<compile_context>
chip_gen: v7x
topology: tpu7x:2x2x1
jax: 0.10.0
libtpu: 0.0.40
codegen_flags: <defaults>
</compile_context>

<pallas_src>
import functools

import jax
import jax.numpy as jnp
from jax.experimental import pallas as pl
from jax.experimental.pallas import tpu as pltpu

# ----------------------------------------------------------------------------- hps
HPS = dict(
    vocab_size=16,
    embed_size=32,          # hps.embed_size
    n_mels=8,               # hps.n_mels
    n_fft=30,               # -> mag dim = 1 + n_fft//2 = 16
    K_encoder=4,            # hps.K_encoder
    K_decoder=4,            # hps.K_decoder
    prenet_size=(32,),      # hps.prenet_size[0]
    reduction_factor=2,     # hps.reduction_factor
    num_highway=4,
)

EPS_BN = 1e-5


# ============================================================================ helpers
def _vmem_spec(shape):
    nd = len(shape)
    return pl.BlockSpec(shape, lambda i, _nd=nd: (0,) * _nd)


def _call_full(kernel, args, out_shape_2d):
    """Single-block pallas_call: every operand is a full-array VMEM tile (shapes are tiny)."""
    in_specs = [_vmem_spec(a.shape) for a in args]
    return pl.pallas_call(
        kernel,
        out_shape=jax.ShapeDtypeStruct(out_shape_2d, jnp.float32),
        grid=(1,),
        in_specs=in_specs,
        out_specs=_vmem_spec(out_shape_2d),
        compiler_params=pltpu.CompilerParams(dimension_semantics=("arbitrary",)),
    )(*args)


def _gru_cell(gi, h, whh, bhh, H):
    """PyTorch GRU cell (gate order r, z, n) from precomputed input gates gi = x@Wih+bih."""
    gh = jnp.dot(h, whh, preferred_element_type=jnp.float32) + bhh
    r = jax.nn.sigmoid(gi[:, 0 * H:1 * H] + gh[:, 0 * H:1 * H])
    z = jax.nn.sigmoid(gi[:, 1 * H:2 * H] + gh[:, 1 * H:2 * H])
    n = jnp.tanh(gi[:, 2 * H:3 * H] + r * gh[:, 2 * H:3 * H])
    return (1.0 - z) * n + z * h


# ============================================================================ kernels
# ---- plain linear (used for gate-input / memory / output projections) --------------
def _linear_kernel(x_ref, w_ref, b_ref, o_ref):
    o_ref[...] = jnp.dot(x_ref[...], w_ref[...],
                         preferred_element_type=jnp.float32) + b_ref[...]


def pallas_linear(x, w, b):
    M, _ = x.shape
    N = w.shape[1]
    return _call_full(_linear_kernel, [x, w, b.reshape(1, N)], (M, N))


# ---- fused 2-layer prenet (fc1+relu, fc2+relu) --------------------------------------
def _prenet_kernel(x_ref, w1_ref, b1_ref, w2_ref, b2_ref, o_ref):
    h = jnp.maximum(jnp.dot(x_ref[...], w1_ref[...],
                            preferred_element_type=jnp.float32) + b1_ref[...], 0.0)
    # TODO(synk): prenet dropout omitted (treated as rate 0).
    o_ref[...] = jnp.maximum(jnp.dot(h, w2_ref[...],
                                     preferred_element_type=jnp.float32) + b2_ref[...], 0.0)


def prenet(x, p):
    B, T, D = x.shape
    d1 = p["fc1"]["w"].shape[1]
    d2 = p["fc2"]["w"].shape[1]
    y = _call_full(_prenet_kernel,
                   [x.reshape(B * T, D),
                    p["fc1"]["w"], p["fc1"]["b"].reshape(1, d1),
                    p["fc2"]["w"], p["fc2"]["b"].reshape(1, d2)],
                   (B * T, d2))
    return y.reshape(B, T, d2)


# ---- fused conv bank (k=1..K) + BN(batch stats) + ReLU + maxpool(k=2) + concat ------
def _conv_bank_kernel(*refs, B, T, Cin, K, Hh, eps):
    xp_ref = refs[0]            # (B, T + 2*(K//2), Cin)  zero-padded input
    o_ref = refs[-1]            # (B*T, K*Hh)
    prefs = refs[1:-1]          # per k: w (k*Cin,Hh), b (1,Hh), gamma (1,Hh), beta (1,Hh)
    p_max = K // 2

    acc = [[None] * B for _ in range(K)]
    scale = [None] * K
    shift = [None] * K

    # conv accumulation via k shifted-slice matmuls (no im2col in HBM)
    for kidx in range(K):
        kk = kidx + 1
        w_ref, b_ref, _, _ = prefs[4 * kidx: 4 * kidx + 4]
        off = p_max - kk // 2
        for b in range(B):
            a = jnp.zeros((T, Hh), jnp.float32)
            for i in range(kk):
                a = a + jnp.dot(xp_ref[b, pl.ds(off + i, T), :],
                                w_ref[i * Cin:(i + 1) * Cin, :],
                                preferred_element_type=jnp.float32)
            acc[kidx][b] = a + b_ref[...]

    # per-bank batch-norm statistics over all B*T positions (training-mode batch stats)
    n = float(B * T)
    for kidx in range(K):
        _, _, g_ref, be_ref = prefs[4 * kidx: 4 * kidx + 4]
        mean = sum(jnp.sum(a, axis=0, keepdims=True) for a in acc[kidx]) / n
        var = sum(jnp.sum((a - mean) ** 2, axis=0, keepdims=True) for a in acc[kidx]) / n
        s = jax.lax.rsqrt(var + eps) * g_ref[...]
        scale[kidx] = s
        shift[kidx] = be_ref[...] - mean * s

    # normalize + ReLU + maxpool(k=2, stride 1, 'same') + lane-dense concat store
    for b in range(B):
        ys = []
        for kidx in range(K):
            y = jnp.maximum(acc[kidx][b] * scale[kidx] + shift[kidx], 0.0)
            pooled = jnp.concatenate([y[0:1], jnp.maximum(y[1:], y[:-1])], axis=0)
            ys.append(pooled)
        o_ref[b * T:(b + 1) * T, :] = jnp.concatenate(ys, axis=-1)


def pallas_conv_bank(xp, bank_p, bank_bn_p, *, B, T, Cin, K, Hh):
    args = [xp]
    for k in range(K):
        args += [bank_p[k]["w"], bank_p[k]["b"].reshape(1, Hh),
                 bank_bn_p[k]["g"].reshape(1, Hh), bank_bn_p[k]["b"].reshape(1, Hh)]
    kern = functools.partial(_conv_bank_kernel, B=B, T=T, Cin=Cin, K=K, Hh=Hh, eps=EPS_BN)
    return _call_full(kern, args, (B * T, K * Hh))


# ---- fused conv projection (k=3) + BN + optional ReLU + optional residual -----------
def _conv_proj_kernel(xp_ref, w_ref, b_ref, g_ref, be_ref, *rest,
                      B, T, Cin, k, relu, eps, has_res):
    if has_res:
        res_ref, o_ref = rest
    else:
        (o_ref,) = rest
    Cout = w_ref.shape[1]

    accs = []
    for b in range(B):
        a = jnp.zeros((T, Cout), jnp.float32)
        for i in range(k):
            a = a + jnp.dot(xp_ref[b, pl.ds(i, T), :],
                            w_ref[i * Cin:(i + 1) * Cin, :],
                            preferred_element_type=jnp.float32)
        accs.append(a + b_ref[...])

    n = float(B * T)
    mean = sum(jnp.sum(a, axis=0, keepdims=True) for a in accs) / n
    var = sum(jnp.sum((a - mean) ** 2, axis=0, keepdims=True) for a in accs) / n
    scale = jax.lax.rsqrt(var + eps) * g_ref[...]
    shift = be_ref[...] - mean * scale

    for b in range(B):
        y = accs[b] * scale + shift
        if relu:
            y = jnp.maximum(y, 0.0)
        if has_res:
            y = y + res_ref[b * T:(b + 1) * T, :]
        o_ref[b * T:(b + 1) * T, :] = y


def pallas_conv_proj(xp, conv_p, bn_p, *, k, relu, res, B, T):
    Cin = xp.shape[-1]
    Cout = conv_p["w"].shape[1]
    args = [xp, conv_p["w"], conv_p["b"].reshape(1, Cout),
            bn_p["g"].reshape(1, Cout), bn_p["b"].reshape(1, Cout)]
    if res is not None:
        args.append(res)
    kern = functools.partial(_conv_proj_kernel, B=B, T=T, Cin=Cin, k=k,
                             relu=relu, eps=EPS_BN, has_res=res is not None)
    return _call_full(kern, args, (B * T, Cout))


# ---- fused highway stack (optional pre-projection + num_highway layers) -------------
def _highway_stack_kernel(x_ref, *refs, L, has_pre):
    if has_pre:
        wp_ref, bp_ref = refs[0], refs[1]
        refs = refs[2:]
    wh_ref, bh_ref, wt_ref, bt_ref, o_ref = refs
    x = x_ref[...]
    if has_pre:
        x = jnp.dot(x, wp_ref[...], preferred_element_type=jnp.float32) + bp_ref[...]
    for l in range(L):
        h = jnp.maximum(jnp.dot(x, wh_ref[l], preferred_element_type=jnp.float32)
                        + bh_ref[l], 0.0)
        t = jax.nn.sigmoid(jnp.dot(x, wt_ref[l], preferred_element_type=jnp.float32)
                           + bt_ref[l])
        x = h * t + x * (1.0 - t)
    o_ref[...] = x


def pallas_highway_stack(x, pre_p, hw_p):
    M = x.shape[0]
    L, _, D = hw_p["wh"].shape
    args = [x]
    if pre_p is not None:
        args += [pre_p["w"], pre_p["b"].reshape(1, D)]
    args += [hw_p["wh"], hw_p["bh"], hw_p["wt"], hw_p["bt"]]
    kern = functools.partial(_highway_stack_kernel, L=L, has_pre=pre_p is not None)
    return _call_full(kern, args, (M, D))


# ---- fused bidirectional GRU over time (one pallas_call, state in VMEM scratch) -----
def _bigru_kernel(gif_ref, gib_ref, whhf_ref, bhhf_ref, whhb_ref, bhhb_ref,
                  of_ref, ob_ref, hf_sc, hb_sc, *, H):
    @pl.when(pl.program_id(0) == 0)
    def _():
        hf_sc[...] = jnp.zeros_like(hf_sc)
        hb_sc[...] = jnp.zeros_like(hb_sc)

    gif = gif_ref[0]                               # (B, 6H) gate inputs at time t
    gib = gib_ref[0]                               # (B, 6H) gate inputs at time T-1-t
    hf = _gru_cell(gif[:, :3 * H], hf_sc[...], whhf_ref[...], bhhf_ref[...], H)
    hb = _gru_cell(gib[:, 3 * H:], hb_sc[...], whhb_ref[...], bhhb_ref[...], H)
    hf_sc[...] = hf
    hb_sc[...] = hb
    of_ref[0] = hf
    ob_ref[0] = hb


def pallas_bigru(gi, whh_f, bhh_f, whh_b, bhh_b):
    T, B, H6 = gi.shape
    H = whh_f.shape[0]

    def idx_f(t):
        return (t, 0, 0)

    def idx_b(t):
        return (T - 1 - t, 0, 0)

    of, ob = pl.pallas_call(
        functools.partial(_bigru_kernel, H=H),
        out_shape=(jax.ShapeDtypeStruct((T, B, H), jnp.float32),
                   jax.ShapeDtypeStruct((T, B, H), jnp.float32)),
        grid=(T,),
        in_specs=[pl.BlockSpec((1, B, H6), idx_f),
                  pl.BlockSpec((1, B, H6), idx_b),
                  pl.BlockSpec((H, 3 * H), lambda t: (0, 0)),
                  pl.BlockSpec((1, 3 * H), lambda t: (0, 0)),
                  pl.BlockSpec((H, 3 * H), lambda t: (0, 0)),
                  pl.BlockSpec((1, 3 * H), lambda t: (0, 0))],
        out_specs=(pl.BlockSpec((1, B, H), idx_f),
                   pl.BlockSpec((1, B, H), idx_b)),
        scratch_shapes=[pltpu.VMEM((B, H), jnp.float32),
                        pltpu.VMEM((B, H), jnp.float32)],
        compiler_params=pltpu.CompilerParams(dimension_semantics=("arbitrary",)),
    )(gi, gi, whh_f, bhh_f.reshape(1, 3 * H), whh_b, bhh_b.reshape(1, 3 * H))
    return of, ob


# ---- fused attention-RNN loop (GRU cell + Bahdanau attention per decoder step) ------
def _attn_rnn_kernel(gi_ref, whh_ref, bhh_ref, wq_ref, u_ref, v_ref, mem_ref, mask_ref,
                     out_ref, attn_ref, h_sc, *, H):
    @pl.when(pl.program_id(0) == 0)
    def _():
        h_sc[...] = jnp.zeros_like(h_sc)

    hn = _gru_cell(gi_ref[0], h_sc[...], whh_ref[...], bhh_ref[...], H)
    h_sc[...] = hn

    q = jnp.dot(hn, wq_ref[...], preferred_element_type=jnp.float32)      # (B, A)
    e = jnp.tanh(q[:, None, :] + u_ref[...])                              # (B, S, A)
    scores = jnp.sum(e * v_ref[...][None, :, :], axis=-1)                 # (B, S)
    mask = mask_ref[...]
    scores = jnp.where(mask > 0.5, scores, -1e30)
    scores = scores - jnp.max(scores, axis=-1, keepdims=True)
    w = jnp.exp(scores) * mask
    denom = jnp.maximum(jnp.sum(w, axis=-1, keepdims=True), 1e-20)        # guard 0/0
    a = w / denom
    c = jnp.sum(a[:, :, None] * mem_ref[...], axis=1)                     # (B, E)

    out_ref[0] = jnp.concatenate([hn, c], axis=-1)                        # (B, H+E)
    attn_ref[0] = a


def attention_rnn(h, memory, text_length, p):
    B, T, I = h.shape
    S, E = memory.shape[1], memory.shape[2]
    H = p["gru"]["whh"].shape[0]
    A = p["wq"].shape[1]

    gi = pallas_linear(h.reshape(B * T, I), p["gru"]["wih"], p["gru"]["bih"])
    gi = gi.reshape(B, T, 3 * H).transpose(1, 0, 2)                       # (T, B, 3H)
    u = pallas_linear(memory.reshape(B * S, E), p["wm"], p["bm"]).reshape(B, S, A)
    mask = (jnp.arange(S, dtype=jnp.int32)[None, :] < text_length[:, None]).astype(jnp.float32)

    outs, attns = pl.pallas_call(
        functools.partial(_attn_rnn_kernel, H=H),
        out_shape=(jax.ShapeDtypeStruct((T, B, H + E), jnp.float32),
                   jax.ShapeDtypeStruct((T, B, S), jnp.float32)),
        grid=(T,),
        in_specs=[pl.BlockSpec((1, B, 3 * H), lambda t: (t, 0, 0)),
                  pl.BlockSpec((H, 3 * H), lambda t: (0, 0)),
                  pl.BlockSpec((1, 3 * H), lambda t: (0, 0)),
                  pl.BlockSpec((H, A), lambda t: (0, 0)),
                  pl.BlockSpec((B, S, A), lambda t: (0, 0, 0)),
                  pl.BlockSpec((1, A), lambda t: (0, 0)),
                  pl.BlockSpec((B, S, E), lambda t: (0, 0, 0)),
                  pl.BlockSpec((B, S), lambda t: (0, 0))],
        out_specs=(pl.BlockSpec((1, B, H + E), lambda t: (t, 0, 0)),
                   pl.BlockSpec((1, B, S), lambda t: (t, 0, 0))),
        scratch_shapes=[pltpu.VMEM((B, H), jnp.float32)],
        compiler_params=pltpu.CompilerParams(dimension_semantics=("arbitrary",)),
    )(gi, p["gru"]["whh"], p["gru"]["bhh"].reshape(1, 3 * H),
      p["wq"], u, p["v"], memory, mask)
    return outs.transpose(1, 0, 2), attns.transpose(1, 0, 2)


# ---- fused decoder RNN (GRU1 + residual + GRU2 + residual + output projection) ------
def _dec_rnn_kernel(x_ref, gi1_ref, whh1_ref, bhh1_ref, wih2_ref, bih2_ref,
                    whh2_ref, bhh2_ref, wp_ref, bp_ref, o_ref, s1_sc, s2_sc, *, D):
    @pl.when(pl.program_id(0) == 0)
    def _():
        s1_sc[...] = jnp.zeros_like(s1_sc)
        s2_sc[...] = jnp.zeros_like(s2_sc)

    x1 = x_ref[0]                                                         # (B, D)
    h1 = _gru_cell(gi1_ref[0], s1_sc[...], whh1_ref[...], bhh1_ref[...], D)
    s1_sc[...] = h1
    x2 = x1 + h1
    gi2 = jnp.dot(x2, wih2_ref[...], preferred_element_type=jnp.float32) + bih2_ref[...]
    h2 = _gru_cell(gi2, s2_sc[...], whh2_ref[...], bhh2_ref[...], D)
    s2_sc[...] = h2
    z = x2 + h2
    o_ref[0] = jnp.dot(z, wp_ref[...], preferred_element_type=jnp.float32) + bp_ref[...]


def decoder_rnn(h, p, r, n_mels):
    B, T, D = h.shape
    RN = p["proj"]["w"].shape[1]
    gi1 = pallas_linear(h.reshape(B * T, D), p["gru1"]["wih"], p["gru1"]["bih"])
    gi1 = gi1.reshape(B, T, 3 * D).transpose(1, 0, 2)                     # (T, B, 3D)
    xt = h.transpose(1, 0, 2)                                             # (T, B, D)

    out = pl.pallas_call(
        functools.partial(_dec_rnn_kernel, D=D),
        out_shape=jax.ShapeDtypeStruct((T, B, RN), jnp.float32),
        grid=(T,),
        in_specs=[pl.BlockSpec((1, B, D), lambda t: (t, 0, 0)),
                  pl.BlockSpec((1, B, 3 * D), lambda t: (t, 0, 0)),
                  pl.BlockSpec((D, 3 * D), lambda t: (0, 0)),
                  pl.BlockSpec((1, 3 * D), lambda t: (0, 0)),
                  pl.BlockSpec((D, 3 * D), lambda t: (0, 0)),
                  pl.BlockSpec((1, 3 * D), lambda t: (0, 0)),
                  pl.BlockSpec((D, 3 * D), lambda t: (0, 0)),
                  pl.BlockSpec((1, 3 * D), lambda t: (0, 0)),
                  pl.BlockSpec((D, RN), lambda t: (0, 0)),
                  pl.BlockSpec((1, RN), lambda t: (0, 0))],
        out_specs=pl.BlockSpec((1, B, RN), lambda t: (t, 0, 0)),
        scratch_shapes=[pltpu.VMEM((B, D), jnp.float32),
                        pltpu.VMEM((B, D), jnp.float32)],
        compiler_params=pltpu.CompilerParams(dimension_semantics=("arbitrary",)),
    )(xt, gi1, p["gru1"]["whh"], p["gru1"]["bhh"].reshape(1, 3 * D),
      p["gru2"]["wih"], p["gru2"]["bih"].reshape(1, 3 * D),
      p["gru2"]["whh"], p["gru2"]["bhh"].reshape(1, 3 * D),
      p["proj"]["w"], p["proj"]["b"].reshape(1, RN))

    return out.transpose(1, 0, 2).reshape(B, T * r, n_mels)


# ============================================================================ modules
def binary_mask(x, lengths):
    T = x.shape[1]
    m = (jnp.arange(T, dtype=jnp.int32)[None, :] < lengths[:, None]).astype(x.dtype)
    return m[:, :, None]


def cbhg(x, p, K, input_size, hidden_size):
    B, T, C = x.shape
    Hh = hidden_size
    p_max = K // 2

    # conv bank (k=1..K) + BN + ReLU + maxpool(k=2) + concat, all fused
    xp = jnp.pad(x, ((0, 0), (p_max, p_max), (0, 0)))
    y = pallas_conv_bank(xp, p["bank"], p["bank_bn"], B=B, T=T, Cin=C, K=K, Hh=Hh)
    y = y.reshape(B, T, K * Hh)

    # conv projections (k=3) + BN (+ReLU / +residual), fused per projection
    yp = jnp.pad(y, ((0, 0), (1, 1), (0, 0)))
    y1 = pallas_conv_proj(yp, p["proj1"], p["proj1_bn"], k=3, relu=True, res=None, B=B, T=T)
    yp2 = jnp.pad(y1.reshape(B, T, Hh), ((0, 0), (1, 1), (0, 0)))
    y2 = pallas_conv_proj(yp2, p["proj2"], p["proj2_bn"], k=3, relu=False,
                          res=x.reshape(B * T, C), B=B, T=T)               # (B*T, C)

    # (optional pre-highway) + num_highway fused highway layers
    hwy = pallas_highway_stack(y2, p["pre_highway"], p["highway"])         # (B*T, Hh)

    # bidirectional GRU: one lane-dense gate-input projection + one fused recurrence
    gi = pallas_linear(hwy, p["bigru"]["wih"], p["bigru"]["bih"])          # (B*T, 6Hh)
    gi = gi.reshape(B, T, 6 * Hh).transpose(1, 0, 2)                       # (T, B, 6Hh)
    of, ob = pallas_bigru(gi, p["bigru"]["whh_f"], p["bigru"]["bhh_f"],
                          p["bigru"]["whh_b"], p["bigru"]["bhh_b"])
    out = jnp.concatenate([of, ob], axis=-1).transpose(1, 0, 2)            # (B, T, 2Hh)
    return out


def encoder(text, text_length, p):
    y = jnp.take(p["embed"], text, axis=0)                                 # (B, S, E)
    y = prenet(y, p["prenet"])
    y = binary_mask(y, text_length) * y
    out = cbhg(y, p["cbhg"], HPS["K_encoder"], HPS["embed_size"] // 2, HPS["embed_size"] // 2)
    out = binary_mask(out, text_length) * out
    return out


def decoder_mel(frames, memory, text_length, p, frame_length=None, mask=False):
    h = prenet(frames, p["prenet"])
    h, a = attention_rnn(h, memory, text_length, p["attn"])
    out = decoder_rnn(h, p["dec"], HPS["reduction_factor"], HPS["n_mels"])
    if mask:
        out = binary_mask(out, frame_length) * out
    return out, a


def decoder_mag(x, p, frame_length=None, mask=False):
    B, T, _ = x.shape
    y = cbhg(x, p["cbhg"], HPS["K_decoder"], HPS["n_mels"], HPS["embed_size"] // 2)
    out = pallas_linear(y.reshape(B * T, y.shape[-1]), p["proj"]["w"], p["proj"]["b"])
    out = out.reshape(B, T, 1 + HPS["n_fft"] // 2)
    if mask:
        out = binary_mask(out, frame_length) * out
    return out


@jax.jit
def tacotron_forward(params, text, frames, text_length, frame_length):
    """Training-mode Tacotron forward (teacher forcing)."""
    text_embed = encoder(text, text_length, params["encoder"])
    mel_pred, attn = decoder_mel(frames, text_embed, text_length, params["decoder_mel"],
                                 frame_length=frame_length, mask=True)
    mag_pred = decoder_mag(mel_pred, params["decoder_mag"],
                           frame_length=frame_length, mask=True)
    return {"mel": mel_pred, "mag": mag_pred, "attn": attn}


# ============================================================================ params
class KeyGen:
    def __init__(self, key):
        self.key = key

    def __call__(self):
        self.key, sub = jax.random.split(self.key)
        return sub


def _normal(key, shape, scale=0.1):
    return scale * jax.random.normal(key, shape, dtype=jnp.float32)


def init_linear(kg, din, dout):
    return {"w": _normal(kg(), (din, dout)), "b": jnp.zeros((dout,), jnp.float32)}


def init_conv(kg, k, cin, cout):
    return {"w": _normal(kg(), (k * cin, cout)), "b": jnp.zeros((cout,), jnp.float32)}


def init_bn(c):
    return {"g": jnp.ones((c,), jnp.float32), "b": jnp.zeros((c,), jnp.float32)}


def init_gru(kg, din, dh):
    return {"wih": _normal(kg(), (din, 3 * dh)), "bih": jnp.zeros((3 * dh,), jnp.float32),
            "whh": _normal(kg(), (dh, 3 * dh)), "bhh": jnp.zeros((3 * dh,), jnp.float32)}


def init_bigru(kg, din, dh):
    f = init_gru(kg, din, dh)
    b = init_gru(kg, din, dh)
    return {"wih": jnp.concatenate([f["wih"], b["wih"]], axis=1),          # (din, 6H)
            "bih": jnp.concatenate([f["bih"], b["bih"]], axis=0),          # (6H,)
            "whh_f": f["whh"], "bhh_f": f["bhh"],
            "whh_b": b["whh"], "bhh_b": b["bhh"]}


def init_highway_stack(kg, d, L):
    return {"wh": jnp.stack([_normal(kg(), (d, d)) for _ in range(L)]),
            "bh": jnp.zeros((L, 1, d), jnp.float32),
            "wt": jnp.stack([_normal(kg(), (d, d)) for _ in range(L)]),
            "bt": -1.0 * jnp.ones((L, 1, d), jnp.float32)}


def init_prenet(kg, din, dhid, dout):
    return {"fc1": init_linear(kg, din, dhid), "fc2": init_linear(kg, dhid, dout)}


def init_cbhg(kg, K, input_size, hidden_size):
    return {
        "bank": [init_conv(kg, k, input_size, hidden_size) for k in range(1, K + 1)],
        "bank_bn": [init_bn(hidden_size) for _ in range(K)],
        "proj1": init_conv(kg, 3, K * hidden_size, hidden_size),
        "proj1_bn": init_bn(hidden_size),
        "proj2": init_conv(kg, 3, hidden_size, input_size),
        "proj2_bn": init_bn(input_size),
        "pre_highway": (init_linear(kg, input_size, hidden_size)
                        if input_size != hidden_size else None),
        "highway": init_highway_stack(kg, hidden_size, HPS["num_highway"]),
        "bigru": init_bigru(kg, hidden_size, hidden_size),
    }


def init_attention_rnn(kg, din, dh, de):
    A = de
    return {"gru": init_gru(kg, din, dh),
            "wm": _normal(kg(), (de, A)), "bm": jnp.zeros((A,), jnp.float32),
            "wq": _normal(kg(), (dh, A)),
            "v": _normal(kg(), (1, A))}


def init_decoder_rnn(kg, din, n_mels, r):
    return {"gru1": init_gru(kg, din, din),
            "gru2": init_gru(kg, din, din),
            "proj": init_linear(kg, din, r * n_mels)}


def init_params(key):
    kg = KeyGen(key)
    E = HPS["embed_size"]
    enc = {
        "embed": _normal(kg(), (HPS["vocab_size"], E)),
        "prenet": init_prenet(kg, E, HPS["prenet_size"][0], E // 2),
        "cbhg": init_cbhg(kg, HPS["K_encoder"], E // 2, E // 2),
    }
    dec_mel = {
        "prenet": init_prenet(kg, HPS["n_mels"], HPS["prenet_size"][0], E // 2),
        "attn": init_attention_rnn(kg, E // 2, E, E),
        "dec": init_decoder_rnn(kg, E + E, HPS["n_mels"], HPS["reduction_factor"]),
    }
    dec_mag = {
        "cbhg": init_cbhg(kg, HPS["K_decoder"], HPS["n_mels"], E // 2),
        "proj": init_linear(kg, E, 1 + HPS["n_fft"] // 2),
    }
    return {"encoder": enc, "decoder_mel": dec_mel, "decoder_mag": dec_mag}


# ============================================================================ main
if __name__ == "__main__":
    root = jax.random.PRNGKey(0)
    k_param, k_text, k_frames = jax.random.split(root, 3)

    params = init_params(k_param)

    B, S = 2, 8
    r = HPS["reduction_factor"]
    T_dec = 4                                  # decoder steps -> frame_length = T_dec * r

    text = jax.random.randint(k_text, (B, S), 0, HPS["vocab_size"], dtype=jnp.int32)
    frames = jax.random.normal(k_frames, (B, T_dec, HPS["n_mels"]), dtype=jnp.float32)
    text_length = jnp.array([S, S - 2], dtype=jnp.int32)
    frame_length = jnp.array([T_dec * r, T_dec * r - 2], dtype=jnp.int32)

    out = tacotron_forward(params, text, frames, text_length, frame_length)
    out = jax.block_until_ready(out)

    assert out["mel"].shape == (B, T_dec * r, HPS["n_mels"])
    assert out["mag"].shape == (B, T_dec * r, 1 + HPS["n_fft"] // 2)
    assert out["attn"].shape == (B, T_dec, S)
    assert bool(jnp.all(jnp.isfinite(out["mel"])))
    assert bool(jnp.all(jnp.isfinite(out["mag"])))
    assert bool(jnp.all(jnp.isfinite(out["attn"])))

    print("KERNEL_OK")
</pallas_src>

<mosaic_0001>
module attributes {stable_mosaic.version = 11 : i64} {
  func.func @_prenet_kernel(%arg0: i32, %arg1: memref<8x8xf32, #tpu.memory_space<vmem>>, %arg2: memref<8x32xf32, #tpu.memory_space<vmem>>, %arg3: memref<1x32xf32, #tpu.memory_space<vmem>>, %arg4: memref<32x16xf32, #tpu.memory_space<vmem>>, %arg5: memref<1x16xf32, #tpu.memory_space<vmem>>, %arg6: memref<8x16xf32, #tpu.memory_space<vmem>>) attributes {dimension_semantics = [#tpu.dimension_semantics<arbitrary>], iteration_bounds = array<i64: 1>, scalar_prefetch = 0 : i64, scratch_operands = 0 : i64, tpu.core_type = #tpu.core_type<tc>, window_params = [{pipeline_mode = #tpu.pipeline_mode<synchronous>, transform_indices = @transform_0, window_bounds = array<i64: 8, 8>}, {pipeline_mode = #tpu.pipeline_mode<synchronous>, transform_indices = @transform_1, window_bounds = array<i64: 8, 32>}, {pipeline_mode = #tpu.pipeline_mode<synchronous>, transform_indices = @transform_2, window_bounds = array<i64: 1, 32>}, {pipeline_mode = #tpu.pipeline_mode<synchronous>, transform_indices = @transform_3, window_bounds = array<i64: 32, 16>}, {pipeline_mode = #tpu.pipeline_mode<synchronous>, transform_indices = @transform_4, window_bounds = array<i64: 1, 16>}, {pipeline_mode = #tpu.pipeline_mode<synchronous>, transform_indices = @transform_5, window_bounds = array<i64: 8, 16>}]} {
    %c0 = arith.constant 0 : index
    %c0_0 = arith.constant 0 : index
    %0 = vector.load %arg1[%c0, %c0_0] : memref<8x8xf32, #tpu.memory_space<vmem>>, vector<8x8xf32>
    %c0_1 = arith.constant 0 : index
    %c0_2 = arith.constant 0 : index
    %1 = vector.load %arg2[%c0_1, %c0_2] : memref<8x32xf32, #tpu.memory_space<vmem>>, vector<8x32xf32>
    %cst = arith.constant dense<0.000000e+00> : vector<8x32xf32>
    %2 = tpu.matmul %0, %1, %cst {dimension_numbers = #tpu.dot_dimension_numbers<[1], [0], [0], [1], [0, 0, 1, 1], [], []>} : vector<8x8xf32>, vector<8x32xf32>, vector<8x32xf32> -> vector<8x32xf32>
    %c0_3 = arith.constant 0 : index
    %c0_4 = arith.constant 0 : index
    %3 = vector.load %arg3[%c0_3, %c0_4] : memref<1x32xf32, #tpu.memory_space<vmem>>, vector<1x32xf32>
    %4 = vector.broadcast %3 : vector<1x32xf32> to vector<8x32xf32>
    %5 = arith.addf %2, %4 : vector<8x32xf32>
    %cst_5 = arith.constant 0.000000e+00 : f32
    %6 = vector.broadcast %cst_5 : f32 to vector<8x32xf32>
    %7 = arith.maximumf %5, %6 : vector<8x32xf32>
    %c0_6 = arith.constant 0 : index
    %c0_7 = arith.constant 0 : index
    %8 = vector.load %arg4[%c0_6, %c0_7] : memref<32x16xf32, #tpu.memory_space<vmem>>, vector<32x16xf32>
    %cst_8 = arith.constant dense<0.000000e+00> : vector<8x16xf32>
    %9 = tpu.matmul %7, %8, %cst_8 {dimension_numbers = #tpu.dot_dimension_numbers<[1], [0], [0], [1], [0, 0, 1, 1], [], []>} : vector<8x32xf32>, vector<32x16xf32>, vector<8x16xf32> -> vector<8x16xf32>
    %c0_9 = arith.constant 0 : index
    %c0_10 = arith.constant 0 : index
    %10 = vector.load %arg5[%c0_9, %c0_10] : memref<1x16xf32, #tpu.memory_space<vmem>>, vector<1x16xf32>
    %11 = vector.broadcast %10 : vector<1x16xf32> to vector<8x16xf32>
    %12 = arith.addf %9, %11 : vector<8x16xf32>
    %cst_11 = arith.constant 0.000000e+00 : f32
    %13 = vector.broadcast %cst_11 : f32 to vector<8x16xf32>
    %14 = arith.maximumf %12, %13 : vector<8x16xf32>
    %c0_12 = arith.constant 0 : index
    %c0_13 = arith.constant 0 : index
    %15 = vector.load %arg6[%c0_12, %c0_13] : memref<8x16xf32, #tpu.memory_space<vmem>>, vector<8x16xf32>
    tpu.vector_store %arg6[%c0_12, %c0_13], %14 {strides = array<i32>} : memref<8x16xf32, #tpu.memory_space<vmem>>, vector<8x16xf32>,
    return
  }
  func.func @transform_0(%arg0: i32) -> (i32, i32) {
    %c0_i32 = arith.constant 0 : i32
    %c0_i32_0 = arith.constant 0 : i32
    %c0_i32_1 = arith.constant 0 : i32
    return %c0_i32, %c0_i32_0 : i32, i32
  }
  func.func @transform_1(%arg0: i32) -> (i32, i32) {
    %c0_i32 = arith.constant 0 : i32
    %c0_i32_0 = arith.constant 0 : i32
    %c0_i32_1 = arith.constant 0 : i32
    return %c0_i32, %c0_i32_0 : i32, i32
  }
  func.func @transform_2(%arg0: i32) -> (i32, i32) {
    %c0_i32 = arith.constant 0 : i32
    %c0_i32_0 = arith.constant 0 : i32
    %c0_i32_1 = arith.constant 0 : i32
    return %c0_i32, %c0_i32_0 : i32, i32
  }
  func.func @transform_3(%arg0: i32) -> (i32, i32) {
    %c0_i32 = arith.constant 0 : i32
    %c0_i32_0 = arith.constant 0 : i32
    %c0_i32_1 = arith.constant 0 : i32
    return %c0_i32, %c0_i32_0 : i32, i32
  }
  func.func @transform_4(%arg0: i32) -> (i32, i32) {
    %c0_i32 = arith.constant 0 : i32
    %c0_i32_0 = arith.constant 0 : i32
    %c0_i32_1 = arith.constant 0 : i32
    return %c0_i32, %c0_i32_0 : i32, i32
  }
  func.func @transform_5(%arg0: i32) -> (i32, i32) {
    %c0_i32 = arith.constant 0 : i32
    %c0_i32_0 = arith.constant 0 : i32
    %c0_i32_1 = arith.constant 0 : i32
    return %c0_i32, %c0_i32_0 : i32, i32
  }
}

module attributes {stable_mosaic.version = 11 : i64} {
  func.func @_linear_kernel(%arg0: i32, %arg1: memref<8x16xf32, #tpu.memory_space<vmem>>, %arg2: memref<16x96xf32, #tpu.memory_space<vmem>>, %arg3: memref<1x96xf32, #tpu.memory_space<vmem>>, %arg4: memref<8x96xf32, #tpu.memory_space<vmem>>) attributes {dimension_semantics = [#tpu.dimension_semantics<arbitrary>], iteration_bounds = array<i64: 1>, scalar_prefetch = 0 : i64, scratch_operands = 0 : i64, tpu.core_type = #tpu.core_type<tc>, window_params = [{pipeline_mode = #tpu.pipeline_mode<synchronous>, transform_indices = @transform_0, window_bounds = array<i64: 8, 16>}, {pipeline_mode = #tpu.pipeline_mode<synchronous>, transform_indices = @transform_1, window_bounds = array<i64: 16, 96>}, {pipeline_mode = #tpu.pipeline_mode<synchronous>, transform_indices = @transform_2, window_bounds = array<i64: 1, 96>}, {pipeline_mode = #tpu.pipeline_mode<synchronous>, transform_indices = @transform_3, window_bounds = array<i64: 8, 96>}]} {
    %c0 = arith.constant 0 : index
    %c0_0 = arith.constant 0 : index
    %0 = vector.load %arg1[%c0, %c0_0] : memref<8x16xf32, #tpu.memory_space<vmem>>, vector<8x16xf32>
    %c0_1 = arith.constant 0 : index
    %c0_2 = arith.constant 0 : index
    %1 = vector.load %arg2[%c0_1, %c0_2] : memref<16x96xf32, #tpu.memory_space<vmem>>, vector<16x96xf32>
    %cst = arith.constant dense<0.000000e+00> : vector<8x96xf32>
    %2 = tpu.matmul %0, %1, %cst {dimension_numbers = #tpu.dot_dimension_numbers<[1], [0], [0], [1], [0, 0, 1, 1], [], []>} : vector<8x16xf32>, vector<16x96xf32>, vector<8x96xf32> -> vector<8x96xf32>
    %c0_3 = arith.constant 0 : index
    %c0_4 = arith.constant 0 : index
    %3 = vector.load %arg3[%c0_3, %c0_4] : memref<1x96xf32, #tpu.memory_space<vmem>>, vector<1x96xf32>
    %4 = vector.broadcast %3 : vector<1x96xf32> to vector<8x96xf32>
    %5 = arith.addf %2, %4 : vector<8x96xf32>
    %c0_5 = arith.constant 0 : index
    %c0_6 = arith.constant 0 : index
    %6 = vector.load %arg4[%c0_5, %c0_6] : memref<8x96xf32, #tpu.memory_space<vmem>>, vector<8x96xf32>
    tpu.vector_store %arg4[%c0_5, %c0_6], %5 {strides = array<i32>} : memref<8x96xf32, #tpu.memory_space<vmem>>, vector<8x96xf32>,
    return
  }
  func.func @transform_0(%arg0: i32) -> (i32, i32) {
    %c0_i32 = arith.constant 0 : i32
    %c0_i32_0 = arith.constant 0 : i32
    %c0_i32_1 = arith.constant 0 : i32
    return %c0_i32, %c0_i32_0 : i32, i32
  }
  func.func @transform_1(%arg0: i32) -> (i32, i32) {
    %c0_i32 = arith.constant 0 : i32
    %c0_i32_0 = arith.constant 0 : i32
    %c0_i32_1 = arith.constant 0 : i32
    return %c0_i32, %c0_i32_0 : i32, i32
  }
  func.func @transform_2(%arg0: i32) -> (i32, i32) {
    %c0_i32 = arith.constant 0 : i32
    %c0_i32_0 = arith.constant 0 : i32
    %c0_i32_1 = arith.constant 0 : i32
    return %c0_i32, %c0_i32_0 : i32, i32
  }
  func.func @transform_3(%arg0: i32) -> (i32, i32) {
    %c0_i32 = arith.constant 0 : i32
    %c0_i32_0 = arith.constant 0 : i32
    %c0_i32_1 = arith.constant 0 : i32
    return %c0_i32, %c0_i32_0 : i32, i32
  }
}

module attributes {stable_mosaic.version = 11 : i64} {
  func.func @_prenet_kernel(%arg0: i32, %arg1: memref<16x32xf32, #tpu.memory_space<vmem>>, %arg2: memref<32x32xf32, #tpu.memory_space<vmem>>, %arg3: memref<1x32xf32, #tpu.memory_space<vmem>>, %arg4: memref<32x16xf32, #tpu.memory_space<vmem>>, %arg5: memref<1x16xf32, #tpu.memory_space<vmem>>, %arg6: memref<16x16xf32, #tpu.memory_space<vmem>>) attributes {dimension_semantics = [#tpu.dimension_semantics<arbitrary>], iteration_bounds = array<i64: 1>, scalar_prefetch = 0 : i64, scratch_operands = 0 : i64, tpu.core_type = #tpu.core_type<tc>, window_params = [{pipeline_mode = #tpu.pipeline_mode<synchronous>, transform_indices = @transform_0, window_bounds = array<i64: 16, 32>}, {pipeline_mode = #tpu.pipeline_mode<synchronous>, transform_indices = @transform_1, window_bounds = array<i64: 32, 32>}, {pipeline_mode = #tpu.pipeline_mode<synchronous>, transform_indices = @transform_2, window_bounds = array<i64: 1, 32>}, {pipeline_mode = #tpu.pipeline_mode<synchronous>, transform_indices = @transform_3, window_bounds = array<i64: 32, 16>}, {pipeline_mode = #tpu.pipeline_mode<synchronous>, transform_indices = @transform_4, window_bounds = array<i64: 1, 16>}, {pipeline_mode = #tpu.pipeline_mode<synchronous>, transform_indices = @transform_5, window_bounds = array<i64: 16, 16>}]} {
    %c0 = arith.constant 0 : index
    %c0_0 = arith.constant 0 : index
    %0 = vector.load %arg1[%c0, %c0_0] : memref<16x32xf32, #tpu.memory_space<vmem>>, vector<16x32xf32>
    %c0_1 = arith.constant 0 : index
    %c0_2 = arith.constant 0 : index
    %1 = vector.load %arg2[%c0_1, %c0_2] : memref<32x32xf32, #tpu.memory_space<vmem>>, vector<32x32xf32>
    %cst = arith.constant dense<0.000000e+00> : vector<16x32xf32>
    %2 = tpu.matmul %0, %1, %cst {dimension_numbers = #tpu.dot_dimension_numbers<[1], [0], [0], [1], [0, 0, 1, 1], [], []>} : vector<16x32xf32>, vector<32x32xf32>, vector<16x32xf32> -> vector<16x32xf32>
    %c0_3 = arith.constant 0 : index
    %c0_4 = arith.constant 0 : index
    %3 = vector.load %arg3[%c0_3, %c0_4] : memref<1x32xf32, #tpu.memory_space<vmem>>, vector<1x32xf32>
    %4 = vector.broadcast %3 : vector<1x32xf32> to vector<16x32xf32>
    %5 = arith.addf %2, %4 : vector<16x32xf32>
    %cst_5 = arith.constant 0.000000e+00 : f32
    %6 = vector.broadcast %cst_5 : f32 to vector<16x32xf32>
    %7 = arith.maximumf %5, %6 : vector<16x32xf32>
    %c0_6 = arith.constant 0 : index
    %c0_7 = arith.constant 0 : index
    %8 = vector.load %arg4[%c0_6, %c0_7] : memref<32x16xf32, #tpu.memory_space<vmem>>, vector<32x16xf32>
    %cst_8 = arith.constant dense<0.000000e+00> : vector<16x16xf32>
    %9 = tpu.matmul %7, %8, %cst_8 {dimension_numbers = #tpu.dot_dimension_numbers<[1], [0], [0], [1], [0, 0, 1, 1], [], []>} : vector<16x32xf32>, vector<32x16xf32>, vector<16x16xf32> -> vector<16x16xf32>
    %c0_9 = arith.constant 0 : index
    %c0_10 = arith.constant 0 : index
    %10 = vector.load %arg5[%c0_9, %c0_10] : memref<1x16xf32, #tpu.memory_space<vmem>>, vector<1x16xf32>
    %11 = vector.broadcast %10 : vector<1x16xf32> to vector<16x16xf32>
    %12 = arith.addf %9, %11 : vector<16x16xf32>
    %cst_11 = arith.constant 0.000000e+00 : f32
    %13 = vector.broadcast %cst_11 : f32 to vector<16x16xf32>
    %14 = arith.maximumf %12, %13 : vector<16x16xf32>
    %c0_12 = arith.constant 0 : index
    %c0_13 = arith.constant 0 : index
    %15 = vector.load %arg6[%c0_12, %c0_13] : memref<16x16xf32, #tpu.memory_space<vmem>>, vector<16x16xf32>
    tpu.vector_store %arg6[%c0_12, %c0_13], %14 {strides = array<i32>} : memref<16x16xf32, #tpu.memory_space<vmem>>, vector<16x16xf32>,
    return
  }
  func.func @transform_0(%arg0: i32) -> (i32, i32) {
    %c0_i32 = arith.constant 0 : i32
    %c0_i32_0 = arith.constant 0 : i32
    %c0_i32_1 = arith.constant 0 : i32
    return %c0_i32, %c0_i32_0 : i32, i32
  }
  func.func @transform_1(%arg0: i32) -> (i32, i32) {
    %c0_i32 = arith.constant 0 : i32
    %c0_i32_0 = arith.constant 0 : i32
    %c0_i32_1 = arith.constant 0 : i32
    return %c0_i32, %c0_i32_0 : i32, i32
  }
  func.func @transform_2(%arg0: i32) -> (i32, i32) {
    %c0_i32 = arith.constant 0 : i32
    %c0_i32_0 = arith.constant 0 : i32
    %c0_i32_1 = arith.constant 0 : i32
    return %c0_i32, %c0_i32_0 : i32, i32
  }
  func.func @transform_3(%arg0: i32) -> (i32, i32) {
    %c0_i32 = arith.constant 0 : i32
    %c0_i32_0 = arith.constant 0 : i32
    %c0_i32_1 = arith.constant 0 : i32
    return %c0_i32, %c0_i32_0 : i32, i32
  }
  func.func @transform_4(%arg0: i32) -> (i32, i32) {
    %c0_i32 = arith.constant 0 : i32
    %c0_i32_0 = arith.constant 0 : i32
    %c0_i32_1 = arith.constant 0 : i32
    return %c0_i32, %c0_i32_0 : i32, i32
  }
  func.func @transform_5(%arg0: i32) -> (i32, i32) {
    %c0_i32 = arith.constant 0 : i32
    %c0_i32_0 = arith.constant 0 : i32
    %c0_i32_1 = arith.constant 0 : i32
    return %c0_i32, %c0_i32_0 : i32, i32
  }
}

module attributes {stable_mosaic.version = 11 : i64} {
  func.func @_conv_proj_kernel(%arg0: i32, %arg1: memref<2x10x64xf32, #tpu.memory_space<vmem>>, %arg2: memref<192x16xf32, #tpu.memory_space<vmem>>, %arg3: memref<1x16xf32, #tpu.memory_space<vmem>>, %arg4: memref<1x16xf32, #tpu.memory_space<vmem>>, %arg5: memref<1x16xf32, #tpu.memory_space<vmem>>, %arg6: memref<16x16xf32, #tpu.memory_space<vmem>>) attributes {dimension_semantics = [#tpu.dimension_semantics<arbitrary>], iteration_bounds = array<i64: 1>, scalar_prefetch = 0 : i64, scratch_operands = 0 : i64, tpu.core_type = #tpu.core_type<tc>, window_params = [{pipeline_mode = #tpu.pipeline_mode<synchronous>, transform_indices = @transform_0, window_bounds = array<i64: 2, 10, 64>}, {pipeline_mode = #tpu.pipeline_mode<synchronous>, transform_indices = @transform_1, window_bounds = array<i64: 192, 16>}, {pipeline_mode = #tpu.pipeline_mode<synchronous>, transform_indices = @transform_2, window_bounds = array<i64: 1, 16>}, {pipeline_mode = #tpu.pipeline_mode<synchronous>, transform_indices = @transform_3, window_bounds = array<i64: 1, 16>}, {pipeline_mode = #tpu.pipeline_mode<synchronous>, transform_indices = @transform_4, window_bounds = array<i64: 1, 16>}, {pipeline_mode = #tpu.pipeline_mode<synchronous>, transform_indices = @transform_5, window_bounds = array<i64: 16, 16>}]} {
    %cst = arith.constant 0.000000e+00 : f32
    %0 = vector.broadcast %cst : f32 to vector<8x16xf32>
    %c0 = arith.constant 0 : index
    %c0_0 = arith.constant 0 : index
    %c0_1 = arith.constant 0 : index
    %1 = vector.load %arg1[%c0, %c0_0, %c0_1] : memref<2x10x64xf32, #tpu.memory_space<vmem>>, vector<1x8x64xf32>
    %2 = vector.shape_cast %1 : vector<1x8x64xf32> to vector<8x64xf32>
    %c0_2 = arith.constant 0 : index
    %c0_3 = arith.constant 0 : index
    %3 = vector.load %arg2[%c0_2, %c0_3] : memref<192x16xf32, #tpu.memory_space<vmem>>, vector<64x16xf32>
    %cst_4 = arith.constant dense<0.000000e+00> : vector<8x16xf32>
    %4 = tpu.matmul %2, %3, %cst_4 {dimension_numbers = #tpu.dot_dimension_numbers<[1], [0], [0], [1], [0, 0, 1, 1], [], []>} : vector<8x64xf32>, vector<64x16xf32>, vector<8x16xf32> -> vector<8x16xf32>
    %5 = arith.addf %0, %4 : vector<8x16xf32>
    %c0_5 = arith.constant 0 : index
    %c1 = arith.constant 1 : index
    %c0_6 = arith.constant 0 : index
    %6 = vector.load %arg1[%c0_5, %c1, %c0_6] : memref<2x10x64xf32, #tpu.memory_space<vmem>>, vector<1x8x64xf32>
    %7 = vector.shape_cast %6 : vector<1x8x64xf32> to vector<8x64xf32>
    %c64 = arith.constant 64 : index
    %c0_7 = arith.constant 0 : index
    %8 = vector.load %arg2[%c64, %c0_7] : memref<192x16xf32, #tpu.memory_space<vmem>>, vector<64x16xf32>
    %cst_8 = arith.constant dense<0.000000e+00> : vector<8x16xf32>
    %9 = tpu.matmul %7, %8, %cst_8 {dimension_numbers = #tpu.dot_dimension_numbers<[1], [0], [0], [1], [0, 0, 1, 1], [], []>} : vector<8x64xf32>, vector<64x16xf32>, vector<8x16xf32> -> vector<8x16xf32>
    %10 = arith.addf %5, %9 : vector<8x16xf32>
    %c0_9 = arith.constant 0 : index
    %c2 = arith.constant 2 : index
    %c0_10 = arith.constant 0 : index
    %11 = vector.load %arg1[%c0_9, %c2, %c0_10] : memref<2x10x64xf32, #tpu.memory_space<vmem>>, vector<1x8x64xf32>
    %12 = vector.shape_cast %11 : vector<1x8x64xf32> to vector<8x64xf32>
    %c128 = arith.constant 128 : index
    %c0_11 = arith.constant 0 : index
    %13 = vector.load %arg2[%c128, %c0_11] : memref<192x16xf32, #tpu.memory_space<vmem>>, vector<64x16xf32>
    %cst_12 = arith.constant dense<0.000000e+00> : vector<8x16xf32>
    %14 = tpu.matmul %12, %13, %cst_12 {dimension_numbers = #tpu.dot_dimension_numbers<[1], [0], [0], [1], [0, 0, 1, 1], [], []>} : vector<8x64xf32>, vector<64x16xf32>, vector<8x16xf32> -> vector<8x16xf32>
    %15 = arith.addf %10, %14 : vector<8x16xf32>
    %c0_13 = arith.constant 0 : index
    %c0_14 = arith.constant 0 : index
    %16 = vector.load %arg3[%c0_13, %c0_14] : memref<1x16xf32, #tpu.memory_space<vmem>>, vector<1x16xf32>
    %17 = vector.broadcast %16 : vector<1x16xf32> to vector<8x16xf32>
    %18 = arith.addf %15, %17 : vector<8x16xf32>
    %cst_15 = arith.constant 0.000000e+00 : f32
    %19 = vector.broadcast %cst_15 : f32 to vector<8x16xf32>
    %c1_16 = arith.constant 1 : index
    %c0_17 = arith.constant 0 : index
    %c0_18 = arith.constant 0 : index
    %20 = vector.load %arg1[%c1_16, %c0_17, %c0_18] : memref<2x10x64xf32, #tpu.memory_space<vmem>>, vector<1x8x64xf32>
    %21 = vector.shape_cast %20 : vector<1x8x64xf32> to vector<8x64xf32>
    %c0_19 = arith.constant 0 : index
    %c0_20 = arith.constant 0 : index
    %22 = vector.load %arg2[%c0_19, %c0_20] : memref<192x16xf32, #tpu.memory_space<vmem>>, vector<64x16xf32>
    %cst_21 = arith.constant dense<0.000000e+00> : vector<8x16xf32>
    %23 = tpu.matmul %21, %22, %cst_21 {dimension_numbers = #tpu.dot_dimension_numbers<[1], [0], [0], [1], [0, 0, 1, 1], [], []>} : vector<8x64xf32>, vector<64x16xf32>, vector<8x16xf32> -> vector<8x16xf32>
    %24 = arith.addf %19, %23 : vector<8x16xf32>
    %c1_22 = arith.constant 1 : index
    %c1_23 = arith.constant 1 : index
    %c0_24 = arith.constant 0 : index
    %25 = vector.load %arg1[%c1_22, %c1_23, %c0_24] : memref<2x10x64xf32, #tpu.memory_space<vmem>>, vector<1x8x64xf32>
    %26 = vector.shape_cast %25 : vector<1x8x64xf32> to vector<8x64xf32>
    %c64_25 = arith.constant 64 : index
    %c0_26 = arith.constant 0 : index
    %27 = vector.load %arg2[%c64_25, %c0_26] : memref<192x16xf32, #tpu.memory_space<vmem>>, vector<64x16xf32>
    %cst_27 = arith.constant dense<0.000000e+00> : vector<8x16xf32>
    %28 = tpu.matmul %26, %27, %cst_27 {dimension_numbers = #tpu.dot_dimension_numbers<[1], [0], [0], [1], [0, 0, 1, 1], [], []>} : vector<8x64xf32>, vector<64x16xf32>, vector<8x16xf32> -> vector<8x16xf32>
    %29 = arith.addf %24, %28 : vector<8x16xf32>
    %c1_28 = arith.constant 1 : index
    %c2_29 = arith.constant 2 : index
    %c0_30 = arith.constant 0 : index
    %30 = vector.load %arg1[%c1_28, %c2_29, %c0_30] : memref<2x10x64xf32, #tpu.memory_space<vmem>>, vector<1x8x64xf32>
    %31 = vector.shape_cast %30 : vector<1x8x64xf32> to vector<8x64xf32>
    %c128_31 = arith.constant 128 : index
    %c0_32 = arith.constant 0 : index
    %32 = vector.load %arg2[%c128_31, %c0_32] : memref<192x16xf32, #tpu.memory_space<vmem>>, vector<64x16xf32>
    %cst_33 = arith.constant dense<0.000000e+00> : vector<8x16xf32>
    %33 = tpu.matmul %31, %32, %cst_33 {dimension_numbers = #tpu.dot_dimension_numbers<[1], [0], [0], [1], [0, 0, 1, 1], [], []>} : vector<8x64xf32>, vector<64x16xf32>, vector<8x16xf32> -> vector<8x16xf32>
    %34 = arith.addf %29, %33 : vector<8x16xf32>
    %c0_34 = arith.constant 0 : index
    %c0_35 = arith.constant 0 : index
    %35 = vector.load %arg3[%c0_34, %c0_35] : memref<1x16xf32, #tpu.memory_space<vmem>>, vector<1x16xf32>
    %36 = vector.broadcast %35 : vector<1x16xf32> to vector<8x16xf32>
    %37 = arith.addf %34, %36 : vector<8x16xf32>
    %cst_36 = arith.constant dense<0.000000e+00> : vector<16xf32>
    %38 = vector.multi_reduction <add>, %18, %cst_36 [0] : vector<8x16xf32> to vector<16xf32>
    %39 = vector.shape_cast %38 : vector<16xf32> to vector<1x16xf32>
    %cst_37 = arith.constant 0.000000e+00 : f32
    %40 = vector.broadcast %cst_37 : f32 to vector<1x16xf32>
    %41 = arith.addf %40, %39 : vector<1x16xf32>
    %cst_38 = arith.constant dense<0.000000e+00> : vector<16xf32>
    %42 = vector.multi_reduction <add>, %37, %cst_38 [0] : vector<8x16xf32> to vector<16xf32>
    %43 = vector.shape_cast %42 : vector<16xf32> to vector<1x16xf32>
    %44 = arith.addf %41, %43 : vector<1x16xf32>
    %cst_39 = arith.constant 1.600000e+01 : f32
    %45 = vector.broadcast %cst_39 : f32 to vector<1x16xf32>
    %46 = arith.divf %44, %45 : vector<1x16xf32>
    %47 = vector.broadcast %46 : vector<1x16xf32> to vector<8x16xf32>
    %48 = arith.subf %18, %47 : vector<8x16xf32>
    %49 = arith.mulf %48, %48 : vector<8x16xf32>
    %cst_40 = arith.constant dense<0.000000e+00> : vector<16xf32>
    %50 = vector.multi_reduction <add>, %49, %cst_40 [0] : vector<8x16xf32> to vector<16xf32>
    %51 = vector.shape_cast %50 : vector<16xf32> to vector<1x16xf32>
    %cst_41 = arith.constant 0.000000e+00 : f32
    %52 = vector.broadcast %cst_41 : f32 to vector<1x16xf32>
    %53 = arith.addf %52, %51 : vector<1x16xf32>
    %54 = vector.broadcast %46 : vector<1x16xf32> to vector<8x16xf32>
    %55 = arith.subf %37, %54 : vector<8x16xf32>
    %56 = arith.mulf %55, %55 : vector<8x16xf32>
    %cst_42 = arith.constant dense<0.000000e+00> : vector<16xf32>
    %57 = vector.multi_reduction <add>, %56, %cst_42 [0] : vector<8x16xf32> to vector<16xf32>
    %58 = vector.shape_cast %57 : vector<16xf32> to vector<1x16xf32>
    %59 = arith.addf %53, %58 : vector<1x16xf32>
    %cst_43 = arith.constant 1.600000e+01 : f32
    %60 = vector.broadcast %cst_43 : f32 to vector<1x16xf32>
    %61 = arith.divf %59, %60 : vector<1x16xf32>
    %cst_44 = arith.constant 9.99999974E-6 : f32
    %62 = vector.broadcast %cst_44 : f32 to vector<1x16xf32>
    %63 = arith.addf %61, %62 : vector<1x16xf32>
    %64 = math.rsqrt %63 : vector<1x16xf32>
    %c0_45 = arith.constant 0 : index
    %c0_46 = arith.constant 0 : index
    %65 = vector.load %arg4[%c0_45, %c0_46] : memref<1x16xf32, #tpu.memory_space<vmem>>, vector<1x16xf32>
    %66 = arith.mulf %64, %65 : vector<1x16xf32>
    %c0_47 = arith.constant 0 : index
    %c0_48 = arith.constant 0 : index
    %67 = vector.load %arg5[%c0_47, %c0_48] : memref<1x16xf32, #tpu.memory_space<vmem>>, vector<1x16xf32>
    %68 = arith.mulf %46, %66 : vector<1x16xf32>
    %69 = arith.subf %67, %68 : vector<1x16xf32>
    %70 = vector.broadcast %66 : vector<1x16xf32> to vector<8x16xf32>
    %71 = arith.mulf %18, %70 : vector<8x16xf32>
    %72 = vector.broadcast %69 : vector<1x16xf32> to vector<8x16xf32>
    %73 = arith.addf %71, %72 : vector<8x16xf32>
    %cst_49 = arith.constant 0.000000e+00 : f32
    %74 = vector.broadcast %cst_49 : f32 to vector<8x16xf32>
    %75 = arith.maximumf %73, %74 : vector<8x16xf32>
    %c0_50 = arith.constant 0 : index
    %c0_51 = arith.constant 0 : index
    %76 = vector.load %arg6[%c0_50, %c0_51] : memref<16x16xf32, #tpu.memory_space<vmem>>, vector<8x16xf32>
    tpu.vector_store %arg6[%c0_50, %c0_51], %75 {strides = array<i32>} : memref<16x16xf32, #tpu.memory_space<vmem>>, vector<8x16xf32>,
    %77 = vector.broadcast %66 : vector<1x16xf32> to vector<8x16xf32>
    %78 = arith.mulf %37, %77 : vector<8x16xf32>
    %79 = vector.broadcast %69 : vector<1x16xf32> to vector<8x16xf32>
    %80 = arith.addf %78, %79 : vector<8x16xf32>
    %cst_52 = arith.constant 0.000000e+00 : f32
    %81 = vector.broadcast %cst_52 : f32 to vector<8x16xf32>
    %82 = arith.maximumf %80, %81 : vector<8x16xf32>
    %c8 = arith.constant 8 : index
    %c0_53 = arith.constant 0 : index
    %83 = vector.load %arg6[%c8, %c0_53] : memref<16x16xf32, #tpu.memory_space<vmem>>, vector<8x16xf32>
    tpu.vector_store %arg6[%c8, %c0_53], %82 {strides = array<i32>} : memref<16x16xf32, #tpu.memory_space<vmem>>, vector<8x16xf32>,
    return
  }
  func.func @transform_0(%arg0: i32) -> (i32, i32, i32) {
    %c0_i32 = arith.constant 0 : i32
    %c0_i32_0 = arith.constant 0 : i32
    %c0_i32_1 = arith.constant 0 : i32
    %c0_i32_2 = arith.constant 0 : i32
    return %c0_i32, %c0_i32_0, %c0_i32_1 : i32, i32, i32
  }
  func.func @transform_1(%arg0: i32) -> (i32, i32) {
    %c0_i32 = arith.constant 0 : i32
    %c0_i32_0 = arith.constant 0 : i32
    %c0_i32_1 = arith.constant 0 : i32
    return %c0_i32, %c0_i32_0 : i32, i32
  }
  func.func @transform_2(%arg0: i32) -> (i32, i32) {
    %c0_i32 = arith.constant 0 : i32
    %c0_i32_0 = arith.constant 0 : i32
    %c0_i32_1 = arith.constant 0 : i32
    return %c0_i32, %c0_i32_0 : i32, i32
  }
  func.func @transform_3(%arg0: i32) -> (i32, i32) {
    %c0_i32 = arith.constant 0 : i32
    %c0_i32_0 = arith.constant 0 : i32
    %c0_i32_1 = arith.constant 0 : i32
    return %c0_i32, %c0_i32_0 : i32, i32
  }
  func.func @transform_4(%arg0: i32) -> (i32, i32) {
    %c0_i32 = arith.constant 0 : i32
    %c0_i32_0 = arith.constant 0 : i32
    %c0_i32_1 = arith.constant 0 : i32
    return %c0_i32, %c0_i32_0 : i32, i32
  }
  func.func @transform_5(%arg0: i32) -> (i32, i32) {
    %c0_i32 = arith.constant 0 : i32
    %c0_i32_0 = arith.constant 0 : i32
    %c0_i32_1 = arith.constant 0 : i32
    return %c0_i32, %c0_i32_0 : i32, i32
  }
}

module attributes {stable_mosaic.version = 11 : i64} {
  func.func @_conv_bank_kernel(%arg0: i32, %arg1: memref<2x12x16xf32, #tpu.memory_space<vmem>>, %arg2: memref<16x16xf32, #tpu.memory_space<vmem>>, %arg3: memref<1x16xf32, #tpu.memory_space<vmem>>, %arg4: memref<1x16xf32, #tpu.memory_space<vmem>>, %arg5: memref<1x16xf32, #tpu.memory_space<vmem>>, %arg6: memref<32x16xf32, #tpu.memory_space<vmem>>, %arg7: memref<1x16xf32, #tpu.memory_space<vmem>>, %arg8: memref<1x16xf32, #tpu.memory_space<vmem>>, %arg9: memref<1x16xf32, #tpu.memory_space<vmem>>, %arg10: memref<48x16xf32, #tpu.memory_space<vmem>>, %arg11: memref<1x16xf32, #tpu.memory_space<vmem>>, %arg12: memref<1x16xf32, #tpu.memory_space<vmem>>, %arg13: memref<1x16xf32, #tpu.memory_space<vmem>>, %arg14: memref<64x16xf32, #tpu.memory_space<vmem>>, %arg15: memref<1x16xf32, #tpu.memory_space<vmem>>, %arg16: memref<1x16xf32, #tpu.memory_space<vmem>>, %arg17: memref<1x16xf32, #tpu.memory_space<vmem>>, %arg18: memref<16x64xf32, #tpu.memory_space<vmem>>) attributes {dimension_semantics = [#tpu.dimension_semantics<arbitrary>], iteration_bounds = array<i64: 1>, scalar_prefetch = 0 : i64, scratch_operands = 0 : i64, tpu.core_type = #tpu.core_type<tc>, window_params = [{pipeline_mode = #tpu.pipeline_mode<synchronous>, transform_indices = @transform_0, window_bounds = array<i64: 2, 12, 16>}, {pipeline_mode = #tpu.pipeline_mode<synchronous>, transform_indices = @transform_1, window_bounds = array<i64: 16, 16>}, {pipeline_mode = #tpu.pipeline_mode<synchronous>, transform_indices = @transform_2, window_bounds = array<i64: 1, 16>}, {pipeline_mode = #tpu.pipeline_mode<synchronous>, transform_indices = @transform_3, window_bounds = array<i64: 1, 16>}, {pipeline_mode = #tpu.pipeline_mode<synchronous>, transform_indices = @transform_4, window_bounds = array<i64: 1, 16>}, {pipeline_mode = #tpu.pipeline_mode<synchronous>, transform_indices = @transform_5, window_bounds = array<i64: 32, 16>}, {pipeline_mode = #tpu.pipeline_mode<synchronous>, transform_indices = @transform_6, window_bounds = array<i64: 1, 16>}, {pipeline_mode = #tpu.pipeline_mode<synchronous>, transform_indices = @transform_7, window_bounds = array<i64: 1, 16>}, {pipeline_mode = #tpu.pipeline_mode<synchronous>, transform_indices = @transform_8, window_bounds = array<i64: 1, 16>}, {pipeline_mode = #tpu.pipeline_mode<synchronous>, transform_indices = @transform_9, window_bounds = array<i64: 48, 16>}, {pipeline_mode = #tpu.pipeline_mode<synchronous>, transform_indices = @transform_10, window_bounds = array<i64: 1, 16>}, {pipeline_mode = #tpu.pipeline_mode<synchronous>, transform_indices = @transform_11, window_bounds = array<i64: 1, 16>}, {pipeline_mode = #tpu.pipeline_mode<synchronous>, transform_indices = @transform_12, window_bounds = array<i64: 1, 16>}, {pipeline_mode = #tpu.pipeline_mode<synchronous>, transform_indices = @transform_13, window_bounds = array<i64: 64, 16>}, {pipeline_mode = #tpu.pipeline_mode<synchronous>, transform_indices = @transform_14, window_bounds = array<i64: 1, 16>}, {pipeline_mode = #tpu.pipeline_mode<synchronous>, transform_indices = @transform_15, window_bounds = array<i64: 1, 16>}, {pipeline_mode = #tpu.pipeline_mode<synchronous>, transform_indices = @transform_16, window_bounds = array<i64: 1, 16>}, {pipeline_mode = #tpu.pipeline_mode<synchronous>, transform_indices = @transform_17, window_bounds = array<i64: 16, 64>}]} {
    %cst = arith.constant 0.000000e+00 : f32
    %0 = vector.broadcast %cst : f32 to vector<8x16xf32>
    %c0 = arith.constant 0 : index
    %c2 = arith.constant 2 : index
    %c0_0 = arith.constant 0 : index
    %1 = vector.load %arg1[%c0, %c2, %c0_0] : memref<2x12x16xf32, #tpu.memory_space<vmem>>, vector<1x8x16xf32>
    %2 = vector.shape_cast %1 : vector<1x8x16xf32> to vector<8x16xf32>
    %c0_1 = arith.constant 0 : index
    %c0_2 = arith.constant 0 : index
    %3 = vector.load %arg2[%c0_1, %c0_2] : memref<16x16xf32, #tpu.memory_space<vmem>>, vector<16x16xf32>
    %cst_3 = arith.constant dense<0.000000e+00> : vector<8x16xf32>
    %4 = tpu.matmul %2, %3, %cst_3 {dimension_numbers = #tpu.dot_dimension_numbers<[1], [0], [0], [1], [0, 0, 1, 1], [], []>} : vector<8x16xf32>, vector<16x16xf32>, vector<8x16xf32> -> vector<8x16xf32>
    %5 = arith.addf %0, %4 : vector<8x16xf32>
    %c0_4 = arith.constant 0 : index
    %c0_5 = arith.constant 0 : index
    %6 = vector.load %arg3[%c0_4, %c0_5] : memref<1x16xf32, #tpu.memory_space<vmem>>, vector<1x16xf32>
    %7 = vector.broadcast %6 : vector<1x16xf32> to vector<8x16xf32>
    %8 = arith.addf %5, %7 : vector<8x16xf32>
    %cst_6 = arith.constant 0.000000e+00 : f32
    %9 = vector.broadcast %cst_6 : f32 to vector<8x16xf32>
    %c1 = arith.constant 1 : index
    %c2_7 = arith.constant 2 : index
    %c0_8 = arith.constant 0 : index
    %10 = vector.load %arg1[%c1, %c2_7, %c0_8] : memref<2x12x16xf32, #tpu.memory_space<vmem>>, vector<1x8x16xf32>
    %11 = vector.shape_cast %10 : vector<1x8x16xf32> to vector<8x16xf32>
    %c0_9 = arith.constant 0 : index
    %c0_10 = arith.constant 0 : index
    %12 = vector.load %arg2[%c0_9, %c0_10] : memref<16x16xf32, #tpu.memory_space<vmem>>, vector<16x16xf32>
    %cst_11 = arith.constant dense<0.000000e+00> : vector<8x16xf32>
    %13 = tpu.matmul %11, %12, %cst_11 {dimension_numbers = #tpu.dot_dimension_numbers<[1], [0], [0], [1], [0, 0, 1, 1], [], []>} : vector<8x16xf32>, vector<16x16xf32>, vector<8x16xf32> -> vector<8x16xf32>
    %14 = arith.addf %9, %13 : vector<8x16xf32>
    %c0_12 = arith.constant 0 : index
    %c0_13 = arith.constant 0 : index
    %15 = vector.load %arg3[%c0_12, %c0_13] : memref<1x16xf32, #tpu.memory_space<vmem>>, vector<1x16xf32>
    %16 = vector.broadcast %15 : vector<1x16xf32> to vector<8x16xf32>
    %17 = arith.addf %14, %16 : vector<8x16xf32>
    %cst_14 = arith.constant 0.000000e+00 : f32
    %18 = vector.broadcast %cst_14 : f32 to vector<8x16xf32>
    %c0_15 = arith.constant 0 : index
    %c1_16 = arith.constant 1 : index
    %c0_17 = arith.constant 0 : index
    %19 = vector.load %arg1[%c0_15, %c1_16, %c0_17] : memref<2x12x16xf32, #tpu.memory_space<vmem>>, vector<1x8x16xf32>
    %20 = vector.shape_cast %19 : vector<1x8x16xf32> to vector<8x16xf32>
    %c0_18 = arith.constant 0 : index
    %c0_19 = arith.constant 0 : index
    %21 = vector.load %arg6[%c0_18, %c0_19] : memref<32x16xf32, #tpu.memory_space<vmem>>, vector<16x16xf32>
    %cst_20 = arith.constant dense<0.000000e+00> : vector<8x16xf32>
    %22 = tpu.matmul %20, %21, %cst_20 {dimension_numbers = #tpu.dot_dimension_numbers<[1], [0], [0], [1], [0, 0, 1, 1], [], []>} : vector<8x16xf32>, vector<16x16xf32>, vector<8x16xf32> -> vector<8x16xf32>
    %23 = arith.addf %18, %22 : vector<8x16xf32>
    %c0_21 = arith.constant 0 : index
    %c2_22 = arith.constant 2 : index
    %c0_23 = arith.constant 0 : index
    %24 = vector.load %arg1[%c0_21, %c2_22, %c0_23] : memref<2x12x16xf32, #tpu.memory_space<vmem>>, vector<1x8x16xf32>
    %25 = vector.shape_cast %24 : vector<1x8x16xf32> to vector<8x16xf32>
    %c16 = arith.constant 16 : index
    %c0_24 = arith.constant 0 : index
    %26 = vector.load %arg6[%c16, %c0_24] : memref<32x16xf32, #tpu.memory_space<vmem>>, vector<16x16xf32>
    %cst_25 = arith.constant dense<0.000000e+00> : vector<8x16xf32>
    %27 = tpu.matmul %25, %26, %cst_25 {dimension_numbers = #tpu.dot_dimension_numbers<[1], [0], [0], [1], [0, 0, 1, 1], [], []>} : vector<8x16xf32>, vector<16x16xf32>, vector<8x16xf32> -> vector<8x16xf32>
    %28 = arith.addf %23, %27 : vector<8x16xf32>
    %c0_26 = arith.constant 0 : index
    %c0_27 = arith.constant 0 : index
    %29 = vector.load %arg7[%c0_26, %c0_27] : memref<1x16xf32, #tpu.memory_space<vmem>>, vector<1x16xf32>
    %30 = vector.broadcast %29 : vector<1x16xf32> to vector<8x16xf32>
    %31 = arith.addf %28, %30 : vector<8x16xf32>
    %cst_28 = arith.constant 0.000000e+00 : f32
    %32 = vector.broadcast %cst_28 : f32 to vector<8x16xf32>
    %c1_29 = arith.constant 1 : index
    %c1_30 = arith.constant 1 : index
    %c0_31 = arith.constant 0 : index
    %33 = vector.load %arg1[%c1_29, %c1_30, %c0_31] : memref<2x12x16xf32, #tpu.memory_space<vmem>>, vector<1x8x16xf32>
    %34 = vector.shape_cast %33 : vector<1x8x16xf32> to vector<8x16xf32>
    %c0_32 = arith.constant 0 : index
    %c0_33 = arith.constant 0 : index
    %35 = vector.load %arg6[%c0_32, %c0_33] : memref<32x16xf32, #tpu.memory_space<vmem>>, vector<16x16xf32>
    %cst_34 = arith.constant dense<0.000000e+00> : vector<8x16xf32>
    %36 = tpu.matmul %34, %35, %cst_34 {dimension_numbers = #tpu.dot_dimension_numbers<[1], [0], [0], [1], [0, 0, 1, 1], [], []>} : vector<8x16xf32>, vector<16x16xf32>, vector<8x16xf32> -> vector<8x16xf32>
    %37 = arith.addf %32, %36 : vector<8x16xf32>
    %c1_35 = arith.constant 1 : index
    %c2_36 = arith.constant 2 : index
    %c0_37 = arith.constant 0 : index
    %38 = vector.load %arg1[%c1_35, %c2_36, %c0_37] : memref<2x12x16xf32, #tpu.memory_space<vmem>>, vector<1x8x16xf32>
    %39 = vector.shape_cast %38 : vector<1x8x16xf32> to vector<8x16xf32>
    %c16_38 = arith.constant 16 : index
    %c0_39 = arith.constant 0 : index
    %40 = vector.load %arg6[%c16_38, %c0_39] : memref<32x16xf32, #tpu.memory_space<vmem>>, vector<16x16xf32>
    %cst_40 = arith.constant dense<0.000000e+00> : vector<8x16xf32>
    %41 = tpu.matmul %39, %40, %cst_40 {dimension_numbers = #tpu.dot_dimension_numbers<[1], [0], [0], [1], [0, 0, 1, 1], [], []>} : vector<8x16xf32>, vector<16x16xf32>, vector<8x16xf32> -> vector<8x16xf32>
    %42 = arith.addf %37, %41 : vector<8x16xf32>
    %c0_41 = arith.constant 0 : index
    %c0_42 = arith.constant 0 : index
    %43 = vector.load %arg7[%c0_41, %c0_42] : memref<1x16xf32, #tpu.memory_space<vmem>>, vector<1x16xf32>
    %44 = vector.broadcast %43 : vector<1x16xf32> to vector<8x16xf32>
    %45 = arith.addf %42, %44 : vector<8x16xf32>
    %cst_43 = arith.constant 0.000000e+00 : f32
    %46 = vector.broadcast %cst_43 : f32 to vector<8x16xf32>
    %c0_44 = arith.constant 0 : index
    %c1_45 = arith.constant 1 : index
    %c0_46 = arith.constant 0 : index
    %47 = vector.load %arg1[%c0_44, %c1_45, %c0_46] : memref<2x12x16xf32, #tpu.memory_space<vmem>>, vector<1x8x16xf32>
    %48 = vector.shape_cast %47 : vector<1x8x16xf32> to vector<8x16xf32>
    %c0_47 = arith.constant 0 : index
    %c0_48 = arith.constant 0 : index
    %49 = vector.load %arg10[%c0_47, %c0_48] : memref<48x16xf32, #tpu.memory_space<vmem>>, vector<16x16xf32>
    %cst_49 = arith.constant dense<0.000000e+00> : vector<8x16xf32>
    %50 = tpu.matmul %48, %49, %cst_49 {dimension_numbers = #tpu.dot_dimension_numbers<[1], [0], [0], [1], [0, 0, 1, 1], [], []>} : vector<8x16xf32>, vector<16x16xf32>, vector<8x16xf32> -> vector<8x16xf32>
    %51 = arith.addf %46, %50 : vector<8x16xf32>
    %c0_50 = arith.constant 0 : index
    %c2_51 = arith.constant 2 : index
    %c0_52 = arith.constant 0 : index
    %52 = vector.load %arg1[%c0_50, %c2_51, %c0_52] : memref<2x12x16xf32, #tpu.memory_space<vmem>>, vector<1x8x16xf32>
    %53 = vector.shape_cast %52 : vector<1x8x16xf32> to vector<8x16xf32>
    %c16_53 = arith.constant 16 : index
    %c0_54 = arith.constant 0 : index
    %54 = vector.load %arg10[%c16_53, %c0_54] : memref<48x16xf32, #tpu.memory_space<vmem>>, vector<16x16xf32>
    %cst_55 = arith.constant dense<0.000000e+00> : vector<8x16xf32>
    %55 = tpu.matmul %53, %54, %cst_55 {dimension_numbers = #tpu.dot_dimension_numbers<[1], [0], [0], [1], [0, 0, 1, 1], [], []>} : vector<8x16xf32>, vector<16x16xf32>, vector<8x16xf32> -> vector<8x16xf32>
    %56 = arith.addf %51, %55 : vector<8x16xf32>
    %c0_56 = arith.constant 0 : index
    %c3 = arith.constant 3 : index
    %c0_57 = arith.constant 0 : index
    %57 = vector.load %arg1[%c0_56, %c3, %c0_57] : memref<2x12x16xf32, #tpu.memory_space<vmem>>, vector<1x8x16xf32>
    %58 = vector.shape_cast %57 : vector<1x8x16xf32> to vector<8x16xf32>
    %c32 = arith.constant 32 : index
    %c0_58 = arith.constant 0 : index
    %59 = vector.load %arg10[%c32, %c0_58] : memref<48x16xf32, #tpu.memory_space<vmem>>, vector<16x16xf32>
    %cst_59 = arith.constant dense<0.000000e+00> : vector<8x16xf32>
    %60 = tpu.matmul %58, %59, %cst_59 {dimension_numbers = #tpu.dot_dimension_numbers<[1], [0], [0], [1], [0, 0, 1, 1], [], []>} : vector<8x16xf32>, vector<16x16xf32>, vector<8x16xf32> -> vector<8x16xf32>
    %61 = arith.addf %56, %60 : vector<8x16xf32>
    %c0_60 = arith.constant 0 : index
    %c0_61 = arith.constant 0 : index
    %62 = vector.load %arg11[%c0_60, %c0_61] : memref<1x16xf32, #tpu.memory_space<vmem>>, vector<1x16xf32>
    %63 = vector.broadcast %62 : vector<1x16xf32> to vector<8x16xf32>
    %64 = arith.addf %61, %63 : vector<8x16xf32>
    %cst_62 = arith.constant 0.000000e+00 : f32
    %65 = vector.broadcast %cst_62 : f32 to vector<8x16xf32>
    %c1_63 = arith.constant 1 : index
    %c1_64 = arith.constant 1 : index
    %c0_65 = arith.constant 0 : index
    %66 = vector.load %arg1[%c1_63, %c1_64, %c0_65] : memref<2x12x16xf32, #tpu.memory_space<vmem>>, vector<1x8x16xf32>
    %67 = vector.shape_cast %66 : vector<1x8x16xf32> to vector<8x16xf32>
    %c0_66 = arith.constant 0 : index
    %c0_67 = arith.constant 0 : index
    %68 = vector.load %arg10[%c0_66, %c0_67] : memref<48x16xf32, #tpu.memory_space<vmem>>, vector<16x16xf32>
    %cst_68 = arith.constant dense<0.000000e+00> : vector<8x16xf32>
    %69 = tpu.matmul %67, %68, %cst_68 {dimension_numbers = #tpu.dot_dimension_numbers<[1], [0], [0], [1], [0, 0, 1, 1], [], []>} : vector<8x16xf32>, vector<16x16xf32>, vector<8x16xf32> -> vector<8x16xf32>
    %70 = arith.addf %65, %69 : vector<8x16xf32>
    %c1_69 = arith.constant 1 : index
    %c2_70 = arith.constant 2 : index
    %c0_71 = arith.constant 0 : index
    %71 = vector.load %arg1[%c1_69, %c2_70, %c0_71] : memref<2x12x16xf32, #tpu.memory_space<vmem>>, vector<1x8x16xf32>
    %72 = vector.shape_cast %71 : vector<1x8x16xf32> to vector<8x16xf32>
    %c16_72 = arith.constant 16 : index
    %c0_73 = arith.constant 0 : index
    %73 = vector.load %arg10[%c16_72, %c0_73] : memref<48x16xf32, #tpu.memory_space<vmem>>, vector<16x16xf32>
    %cst_74 = arith.constant dense<0.000000e+00> : vector<8x16xf32>
    %74 = tpu.matmul %72, %73, %cst_74 {dimension_numbers = #tpu.dot_dimension_numbers<[1], [0], [0], [1], [0, 0, 1, 1], [], []>} : vector<8x16xf32>, vector<16x16xf32>, vector<8x16xf32> -> vector<8x16xf32>
    %75 = arith.addf %70, %74 : vector<8x16xf32>
    %c1_75 = arith.constant 1 : index
    %c3_76 = arith.constant 3 : index
    %c0_77 = arith.constant 0 : index
    %76 = vector.load %arg1[%c1_75, %c3_76, %c0_77] : memref<2x12x16xf32, #tpu.memory_space<vmem>>, vector<1x8x16xf32>
    %77 = vector.shape_cast %76 : vector<1x8x16xf32> to vector<8x16xf32>
    %c32_78 = arith.constant 32 : index
    %c0_79 = arith.constant 0 : index
    %78 = vector.load %arg10[%c32_78, %c0_79] : memref<48x16xf32, #tpu.memory_space<vmem>>, vector<16x16xf32>
    %cst_80 = arith.constant dense<0.000000e+00> : vector<8x16xf32>
    %79 = tpu.matmul %77, %78, %cst_80 {dimension_numbers = #tpu.dot_dimension_numbers<[1], [0], [0], [1], [0, 0, 1, 1], [], []>} : vector<8x16xf32>, vector<16x16xf32>, vector<8x16xf32> -> vector<8x16xf32>
    %80 = arith.addf %75, %79 : vector<8x16xf32>
    %c0_81 = arith.constant 0 : index
    %c0_82 = arith.constant 0 : index
    %81 = vector.load %arg11[%c0_81, %c0_82] : memref<1x16xf32, #tpu.memory_space<vmem>>, vector<1x16xf32>
    %82 = vector.broadcast %81 : vector<1x16xf32> to vector<8x16xf32>
    %83 = arith.addf %80, %82 : vector<8x16xf32>
    %cst_83 = arith.constant 0.000000e+00 : f32
    %84 = vector.broadcast %cst_83 : f32 to vector<8x16xf32>
    %c0_84 = arith.constant 0 : index
    %c0_85 = arith.constant 0 : index
    %c0_86 = arith.constant 0 : index
    %85 = vector.load %arg1[%c0_84, %c0_85, %c0_86] : memref<2x12x16xf32, #tpu.memory_space<vmem>>, vector<1x8x16xf32>
    %86 = vector.shape_cast %85 : vector<1x8x16xf32> to vector<8x16xf32>
    %c0_87 = arith.constant 0 : index
    %c0_88 = arith.constant 0 : index
    %87 = vector.load %arg14[%c0_87, %c0_88] : memref<64x16xf32, #tpu.memory_space<vmem>>, vector<16x16xf32>
    %cst_89 = arith.constant dense<0.000000e+00> : vector<8x16xf32>
    %88 = tpu.matmul %86, %87, %cst_89 {dimension_numbers = #tpu.dot_dimension_numbers<[1], [0], [0], [1], [0, 0, 1, 1], [], []>} : vector<8x16xf32>, vector<16x16xf32>, vector<8x16xf32> -> vector<8x16xf32>
    %89 = arith.addf %84, %88 : vector<8x16xf32>
    %c0_90 = arith.constant 0 : index
    %c1_91 = arith.constant 1 : index
    %c0_92 = arith.constant 0 : index
    %90 = vector.load %arg1[%c0_90, %c1_91, %c0_92] : memref<2x12x16xf32, #tpu.memory_space<vmem>>, vector<1x8x16xf32>
    %91 = vector.shape_cast %90 : vector<1x8x16xf32> to vector<8x16xf32>
    %c16_93 = arith.constant 16 : index
    %c0_94 = arith.constant 0 : index
    %92 = vector.load %arg14[%c16_93, %c0_94] : memref<64x16xf32, #tpu.memory_space<vmem>>, vector<16x16xf32>
    %cst_95 = arith.constant dense<0.000000e+00> : vector<8x16xf32>
    %93 = tpu.matmul %91, %92, %cst_95 {dimension_numbers = #tpu.dot_dimension_numbers<[1], [0], [0], [1], [0, 0, 1, 1], [], []>} : vector<8x16xf32>, vector<16x16xf32>, vector<8x16xf32> -> vector<8x16xf32>
    %94 = arith.addf %89, %93 : vector<8x16xf32>
    %c0_96 = arith.constant 0 : index
    %c2_97 = arith.constant 2 : index
    %c0_98 = arith.constant 0 : index
    %95 = vector.load %arg1[%c0_96, %c2_97, %c0_98] : memref<2x12x16xf32, #tpu.memory_space<vmem>>, vector<1x8x16xf32>
    %96 = vector.shape_cast %95 : vector<1x8x16xf32> to vector<8x16xf32>
    %c32_99 = arith.constant 32 : index
    %c0_100 = arith.constant 0 : index
    %97 = vector.load %arg14[%c32_99, %c0_100] : memref<64x16xf32, #tpu.memory_space<vmem>>, vector<16x16xf32>
    %cst_101 = arith.constant dense<0.000000e+00> : vector<8x16xf32>
    %98 = tpu.matmul %96, %97, %cst_101 {dimension_numbers = #tpu.dot_dimension_numbers<[1], [0], [0], [1], [0, 0, 1, 1], [], []>} : vector<8x16xf32>, vector<16x16xf32>, vector<8x16xf32> -> vector<8x16xf32>
    %99 = arith.addf %94, %98 : vector<8x16xf32>
    %c0_102 = arith.constant 0 : index
    %c3_103 = arith.constant 3 : index
    %c0_104 = arith.constant 0 : index
    %100 = vector.load %arg1[%c0_102, %c3_103, %c0_104] : memref<2x12x16xf32, #tpu.memory_space<vmem>>, vector<1x8x16xf32>
    %101 = vector.shape_cast %100 : vector<1x8x16xf32> to vector<8x16xf32>
    %c48 = arith.constant 48 : index
    %c0_105 = arith.constant 0 : index
    %102 = vector.load %arg14[%c48, %c0_105] : memref<64x16xf32, #tpu.memory_space<vmem>>, vector<16x16xf32>
    %cst_106 = arith.constant dense<0.000000e+00> : vector<8x16xf32>
    %103 = tpu.matmul %101, %102, %cst_106 {dimension_numbers = #tpu.dot_dimension_numbers<[1], [0], [0], [1], [0, 0, 1, 1], [], []>} : vector<8x16xf32>, vector<16x16xf32>, vector<8x16xf32> -> vector<8x16xf32>
    %104 = arith.addf %99, %103 : vector<8x16xf32>
    %c0_107 = arith.constant 0 : index
    %c0_108 = arith.constant 0 : index
    %105 = vector.load %arg15[%c0_107, %c0_108] : memref<1x16xf32, #tpu.memory_space<vmem>>, vector<1x16xf32>
    %106 = vector.broadcast %105 : vector<1x16xf32> to vector<8x16xf32>
    %107 = arith.addf %104, %106 : vector<8x16xf32>
    %cst_109 = arith.constant 0.000000e+00 : f32
    %108 = vector.broadcast %cst_109 : f32 to vector<8x16xf32>
    %c1_110 = arith.constant 1 : index
    %c0_111 = arith.constant 0 : index
    %c0_112 = arith.constant 0 : index
    %109 = vector.load %arg1[%c1_110, %c0_111, %c0_112] : memref<2x12x16xf32, #tpu.memory_space<vmem>>, vector<1x8x16xf32>
    %110 = vector.shape_cast %109 : vector<1x8x16xf32> to vector<8x16xf32>
    %c0_113 = arith.constant 0 : index
    %c0_114 = arith.constant 0 : index
    %111 = vector.load %arg14[%c0_113, %c0_114] : memref<64x16xf32, #tpu.memory_space<vmem>>, vector<16x16xf32>
    %cst_115 = arith.constant dense<0.000000e+00> : vector<8x16xf32>
    %112 = tpu.matmul %110, %111, %cst_115 {dimension_numbers = #tpu.dot_dimension_numbers<[1], [0], [0], [1], [0, 0, 1, 1], [], []>} : vector<8x16xf32>, vector<16x16xf32>, vector<8x16xf32> -> vector<8x16xf32>
    %113 = arith.addf %108, %112 : vector<8x16xf32>
    %c1_116 = arith.constant 1 : index
    %c1_117 = arith.constant 1 : index
    %c0_118 = arith.constant 0 : index
    %114 = vector.load %arg1[%c1_116, %c1_117, %c0_118] : memref<2x12x16xf32, #tpu.memory_space<vmem>>, vector<1x8x16xf32>
    %115 = vector.shape_cast %114 : vector<1x8x16xf32> to vector<8x16xf32>
    %c16_119 = arith.constant 16 : index
    %c0_120 = arith.constant 0 : index
    %116 = vector.load %arg14[%c16_119, %c0_120] : memref<64x16xf32, #tpu.memory_space<vmem>>, vector<16x16xf32>
    %cst_121 = arith.constant dense<0.000000e+00> : vector<8x16xf32>
    %117 = tpu.matmul %115, %116, %cst_121 {dimension_numbers = #tpu.dot_dimension_numbers<[1], [0], [0], [1], [0, 0, 1, 1], [], []>} : vector<8x16xf32>, vector<16x16xf32>, vector<8x16xf32> -> vector<8x16xf32>
    %118 = arith.addf %113, %117 : vector<8x16xf32>
    %c1_122 = arith.constant 1 : index
    %c2_123 = arith.constant 2 : index
    %c0_124 = arith.constant 0 : index
    %119 = vector.load %arg1[%c1_122, %c2_123, %c0_124] : memref<2x12x16xf32, #tpu.memory_space<vmem>>, vector<1x8x16xf32>
    %120 = vector.shape_cast %119 : vector<1x8x16xf32> to vector<8x16xf32>
    %c32_125 = arith.constant 32 : index
    %c0_126 = arith.constant 0 : index
    %121 = vector.load %arg14[%c32_125, %c0_126] : memref<64x16xf32, #tpu.memory_space<vmem>>, vector<16x16xf32>
    %cst_127 = arith.constant dense<0.000000e+00> : vector<8x16xf32>
    %122 = tpu.matmul %120, %121, %cst_127 {dimension_numbers = #tpu.dot_dimension_numbers<[1], [0], [0], [1], [0, 0, 1, 1], [], []>} : vector<8x16xf32>, vector<16x16xf32>, vector<8x16xf32> -> vector<8x16xf32>
    %123 = arith.addf %118, %122 : vector<8x16xf32>
    %c1_128 = arith.constant 1 : index
    %c3_129 = arith.constant 3 : index
    %c0_130 = arith.constant 0 : index
    %124 = vector.load %arg1[%c1_128, %c3_129, %c0_130] : memref<2x12x16xf32, #tpu.memory_space<vmem>>, vector<1x8x16xf32>
    %125 = vector.shape_cast %124 : vector<1x8x16xf32> to vector<8x16xf32>
    %c48_131 = arith.constant 48 : index
    %c0_132 = arith.constant 0 : index
    %126 = vector.load %arg14[%c48_131, %c0_132] : memref<64x16xf32, #tpu.memory_space<vmem>>, vector<16x16xf32>
    %cst_133 = arith.constant dense<0.000000e+00> : vector<8x16xf32>
    %127 = tpu.matmul %125, %126, %cst_133 {dimension_numbers = #tpu.dot_dimension_numbers<[1], [0], [0], [1], [0, 0, 1, 1], [], []>} : vector<8x16xf32>, vector<16x16xf32>, vector<8x16xf32> -> vector<8x16xf32>
    %128 = arith.addf %123, %127 : vector<8x16xf32>
    %c0_134 = arith.constant 0 : index
    %c0_135 = arith.constant 0 : index
    %129 = vector.load %arg15[%c0_134, %c0_135] : memref<1x16xf32, #tpu.memory_space<vmem>>, vector<1x16xf32>
    %130 = vector.broadcast %129 : vector<1x16xf32> to vector<8x16xf32>
    %131 = arith.addf %128, %130 : vector<8x16xf32>
    %cst_136 = arith.constant dense<0.000000e+00> : vector<16xf32>
    %132 = vector.multi_reduction <add>, %8, %cst_136 [0] : vector<8x16xf32> to vector<16xf32>
    %133 = vector.shape_cast %132 : vector<16xf32> to vector<1x16xf32>
    %cst_137 = arith.constant 0.000000e+00 : f32
    %134 = vector.broadcast %cst_137 : f32 to vector<1x16xf32>
    %135 = arith.addf %134, %133 : vector<1x16xf32>
    %cst_138 = arith.constant dense<0.000000e+00> : vector<16xf32>
    %136 = vector.multi_reduction <add>, %17, %cst_138 [0] : vector<8x16xf32> to vector<16xf32>
    %137 = vector.shape_cast %136 : vector<16xf32> to vector<1x16xf32>
    %138 = arith.addf %135, %137 : vector<1x16xf32>
    %cst_139 = arith.constant 1.600000e+01 : f32
    %139 = vector.broadcast %cst_139 : f32 to vector<1x16xf32>
    %140 = arith.divf %138, %139 : vector<1x16xf32>
    %141 = vector.broadcast %140 : vector<1x16xf32> to vector<8x16xf32>
    %142 = arith.subf %8, %141 : vector<8x16xf32>
    %143 = arith.mulf %142, %142 : vector<8x16xf32>
    %cst_140 = arith.constant dense<0.000000e+00> : vector<16xf32>
    %144 = vector.multi_reduction <add>, %143, %cst_140 [0] : vector<8x16xf32> to vector<16xf32>
    %145 = vector.shape_cast %144 : vector<16xf32> to vector<1x16xf32>
    %cst_141 = arith.constant 0.000000e+00 : f32
    %146 = vector.broadcast %cst_141 : f32 to vector<1x16xf32>
    %147 = arith.addf %146, %145 : vector<1x16xf32>
    %148 = vector.broadcast %140 : vector<1x16xf32> to vector<8x16xf32>
    %149 = arith.subf %17, %148 : vector<8x16xf32>
    %150 = arith.mulf %149, %149 : vector<8x16xf32>
    %cst_142 = arith.constant dense<0.000000e+00> : vector<16xf32>
    %151 = vector.multi_reduction <add>, %150, %cst_142 [0] : vector<8x16xf32> to vector<16xf32>
    %152 = vector.shape_cast %151 : vector<16xf32> to vector<1x16xf32>
    %153 = arith.addf %147, %152 : vector<1x16xf32>
    %cst_143 = arith.constant 1.600000e+01 : f32
    %154 = vector.broadcast %cst_143 : f32 to vector<1x16xf32>
    %155 = arith.divf %153, %154 : vector<1x16xf32>
    %cst_144 = arith.constant 9.99999974E-6 : f32
    %156 = vector.broadcast %cst_144 : f32 to vector<1x16xf32>
    %157 = arith.addf %155, %156 : vector<1x16xf32>
    %158 = math.rsqrt %157 : vector<1x16xf32>
    %c0_145 = arith.constant 0 : index
    %c0_146 = arith.constant 0 : index
    %159 = vector.load %arg4[%c0_145, %c0_146] : memref<1x16xf32, #tpu.memory_space<vmem>>, vector<1x16xf32>
    %160 = arith.mulf %158, %159 : vector<1x16xf32>
    %c0_147 = arith.constant 0 : index
    %c0_148 = arith.constant 0 : index
    %161 = vector.load %arg5[%c0_147, %c0_148] : memref<1x16xf32, #tpu.memory_space<vmem>>, vector<1x16xf32>
    %162 = arith.mulf %140, %160 : vector<1x16xf32>
    %163 = arith.subf %161, %162 : vector<1x16xf32>
    %cst_149 = arith.constant dense<0.000000e+00> : vector<16xf32>
    %164 = vector.multi_reduction <add>, %31, %cst_149 [0] : vector<8x16xf32> to vector<16xf32>
    %165 = vector.shape_cast %164 : vector<16xf32> to vector<1x16xf32>
    %cst_150 = arith.constant 0.000000e+00 : f32
    %166 = vector.broadcast %cst_150 : f32 to vector<1x16xf32>
    %167 = arith.addf %166, %165 : vector<1x16xf32>
    %cst_151 = arith.constant dense<0.000000e+00> : vector<16xf32>
    %168 = vector.multi_reduction <add>, %45, %cst_151 [0] : vector<8x16xf32> to vector<16xf32>
    %169 = vector.shape_cast %168 : vector<16xf32> to vector<1x16xf32>
    %170 = arith.addf %167, %169 : vector<1x16xf32>
    %cst_152 = arith.constant 1.600000e+01 : f32
    %171 = vector.broadcast %cst_152 : f32 to vector<1x16xf32>
    %172 = arith.divf %170, %171 : vector<1x16xf32>
    %173 = vector.broadcast %172 : vector<1x16xf32> to vector<8x16xf32>
    %174 = arith.subf %31, %173 : vector<8x16xf32>
    %175 = arith.mulf %174, %174 : vector<8x16xf32>
    %cst_153 = arith.constant dense<0.000000e+00> : vector<16xf32>
    %176 = vector.multi_reduction <add>, %175, %cst_153 [0] : vector<8x16xf32> to vector<16xf32>
    %177 = vector.shape_cast %176 : vector<16xf32> to vector<1x16xf32>
    %cst_154 = arith.constant 0.000000e+00 : f32
    %178 = vector.broadcast %cst_154 : f32 to vector<1x16xf32>
    %179 = arith.addf %178, %177 : vector<1x16xf32>
    %180 = vector.broadcast %172 : vector<1x16xf32> to vector<8x16xf32>
    %181 = arith.subf %45, %180 : vector<8x16xf32>
    %182 = arith.mulf %181, %181 : vector<8x16xf32>
    %cst_155 = arith.constant dense<0.000000e+00> : vector<16xf32>
    %183 = vector.multi_reduction <add>, %182, %cst_155 [0] : vector<8x16xf32> to vector<16xf32>
    %184 = vector.shape_cast %183 : vector<16xf32> to vector<1x16xf32>
    %185 = arith.addf %179, %184 : vector<1x16xf32>
    %cst_156 = arith.constant 1.600000e+01 : f32
    %186 = vector.broadcast %cst_156 : f32 to vector<1x16xf32>
    %187 = arith.divf %185, %186 : vector<1x16xf32>
    %cst_157 = arith.constant 9.99999974E-6 : f32
    %188 = vector.broadcast %cst_157 : f32 to vector<1x16xf32>
    %189 = arith.addf %187, %188 : vector<1x16xf32>
    %190 = math.rsqrt %189 : vector<1x16xf32>
    %c0_158 = arith.constant 0 : index
    %c0_159 = arith.constant 0 : index
    %191 = vector.load %arg8[%c0_158, %c0_159] : memref<1x16xf32, #tpu.memory_space<vmem>>, vector<1x16xf32>
    %192 = arith.mulf %190, %191 : vector<1x16xf32>
    %c0_160 = arith.constant 0 : index
    %c0_161 = arith.constant 0 : index
    %193 = vector.load %arg9[%c0_160, %c0_161] : memref<1x16xf32, #tpu.memory_space<vmem>>, vector<1x16xf32>
    %194 = arith.mulf %172, %192 : vector<1x16xf32>
    %195 = arith.subf %193, %194 : vector<1x16xf32>
    %cst_162 = arith.constant dense<0.000000e+00> : vector<16xf32>
    %196 = vector.multi_reduction <add>, %64, %cst_162 [0] : vector<8x16xf32> to vector<16xf32>
    %197 = vector.shape_cast %196 : vector<16xf32> to vector<1x16xf32>
    %cst_163 = arith.constant 0.000000e+00 : f32
    %198 = vector.broadcast %cst_163 : f32 to vector<1x16xf32>
    %199 = arith.addf %198, %197 : vector<1x16xf32>
    %cst_164 = arith.constant dense<0.000000e+00> : vector<16xf32>
    %200 = vector.multi_reduction <add>, %83, %cst_164 [0] : vector<8x16xf32> to vector<16xf32>
    %201 = vector.shape_cast %200 : vector<16xf32> to vector<1x16xf32>
    %202 = arith.addf %199, %201 : vector<1x16xf32>
    %cst_165 = arith.constant 1.600000e+01 : f32
    %203 = vector.broadcast %cst_165 : f32 to vector<1x16xf32>
    %204 = arith.divf %202, %203 : vector<1x16xf32>
    %205 = vector.broadcast %204 : vector<1x16xf32> to vector<8x16xf32>
    %206 = arith.subf %64, %205 : vector<8x16xf32>
    %207 = arith.mulf %206, %206 : vector<8x16xf32>
    %cst_166 = arith.constant dense<0.000000e+00> : vector<16xf32>
    %208 = vector.multi_reduction <add>, %207, %cst_166 [0] : vector<8x16xf32> to vector<16xf32>
    %209 = vector.shape_cast %208 : vector<16xf32> to vector<1x16xf32>
    %cst_167 = arith.constant 0.000000e+00 : f32
    %210 = vector.broadcast %cst_167 : f32 to vector<1x16xf32>
    %211 = arith.addf %210, %209 : vector<1x16xf32>
    %212 = vector.broadcast %204 : vector<1x16xf32> to vector<8x16xf32>
    %213 = arith.subf %83, %212 : vector<8x16xf32>
    %214 = arith.mulf %213, %213 : vector<8x16xf32>
    %cst_168 = arith.constant dense<0.000000e+00> : vector<16xf32>
    %215 = vector.multi_reduction <add>, %214, %cst_168 [0] : vector<8x16xf32> to vector<16xf32>
    %216 = vector.shape_cast %215 : vector<16xf32> to vector<1x16xf32>
    %217 = arith.addf %211, %216 : vector<1x16xf32>
    %cst_169 = arith.constant 1.600000e+01 : f32
    %218 = vector.broadcast %cst_169 : f32 to vector<1x16xf32>
    %219 = arith.divf %217, %218 : vector<1x16xf32>
    %cst_170 = arith.constant 9.99999974E-6 : f32
    %220 = vector.broadcast %cst_170 : f32 to vector<1x16xf32>
    %221 = arith.addf %219, %220 : vector<1x16xf32>
    %222 = math.rsqrt %221 : vector<1x16xf32>
    %c0_171 = arith.constant 0 : index
    %c0_172 = arith.constant 0 : index
    %223 = vector.load %arg12[%c0_171, %c0_172] : memref<1x16xf32, #tpu.memory_space<vmem>>, vector<1x16xf32>
    %224 = arith.mulf %222, %223 : vector<1x16xf32>
    %c0_173 = arith.constant 0 : index
    %c0_174 = arith.constant 0 : index
    %225 = vector.load %arg13[%c0_173, %c0_174] : memref<1x16xf32, #tpu.memory_space<vmem>>, vector<1x16xf32>
    %226 = arith.mulf %204, %224 : vector<1x16xf32>
    %227 = arith.subf %225, %226 : vector<1x16xf32>
    %cst_175 = arith.constant dense<0.000000e+00> : vector<16xf32>
    %228 = vector.multi_reduction <add>, %107, %cst_175 [0] : vector<8x16xf32> to vector<16xf32>
    %229 = vector.shape_cast %228 : vector<16xf32> to vector<1x16xf32>
    %cst_176 = arith.constant 0.000000e+00 : f32
    %230 = vector.broadcast %cst_176 : f32 to vector<1x16xf32>
    %231 = arith.addf %230, %229 : vector<1x16xf32>
    %cst_177 = arith.constant dense<0.000000e+00> : vector<16xf32>
    %232 = vector.multi_reduction <add>, %131, %cst_177 [0] : vector<8x16xf32> to vector<16xf32>
    %233 = vector.shape_cast %232 : vector<16xf32> to vector<1x16xf32>
    %234 = arith.addf %231, %233 : vector<1x16xf32>
    %cst_178 = arith.constant 1.600000e+01 : f32
    %235 = vector.broadcast %cst_178 : f32 to vector<1x16xf32>
    %236 = arith.divf %234, %235 : vector<1x16xf32>
    %237 = vector.broadcast %236 : vector<1x16xf32> to vector<8x16xf32>
    %238 = arith.subf %107, %237 : vector<8x16xf32>
    %239 = arith.mulf %238, %238 : vector<8x16xf32>
    %cst_179 = arith.constant dense<0.000000e+00> : vector<16xf32>
    %240 = vector.multi_reduction <add>, %239, %cst_179 [0] : vector<8x16xf32> to vector<16xf32>
    %241 = vector.shape_cast %240 : vector<16xf32> to vector<1x16xf32>
    %cst_180 = arith.constant 0.000000e+00 : f32
    %242 = vector.broadcast %cst_180 : f32 to vector<1x16xf32>
    %243 = arith.addf %242, %241 : vector<1x16xf32>
    %244 = vector.broadcast %236 : vector<1x16xf32> to vector<8x16xf32>
    %245 = arith.subf %131, %244 : vector<8x16xf32>
    %246 = arith.mulf %245, %245 : vector<8x16xf32>
    %cst_181 = arith.constant dense<0.000000e+00> : vector<16xf32>
    %247 = vector.multi_reduction <add>, %246, %cst_181 [0] : vector<8x16xf32> to vector<16xf32>
    %248 = vector.shape_cast %247 : vector<16xf32> to vector<1x16xf32>
    %249 = arith.addf %243, %248 : vector<1x16xf32>
    %cst_182 = arith.constant 1.600000e+01 : f32
    %250 = vector.broadcast %cst_182 : f32 to vector<1x16xf32>
    %251 = arith.divf %249, %250 : vector<1x16xf32>
    %cst_183 = arith.constant 9.99999974E-6 : f32
    %252 = vector.broadcast %cst_183 : f32 to vector<1x16xf32>
    %253 = arith.addf %251, %252 : vector<1x16xf32>
    %254 = math.rsqrt %253 : vector<1x16xf32>
    %c0_184 = arith.constant 0 : index
    %c0_185 = arith.constant 0 : index
    %255 = vector.load %arg16[%c0_184, %c0_185] : memref<1x16xf32, #tpu.memory_space<vmem>>, vector<1x16xf32>
    %256 = arith.mulf %254, %255 : vector<1x16xf32>
    %c0_186 = arith.constant 0 : index
    %c0_187 = arith.constant 0 : index
    %257 = vector.load %arg17[%c0_186, %c0_187] : memref<1x16xf32, #tpu.memory_space<vmem>>, vector<1x16xf32>
    %258 = arith.mulf %236, %256 : vector<1x16xf32>
    %259 = arith.subf %257, %258 : vector<1x16xf32>
    %260 = vector.broadcast %160 : vector<1x16xf32> to vector<8x16xf32>
    %261 = arith.mulf %8, %260 : vector<8x16xf32>
    %262 = vector.broadcast %163 : vector<1x16xf32> to vector<8x16xf32>
    %263 = arith.addf %261, %262 : vector<8x16xf32>
    %cst_188 = arith.constant 0.000000e+00 : f32
    %264 = vector.broadcast %cst_188 : f32 to vector<8x16xf32>
    %265 = arith.maximumf %263, %264 : vector<8x16xf32>
    %266 = vector.extract_strided_slice %265 {offsets = [0, 0], sizes = [1, 16], strides = [1, 1]} : vector<8x16xf32> to vector<1x16xf32>
    %267 = vector.extract_strided_slice %265 {offsets = [1, 0], sizes = [7, 16], strides = [1, 1]} : vector<8x16xf32> to vector<7x16xf32>
    %268 = vector.extract_strided_slice %265 {offsets = [0, 0], sizes = [7, 16], strides = [1, 1]} : vector<8x16xf32> to vector<7x16xf32>
    %269 = arith.maximumf %267, %268 : vector<7x16xf32>
    %270 = tpu.concatenate %266, %269 in 0 : vector<1x16xf32>, vector<7x16xf32> -> vector<8x16xf32>
    %271 = vector.broadcast %192 : vector<1x16xf32> to vector<8x16xf32>
    %272 = arith.mulf %31, %271 : vector<8x16xf32>
    %273 = vector.broadcast %195 : vector<1x16xf32> to vector<8x16xf32>
    %274 = arith.addf %272, %273 : vector<8x16xf32>
    %cst_189 = arith.constant 0.000000e+00 : f32
    %275 = vector.broadcast %cst_189 : f32 to vector<8x16xf32>
    %276 = arith.maximumf %274, %275 : vector<8x16xf32>
    %277 = vector.extract_strided_slice %276 {offsets = [0, 0], sizes = [1, 16], strides = [1, 1]} : vector<8x16xf32> to vector<1x16xf32>
    %278 = vector.extract_strided_slice %276 {offsets = [1, 0], sizes = [7, 16], strides = [1, 1]} : vector<8x16xf32> to vector<7x16xf32>
    %279 = vector.extract_strided_slice %276 {offsets = [0, 0], sizes = [7, 16], strides = [1, 1]} : vector<8x16xf32> to vector<7x16xf32>
    %280 = arith.maximumf %278, %279 : vector<7x16xf32>
    %281 = tpu.concatenate %277, %280 in 0 : vector<1x16xf32>, vector<7x16xf32> -> vector<8x16xf32>
    %282 = vector.broadcast %224 : vector<1x16xf32> to vector<8x16xf32>
    %283 = arith.mulf %64, %282 : vector<8x16xf32>
    %284 = vector.broadcast %227 : vector<1x16xf32> to vector<8x16xf32>
    %285 = arith.addf %283, %284 : vector<8x16xf32>
    %cst_190 = arith.constant 0.000000e+00 : f32
    %286 = vector.broadcast %cst_190 : f32 to vector<8x16xf32>
    %287 = arith.maximumf %285, %286 : vector<8x16xf32>
    %288 = vector.extract_strided_slice %287 {offsets = [0, 0], sizes = [1, 16], strides = [1, 1]} : vector<8x16xf32> to vector<1x16xf32>
    %289 = vector.extract_strided_slice %287 {offsets = [1, 0], sizes = [7, 16], strides = [1, 1]} : vector<8x16xf32> to vector<7x16xf32>
    %290 = vector.extract_strided_slice %287 {offsets = [0, 0], sizes = [7, 16], strides = [1, 1]} : vector<8x16xf32> to vector<7x16xf32>
    %291 = arith.maximumf %289, %290 : vector<7x16xf32>
    %292 = tpu.concatenate %288, %291 in 0 : vector<1x16xf32>, vector<7x16xf32> -> vector<8x16xf32>
    %293 = vector.broadcast %256 : vector<1x16xf32> to vector<8x16xf32>
    %294 = arith.mulf %107, %293 : vector<8x16xf32>
    %295 = vector.broadcast %259 : vector<1x16xf32> to vector<8x16xf32>
    %296 = arith.addf %294, %295 : vector<8x16xf32>
    %cst_191 = arith.constant 0.000000e+00 : f32
    %297 = vector.broadcast %cst_191 : f32 to vector<8x16xf32>
    %298 = arith.maximumf %296, %297 : vector<8x16xf32>
    %299 = vector.extract_strided_slice %298 {offsets = [0, 0], sizes = [1, 16], strides = [1, 1]} : vector<8x16xf32> to vector<1x16xf32>
    %300 = vector.extract_strided_slice %298 {offsets = [1, 0], sizes = [7, 16], strides = [1, 1]} : vector<8x16xf32> to vector<7x16xf32>
    %301 = vector.extract_strided_slice %298 {offsets = [0, 0], sizes = [7, 16], strides = [1, 1]} : vector<8x16xf32> to vector<7x16xf32>
    %302 = arith.maximumf %300, %301 : vector<7x16xf32>
    %303 = tpu.concatenate %299, %302 in 0 : vector<1x16xf32>, vector<7x16xf32> -> vector<8x16xf32>
    %304 = tpu.concatenate %270, %281, %292, %303 in 1 : vector<8x16xf32>, vector<8x16xf32>, vector<8x16xf32>, vector<8x16xf32> -> vector<8x64xf32>
    %c0_192 = arith.constant 0 : index
    %c0_193 = arith.constant 0 : index
    %305 = vector.load %arg18[%c0_192, %c0_193] : memref<16x64xf32, #tpu.memory_space<vmem>>, vector<8x64xf32>
    tpu.vector_store %arg18[%c0_192, %c0_193], %304 {strides = array<i32>} : memref<16x64xf32, #tpu.memory_space<vmem>>, vector<8x64xf32>,
    %306 = vector.broadcast %160 : vector<1x16xf32> to vector<8x16xf32>
    %307 = arith.mulf %17, %306 : vector<8x16xf32>
    %308 = vector.broadcast %163 : vector<1x16xf32> to vector<8x16xf32>
    %309 = arith.addf %307, %308 : vector<8x16xf32>
    %cst_194 = arith.constant 0.000000e+00 : f32
    %310 = vector.broadcast %cst_194 : f32 to vector<8x16xf32>
    %311 = arith.maximumf %309, %310 : vector<8x16xf32>
    %312 = vector.extract_strided_slice %311 {offsets = [0, 0], sizes = [1, 16], strides = [1, 1]} : vector<8x16xf32> to vector<1x16xf32>
    %313 = vector.extract_strided_slice %311 {offsets = [1, 0], sizes = [7, 16], strides = [1, 1]} : vector<8x16xf32> to vector<7x16xf32>
    %314 = vector.extract_strided_slice %311 {offsets = [0, 0], sizes = [7, 16], strides = [1, 1]} : vector<8x16xf32> to vector<7x16xf32>
    %315 = arith.maximumf %313, %314 : vector<7x16xf32>
    %316 = tpu.concatenate %312, %315 in 0 : vector<1x16xf32>, vector<7x16xf32> -> vector<8x16xf32>
    %317 = vector.broadcast %192 : vector<1x16xf32> to vector<8x16xf32>
    %318 = arith.mulf %45, %317 : vector<8x16xf32>
    %319 = vector.broadcast %195 : vector<1x16xf32> to vector<8x16xf32>
    %320 = arith.addf %318, %319 : vector<8x16xf32>
    %cst_195 = arith.constant 0.000000e+00 : f32
    %321 = vector.broadcast %cst_195 : f32 to vector<8x16xf32>
    %322 = arith.maximumf %320, %321 : vector<8x16xf32>
    %323 = vector.extract_strided_slice %322 {offsets = [0, 0], sizes = [1, 16], strides = [1, 1]} : vector<8x16xf32> to vector<1x16xf32>
    %324 = vector.extract_strided_slice %322 {offsets = [1, 0], sizes = [7, 16], strides = [1, 1]} : vector<8x16xf32> to vector<7x16xf32>
    %325 = vector.extract_strided_slice %322 {offsets = [0, 0], sizes = [7, 16], strides = [1, 1]} : vector<8x16xf32> to vector<7x16xf32>
    %326 = arith.maximumf %324, %325 : vector<7x16xf32>
    %327 = tpu.concatenate %323, %326 in 0 : vector<1x16xf32>, vector<7x16xf32> -> vector<8x16xf32>
    %328 = vector.broadcast %224 : vector<1x16xf32> to vector<8x16xf32>
    %329 = arith.mulf %83, %328 : vector<8x16xf32>
    %330 = vector.broadcast %227 : vector<1x16xf32> to vector<8x16xf32>
    %331 = arith.addf %329, %330 : vector<8x16xf32>
    %cst_196 = arith.constant 0.000000e+00 : f32
    %332 = vector.broadcast %cst_196 : f32 to vector<8x16xf32>
    %333 = arith.maximumf %331, %332 : vector<8x16xf32>
    %334 = vector.extract_strided_slice %333 {offsets = [0, 0], sizes = [1, 16], strides = [1, 1]} : vector<8x16xf32> to vector<1x16xf32>
    %335 = vector.extract_strided_slice %333 {offsets = [1, 0], sizes = [7, 16], strides = [1, 1]} : vector<8x16xf32> to vector<7x16xf32>
    %336 = vector.extract_strided_slice %333 {offsets = [0, 0], sizes = [7, 16], strides = [1, 1]} : vector<8x16xf32> to vector<7x16xf32>
    %337 = arith.maximumf %335, %336 : vector<7x16xf32>
    %338 = tpu.concatenate %334, %337 in 0 : vector<1x16xf32>, vector<7x16xf32> -> vector<8x16xf32>
    %339 = vector.broadcast %256 : vector<1x16xf32> to vector<8x16xf32>
    %340 = arith.mulf %131, %339 : vector<8x16xf32>
    %341 = vector.broadcast %259 : vector<1x16xf32> to vector<8x16xf32>
    %342 = arith.addf %340, %341 : vector<8x16xf32>
    %cst_197 = arith.constant 0.000000e+00 : f32
    %343 = vector.broadcast %cst_197 : f32 to vector<8x16xf32>
    %344 = arith.maximumf %342, %343 : vector<8x16xf32>
    %345 = vector.extract_strided_slice %344 {offsets = [0, 0], sizes = [1, 16], strides = [1, 1]} : vector<8x16xf32> to vector<1x16xf32>
    %346 = vector.extract_strided_slice %344 {offsets = [1, 0], sizes = [7, 16], strides = [1, 1]} : vector<8x16xf32> to vector<7x16xf32>
    %347 = vector.extract_strided_slice %344 {offsets = [0, 0], sizes = [7, 16], strides = [1, 1]} : vector<8x16xf32> to vector<7x16xf32>
    %348 = arith.maximumf %346, %347 : vector<7x16xf32>
    %349 = tpu.concatenate %345, %348 in 0 : vector<1x16xf32>, vector<7x16xf32> -> vector<8x16xf32>
    %350 = tpu.concatenate %316, %327, %338, %349 in 1 : vector<8x16xf32>, vector<8x16xf32>, vector<8x16xf32>, vector<8x16xf32> -> vector<8x64xf32>
    %c8 = arith.constant 8 : index
    %c0_198 = arith.constant 0 : index
    %351 = vector.load %arg18[%c8, %c0_198] : memref<16x64xf32, #tpu.memory_space<vmem>>, vector<8x64xf32>
    tpu.vector_store %arg18[%c8, %c0_198], %350 {strides = array<i32>} : memref<16x64xf32, #tpu.memory_space<vmem>>, vector<8x64xf32>,
    return
  }
  func.func @transform_0(%arg0: i32) -> (i32, i32, i32) {
    %c0_i32 = arith.constant 0 : i32
    %c0_i32_0 = arith.constant 0 : i32
    %c0_i32_1 = arith.constant 0 : i32
    %c0_i32_2 = arith.constant 0 : i32
    return %c0_i32, %c0_i32_0, %c0_i32_1 : i32, i32, i32
  }
  func.func @transform_1(%arg0: i32) -> (i32, i32) {
    %c0_i32 = arith.constant 0 : i32
    %c0_i32_0 = arith.constant 0 : i32
    %c0_i32_1 = arith.constant 0 : i32
    return %c0_i32, %c0_i32_0 : i32, i32
  }
  func.func @transform_2(%arg0: i32) -> (i32, i32) {
    %c0_i32 = arith.constant 0 : i32
    %c0_i32_0 = arith.constant 0 : i32
    %c0_i32_1 = arith.constant 0 : i32
    return %c0_i32, %c0_i32_0 : i32, i32
  }
  func.func @transform_3(%arg0: i32) -> (i32, i32) {
    %c0_i32 = arith.constant 0 : i32
    %c0_i32_0 = arith.constant 0 : i32
    %c0_i32_1 = arith.constant 0 : i32
    return %c0_i32, %c0_i32_0 : i32, i32
  }
  func.func @transform_4(%arg0: i32) -> (i32, i32) {
    %c0_i32 = arith.constant 0 : i32
    %c0_i32_0 = arith.constant 0 : i32
    %c0_i32_1 = arith.constant 0 : i32
    return %c0_i32, %c0_i32_0 : i32, i32
  }
  func.func @transform_5(%arg0: i32) -> (i32, i32) {
    %c0_i32 = arith.constant 0 : i32
    %c0_i32_0 = arith.constant 0 : i32
    %c0_i32_1 = arith.constant 0 : i32
    return %c0_i32, %c0_i32_0 : i32, i32
  }
  func.func @transform_6(%arg0: i32) -> (i32, i32) {
    %c0_i32 = arith.constant 0 : i32
    %c0_i32_0 = arith.constant 0 : i32
    %c0_i32_1 = arith.constant 0 : i32
    return %c0_i32, %c0_i32_0 : i32, i32
  }
  func.func @transform_7(%arg0: i32) -> (i32, i32) {
    %c0_i32 = arith.constant 0 : i32
    %c0_i32_0 = arith.constant 0 : i32
    %c0_i32_1 = arith.constant 0 : i32
    return %c0_i32, %c0_i32_0 : i32, i32
  }
  func.func @transform_8(%arg0: i32) -> (i32, i32) {
    %c0_i32 = arith.constant 0 : i32
    %c0_i32_0 = arith.constant 0 : i32
    %c0_i32_1 = arith.constant 0 : i32
    return %c0_i32, %c0_i32_0 : i32, i32
  }
  func.func @transform_9(%arg0: i32) -> (i32, i32) {
    %c0_i32 = arith.constant 0 : i32
    %c0_i32_0 = arith.constant 0 : i32
    %c0_i32_1 = arith.constant 0 : i32
    return %c0_i32, %c0_i32_0 : i32, i32
  }
  func.func @transform_10(%arg0: i32) -> (i32, i32) {
    %c0_i32 = arith.constant 0 : i32
    %c0_i32_0 = arith.constant 0 : i32
    %c0_i32_1 = arith.constant 0 : i32
    return %c0_i32, %c0_i32_0 : i32, i32
  }
  func.func @transform_11(%arg0: i32) -> (i32, i32) {
    %c0_i32 = arith.constant 0 : i32
    %c0_i32_0 = arith.constant 0 : i32
    %c0_i32_1 = arith.constant 0 : i32
    return %c0_i32, %c0_i32_0 : i32, i32
  }
  func.func @transform_12(%arg0: i32) -> (i32, i32) {
    %c0_i32 = arith.constant 0 : i32
    %c0_i32_0 = arith.constant 0 : i32
    %c0_i32_1 = arith.constant 0 : i32
    return %c0_i32, %c0_i32_0 : i32, i32
  }
  func.func @transform_13(%arg0: i32) -> (i32, i32) {
    %c0_i32 = arith.constant 0 : i32
    %c0_i32_0 = arith.constant 0 : i32
    %c0_i32_1 = arith.constant 0 : i32
    return %c0_i32, %c0_i32_0 : i32, i32
  }
  func.func @transform_14(%arg0: i32) -> (i32, i32) {
    %c0_i32 = arith.constant 0 : i32
    %c0_i32_0 = arith.constant 0 : i32
    %c0_i32_1 = arith.constant 0 : i32
    return %c0_i32, %c0_i32_0 : i32, i32
  }
  func.func @transform_15(%arg0: i32) -> (i32, i32) {
    %c0_i32 = arith.constant 0 : i32
    %c0_i32_0 = arith.constant 0 : i32
    %c0_i32_1 = arith.constant 0 : i32
    return %c0_i32, %c0_i32_0 : i32, i32
  }
  func.func @transform_16(%arg0: i32) -> (i32, i32) {
    %c0_i32 = arith.constant 0 : i32
    %c0_i32_0 = arith.constant 0 : i32
    %c0_i32_1 = arith.constant 0 : i32
    return %c0_i32, %c0_i32_0 : i32, i32
  }
  func.func @transform_17(%arg0: i32) -> (i32, i32) {
    %c0_i32 = arith.constant 0 : i32
    %c0_i32_0 = arith.constant 0 : i32
    %c0_i32_1 = arith.constant 0 : i32
    return %c0_i32, %c0_i32_0 : i32, i32
  }
}

module attributes {stable_mosaic.version = 11 : i64} {
  func.func @_conv_proj_kernel(%arg0: i32, %arg1: memref<2x10x16xf32, #tpu.memory_space<vmem>>, %arg2: memref<48x16xf32, #tpu.memory_space<vmem>>, %arg3: memref<1x16xf32, #tpu.memory_space<vmem>>, %arg4: memref<1x16xf32, #tpu.memory_space<vmem>>, %arg5: memref<1x16xf32, #tpu.memory_space<vmem>>, %arg6: memref<16x16xf32, #tpu.memory_space<vmem>>, %arg7: memref<16x16xf32, #tpu.memory_space<vmem>>) attributes {dimension_semantics = [#tpu.dimension_semantics<arbitrary>], iteration_bounds = array<i64: 1>, scalar_prefetch = 0 : i64, scratch_operands = 0 : i64, tpu.core_type = #tpu.core_type<tc>, window_params = [{pipeline_mode = #tpu.pipeline_mode<synchronous>, transform_indices = @transform_0, window_bounds = array<i64: 2, 10, 16>}, {pipeline_mode = #tpu.pipeline_mode<synchronous>, transform_indices = @transform_1, window_bounds = array<i64: 48, 16>}, {pipeline_mode = #tpu.pipeline_mode<synchronous>, transform_indices = @transform_2, window_bounds = array<i64: 1, 16>}, {pipeline_mode = #tpu.pipeline_mode<synchronous>, transform_indices = @transform_3, window_bounds = array<i64: 1, 16>}, {pipeline_mode = #tpu.pipeline_mode<synchronous>, transform_indices = @transform_4, window_bounds = array<i64: 1, 16>}, {pipeline_mode = #tpu.pipeline_mode<synchronous>, transform_indices = @transform_5, window_bounds = array<i64: 16, 16>}, {pipeline_mode = #tpu.pipeline_mode<synchronous>, transform_indices = @transform_6, window_bounds = array<i64: 16, 16>}]} {
    %cst = arith.constant 0.000000e+00 : f32
    %0 = vector.broadcast %cst : f32 to vector<8x16xf32>
    %c0 = arith.constant 0 : index
    %c0_0 = arith.constant 0 : index
    %c0_1 = arith.constant 0 : index
    %1 = vector.load %arg1[%c0, %c0_0, %c0_1] : memref<2x10x16xf32, #tpu.memory_space<vmem>>, vector<1x8x16xf32>
    %2 = vector.shape_cast %1 : vector<1x8x16xf32> to vector<8x16xf32>
    %c0_2 = arith.constant 0 : index
    %c0_3 = arith.constant 0 : index
    %3 = vector.load %arg2[%c0_2, %c0_3] : memref<48x16xf32, #tpu.memory_space<vmem>>, vector<16x16xf32>
    %cst_4 = arith.constant dense<0.000000e+00> : vector<8x16xf32>
    %4 = tpu.matmul %2, %3, %cst_4 {dimension_numbers = #tpu.dot_dimension_numbers<[1], [0], [0], [1], [0, 0, 1, 1], [], []>} : vector<8x16xf32>, vector<16x16xf32>, vector<8x16xf32> -> vector<8x16xf32>
    %5 = arith.addf %0, %4 : vector<8x16xf32>
    %c0_5 = arith.constant 0 : index
    %c1 = arith.constant 1 : index
    %c0_6 = arith.constant 0 : index
    %6 = vector.load %arg1[%c0_5, %c1, %c0_6] : memref<2x10x16xf32, #tpu.memory_space<vmem>>, vector<1x8x16xf32>
    %7 = vector.shape_cast %6 : vector<1x8x16xf32> to vector<8x16xf32>
    %c16 = arith.constant 16 : index
    %c0_7 = arith.constant 0 : index
    %8 = vector.load %arg2[%c16, %c0_7] : memref<48x16xf32, #tpu.memory_space<vmem>>, vector<16x16xf32>
    %cst_8 = arith.constant dense<0.000000e+00> : vector<8x16xf32>
    %9 = tpu.matmul %7, %8, %cst_8 {dimension_numbers = #tpu.dot_dimension_numbers<[1], [0], [0], [1], [0, 0, 1, 1], [], []>} : vector<8x16xf32>, vector<16x16xf32>, vector<8x16xf32> -> vector<8x16xf32>
    %10 = arith.addf %5, %9 : vector<8x16xf32>
    %c0_9 = arith.constant 0 : index
    %c2 = arith.constant 2 : index
    %c0_10 = arith.constant 0 : index
    %11 = vector.load %arg1[%c0_9, %c2, %c0_10] : memref<2x10x16xf32, #tpu.memory_space<vmem>>, vector<1x8x16xf32>
    %12 = vector.shape_cast %11 : vector<1x8x16xf32> to vector<8x16xf32>
    %c32 = arith.constant 32 : index
    %c0_11 = arith.constant 0 : index
    %13 = vector.load %arg2[%c32, %c0_11] : memref<48x16xf32, #tpu.memory_space<vmem>>, vector<16x16xf32>
    %cst_12 = arith.constant dense<0.000000e+00> : vector<8x16xf32>
    %14 = tpu.matmul %12, %13, %cst_12 {dimension_numbers = #tpu.dot_dimension_numbers<[1], [0], [0], [1], [0, 0, 1, 1], [], []>} : vector<8x16xf32>, vector<16x16xf32>, vector<8x16xf32> -> vector<8x16xf32>
    %15 = arith.addf %10, %14 : vector<8x16xf32>
    %c0_13 = arith.constant 0 : index
    %c0_14 = arith.constant 0 : index
    %16 = vector.load %arg3[%c0_13, %c0_14] : memref<1x16xf32, #tpu.memory_space<vmem>>, vector<1x16xf32>
    %17 = vector.broadcast %16 : vector<1x16xf32> to vector<8x16xf32>
    %18 = arith.addf %15, %17 : vector<8x16xf32>
    %cst_15 = arith.constant 0.000000e+00 : f32
    %19 = vector.broadcast %cst_15 : f32 to vector<8x16xf32>
    %c1_16 = arith.constant 1 : index
    %c0_17 = arith.constant 0 : index
    %c0_18 = arith.constant 0 : index
    %20 = vector.load %arg1[%c1_16, %c0_17, %c0_18] : memref<2x10x16xf32, #tpu.memory_space<vmem>>, vector<1x8x16xf32>
    %21 = vector.shape_cast %20 : vector<1x8x16xf32> to vector<8x16xf32>
    %c0_19 = arith.constant 0 : index
    %c0_20 = arith.constant 0 : index
    %22 = vector.load %arg2[%c0_19, %c0_20] : memref<48x16xf32, #tpu.memory_space<vmem>>, vector<16x16xf32>
    %cst_21 = arith.constant dense<0.000000e+00> : vector<8x16xf32>
    %23 = tpu.matmul %21, %22, %cst_21 {dimension_numbers = #tpu.dot_dimension_numbers<[1], [0], [0], [1], [0, 0, 1, 1], [], []>} : vector<8x16xf32>, vector<16x16xf32>, vector<8x16xf32> -> vector<8x16xf32>
    %24 = arith.addf %19, %23 : vector<8x16xf32>
    %c1_22 = arith.constant 1 : index
    %c1_23 = arith.constant 1 : index
    %c0_24 = arith.constant 0 : index
    %25 = vector.load %arg1[%c1_22, %c1_23, %c0_24] : memref<2x10x16xf32, #tpu.memory_space<vmem>>, vector<1x8x16xf32>
    %26 = vector.shape_cast %25 : vector<1x8x16xf32> to vector<8x16xf32>
    %c16_25 = arith.constant 16 : index
    %c0_26 = arith.constant 0 : index
    %27 = vector.load %arg2[%c16_25, %c0_26] : memref<48x16xf32, #tpu.memory_space<vmem>>, vector<16x16xf32>
    %cst_27 = arith.constant dense<0.000000e+00> : vector<8x16xf32>
    %28 = tpu.matmul %26, %27, %cst_27 {dimension_numbers = #tpu.dot_dimension_numbers<[1], [0], [0], [1], [0, 0, 1, 1], [], []>} : vector<8x16xf32>, vector<16x16xf32>, vector<8x16xf32> -> vector<8x16xf32>
    %29 = arith.addf %24, %28 : vector<8x16xf32>
    %c1_28 = arith.constant 1 : index
    %c2_29 = arith.constant 2 : index
    %c0_30 = arith.constant 0 : index
    %30 = vector.load %arg1[%c1_28, %c2_29, %c0_30] : memref<2x10x16xf32, #tpu.memory_space<vmem>>, vector<1x8x16xf32>
    %31 = vector.shape_cast %30 : vector<1x8x16xf32> to vector<8x16xf32>
    %c32_31 = arith.constant 32 : index
    %c0_32 = arith.constant 0 : index
    %32 = vector.load %arg2[%c32_31, %c0_32] : memref<48x16xf32, #tpu.memory_space<vmem>>, vector<16x16xf32>
    %cst_33 = arith.constant dense<0.000000e+00> : vector<8x16xf32>
    %33 = tpu.matmul %31, %32, %cst_33 {dimension_numbers = #tpu.dot_dimension_numbers<[1], [0], [0], [1], [0, 0, 1, 1], [], []>} : vector<8x16xf32>, vector<16x16xf32>, vector<8x16xf32> -> vector<8x16xf32>
    %34 = arith.addf %29, %33 : vector<8x16xf32>
    %c0_34 = arith.constant 0 : index
    %c0_35 = arith.constant 0 : index
    %35 = vector.load %arg3[%c0_34, %c0_35] : memref<1x16xf32, #tpu.memory_space<vmem>>, vector<1x16xf32>
    %36 = vector.broadcast %35 : vector<1x16xf32> to vector<8x16xf32>
    %37 = arith.addf %34, %36 : vector<8x16xf32>
    %cst_36 = arith.constant dense<0.000000e+00> : vector<16xf32>
    %38 = vector.multi_reduction <add>, %18, %cst_36 [0] : vector<8x16xf32> to vector<16xf32>
    %39 = vector.shape_cast %38 : vector<16xf32> to vector<1x16xf32>
    %cst_37 = arith.constant 0.000000e+00 : f32
    %40 = vector.broadcast %cst_37 : f32 to vector<1x16xf32>
    %41 = arith.addf %40, %39 : vector<1x16xf32>
    %cst_38 = arith.constant dense<0.000000e+00> : vector<16xf32>
    %42 = vector.multi_reduction <add>, %37, %cst_38 [0] : vector<8x16xf32> to vector<16xf32>
    %43 = vector.shape_cast %42 : vector<16xf32> to vector<1x16xf32>
    %44 = arith.addf %41, %43 : vector<1x16xf32>
    %cst_39 = arith.constant 1.600000e+01 : f32
    %45 = vector.broadcast %cst_39 : f32 to vector<1x16xf32>
    %46 = arith.divf %44, %45 : vector<1x16xf32>
    %47 = vector.broadcast %46 : vector<1x16xf32> to vector<8x16xf32>
    %48 = arith.subf %18, %47 : vector<8x16xf32>
    %49 = arith.mulf %48, %48 : vector<8x16xf32>
    %cst_40 = arith.constant dense<0.000000e+00> : vector<16xf32>
    %50 = vector.multi_reduction <add>, %49, %cst_40 [0] : vector<8x16xf32> to vector<16xf32>
    %51 = vector.shape_cast %50 : vector<16xf32> to vector<1x16xf32>
    %cst_41 = arith.constant 0.000000e+00 : f32
    %52 = vector.broadcast %cst_41 : f32 to vector<1x16xf32>
    %53 = arith.addf %52, %51 : vector<1x16xf32>
    %54 = vector.broadcast %46 : vector<1x16xf32> to vector<8x16xf32>
    %55 = arith.subf %37, %54 : vector<8x16xf32>
    %56 = arith.mulf %55, %55 : vector<8x16xf32>
    %cst_42 = arith.constant dense<0.000000e+00> : vector<16xf32>
    %57 = vector.multi_reduction <add>, %56, %cst_42 [0] : vector<8x16xf32> to vector<16xf32>
    %58 = vector.shape_cast %57 : vector<16xf32> to vector<1x16xf32>
    %59 = arith.addf %53, %58 : vector<1x16xf32>
    %cst_43 = arith.constant 1.600000e+01 : f32
    %60 = vector.broadcast %cst_43 : f32 to vector<1x16xf32>
    %61 = arith.divf %59, %60 : vector<1x16xf32>
    %cst_44 = arith.constant 9.99999974E-6 : f32
    %62 = vector.broadcast %cst_44 : f32 to vector<1x16xf32>
    %63 = arith.addf %61, %62 : vector<1x16xf32>
    %64 = math.rsqrt %63 : vector<1x16xf32>
    %c0_45 = arith.constant 0 : index
    %c0_46 = arith.constant 0 : index
    %65 = vector.load %arg4[%c0_45, %c0_46] : memref<1x16xf32, #tpu.memory_space<vmem>>, vector<1x16xf32>
    %66 = arith.mulf %64, %65 : vector<1x16xf32>
    %c0_47 = arith.constant 0 : index
    %c0_48 = arith.constant 0 : index
    %67 = vector.load %arg5[%c0_47, %c0_48] : memref<1x16xf32, #tpu.memory_space<vmem>>, vector<1x16xf32>
    %68 = arith.mulf %46, %66 : vector<1x16xf32>
    %69 = arith.subf %67, %68 : vector<1x16xf32>
    %70 = vector.broadcast %66 : vector<1x16xf32> to vector<8x16xf32>
    %71 = arith.mulf %18, %70 : vector<8x16xf32>
    %72 = vector.broadcast %69 : vector<1x16xf32> to vector<8x16xf32>
    %73 = arith.addf %71, %72 : vector<8x16xf32>
    %c0_49 = arith.constant 0 : index
    %c0_50 = arith.constant 0 : index
    %74 = vector.load %arg6[%c0_49, %c0_50] : memref<16x16xf32, #tpu.memory_space<vmem>>, vector<8x16xf32>
    %75 = arith.addf %73, %74 : vector<8x16xf32>
    %c0_51 = arith.constant 0 : index
    %c0_52 = arith.constant 0 : index
    %76 = vector.load %arg7[%c0_51, %c0_52] : memref<16x16xf32, #tpu.memory_space<vmem>>, vector<8x16xf32>
    tpu.vector_store %arg7[%c0_51, %c0_52], %75 {strides = array<i32>} : memref<16x16xf32, #tpu.memory_space<vmem>>, vector<8x16xf32>,
    %77 = vector.broadcast %66 : vector<1x16xf32> to vector<8x16xf32>
    %78 = arith.mulf %37, %77 : vector<8x16xf32>
    %79 = vector.broadcast %69 : vector<1x16xf32> to vector<8x16xf32>
    %80 = arith.addf %78, %79 : vector<8x16xf32>
    %c8 = arith.constant 8 : index
    %c0_53 = arith.constant 0 : index
    %81 = vector.load %arg6[%c8, %c0_53] : memref<16x16xf32, #tpu.memory_space<vmem>>, vector<8x16xf32>
    %82 = arith.addf %80, %81 : vector<8x16xf32>
    %c8_54 = arith.constant 8 : index
    %c0_55 = arith.constant 0 : index
    %83 = vector.load %arg7[%c8_54, %c0_55] : memref<16x16xf32, #tpu.memory_space<vmem>>, vector<8x16xf32>
    tpu.vector_store %arg7[%c8_54, %c0_55], %82 {strides = array<i32>} : memref<16x16xf32, #tpu.memory_space<vmem>>, vector<8x16xf32>,
    return
  }
  func.func @transform_0(%arg0: i32) -> (i32, i32, i32) {
    %c0_i32 = arith.constant 0 : i32
    %c0_i32_0 = arith.constant 0 : i32
    %c0_i32_1 = arith.constant 0 : i32
    %c0_i32_2 = arith.constant 0 : i32
    return %c0_i32, %c0_i32_0, %c0_i32_1 : i32, i32, i32
  }
  func.func @transform_1(%arg0: i32) -> (i32, i32) {
    %c0_i32 = arith.constant 0 : i32
    %c0_i32_0 = arith.constant 0 : i32
    %c0_i32_1 = arith.constant 0 : i32
    return %c0_i32, %c0_i32_0 : i32, i32
  }
  func.func @transform_2(%arg0: i32) -> (i32, i32) {
    %c0_i32 = arith.constant 0 : i32
    %c0_i32_0 = arith.constant 0 : i32
    %c0_i32_1 = arith.constant 0 : i32
    return %c0_i32, %c0_i32_0 : i32, i32
  }
  func.func @transform_3(%arg0: i32) -> (i32, i32) {
    %c0_i32 = arith.constant 0 : i32
    %c0_i32_0 = arith.constant 0 : i32
    %c0_i32_1 = arith.constant 0 : i32
    return %c0_i32, %c0_i32_0 : i32, i32
  }
  func.func @transform_4(%arg0: i32) -> (i32, i32) {
    %c0_i32 = arith.constant 0 : i32
    %c0_i32_0 = arith.constant 0 : i32
    %c0_i32_1 = arith.constant 0 : i32
    return %c0_i32, %c0_i32_0 : i32, i32
  }
  func.func @transform_5(%arg0: i32) -> (i32, i32) {
    %c0_i32 = arith.constant 0 : i32
    %c0_i32_0 = arith.constant 0 : i32
    %c0_i32_1 = arith.constant 0 : i32
    return %c0_i32, %c0_i32_0 : i32, i32
  }
  func.func @transform_6(%arg0: i32) -> (i32, i32) {
    %c0_i32 = arith.constant 0 : i32
    %c0_i32_0 = arith.constant 0 : i32
    %c0_i32_1 = arith.constant 0 : i32
    return %c0_i32, %c0_i32_0 : i32, i32
  }
}

module attributes {stable_mosaic.version = 11 : i64} {
  func.func @_highway_stack_kernel(%arg0: i32, %arg1: memref<16x16xf32, #tpu.memory_space<vmem>>, %arg2: memref<4x16x16xf32, #tpu.memory_space<vmem>>, %arg3: memref<4x1x16xf32, #tpu.memory_space<vmem>>, %arg4: memref<4x16x16xf32, #tpu.memory_space<vmem>>, %arg5: memref<4x1x16xf32, #tpu.memory_space<vmem>>, %arg6: memref<16x16xf32, #tpu.memory_space<vmem>>) attributes {dimension_semantics = [#tpu.dimension_semantics<arbitrary>], iteration_bounds = array<i64: 1>, scalar_prefetch = 0 : i64, scratch_operands = 0 : i64, tpu.core_type = #tpu.core_type<tc>, window_params = [{pipeline_mode = #tpu.pipeline_mode<synchronous>, transform_indices = @transform_0, window_bounds = array<i64: 16, 16>}, {pipeline_mode = #tpu.pipeline_mode<synchronous>, transform_indices = @transform_1, window_bounds = array<i64: 4, 16, 16>}, {pipeline_mode = #tpu.pipeline_mode<synchronous>, transform_indices = @transform_2, window_bounds = array<i64: 4, 1, 16>}, {pipeline_mode = #tpu.pipeline_mode<synchronous>, transform_indices = @transform_3, window_bounds = array<i64: 4, 16, 16>}, {pipeline_mode = #tpu.pipeline_mode<synchronous>, transform_indices = @transform_4, window_bounds = array<i64: 4, 1, 16>}, {pipeline_mode = #tpu.pipeline_mode<synchronous>, transform_indices = @transform_5, window_bounds = array<i64: 16, 16>}]} {
    %c0 = arith.constant 0 : index
    %c0_0 = arith.constant 0 : index
    %0 = vector.load %arg1[%c0, %c0_0] : memref<16x16xf32, #tpu.memory_space<vmem>>, vector<16x16xf32>
    %c0_1 = arith.constant 0 : index
    %c0_2 = arith.constant 0 : index
    %c0_3 = arith.constant 0 : index
    %1 = vector.load %arg2[%c0_1, %c0_2, %c0_3] : memref<4x16x16xf32, #tpu.memory_space<vmem>>, vector<1x16x16xf32>
    %2 = vector.shape_cast %1 : vector<1x16x16xf32> to vector<16x16xf32>
    %cst = arith.constant dense<0.000000e+00> : vector<16x16xf32>
    %3 = tpu.matmul %0, %2, %cst {dimension_numbers = #tpu.dot_dimension_numbers<[1], [0], [0], [1], [0, 0, 1, 1], [], []>} : vector<16x16xf32>, vector<16x16xf32>, vector<16x16xf32> -> vector<16x16xf32>
    %c0_4 = arith.constant 0 : index
    %c0_5 = arith.constant 0 : index
    %c0_6 = arith.constant 0 : index
    %4 = vector.load %arg3[%c0_4, %c0_5, %c0_6] : memref<4x1x16xf32, #tpu.memory_space<vmem>>, vector<1x1x16xf32>
    %5 = vector.shape_cast %4 : vector<1x1x16xf32> to vector<1x16xf32>
    %6 = vector.broadcast %5 : vector<1x16xf32> to vector<16x16xf32>
    %7 = arith.addf %3, %6 : vector<16x16xf32>
    %cst_7 = arith.constant 0.000000e+00 : f32
    %8 = vector.broadcast %cst_7 : f32 to vector<16x16xf32>
    %9 = arith.maximumf %7, %8 : vector<16x16xf32>
    %c0_8 = arith.constant 0 : index
    %c0_9 = arith.constant 0 : index
    %c0_10 = arith.constant 0 : index
    %10 = vector.load %arg4[%c0_8, %c0_9, %c0_10] : memref<4x16x16xf32, #tpu.memory_space<vmem>>, vector<1x16x16xf32>
    %11 = vector.shape_cast %10 : vector<1x16x16xf32> to vector<16x16xf32>
    %cst_11 = arith.constant dense<0.000000e+00> : vector<16x16xf32>
    %12 = tpu.matmul %0, %11, %cst_11 {dimension_numbers = #tpu.dot_dimension_numbers<[1], [0], [0], [1], [0, 0, 1, 1], [], []>} : vector<16x16xf32>, vector<16x16xf32>, vector<16x16xf32> -> vector<16x16xf32>
    %c0_12 = arith.constant 0 : index
    %c0_13 = arith.constant 0 : index
    %c0_14 = arith.constant 0 : index
    %13 = vector.load %arg5[%c0_12, %c0_13, %c0_14] : memref<4x1x16xf32, #tpu.memory_space<vmem>>, vector<1x1x16xf32>
    %14 = vector.shape_cast %13 : vector<1x1x16xf32> to vector<1x16xf32>
    %15 = vector.broadcast %14 : vector<1x16xf32> to vector<16x16xf32>
    %16 = arith.addf %12, %15 : vector<16x16xf32>
    %17 = arith.negf %16 : vector<16x16xf32>
    %18 = math.exp %17 : vector<16x16xf32>
    %cst_15 = arith.constant 1.000000e+00 : f32
    %19 = vector.broadcast %cst_15 : f32 to vector<16x16xf32>
    %20 = arith.addf %19, %18 : vector<16x16xf32>
    %21 = arith.divf %19, %20 : vector<16x16xf32>
    %22 = arith.mulf %9, %21 : vector<16x16xf32>
    %cst_16 = arith.constant 1.000000e+00 : f32
    %23 = vector.broadcast %cst_16 : f32 to vector<16x16xf32>
    %24 = arith.subf %23, %21 : vector<16x16xf32>
    %25 = arith.mulf %0, %24 : vector<16x16xf32>
    %26 = arith.addf %22, %25 : vector<16x16xf32>
    %c1 = arith.constant 1 : index
    %c0_17 = arith.constant 0 : index
    %c0_18 = arith.constant 0 : index
    %27 = vector.load %arg2[%c1, %c0_17, %c0_18] : memref<4x16x16xf32, #tpu.memory_space<vmem>>, vector<1x16x16xf32>
    %28 = vector.shape_cast %27 : vector<1x16x16xf32> to vector<16x16xf32>
    %cst_19 = arith.constant dense<0.000000e+00> : vector<16x16xf32>
    %29 = tpu.matmul %26, %28, %cst_19 {dimension_numbers = #tpu.dot_dimension_numbers<[1], [0], [0], [1], [0, 0, 1, 1], [], []>} : vector<16x16xf32>, vector<16x16xf32>, vector<16x16xf32> -> vector<16x16xf32>
    %c1_20 = arith.constant 1 : index
    %c0_21 = arith.constant 0 : index
    %c0_22 = arith.constant 0 : index
    %30 = vector.load %arg3[%c1_20, %c0_21, %c0_22] : memref<4x1x16xf32, #tpu.memory_space<vmem>>, vector<1x1x16xf32>
    %31 = vector.shape_cast %30 : vector<1x1x16xf32> to vector<1x16xf32>
    %32 = vector.broadcast %31 : vector<1x16xf32> to vector<16x16xf32>
    %33 = arith.addf %29, %32 : vector<16x16xf32>
    %cst_23 = arith.constant 0.000000e+00 : f32
    %34 = vector.broadcast %cst_23 : f32 to vector<16x16xf32>
    %35 = arith.maximumf %33, %34 : vector<16x16xf32>
    %c1_24 = arith.constant 1 : index
    %c0_25 = arith.constant 0 : index
    %c0_26 = arith.constant 0 : index
    %36 = vector.load %arg4[%c1_24, %c0_25, %c0_26] : memref<4x16x16xf32, #tpu.memory_space<vmem>>, vector<1x16x16xf32>
    %37 = vector.shape_cast %36 : vector<1x16x16xf32> to vector<16x16xf32>
    %cst_27 = arith.constant dense<0.000000e+00> : vector<16x16xf32>
    %38 = tpu.matmul %26, %37, %cst_27 {dimension_numbers = #tpu.dot_dimension_numbers<[1], [0], [0], [1], [0, 0, 1, 1], [], []>} : vector<16x16xf32>, vector<16x16xf32>, vector<16x16xf32> -> vector<16x16xf32>
    %c1_28 = arith.constant 1 : index
    %c0_29 = arith.constant 0 : index
    %c0_30 = arith.constant 0 : index
    %39 = vector.load %arg5[%c1_28, %c0_29, %c0_30] : memref<4x1x16xf32, #tpu.memory_space<vmem>>, vector<1x1x16xf32>
    %40 = vector.shape_cast %39 : vector<1x1x16xf32> to vector<1x16xf32>
    %41 = vector.broadcast %40 : vector<1x16xf32> to vector<16x16xf32>
    %42 = arith.addf %38, %41 : vector<16x16xf32>
    %43 = arith.negf %42 : vector<16x16xf32>
    %44 = math.exp %43 : vector<16x16xf32>
    %cst_31 = arith.constant 1.000000e+00 : f32
    %45 = vector.broadcast %cst_31 : f32 to vector<16x16xf32>
    %46 = arith.addf %45, %44 : vector<16x16xf32>
    %47 = arith.divf %45, %46 : vector<16x16xf32>
    %48 = arith.mulf %35, %47 : vector<16x16xf32>
    %cst_32 = arith.constant 1.000000e+00 : f32
    %49 = vector.broadcast %cst_32 : f32 to vector<16x16xf32>
    %50 = arith.subf %49, %47 : vector<16x16xf32>
    %51 = arith.mulf %26, %50 : vector<16x16xf32>
    %52 = arith.addf %48, %51 : vector<16x16xf32>
    %c2 = arith.constant 2 : index
    %c0_33 = arith.constant 0 : index
    %c0_34 = arith.constant 0 : index
    %53 = vector.load %arg2[%c2, %c0_33, %c0_34] : memref<4x16x16xf32, #tpu.memory_space<vmem>>, vector<1x16x16xf32>
    %54 = vector.shape_cast %53 : vector<1x16x16xf32> to vector<16x16xf32>
    %cst_35 = arith.constant dense<0.000000e+00> : vector<16x16xf32>
    %55 = tpu.matmul %52, %54, %cst_35 {dimension_numbers = #tpu.dot_dimension_numbers<[1], [0], [0], [1], [0, 0, 1, 1], [], []>} : vector<16x16xf32>, vector<16x16xf32>, vector<16x16xf32> -> vector<16x16xf32>
    %c2_36 = arith.constant 2 : index
    %c0_37 = arith.constant 0 : index
    %c0_38 = arith.constant 0 : index
    %56 = vector.load %arg3[%c2_36, %c0_37, %c0_38] : memref<4x1x16xf32, #tpu.memory_space<vmem>>, vector<1x1x16xf32>
    %57 = vector.shape_cast %56 : vector<1x1x16xf32> to vector<1x16xf32>
    %58 = vector.broadcast %57 : vector<1x16xf32> to vector<16x16xf32>
    %59 = arith.addf %55, %58 : vector<16x16xf32>
    %cst_39 = arith.constant 0.000000e+00 : f32
    %60 = vector.broadcast %cst_39 : f32 to vector<16x16xf32>
    %61 = arith.maximumf %59, %60 : vector<16x16xf32>
    %c2_40 = arith.constant 2 : index
    %c0_41 = arith.constant 0 : index
    %c0_42 = arith.constant 0 : index
    %62 = vector.load %arg4[%c2_40, %c0_41, %c0_42] : memref<4x16x16xf32, #tpu.memory_space<vmem>>, vector<1x16x16xf32>
    %63 = vector.shape_cast %62 : vector<1x16x16xf32> to vector<16x16xf32>
    %cst_43 = arith.constant dense<0.000000e+00> : vector<16x16xf32>
    %64 = tpu.matmul %52, %63, %cst_43 {dimension_numbers = #tpu.dot_dimension_numbers<[1], [0], [0], [1], [0, 0, 1, 1], [], []>} : vector<16x16xf32>, vector<16x16xf32>, vector<16x16xf32> -> vector<16x16xf32>
    %c2_44 = arith.constant 2 : index
    %c0_45 = arith.constant 0 : index
    %c0_46 = arith.constant 0 : index
    %65 = vector.load %arg5[%c2_44, %c0_45, %c0_46] : memref<4x1x16xf32, #tpu.memory_space<vmem>>, vector<1x1x16xf32>
    %66 = vector.shape_cast %65 : vector<1x1x16xf32> to vector<1x16xf32>
    %67 = vector.broadcast %66 : vector<1x16xf32> to vector<16x16xf32>
    %68 = arith.addf %64, %67 : vector<16x16xf32>
    %69 = arith.negf %68 : vector<16x16xf32>
    %70 = math.exp %69 : vector<16x16xf32>
    %cst_47 = arith.constant 1.000000e+00 : f32
    %71 = vector.broadcast %cst_47 : f32 to vector<16x16xf32>
    %72 = arith.addf %71, %70 : vector<16x16xf32>
    %73 = arith.divf %71, %72 : vector<16x16xf32>
    %74 = arith.mulf %61, %73 : vector<16x16xf32>
    %cst_48 = arith.constant 1.000000e+00 : f32
    %75 = vector.broadcast %cst_48 : f32 to vector<16x16xf32>
    %76 = arith.subf %75, %73 : vector<16x16xf32>
    %77 = arith.mulf %52, %76 : vector<16x16xf32>
    %78 = arith.addf %74, %77 : vector<16x16xf32>
    %c3 = arith.constant 3 : index
    %c0_49 = arith.constant 0 : index
    %c0_50 = arith.constant 0 : index
    %79 = vector.load %arg2[%c3, %c0_49, %c0_50] : memref<4x16x16xf32, #tpu.memory_space<vmem>>, vector<1x16x16xf32>
    %80 = vector.shape_cast %79 : vector<1x16x16xf32> to vector<16x16xf32>
    %cst_51 = arith.constant dense<0.000000e+00> : vector<16x16xf32>
    %81 = tpu.matmul %78, %80, %cst_51 {dimension_numbers = #tpu.dot_dimension_numbers<[1], [0], [0], [1], [0, 0, 1, 1], [], []>} : vector<16x16xf32>, vector<16x16xf32>, vector<16x16xf32> -> vector<16x16xf32>
    %c3_52 = arith.constant 3 : index
    %c0_53 = arith.constant 0 : index
    %c0_54 = arith.constant 0 : index
    %82 = vector.load %arg3[%c3_52, %c0_53, %c0_54] : memref<4x1x16xf32, #tpu.memory_space<vmem>>, vector<1x1x16xf32>
    %83 = vector.shape_cast %82 : vector<1x1x16xf32> to vector<1x16xf32>
    %84 = vector.broadcast %83 : vector<1x16xf32> to vector<16x16xf32>
    %85 = arith.addf %81, %84 : vector<16x16xf32>
    %cst_55 = arith.constant 0.000000e+00 : f32
    %86 = vector.broadcast %cst_55 : f32 to vector<16x16xf32>
    %87 = arith.maximumf %85, %86 : vector<16x16xf32>
    %c3_56 = arith.constant 3 : index
    %c0_57 = arith.constant 0 : index
    %c0_58 = arith.constant 0 : index
    %88 = vector.load %arg4[%c3_56, %c0_57, %c0_58] : memref<4x16x16xf32, #tpu.memory_space<vmem>>, vector<1x16x16xf32>
    %89 = vector.shape_cast %88 : vector<1x16x16xf32> to vector<16x16xf32>
    %cst_59 = arith.constant dense<0.000000e+00> : vector<16x16xf32>
    %90 = tpu.matmul %78, %89, %cst_59 {dimension_numbers = #tpu.dot_dimension_numbers<[1], [0], [0], [1], [0, 0, 1, 1], [], []>} : vector<16x16xf32>, vector<16x16xf32>, vector<16x16xf32> -> vector<16x16xf32>
    %c3_60 = arith.constant 3 : index
    %c0_61 = arith.constant 0 : index
    %c0_62 = arith.constant 0 : index
    %91 = vector.load %arg5[%c3_60, %c0_61, %c0_62] : memref<4x1x16xf32, #tpu.memory_space<vmem>>, vector<1x1x16xf32>
    %92 = vector.shape_cast %91 : vector<1x1x16xf32> to vector<1x16xf32>
    %93 = vector.broadcast %92 : vector<1x16xf32> to vector<16x16xf32>
    %94 = arith.addf %90, %93 : vector<16x16xf32>
    %95 = arith.negf %94 : vector<16x16xf32>
    %96 = math.exp %95 : vector<16x16xf32>
    %cst_63 = arith.constant 1.000000e+00 : f32
    %97 = vector.broadcast %cst_63 : f32 to vector<16x16xf32>
    %98 = arith.addf %97, %96 : vector<16x16xf32>
    %99 = arith.divf %97, %98 : vector<16x16xf32>
    %100 = arith.mulf %87, %99 : vector<16x16xf32>
    %cst_64 = arith.constant 1.000000e+00 : f32
    %101 = vector.broadcast %cst_64 : f32 to vector<16x16xf32>
    %102 = arith.subf %101, %99 : vector<16x16xf32>
    %103 = arith.mulf %78, %102 : vector<16x16xf32>
    %104 = arith.addf %100, %103 : vector<16x16xf32>
    %c0_65 = arith.constant 0 : index
    %c0_66 = arith.constant 0 : index
    %105 = vector.load %arg6[%c0_65, %c0_66] : memref<16x16xf32, #tpu.memory_space<vmem>>, vector<16x16xf32>
    tpu.vector_store %arg6[%c0_65, %c0_66], %104 {strides = array<i32>} : memref<16x16xf32, #tpu.memory_space<vmem>>, vector<16x16xf32>,
    return
  }
  func.func @transform_0(%arg0: i32) -> (i32, i32) {
    %c0_i32 = arith.constant 0 : i32
    %c0_i32_0 = arith.constant 0 : i32
    %c0_i32_1 = arith.constant 0 : i32
    return %c0_i32, %c0_i32_0 : i32, i32
  }
  func.func @transform_1(%arg0: i32) -> (i32, i32, i32) {
    %c0_i32 = arith.constant 0 : i32
    %c0_i32_0 = arith.constant 0 : i32
    %c0_i32_1 = arith.constant 0 : i32
    %c0_i32_2 = arith.constant 0 : i32
    return %c0_i32, %c0_i32_0, %c0_i32_1 : i32, i32, i32
  }
  func.func @transform_2(%arg0: i32) -> (i32, i32, i32) {
    %c0_i32 = arith.constant 0 : i32
    %c0_i32_0 = arith.constant 0 : i32
    %c0_i32_1 = arith.constant 0 : i32
    %c0_i32_2 = arith.constant 0 : i32
    return %c0_i32, %c0_i32_0, %c0_i32_1 : i32, i32, i32
  }
  func.func @transform_3(%arg0: i32) -> (i32, i32, i32) {
    %c0_i32 = arith.constant 0 : i32
    %c0_i32_0 = arith.constant 0 : i32
    %c0_i32_1 = arith.constant 0 : i32
    %c0_i32_2 = arith.constant 0 : i32
    return %c0_i32, %c0_i32_0, %c0_i32_1 : i32, i32, i32
  }
  func.func @transform_4(%arg0: i32) -> (i32, i32, i32) {
    %c0_i32 = arith.constant 0 : i32
    %c0_i32_0 = arith.constant 0 : i32
    %c0_i32_1 = arith.constant 0 : i32
    %c0_i32_2 = arith.constant 0 : i32
    return %c0_i32, %c0_i32_0, %c0_i32_1 : i32, i32, i32
  }
  func.func @transform_5(%arg0: i32) -> (i32, i32) {
    %c0_i32 = arith.constant 0 : i32
    %c0_i32_0 = arith.constant 0 : i32
    %c0_i32_1 = arith.constant 0 : i32
    return %c0_i32, %c0_i32_0 : i32, i32
  }
}

module attributes {stable_mosaic.version = 11 : i64} {
  func.func @_linear_kernel(%arg0: i32, %arg1: memref<16x16xf32, #tpu.memory_space<vmem>>, %arg2: memref<16x96xf32, #tpu.memory_space<vmem>>, %arg3: memref<1x96xf32, #tpu.memory_space<vmem>>, %arg4: memref<16x96xf32, #tpu.memory_space<vmem>>) attributes {dimension_semantics = [#tpu.dimension_semantics<arbitrary>], iteration_bounds = array<i64: 1>, scalar_prefetch = 0 : i64, scratch_operands = 0 : i64, tpu.core_type = #tpu.core_type<tc>, window_params = [{pipeline_mode = #tpu.pipeline_mode<synchronous>, transform_indices = @transform_0, window_bounds = array<i64: 16, 16>}, {pipeline_mode = #tpu.pipeline_mode<synchronous>, transform_indices = @transform_1, window_bounds = array<i64: 16, 96>}, {pipeline_mode = #tpu.pipeline_mode<synchronous>, transform_indices = @transform_2, window_bounds = array<i64: 1, 96>}, {pipeline_mode = #tpu.pipeline_mode<synchronous>, transform_indices = @transform_3, window_bounds = array<i64: 16, 96>}]} {
    %c0 = arith.constant 0 : index
    %c0_0 = arith.constant 0 : index
    %0 = vector.load %arg1[%c0, %c0_0] : memref<16x16xf32, #tpu.memory_space<vmem>>, vector<16x16xf32>
    %c0_1 = arith.constant 0 : index
    %c0_2 = arith.constant 0 : index
    %1 = vector.load %arg2[%c0_1, %c0_2] : memref<16x96xf32, #tpu.memory_space<vmem>>, vector<16x96xf32>
    %cst = arith.constant dense<0.000000e+00> : vector<16x96xf32>
    %2 = tpu.matmul %0, %1, %cst {dimension_numbers = #tpu.dot_dimension_numbers<[1], [0], [0], [1], [0, 0, 1, 1], [], []>} : vector<16x16xf32>, vector<16x96xf32>, vector<16x96xf32> -> vector<16x96xf32>
    %c0_3 = arith.constant 0 : index
    %c0_4 = arith.constant 0 : index
    %3 = vector.load %arg3[%c0_3, %c0_4] : memref<1x96xf32, #tpu.memory_space<vmem>>, vector<1x96xf32>
    %4 = vector.broadcast %3 : vector<1x96xf32> to vector<16x96xf32>
    %5 = arith.addf %2, %4 : vector<16x96xf32>
    %c0_5 = arith.constant 0 : index
    %c0_6 = arith.constant 0 : index
    %6 = vector.load %arg4[%c0_5, %c0_6] : memref<16x96xf32, #tpu.memory_space<vmem>>, vector<16x96xf32>
    tpu.vector_store %arg4[%c0_5, %c0_6], %5 {strides = array<i32>} : memref<16x96xf32, #tpu.memory_space<vmem>>, vector<16x96xf32>,
    return
  }
  func.func @transform_0(%arg0: i32) -> (i32, i32) {
    %c0_i32 = arith.constant 0 : i32
    %c0_i32_0 = arith.constant 0 : i32
    %c0_i32_1 = arith.constant 0 : i32
    return %c0_i32, %c0_i32_0 : i32, i32
  }
  func.func @transform_1(%arg0: i32) -> (i32, i32) {
    %c0_i32 = arith.constant 0 : i32
    %c0_i32_0 = arith.constant 0 : i32
    %c0_i32_1 = arith.constant 0 : i32
    return %c0_i32, %c0_i32_0 : i32, i32
  }
  func.func @transform_2(%arg0: i32) -> (i32, i32) {
    %c0_i32 = arith.constant 0 : i32
    %c0_i32_0 = arith.constant 0 : i32
    %c0_i32_1 = arith.constant 0 : i32
    return %c0_i32, %c0_i32_0 : i32, i32
  }
  func.func @transform_3(%arg0: i32) -> (i32, i32) {
    %c0_i32 = arith.constant 0 : i32
    %c0_i32_0 = arith.constant 0 : i32
    %c0_i32_1 = arith.constant 0 : i32
    return %c0_i32, %c0_i32_0 : i32, i32
  }
}

module attributes {stable_mosaic.version = 11 : i64} {
  func.func @_bigru_kernel(%arg0: i32, %arg1: memref<1x2x96xf32, #tpu.memory_space<vmem>>, %arg2: memref<1x2x96xf32, #tpu.memory_space<vmem>>, %arg3: memref<16x48xf32, #tpu.memory_space<vmem>>, %arg4: memref<1x48xf32, #tpu.memory_space<vmem>>, %arg5: memref<16x48xf32, #tpu.memory_space<vmem>>, %arg6: memref<1x48xf32, #tpu.memory_space<vmem>>, %arg7: memref<1x2x16xf32, #tpu.memory_space<vmem>>, %arg8: memref<1x2x16xf32, #tpu.memory_space<vmem>>, %arg9: memref<2x16xf32, #tpu.memory_space<vmem>>, %arg10: memref<2x16xf32, #tpu.memory_space<vmem>>) attributes {dimension_semantics = [#tpu.dimension_semantics<arbitrary>], iteration_bounds = array<i64: 8>, scalar_prefetch = 0 : i64, scratch_operands = 2 : i64, tpu.core_type = #tpu.core_type<tc>, window_params = [{transform_indices = @transform_0, window_bounds = array<i64: 1, 2, 96>}, {transform_indices = @transform_1, window_bounds = array<i64: 1, 2, 96>}, {pipeline_mode = #tpu.pipeline_mode<synchronous>, transform_indices = @transform_2, window_bounds = array<i64: 16, 48>}, {pipeline_mode = #tpu.pipeline_mode<synchronous>, transform_indices = @transform_3, window_bounds = array<i64: 1, 48>}, {pipeline_mode = #tpu.pipeline_mode<synchronous>, transform_indices = @transform_4, window_bounds = array<i64: 16, 48>}, {pipeline_mode = #tpu.pipeline_mode<synchronous>, transform_indices = @transform_5, window_bounds = array<i64: 1, 48>}, {transform_indices = @transform_6, window_bounds = array<i64: 1, 2, 16>}, {transform_indices = @transform_7, window_bounds = array<i64: 1, 2, 16>}]} {
    %c0_i32 = arith.constant 0 : i32
    %0 = arith.cmpi eq, %arg0, %c0_i32 : i32
    %1 = arith.extui %0 : i1 to i32
    %c0_i32_0 = arith.constant 0 : i32
    %2 = arith.cmpi ne, %1, %c0_i32_0 : i32
    scf.if %2 {
      %cst_35 = arith.constant 0.000000e+00 : f32
      %81 = vector.broadcast %cst_35 : f32 to vector<2x16xf32>
      %c0_36 = arith.constant 0 : index
      %c0_37 = arith.constant 0 : index
      %82 = vector.load %arg9[%c0_36, %c0_37] : memref<2x16xf32, #tpu.memory_space<vmem>>, vector<2x16xf32>
      tpu.vector_store %arg9[%c0_36, %c0_37], %81 {strides = array<i32>} : memref<2x16xf32, #tpu.memory_space<vmem>>, vector<2x16xf32>,
      %cst_38 = arith.constant 0.000000e+00 : f32
      %83 = vector.broadcast %cst_38 : f32 to vector<2x16xf32>
      %c0_39 = arith.constant 0 : index
      %c0_40 = arith.constant 0 : index
      %84 = vector.load %arg10[%c0_39, %c0_40] : memref<2x16xf32, #tpu.memory_space<vmem>>, vector<2x16xf32>
      tpu.vector_store %arg10[%c0_39, %c0_40], %83 {strides = array<i32>} : memref<2x16xf32, #tpu.memory_space<vmem>>, vector<2x16xf32>,
    } else {
    }
    %c0 = arith.constant 0 : index
    %c0_1 = arith.constant 0 : index
    %c0_2 = arith.constant 0 : index
    %3 = vector.load %arg1[%c0, %c0_1, %c0_2] : memref<1x2x96xf32, #tpu.memory_space<vmem>>, vector<1x2x96xf32>
    %4 = vector.shape_cast %3 : vector<1x2x96xf32> to vector<2x96xf32>
    %c0_3 = arith.constant 0 : index
    %c0_4 = arith.constant 0 : index
    %c0_5 = arith.constant 0 : index
    %5 = vector.load %arg2[%c0_3, %c0_4, %c0_5] : memref<1x2x96xf32, #tpu.memory_space<vmem>>, vector<1x2x96xf32>
    %6 = vector.shape_cast %5 : vector<1x2x96xf32> to vector<2x96xf32>
    %7 = vector.extract_strided_slice %4 {offsets = [0, 0], sizes = [2, 48], strides = [1, 1]} : vector<2x96xf32> to vector<2x48xf32>
    %c0_6 = arith.constant 0 : index
    %c0_7 = arith.constant 0 : index
    %8 = vector.load %arg9[%c0_6, %c0_7] : memref<2x16xf32, #tpu.memory_space<vmem>>, vector<2x16xf32>
    %c0_8 = arith.constant 0 : index
    %c0_9 = arith.constant 0 : index
    %9 = vector.load %arg3[%c0_8, %c0_9] : memref<16x48xf32, #tpu.memory_space<vmem>>, vector<16x48xf32>
    %c0_10 = arith.constant 0 : index
    %c0_11 = arith.constant 0 : index
    %10 = vector.load %arg4[%c0_10, %c0_11] : memref<1x48xf32, #tpu.memory_space<vmem>>, vector<1x48xf32>
    %cst = arith.constant dense<0.000000e+00> : vector<2x48xf32>
    %11 = tpu.matmul %8, %9, %cst {dimension_numbers = #tpu.dot_dimension_numbers<[1], [0], [0], [1], [0, 0, 1, 1], [], []>} : vector<2x16xf32>, vector<16x48xf32>, vector<2x48xf32> -> vector<2x48xf32>
    %12 = vector.broadcast %10 : vector<1x48xf32> to vector<2x48xf32>
    %13 = arith.addf %11, %12 : vector<2x48xf32>
    %14 = vector.extract_strided_slice %7 {offsets = [0, 0], sizes = [2, 16], strides = [1, 1]} : vector<2x48xf32> to vector<2x16xf32>
    %15 = vector.extract_strided_slice %13 {offsets = [0, 0], sizes = [2, 16], strides = [1, 1]} : vector<2x48xf32> to vector<2x16xf32>
    %16 = arith.addf %14, %15 : vector<2x16xf32>
    %17 = arith.negf %16 : vector<2x16xf32>
    %18 = math.exp %17 : vector<2x16xf32>
    %cst_12 = arith.constant 1.000000e+00 : f32
    %19 = vector.broadcast %cst_12 : f32 to vector<2x16xf32>
    %20 = arith.addf %19, %18 : vector<2x16xf32>
    %21 = arith.divf %19, %20 : vector<2x16xf32>
    %22 = vector.extract_strided_slice %7 {offsets = [0, 16], sizes = [2, 16], strides = [1, 1]} : vector<2x48xf32> to vector<2x16xf32>
    %23 = vector.extract_strided_slice %13 {offsets = [0, 16], sizes = [2, 16], strides = [1, 1]} : vector<2x48xf32> to vector<2x16xf32>
    %24 = arith.addf %22, %23 : vector<2x16xf32>
    %25 = arith.negf %24 : vector<2x16xf32>
    %26 = math.exp %25 : vector<2x16xf32>
    %cst_13 = arith.constant 1.000000e+00 : f32
    %27 = vector.broadcast %cst_13 : f32 to vector<2x16xf32>
    %28 = arith.addf %27, %26 : vector<2x16xf32>
    %29 = arith.divf %27, %28 : vector<2x16xf32>
    %30 = vector.extract_strided_slice %7 {offsets = [0, 32], sizes = [2, 16], strides = [1, 1]} : vector<2x48xf32> to vector<2x16xf32>
    %31 = vector.extract_strided_slice %13 {offsets = [0, 32], sizes = [2, 16], strides = [1, 1]} : vector<2x48xf32> to vector<2x16xf32>
    %32 = arith.mulf %21, %31 : vector<2x16xf32>
    %33 = arith.addf %30, %32 : vector<2x16xf32>
    %34 = math.tanh %33 : vector<2x16xf32>
    %cst_14 = arith.constant 1.000000e+00 : f32
    %35 = vector.broadcast %cst_14 : f32 to vector<2x16xf32>
    %36 = arith.subf %35, %29 : vector<2x16xf32>
    %37 = arith.mulf %36, %34 : vector<2x16xf32>
    %38 = arith.mulf %29, %8 : vector<2x16xf32>
    %39 = arith.addf %37, %38 : vector<2x16xf32>
    %40 = vector.extract_strided_slice %6 {offsets = [0, 48], sizes = [2, 48], strides = [1, 1]} : vector<2x96xf32> to vector<2x48xf32>
    %c0_15 = arith.constant 0 : index
    %c0_16 = arith.constant 0 : index
    %41 = vector.load %arg10[%c0_15, %c0_16] : memref<2x16xf32, #tpu.memory_space<vmem>>, vector<2x16xf32>
    %c0_17 = arith.constant 0 : index
    %c0_18 = arith.constant 0 : index
    %42 = vector.load %arg5[%c0_17, %c0_18] : memref<16x48xf32, #tpu.memory_space<vmem>>, vector<16x48xf32>
    %c0_19 = arith.constant 0 : index
    %c0_20 = arith.constant 0 : index
    %43 = vector.load %arg6[%c0_19, %c0_20] : memref<1x48xf32, #tpu.memory_space<vmem>>, vector<1x48xf32>
    %cst_21 = arith.constant dense<0.000000e+00> : vector<2x48xf32>
    %44 = tpu.matmul %41, %42, %cst_21 {dimension_numbers = #tpu.dot_dimension_numbers<[1], [0], [0], [1], [0, 0, 1, 1], [], []>} : vector<2x16xf32>, vector<16x48xf32>, vector<2x48xf32> -> vector<2x48xf32>
    %45 = vector.broadcast %43 : vector<1x48xf32> to vector<2x48xf32>
    %46 = arith.addf %44, %45 : vector<2x48xf32>
    %47 = vector.extract_strided_slice %40 {offsets = [0, 0], sizes = [2, 16], strides = [1, 1]} : vector<2x48xf32> to vector<2x16xf32>
    %48 = vector.extract_strided_slice %46 {offsets = [0, 0], sizes = [2, 16], strides = [1, 1]} : vector<2x48xf32> to vector<2x16xf32>
    %49 = arith.addf %47, %48 : vector<2x16xf32>
    %50 = arith.negf %49 : vector<2x16xf32>
    %51 = math.exp %50 : vector<2x16xf32>
    %cst_22 = arith.constant 1.000000e+00 : f32
    %52 = vector.broadcast %cst_22 : f32 to vector<2x16xf32>
    %53 = arith.addf %52, %51 : vector<2x16xf32>
    %54 = arith.divf %52, %53 : vector<2x16xf32>
    %55 = vector.extract_strided_slice %40 {offsets = [0, 16], sizes = [2, 16], strides = [1, 1]} : vector<2x48xf32> to vector<2x16xf32>
    %56 = vector.extract_strided_slice %46 {offsets = [0, 16], sizes = [2, 16], strides = [1, 1]} : vector<2x48xf32> to vector<2x16xf32>
    %57 = arith.addf %55, %56 : vector<2x16xf32>
    %58 = arith.negf %57 : vector<2x16xf32>
    %59 = math.exp %58 : vector<2x16xf32>
    %cst_23 = arith.constant 1.000000e+00 : f32
    %60 = vector.broadcast %cst_23 : f32 to vector<2x16xf32>
    %61 = arith.addf %60, %59 : vector<2x16xf32>
    %62 = arith.divf %60, %61 : vector<2x16xf32>
    %63 = vector.extract_strided_slice %40 {offsets = [0, 32], sizes = [2, 16], strides = [1, 1]} : vector<2x48xf32> to vector<2x16xf32>
    %64 = vector.extract_strided_slice %46 {offsets = [0, 32], sizes = [2, 16], strides = [1, 1]} : vector<2x48xf32> to vector<2x16xf32>
    %65 = arith.mulf %54, %64 : vector<2x16xf32>
    %66 = arith.addf %63, %65 : vector<2x16xf32>
    %67 = math.tanh %66 : vector<2x16xf32>
    %cst_24 = arith.constant 1.000000e+00 : f32
    %68 = vector.broadcast %cst_24 : f32 to vector<2x16xf32>
    %69 = arith.subf %68, %62 : vector<2x16xf32>
    %70 = arith.mulf %69, %67 : vector<2x16xf32>
    %71 = arith.mulf %62, %41 : vector<2x16xf32>
    %72 = arith.addf %70, %71 : vector<2x16xf32>
    %c0_25 = arith.constant 0 : index
    %c0_26 = arith.constant 0 : index
    %73 = vector.load %arg9[%c0_25, %c0_26] : memref<2x16xf32, #tpu.memory_space<vmem>>, vector<2x16xf32>
    tpu.vector_store %arg9[%c0_25, %c0_26], %39 {strides = array<i32>} : memref<2x16xf32, #tpu.memory_space<vmem>>, vector<2x16xf32>,
    %c0_27 = arith.constant 0 : index
    %c0_28 = arith.constant 0 : index
    %74 = vector.load %arg10[%c0_27, %c0_28] : memref<2x16xf32, #tpu.memory_space<vmem>>, vector<2x16xf32>
    tpu.vector_store %arg10[%c0_27, %c0_28], %72 {strides = array<i32>} : memref<2x16xf32, #tpu.memory_space<vmem>>, vector<2x16xf32>,
    %c0_29 = arith.constant 0 : index
    %c0_30 = arith.constant 0 : index
    %c0_31 = arith.constant 0 : index
    %75 = vector.load %arg7[%c0_29, %c0_30, %c0_31] : memref<1x2x16xf32, #tpu.memory_space<vmem>>, vector<1x2x16xf32>
    %76 = vector.shape_cast %75 : vector<1x2x16xf32> to vector<2x16xf32>
    %77 = vector.shape_cast %39 : vector<2x16xf32> to vector<1x2x16xf32>
    tpu.vector_store %arg7[%c0_29, %c0_30, %c0_31], %77 {strides = array<i32>} : memref<1x2x16xf32, #tpu.memory_space<vmem>>, vector<1x2x16xf32>,
    %c0_32 = arith.constant 0 : index
    %c0_33 = arith.constant 0 : index
    %c0_34 = arith.constant 0 : index
    %78 = vector.load %arg8[%c0_32, %c0_33, %c0_34] : memref<1x2x16xf32, #tpu.memory_space<vmem>>, vector<1x2x16xf32>
    %79 = vector.shape_cast %78 : vector<1x2x16xf32> to vector<2x16xf32>
    %80 = vector.shape_cast %72 : vector<2x16xf32> to vector<1x2x16xf32>
    tpu.vector_store %arg8[%c0_32, %c0_33, %c0_34], %80 {strides = array<i32>} : memref<1x2x16xf32, #tpu.memory_space<vmem>>, vector<1x2x16xf32>,
    return
  }
  func.func @transform_0(%arg0: i32) -> (i32, i32, i32) {
    %c0_i32 = arith.constant 0 : i32
    %c0_i32_0 = arith.constant 0 : i32
    %c0_i32_1 = arith.constant 0 : i32
    return %arg0, %c0_i32, %c0_i32_0 : i32, i32, i32
  }
  func.func @transform_1(%arg0: i32) -> (i32, i32, i32) {
    %c7_i32 = arith.constant 7 : i32
    %0 = arith.subi %c7_i32, %arg0 : i32
    %c0_i32 = arith.constant 0 : i32
    %c0_i32_0 = arith.constant 0 : i32
    %c0_i32_1 = arith.constant 0 : i32
    return %0, %c0_i32, %c0_i32_0 : i32, i32, i32
  }
  func.func @transform_2(%arg0: i32) -> (i32, i32) {
    %c0_i32 = arith.constant 0 : i32
    %c0_i32_0 = arith.constant 0 : i32
    %c0_i32_1 = arith.constant 0 : i32
    return %c0_i32, %c0_i32_0 : i32, i32
  }
  func.func @transform_3(%arg0: i32) -> (i32, i32) {
    %c0_i32 = arith.constant 0 : i32
    %c0_i32_0 = arith.constant 0 : i32
    %c0_i32_1 = arith.constant 0 : i32
    return %c0_i32, %c0_i32_0 : i32, i32
  }
  func.func @transform_4(%arg0: i32) -> (i32, i32) {
    %c0_i32 = arith.constant 0 : i32
    %c0_i32_0 = arith.constant 0 : i32
    %c0_i32_1 = arith.constant 0 : i32
    return %c0_i32, %c0_i32_0 : i32, i32
  }
  func.func @transform_5(%arg0: i32) -> (i32, i32) {
    %c0_i32 = arith.constant 0 : i32
    %c0_i32_0 = arith.constant 0 : i32
    %c0_i32_1 = arith.constant 0 : i32
    return %c0_i32, %c0_i32_0 : i32, i32
  }
  func.func @transform_6(%arg0: i32) -> (i32, i32, i32) {
    %c0_i32 = arith.constant 0 : i32
    %c0_i32_0 = arith.constant 0 : i32
    %c0_i32_1 = arith.constant 0 : i32
    return %arg0, %c0_i32, %c0_i32_0 : i32, i32, i32
  }
  func.func @transform_7(%arg0: i32) -> (i32, i32, i32) {
    %c7_i32 = arith.constant 7 : i32
    %0 = arith.subi %c7_i32, %arg0 : i32
    %c0_i32 = arith.constant 0 : i32
    %c0_i32_0 = arith.constant 0 : i32
    %c0_i32_1 = arith.constant 0 : i32
    return %0, %c0_i32, %c0_i32_0 : i32, i32, i32
  }
}

module attributes {stable_mosaic.version = 11 : i64} {
  func.func @_linear_kernel(%arg0: i32, %arg1: memref<16x32xf32, #tpu.memory_space<vmem>>, %arg2: memref<32x32xf32, #tpu.memory_space<vmem>>, %arg3: memref<1x32xf32, #tpu.memory_space<vmem>>, %arg4: memref<16x32xf32, #tpu.memory_space<vmem>>) attributes {dimension_semantics = [#tpu.dimension_semantics<arbitrary>], iteration_bounds = array<i64: 1>, scalar_prefetch = 0 : i64, scratch_operands = 0 : i64, tpu.core_type = #tpu.core_type<tc>, window_params = [{pipeline_mode = #tpu.pipeline_mode<synchronous>, transform_indices = @transform_0, window_bounds = array<i64: 16, 32>}, {pipeline_mode = #tpu.pipeline_mode<synchronous>, transform_indices = @transform_1, window_bounds = array<i64: 32, 32>}, {pipeline_mode = #tpu.pipeline_mode<synchronous>, transform_indices = @transform_2, window_bounds = array<i64: 1, 32>}, {pipeline_mode = #tpu.pipeline_mode<synchronous>, transform_indices = @transform_3, window_bounds = array<i64: 16, 32>}]} {
    %c0 = arith.constant 0 : index
    %c0_0 = arith.constant 0 : index
    %0 = vector.load %arg1[%c0, %c0_0] : memref<16x32xf32, #tpu.memory_space<vmem>>, vector<16x32xf32>
    %c0_1 = arith.constant 0 : index
    %c0_2 = arith.constant 0 : index
    %1 = vector.load %arg2[%c0_1, %c0_2] : memref<32x32xf32, #tpu.memory_space<vmem>>, vector<32x32xf32>
    %cst = arith.constant dense<0.000000e+00> : vector<16x32xf32>
    %2 = tpu.matmul %0, %1, %cst {dimension_numbers = #tpu.dot_dimension_numbers<[1], [0], [0], [1], [0, 0, 1, 1], [], []>} : vector<16x32xf32>, vector<32x32xf32>, vector<16x32xf32> -> vector<16x32xf32>
    %c0_3 = arith.constant 0 : index
    %c0_4 = arith.constant 0 : index
    %3 = vector.load %arg3[%c0_3, %c0_4] : memref<1x32xf32, #tpu.memory_space<vmem>>, vector<1x32xf32>
    %4 = vector.broadcast %3 : vector<1x32xf32> to vector<16x32xf32>
    %5 = arith.addf %2, %4 : vector<16x32xf32>
    %c0_5 = arith.constant 0 : index
    %c0_6 = arith.constant 0 : index
    %6 = vector.load %arg4[%c0_5, %c0_6] : memref<16x32xf32, #tpu.memory_space<vmem>>, vector<16x32xf32>
    tpu.vector_store %arg4[%c0_5, %c0_6], %5 {strides = array<i32>} : memref<16x32xf32, #tpu.memory_space<vmem>>, vector<16x32xf32>,
    return
  }
  func.func @transform_0(%arg0: i32) -> (i32, i32) {
    %c0_i32 = arith.constant 0 : i32
    %c0_i32_0 = arith.constant 0 : i32
    %c0_i32_1 = arith.constant 0 : i32
    return %c0_i32, %c0_i32_0 : i32, i32
  }
  func.func @transform_1(%arg0: i32) -> (i32, i32) {
    %c0_i32 = arith.constant 0 : i32
    %c0_i32_0 = arith.constant 0 : i32
    %c0_i32_1 = arith.constant 0 : i32
    return %c0_i32, %c0_i32_0 : i32, i32
  }
  func.func @transform_2(%arg0: i32) -> (i32, i32) {
    %c0_i32 = arith.constant 0 : i32
    %c0_i32_0 = arith.constant 0 : i32
    %c0_i32_1 = arith.constant 0 : i32
    return %c0_i32, %c0_i32_0 : i32, i32
  }
  func.func @transform_3(%arg0: i32) -> (i32, i32) {
    %c0_i32 = arith.constant 0 : i32
    %c0_i32_0 = arith.constant 0 : i32
    %c0_i32_1 = arith.constant 0 : i32
    return %c0_i32, %c0_i32_0 : i32, i32
  }
}

module attributes {stable_mosaic.version = 11 : i64} {
  func.func @_attn_rnn_kernel(%arg0: i32, %arg1: memref<1x2x96xf32, #tpu.memory_space<vmem>>, %arg2: memref<32x96xf32, #tpu.memory_space<vmem>>, %arg3: memref<1x96xf32, #tpu.memory_space<vmem>>, %arg4: memref<32x32xf32, #tpu.memory_space<vmem>>, %arg5: memref<2x8x32xf32, #tpu.memory_space<vmem>>, %arg6: memref<1x32xf32, #tpu.memory_space<vmem>>, %arg7: memref<2x8x32xf32, #tpu.memory_space<vmem>>, %arg8: memref<2x8xf32, #tpu.memory_space<vmem>>, %arg9: memref<1x2x64xf32, #tpu.memory_space<vmem>>, %arg10: memref<1x2x8xf32, #tpu.memory_space<vmem>>, %arg11: memref<2x32xf32, #tpu.memory_space<vmem>>) attributes {dimension_semantics = [#tpu.dimension_semantics<arbitrary>], iteration_bounds = array<i64: 4>, scalar_prefetch = 0 : i64, scratch_operands = 1 : i64, tpu.core_type = #tpu.core_type<tc>, window_params = [{transform_indices = @transform_0, window_bounds = array<i64: 1, 2, 96>}, {pipeline_mode = #tpu.pipeline_mode<synchronous>, transform_indices = @transform_1, window_bounds = array<i64: 32, 96>}, {pipeline_mode = #tpu.pipeline_mode<synchronous>, transform_indices = @transform_2, window_bounds = array<i64: 1, 96>}, {pipeline_mode = #tpu.pipeline_mode<synchronous>, transform_indices = @transform_3, window_bounds = array<i64: 32, 32>}, {pipeline_mode = #tpu.pipeline_mode<synchronous>, transform_indices = @transform_4, window_bounds = array<i64: 2, 8, 32>}, {pipeline_mode = #tpu.pipeline_mode<synchronous>, transform_indices = @transform_5, window_bounds = array<i64: 1, 32>}, {pipeline_mode = #tpu.pipeline_mode<synchronous>, transform_indices = @transform_6, window_bounds = array<i64: 2, 8, 32>}, {pipeline_mode = #tpu.pipeline_mode<synchronous>, transform_indices = @transform_7, window_bounds = array<i64: 2, 8>}, {transform_indices = @transform_8, window_bounds = array<i64: 1, 2, 64>}, {transform_indices = @transform_9, window_bounds = array<i64: 1, 2, 8>}]} {
    %c0_i32 = arith.constant 0 : i32
    %0 = arith.cmpi eq, %arg0, %c0_i32 : i32
    %1 = arith.extui %0 : i1 to i32
    %c0_i32_0 = arith.constant 0 : i32
    %2 = arith.cmpi ne, %1, %c0_i32_0 : i32
    scf.if %2 {
      %cst_40 = arith.constant 0.000000e+00 : f32
      %79 = vector.broadcast %cst_40 : f32 to vector<2x32xf32>
      %c0_41 = arith.constant 0 : index
      %c0_42 = arith.constant 0 : index
      %80 = vector.load %arg11[%c0_41, %c0_42] : memref<2x32xf32, #tpu.memory_space<vmem>>, vector<2x32xf32>
      tpu.vector_store %arg11[%c0_41, %c0_42], %79 {strides = array<i32>} : memref<2x32xf32, #tpu.memory_space<vmem>>, vector<2x32xf32>,
    } else {
    }
    %c0 = arith.constant 0 : index
    %c0_1 = arith.constant 0 : index
    %c0_2 = arith.constant 0 : index
    %3 = vector.load %arg1[%c0, %c0_1, %c0_2] : memref<1x2x96xf32, #tpu.memory_space<vmem>>, vector<1x2x96xf32>
    %4 = vector.shape_cast %3 : vector<1x2x96xf32> to vector<2x96xf32>
    %c0_3 = arith.constant 0 : index
    %c0_4 = arith.constant 0 : index
    %5 = vector.load %arg11[%c0_3, %c0_4] : memref<2x32xf32, #tpu.memory_space<vmem>>, vector<2x32xf32>
    %c0_5 = arith.constant 0 : index
    %c0_6 = arith.constant 0 : index
    %6 = vector.load %arg2[%c0_5, %c0_6] : memref<32x96xf32, #tpu.memory_space<vmem>>, vector<32x96xf32>
    %c0_7 = arith.constant 0 : index
    %c0_8 = arith.constant 0 : index
    %7 = vector.load %arg3[%c0_7, %c0_8] : memref<1x96xf32, #tpu.memory_space<vmem>>, vector<1x96xf32>
    %cst = arith.constant dense<0.000000e+00> : vector<2x96xf32>
    %8 = tpu.matmul %5, %6, %cst {dimension_numbers = #tpu.dot_dimension_numbers<[1], [0], [0], [1], [0, 0, 1, 1], [], []>} : vector<2x32xf32>, vector<32x96xf32>, vector<2x96xf32> -> vector<2x96xf32>
    %9 = vector.broadcast %7 : vector<1x96xf32> to vector<2x96xf32>
    %10 = arith.addf %8, %9 : vector<2x96xf32>
    %11 = vector.extract_strided_slice %4 {offsets = [0, 0], sizes = [2, 32], strides = [1, 1]} : vector<2x96xf32> to vector<2x32xf32>
    %12 = vector.extract_strided_slice %10 {offsets = [0, 0], sizes = [2, 32], strides = [1, 1]} : vector<2x96xf32> to vector<2x32xf32>
    %13 = arith.addf %11, %12 : vector<2x32xf32>
    %14 = arith.negf %13 : vector<2x32xf32>
    %15 = math.exp %14 : vector<2x32xf32>
    %cst_9 = arith.constant 1.000000e+00 : f32
    %16 = vector.broadcast %cst_9 : f32 to vector<2x32xf32>
    %17 = arith.addf %16, %15 : vector<2x32xf32>
    %18 = arith.divf %16, %17 : vector<2x32xf32>
    %19 = vector.extract_strided_slice %4 {offsets = [0, 32], sizes = [2, 32], strides = [1, 1]} : vector<2x96xf32> to vector<2x32xf32>
    %20 = vector.extract_strided_slice %10 {offsets = [0, 32], sizes = [2, 32], strides = [1, 1]} : vector<2x96xf32> to vector<2x32xf32>
    %21 = arith.addf %19, %20 : vector<2x32xf32>
    %22 = arith.negf %21 : vector<2x32xf32>
    %23 = math.exp %22 : vector<2x32xf32>
    %cst_10 = arith.constant 1.000000e+00 : f32
    %24 = vector.broadcast %cst_10 : f32 to vector<2x32xf32>
    %25 = arith.addf %24, %23 : vector<2x32xf32>
    %26 = arith.divf %24, %25 : vector<2x32xf32>
    %27 = vector.extract_strided_slice %4 {offsets = [0, 64], sizes = [2, 32], strides = [1, 1]} : vector<2x96xf32> to vector<2x32xf32>
    %28 = vector.extract_strided_slice %10 {offsets = [0, 64], sizes = [2, 32], strides = [1, 1]} : vector<2x96xf32> to vector<2x32xf32>
    %29 = arith.mulf %18, %28 : vector<2x32xf32>
    %30 = arith.addf %27, %29 : vector<2x32xf32>
    %31 = math.tanh %30 : vector<2x32xf32>
    %cst_11 = arith.constant 1.000000e+00 : f32
    %32 = vector.broadcast %cst_11 : f32 to vector<2x32xf32>
    %33 = arith.subf %32, %26 : vector<2x32xf32>
    %34 = arith.mulf %33, %31 : vector<2x32xf32>
    %35 = arith.mulf %26, %5 : vector<2x32xf32>
    %36 = arith.addf %34, %35 : vector<2x32xf32>
    %c0_12 = arith.constant 0 : index
    %c0_13 = arith.constant 0 : index
    %37 = vector.load %arg11[%c0_12, %c0_13] : memref<2x32xf32, #tpu.memory_space<vmem>>, vector<2x32xf32>
    tpu.vector_store %arg11[%c0_12, %c0_13], %36 {strides = array<i32>} : memref<2x32xf32, #tpu.memory_space<vmem>>, vector<2x32xf32>,
    %c0_14 = arith.constant 0 : index
    %c0_15 = arith.constant 0 : index
    %38 = vector.load %arg4[%c0_14, %c0_15] : memref<32x32xf32, #tpu.memory_space<vmem>>, vector<32x32xf32>
    %cst_16 = arith.constant dense<0.000000e+00> : vector<2x32xf32>
    %39 = tpu.matmul %36, %38, %cst_16 {dimension_numbers = #tpu.dot_dimension_numbers<[1], [0], [0], [1], [0, 0, 1, 1], [], []>} : vector<2x32xf32>, vector<32x32xf32>, vector<2x32xf32> -> vector<2x32xf32>
    %40 = vector.shape_cast %39 : vector<2x32xf32> to vector<2x1x32xf32>
    %c0_17 = arith.constant 0 : index
    %c0_18 = arith.constant 0 : index
    %c0_19 = arith.constant 0 : index
    %41 = vector.load %arg5[%c0_17, %c0_18, %c0_19] : memref<2x8x32xf32, #tpu.memory_space<vmem>>, vector<2x8x32xf32>
    %42 = vector.broadcast %40 : vector<2x1x32xf32> to vector<2x8x32xf32>
    %43 = arith.addf %42, %41 : vector<2x8x32xf32>
    %44 = math.tanh %43 : vector<2x8x32xf32>
    %c0_20 = arith.constant 0 : index
    %c0_21 = arith.constant 0 : index
    %45 = vector.load %arg6[%c0_20, %c0_21] : memref<1x32xf32, #tpu.memory_space<vmem>>, vector<1x32xf32>
    %46 = vector.shape_cast %45 : vector<1x32xf32> to vector<1x1x32xf32>
    %47 = vector.broadcast %46 : vector<1x1x32xf32> to vector<2x8x32xf32>
    %48 = arith.mulf %44, %47 : vector<2x8x32xf32>
    %cst_22 = arith.constant dense<0.000000e+00> : vector<2x8xf32>
    %49 = vector.multi_reduction <add>, %48, %cst_22 [2] : vector<2x8x32xf32> to vector<2x8xf32>
    %c0_23 = arith.constant 0 : index
    %c0_24 = arith.constant 0 : index
    %50 = vector.load %arg8[%c0_23, %c0_24] : memref<2x8xf32, #tpu.memory_space<vmem>>, vector<2x8xf32>
    %cst_25 = arith.constant 5.000000e-01 : f32
    %51 = vector.broadcast %cst_25 : f32 to vector<2x8xf32>
    %52 = arith.cmpf ogt, %50, %51 : vector<2x8xf32>
    %cst_26 = arith.constant -1.000000e+30 : f32
    %53 = vector.broadcast %cst_26 : f32 to vector<2x8xf32>
    %54 = arith.select %52, %49, %53 : vector<2x8xi1>, vector<2x8xf32>
    %cst_27 = arith.constant dense<0xFF800000> : vector<2xf32>
    %55 = vector.multi_reduction <maximumf>, %54, %cst_27 [1] : vector<2x8xf32> to vector<2xf32>
    %56 = vector.shape_cast %55 : vector<2xf32> to vector<2x1xf32>
    %57 = vector.broadcast %56 : vector<2x1xf32> to vector<2x8xf32>
    %58 = arith.subf %54, %57 : vector<2x8xf32>
    %59 = math.exp %58 : vector<2x8xf32>
    %60 = arith.mulf %59, %50 : vector<2x8xf32>
    %cst_28 = arith.constant dense<0.000000e+00> : vector<2xf32>
    %61 = vector.multi_reduction <add>, %60, %cst_28 [1] : vector<2x8xf32> to vector<2xf32>
    %62 = vector.shape_cast %61 : vector<2xf32> to vector<2x1xf32>
    %cst_29 = arith.constant 9.99999968E-21 : f32
    %63 = vector.broadcast %cst_29 : f32 to vector<2x1xf32>
    %64 = arith.maximumf %62, %63 : vector<2x1xf32>
    %65 = vector.broadcast %64 : vector<2x1xf32> to vector<2x8xf32>
    %66 = arith.divf %60, %65 : vector<2x8xf32>
    %67 = vector.shape_cast %66 : vector<2x8xf32> to vector<2x8x1xf32>
    %c0_30 = arith.constant 0 : index
    %c0_31 = arith.constant 0 : index
    %c0_32 = arith.constant 0 : index
    %68 = vector.load %arg7[%c0_30, %c0_31, %c0_32] : memref<2x8x32xf32, #tpu.memory_space<vmem>>, vector<2x8x32xf32>
    %69 = vector.broadcast %67 : vector<2x8x1xf32> to vector<2x8x32xf32>
    %70 = arith.mulf %69, %68 : vector<2x8x32xf32>
    %cst_33 = arith.constant dense<0.000000e+00> : vector<2x32xf32>
    %71 = vector.multi_reduction <add>, %70, %cst_33 [1] : vector<2x8x32xf32> to vector<2x32xf32>
    %72 = tpu.concatenate %36, %71 in 1 : vector<2x32xf32>, vector<2x32xf32> -> vector<2x64xf32>
    %c0_34 = arith.constant 0 : index
    %c0_35 = arith.constant 0 : index
    %c0_36 = arith.constant 0 : index
    %73 = vector.load %arg9[%c0_34, %c0_35, %c0_36] : memref<1x2x64xf32, #tpu.memory_space<vmem>>, vector<1x2x64xf32>
    %74 = vector.shape_cast %73 : vector<1x2x64xf32> to vector<2x64xf32>
    %75 = vector.shape_cast %72 : vector<2x64xf32> to vector<1x2x64xf32>
    tpu.vector_store %arg9[%c0_34, %c0_35, %c0_36], %75 {strides = array<i32>} : memref<1x2x64xf32, #tpu.memory_space<vmem>>, vector<1x2x64xf32>,
    %c0_37 = arith.constant 0 : index
    %c0_38 = arith.constant 0 : index
    %c0_39 = arith.constant 0 : index
    %76 = vector.load %arg10[%c0_37, %c0_38, %c0_39] : memref<1x2x8xf32, #tpu.memory_space<vmem>>, vector<1x2x8xf32>
    %77 = vector.shape_cast %76 : vector<1x2x8xf32> to vector<2x8xf32>
    %78 = vector.shape_cast %66 : vector<2x8xf32> to vector<1x2x8xf32>
    tpu.vector_store %arg10[%c0_37, %c0_38, %c0_39], %78 {strides = array<i32>} : memref<1x2x8xf32, #tpu.memory_space<vmem>>, vector<1x2x8xf32>,
    return
  }
  func.func @transform_0(%arg0: i32) -> (i32, i32, i32) {
    %c0_i32 = arith.constant 0 : i32
    %c0_i32_0 = arith.constant 0 : i32
    %c0_i32_1 = arith.constant 0 : i32
    return %arg0, %c0_i32, %c0_i32_0 : i32, i32, i32
  }
  func.func @transform_1(%arg0: i32) -> (i32, i32) {
    %c0_i32 = arith.constant 0 : i32
    %c0_i32_0 = arith.constant 0 : i32
    %c0_i32_1 = arith.constant 0 : i32
    return %c0_i32, %c0_i32_0 : i32, i32
  }
  func.func @transform_2(%arg0: i32) -> (i32, i32) {
    %c0_i32 = arith.constant 0 : i32
    %c0_i32_0 = arith.constant 0 : i32
    %c0_i32_1 = arith.constant 0 : i32
    return %c0_i32, %c0_i32_0 : i32, i32
  }
  func.func @transform_3(%arg0: i32) -> (i32, i32) {
    %c0_i32 = arith.constant 0 : i32
    %c0_i32_0 = arith.constant 0 : i32
    %c0_i32_1 = arith.constant 0 : i32
    return %c0_i32, %c0_i32_0 : i32, i32
  }
  func.func @transform_4(%arg0: i32) -> (i32, i32, i32) {
    %c0_i32 = arith.constant 0 : i32
    %c0_i32_0 = arith.constant 0 : i32
    %c0_i32_1 = arith.constant 0 : i32
    %c0_i32_2 = arith.constant 0 : i32
    return %c0_i32, %c0_i32_0, %c0_i32_1 : i32, i32, i32
  }
  func.func @transform_5(%arg0: i32) -> (i32, i32) {
    %c0_i32 = arith.constant 0 : i32
    %c0_i32_0 = arith.constant 0 : i32
    %c0_i32_1 = arith.constant 0 : i32
    return %c0_i32, %c0_i32_0 : i32, i32
  }
  func.func @transform_6(%arg0: i32) -> (i32, i32, i32) {
    %c0_i32 = arith.constant 0 : i32
    %c0_i32_0 = arith.constant 0 : i32
    %c0_i32_1 = arith.constant 0 : i32
    %c0_i32_2 = arith.constant 0 : i32
    return %c0_i32, %c0_i32_0, %c0_i32_1 : i32, i32, i32
  }
  func.func @transform_7(%arg0: i32) -> (i32, i32) {
    %c0_i32 = arith.constant 0 : i32
    %c0_i32_0 = arith.constant 0 : i32
    %c0_i32_1 = arith.constant 0 : i32
    return %c0_i32, %c0_i32_0 : i32, i32
  }
  func.func @transform_8(%arg0: i32) -> (i32, i32, i32) {
    %c0_i32 = arith.constant 0 : i32
    %c0_i32_0 = arith.constant 0 : i32
    %c0_i32_1 = arith.constant 0 : i32
    return %arg0, %c0_i32, %c0_i32_0 : i32, i32, i32
  }
  func.func @transform_9(%arg0: i32) -> (i32, i32, i32) {
    %c0_i32 = arith.constant 0 : i32
    %c0_i32_0 = arith.constant 0 : i32
    %c0_i32_1 = arith.constant 0 : i32
    return %arg0, %c0_i32, %c0_i32_0 : i32, i32, i32
  }
}

module attributes {stable_mosaic.version = 11 : i64} {
  func.func @_linear_kernel(%arg0: i32, %arg1: memref<8x64xf32, #tpu.memory_space<vmem>>, %arg2: memref<64x192xf32, #tpu.memory_space<vmem>>, %arg3: memref<1x192xf32, #tpu.memory_space<vmem>>, %arg4: memref<8x192xf32, #tpu.memory_space<vmem>>) attributes {dimension_semantics = [#tpu.dimension_semantics<arbitrary>], iteration_bounds = array<i64: 1>, scalar_prefetch = 0 : i64, scratch_operands = 0 : i64, tpu.core_type = #tpu.core_type<tc>, window_params = [{pipeline_mode = #tpu.pipeline_mode<synchronous>, transform_indices = @transform_0, window_bounds = array<i64: 8, 64>}, {pipeline_mode = #tpu.pipeline_mode<synchronous>, transform_indices = @transform_1, window_bounds = array<i64: 64, 192>}, {pipeline_mode = #tpu.pipeline_mode<synchronous>, transform_indices = @transform_2, window_bounds = array<i64: 1, 192>}, {pipeline_mode = #tpu.pipeline_mode<synchronous>, transform_indices = @transform_3, window_bounds = array<i64: 8, 192>}]} {
    %c0 = arith.constant 0 : index
    %c0_0 = arith.constant 0 : index
    %0 = vector.load %arg1[%c0, %c0_0] : memref<8x64xf32, #tpu.memory_space<vmem>>, vector<8x64xf32>
    %c0_1 = arith.constant 0 : index
    %c0_2 = arith.constant 0 : index
    %1 = vector.load %arg2[%c0_1, %c0_2] : memref<64x192xf32, #tpu.memory_space<vmem>>, vector<64x192xf32>
    %cst = arith.constant dense<0.000000e+00> : vector<8x192xf32>
    %2 = tpu.matmul %0, %1, %cst {dimension_numbers = #tpu.dot_dimension_numbers<[1], [0], [0], [1], [0, 0, 1, 1], [], []>} : vector<8x64xf32>, vector<64x192xf32>, vector<8x192xf32> -> vector<8x192xf32>
    %c0_3 = arith.constant 0 : index
    %c0_4 = arith.constant 0 : index
    %3 = vector.load %arg3[%c0_3, %c0_4] : memref<1x192xf32, #tpu.memory_space<vmem>>, vector<1x192xf32>
    %4 = vector.broadcast %3 : vector<1x192xf32> to vector<8x192xf32>
    %5 = arith.addf %2, %4 : vector<8x192xf32>
    %c0_5 = arith.constant 0 : index
    %c0_6 = arith.constant 0 : index
    %6 = vector.load %arg4[%c0_5, %c0_6] : memref<8x192xf32, #tpu.memory_space<vmem>>, vector<8x192xf32>
    tpu.vector_store %arg4[%c0_5, %c0_6], %5 {strides = array<i32>} : memref<8x192xf32, #tpu.memory_space<vmem>>, vector<8x192xf32>,
    return
  }
  func.func @transform_0(%arg0: i32) -> (i32, i32) {
    %c0_i32 = arith.constant 0 : i32
    %c0_i32_0 = arith.constant 0 : i32
    %c0_i32_1 = arith.constant 0 : i32
    return %c0_i32, %c0_i32_0 : i32, i32
  }
  func.func @transform_1(%arg0: i32) -> (i32, i32) {
    %c0_i32 = arith.constant 0 : i32
    %c0_i32_0 = arith.constant 0 : i32
    %c0_i32_1 = arith.constant 0 : i32
    return %c0_i32, %c0_i32_0 : i32, i32
  }
  func.func @transform_2(%arg0: i32) -> (i32, i32) {
    %c0_i32 = arith.constant 0 : i32
    %c0_i32_0 = arith.constant 0 : i32
    %c0_i32_1 = arith.constant 0 : i32
    return %c0_i32, %c0_i32_0 : i32, i32
  }
  func.func @transform_3(%arg0: i32) -> (i32, i32) {
    %c0_i32 = arith.constant 0 : i32
    %c0_i32_0 = arith.constant 0 : i32
    %c0_i32_1 = arith.constant 0 : i32
    return %c0_i32, %c0_i32_0 : i32, i32
  }
}

module attributes {stable_mosaic.version = 11 : i64} {
  func.func @_dec_rnn_kernel(%arg0: i32, %arg1: memref<1x2x64xf32, #tpu.memory_space<vmem>>, %arg2: memref<1x2x192xf32, #tpu.memory_space<vmem>>, %arg3: memref<64x192xf32, #tpu.memory_space<vmem>>, %arg4: memref<1x192xf32, #tpu.memory_space<vmem>>, %arg5: memref<64x192xf32, #tpu.memory_space<vmem>>, %arg6: memref<1x192xf32, #tpu.memory_space<vmem>>, %arg7: memref<64x192xf32, #tpu.memory_space<vmem>>, %arg8: memref<1x192xf32, #tpu.memory_space<vmem>>, %arg9: memref<64x16xf32, #tpu.memory_space<vmem>>, %arg10: memref<1x16xf32, #tpu.memory_space<vmem>>, %arg11: memref<1x2x16xf32, #tpu.memory_space<vmem>>, %arg12: memref<2x64xf32, #tpu.memory_space<vmem>>, %arg13: memref<2x64xf32, #tpu.memory_space<vmem>>) attributes {dimension_semantics = [#tpu.dimension_semantics<arbitrary>], iteration_bounds = array<i64: 4>, scalar_prefetch = 0 : i64, scratch_operands = 2 : i64, tpu.core_type = #tpu.core_type<tc>, window_params = [{transform_indices = @transform_0, window_bounds = array<i64: 1, 2, 64>}, {transform_indices = @transform_1, window_bounds = array<i64: 1, 2, 192>}, {pipeline_mode = #tpu.pipeline_mode<synchronous>, transform_indices = @transform_2, window_bounds = array<i64: 64, 192>}, {pipeline_mode = #tpu.pipeline_mode<synchronous>, transform_indices = @transform_3, window_bounds = array<i64: 1, 192>}, {pipeline_mode = #tpu.pipeline_mode<synchronous>, transform_indices = @transform_4, window_bounds = array<i64: 64, 192>}, {pipeline_mode = #tpu.pipeline_mode<synchronous>, transform_indices = @transform_5, window_bounds = array<i64: 1, 192>}, {pipeline_mode = #tpu.pipeline_mode<synchronous>, transform_indices = @transform_6, window_bounds = array<i64: 64, 192>}, {pipeline_mode = #tpu.pipeline_mode<synchronous>, transform_indices = @transform_7, window_bounds = array<i64: 1, 192>}, {pipeline_mode = #tpu.pipeline_mode<synchronous>, transform_indices = @transform_8, window_bounds = array<i64: 64, 16>}, {pipeline_mode = #tpu.pipeline_mode<synchronous>, transform_indices = @transform_9, window_bounds = array<i64: 1, 16>}, {transform_indices = @transform_10, window_bounds = array<i64: 1, 2, 16>}]} {
    %c0_i32 = arith.constant 0 : i32
    %0 = arith.cmpi eq, %arg0, %c0_i32 : i32
    %1 = arith.extui %0 : i1 to i32
    %c0_i32_0 = arith.constant 0 : i32
    %2 = arith.cmpi ne, %1, %c0_i32_0 : i32
    scf.if %2 {
      %cst_42 = arith.constant 0.000000e+00 : f32
      %88 = vector.broadcast %cst_42 : f32 to vector<2x64xf32>
      %c0_43 = arith.constant 0 : index
      %c0_44 = arith.constant 0 : index
      %89 = vector.load %arg12[%c0_43, %c0_44] : memref<2x64xf32, #tpu.memory_space<vmem>>, vector<2x64xf32>
      tpu.vector_store %arg12[%c0_43, %c0_44], %88 {strides = array<i32>} : memref<2x64xf32, #tpu.memory_space<vmem>>, vector<2x64xf32>,
      %cst_45 = arith.constant 0.000000e+00 : f32
      %90 = vector.broadcast %cst_45 : f32 to vector<2x64xf32>
      %c0_46 = arith.constant 0 : index
      %c0_47 = arith.constant 0 : index
      %91 = vector.load %arg13[%c0_46, %c0_47] : memref<2x64xf32, #tpu.memory_space<vmem>>, vector<2x64xf32>
      tpu.vector_store %arg13[%c0_46, %c0_47], %90 {strides = array<i32>} : memref<2x64xf32, #tpu.memory_space<vmem>>, vector<2x64xf32>,
    } else {
    }
    %c0 = arith.constant 0 : index
    %c0_1 = arith.constant 0 : index
    %c0_2 = arith.constant 0 : index
    %3 = vector.load %arg1[%c0, %c0_1, %c0_2] : memref<1x2x64xf32, #tpu.memory_space<vmem>>, vector<1x2x64xf32>
    %4 = vector.shape_cast %3 : vector<1x2x64xf32> to vector<2x64xf32>
    %c0_3 = arith.constant 0 : index
    %c0_4 = arith.constant 0 : index
    %c0_5 = arith.constant 0 : index
    %5 = vector.load %arg2[%c0_3, %c0_4, %c0_5] : memref<1x2x192xf32, #tpu.memory_space<vmem>>, vector<1x2x192xf32>
    %6 = vector.shape_cast %5 : vector<1x2x192xf32> to vector<2x192xf32>
    %c0_6 = arith.constant 0 : index
    %c0_7 = arith.constant 0 : index
    %7 = vector.load %arg12[%c0_6, %c0_7] : memref<2x64xf32, #tpu.memory_space<vmem>>, vector<2x64xf32>
    %c0_8 = arith.constant 0 : index
    %c0_9 = arith.constant 0 : index
    %8 = vector.load %arg3[%c0_8, %c0_9] : memref<64x192xf32, #tpu.memory_space<vmem>>, vector<64x192xf32>
    %c0_10 = arith.constant 0 : index
    %c0_11 = arith.constant 0 : index
    %9 = vector.load %arg4[%c0_10, %c0_11] : memref<1x192xf32, #tpu.memory_space<vmem>>, vector<1x192xf32>
    %cst = arith.constant dense<0.000000e+00> : vector<2x192xf32>
    %10 = tpu.matmul %7, %8, %cst {dimension_numbers = #tpu.dot_dimension_numbers<[1], [0], [0], [1], [0, 0, 1, 1], [], []>} : vector<2x64xf32>, vector<64x192xf32>, vector<2x192xf32> -> vector<2x192xf32>
    %11 = vector.broadcast %9 : vector<1x192xf32> to vector<2x192xf32>
    %12 = arith.addf %10, %11 : vector<2x192xf32>
    %13 = vector.extract_strided_slice %6 {offsets = [0, 0], sizes = [2, 64], strides = [1, 1]} : vector<2x192xf32> to vector<2x64xf32>
    %14 = vector.extract_strided_slice %12 {offsets = [0, 0], sizes = [2, 64], strides = [1, 1]} : vector<2x192xf32> to vector<2x64xf32>
    %15 = arith.addf %13, %14 : vector<2x64xf32>
    %16 = arith.negf %15 : vector<2x64xf32>
    %17 = math.exp %16 : vector<2x64xf32>
    %cst_12 = arith.constant 1.000000e+00 : f32
    %18 = vector.broadcast %cst_12 : f32 to vector<2x64xf32>
    %19 = arith.addf %18, %17 : vector<2x64xf32>
    %20 = arith.divf %18, %19 : vector<2x64xf32>
    %21 = vector.extract_strided_slice %6 {offsets = [0, 64], sizes = [2, 64], strides = [1, 1]} : vector<2x192xf32> to vector<2x64xf32>
    %22 = vector.extract_strided_slice %12 {offsets = [0, 64], sizes = [2, 64], strides = [1, 1]} : vector<2x192xf32> to vector<2x64xf32>
    %23 = arith.addf %21, %22 : vector<2x64xf32>
    %24 = arith.negf %23 : vector<2x64xf32>
    %25 = math.exp %24 : vector<2x64xf32>
    %cst_13 = arith.constant 1.000000e+00 : f32
    %26 = vector.broadcast %cst_13 : f32 to vector<2x64xf32>
    %27 = arith.addf %26, %25 : vector<2x64xf32>
    %28 = arith.divf %26, %27 : vector<2x64xf32>
    %29 = vector.extract_strided_slice %6 {offsets = [0, 128], sizes = [2, 64], strides = [1, 1]} : vector<2x192xf32> to vector<2x64xf32>
    %30 = vector.extract_strided_slice %12 {offsets = [0, 128], sizes = [2, 64], strides = [1, 1]} : vector<2x192xf32> to vector<2x64xf32>
    %31 = arith.mulf %20, %30 : vector<2x64xf32>
    %32 = arith.addf %29, %31 : vector<2x64xf32>
    %33 = math.tanh %32 : vector<2x64xf32>
    %cst_14 = arith.constant 1.000000e+00 : f32
    %34 = vector.broadcast %cst_14 : f32 to vector<2x64xf32>
    %35 = arith.subf %34, %28 : vector<2x64xf32>
    %36 = arith.mulf %35, %33 : vector<2x64xf32>
    %37 = arith.mulf %28, %7 : vector<2x64xf32>
    %38 = arith.addf %36, %37 : vector<2x64xf32>
    %c0_15 = arith.constant 0 : index
    %c0_16 = arith.constant 0 : index
    %39 = vector.load %arg12[%c0_15, %c0_16] : memref<2x64xf32, #tpu.memory_space<vmem>>, vector<2x64xf32>
    tpu.vector_store %arg12[%c0_15, %c0_16], %38 {strides = array<i32>} : memref<2x64xf32, #tpu.memory_space<vmem>>, vector<2x64xf32>,
    %40 = arith.addf %4, %38 : vector<2x64xf32>
    %c0_17 = arith.constant 0 : index
    %c0_18 = arith.constant 0 : index
    %41 = vector.load %arg5[%c0_17, %c0_18] : memref<64x192xf32, #tpu.memory_space<vmem>>, vector<64x192xf32>
    %cst_19 = arith.constant dense<0.000000e+00> : vector<2x192xf32>
    %42 = tpu.matmul %40, %41, %cst_19 {dimension_numbers = #tpu.dot_dimension_numbers<[1], [0], [0], [1], [0, 0, 1, 1], [], []>} : vector<2x64xf32>, vector<64x192xf32>, vector<2x192xf32> -> vector<2x192xf32>
    %c0_20 = arith.constant 0 : index
    %c0_21 = arith.constant 0 : index
    %43 = vector.load %arg6[%c0_20, %c0_21] : memref<1x192xf32, #tpu.memory_space<vmem>>, vector<1x192xf32>
    %44 = vector.broadcast %43 : vector<1x192xf32> to vector<2x192xf32>
    %45 = arith.addf %42, %44 : vector<2x192xf32>
    %c0_22 = arith.constant 0 : index
    %c0_23 = arith.constant 0 : index
    %46 = vector.load %arg13[%c0_22, %c0_23] : memref<2x64xf32, #tpu.memory_space<vmem>>, vector<2x64xf32>
    %c0_24 = arith.constant 0 : index
    %c0_25 = arith.constant 0 : index
    %47 = vector.load %arg7[%c0_24, %c0_25] : memref<64x192xf32, #tpu.memory_space<vmem>>, vector<64x192xf32>
    %c0_26 = arith.constant 0 : index
    %c0_27 = arith.constant 0 : index
    %48 = vector.load %arg8[%c0_26, %c0_27] : memref<1x192xf32, #tpu.memory_space<vmem>>, vector<1x192xf32>
    %cst_28 = arith.constant dense<0.000000e+00> : vector<2x192xf32>
    %49 = tpu.matmul %46, %47, %cst_28 {dimension_numbers = #tpu.dot_dimension_numbers<[1], [0], [0], [1], [0, 0, 1, 1], [], []>} : vector<2x64xf32>, vector<64x192xf32>, vector<2x192xf32> -> vector<2x192xf32>
    %50 = vector.broadcast %48 : vector<1x192xf32> to vector<2x192xf32>
    %51 = arith.addf %49, %50 : vector<2x192xf32>
    %52 = vector.extract_strided_slice %45 {offsets = [0, 0], sizes = [2, 64], strides = [1, 1]} : vector<2x192xf32> to vector<2x64xf32>
    %53 = vector.extract_strided_slice %51 {offsets = [0, 0], sizes = [2, 64], strides = [1, 1]} : vector<2x192xf32> to vector<2x64xf32>
    %54 = arith.addf %52, %53 : vector<2x64xf32>
    %55 = arith.negf %54 : vector<2x64xf32>
    %56 = math.exp %55 : vector<2x64xf32>
    %cst_29 = arith.constant 1.000000e+00 : f32
    %57 = vector.broadcast %cst_29 : f32 to vector<2x64xf32>
    %58 = arith.addf %57, %56 : vector<2x64xf32>
    %59 = arith.divf %57, %58 : vector<2x64xf32>
    %60 = vector.extract_strided_slice %45 {offsets = [0, 64], sizes = [2, 64], strides = [1, 1]} : vector<2x192xf32> to vector<2x64xf32>
    %61 = vector.extract_strided_slice %51 {offsets = [0, 64], sizes = [2, 64], strides = [1, 1]} : vector<2x192xf32> to vector<2x64xf32>
    %62 = arith.addf %60, %61 : vector<2x64xf32>
    %63 = arith.negf %62 : vector<2x64xf32>
    %64 = math.exp %63 : vector<2x64xf32>
    %cst_30 = arith.constant 1.000000e+00 : f32
    %65 = vector.broadcast %cst_30 : f32 to vector<2x64xf32>
    %66 = arith.addf %65, %64 : vector<2x64xf32>
    %67 = arith.divf %65, %66 : vector<2x64xf32>
    %68 = vector.extract_strided_slice %45 {offsets = [0, 128], sizes = [2, 64], strides = [1, 1]} : vector<2x192xf32> to vector<2x64xf32>
    %69 = vector.extract_strided_slice %51 {offsets = [0, 128], sizes = [2, 64], strides = [1, 1]} : vector<2x192xf32> to vector<2x64xf32>
    %70 = arith.mulf %59, %69 : vector<2x64xf32>
    %71 = arith.addf %68, %70 : vector<2x64xf32>
    %72 = math.tanh %71 : vector<2x64xf32>
    %cst_31 = arith.constant 1.000000e+00 : f32
    %73 = vector.broadcast %cst_31 : f32 to vector<2x64xf32>
    %74 = arith.subf %73, %67 : vector<2x64xf32>
    %75 = arith.mulf %74, %72 : vector<2x64xf32>
    %76 = arith.mulf %67, %46 : vector<2x64xf32>
    %77 = arith.addf %75, %76 : vector<2x64xf32>
    %c0_32 = arith.constant 0 : index
    %c0_33 = arith.constant 0 : index
    %78 = vector.load %arg13[%c0_32, %c0_33] : memref<2x64xf32, #tpu.memory_space<vmem>>, vector<2x64xf32>
    tpu.vector_store %arg13[%c0_32, %c0_33], %77 {strides = array<i32>} : memref<2x64xf32, #tpu.memory_space<vmem>>, vector<2x64xf32>,
    %79 = arith.addf %40, %77 : vector<2x64xf32>
    %c0_34 = arith.constant 0 : index
    %c0_35 = arith.constant 0 : index
    %80 = vector.load %arg9[%c0_34, %c0_35] : memref<64x16xf32, #tpu.memory_space<vmem>>, vector<64x16xf32>
    %cst_36 = arith.constant dense<0.000000e+00> : vector<2x16xf32>
    %81 = tpu.matmul %79, %80, %cst_36 {dimension_numbers = #tpu.dot_dimension_numbers<[1], [0], [0], [1], [0, 0, 1, 1], [], []>} : vector<2x64xf32>, vector<64x16xf32>, vector<2x16xf32> -> vector<2x16xf32>
    %c0_37 = arith.constant 0 : index
    %c0_38 = arith.constant 0 : index
    %82 = vector.load %arg10[%c0_37, %c0_38] : memref<1x16xf32, #tpu.memory_space<vmem>>, vector<1x16xf32>
    %83 = vector.broadcast %82 : vector<1x16xf32> to vector<2x16xf32>
    %84 = arith.addf %81, %83 : vector<2x16xf32>
    %c0_39 = arith.constant 0 : index
    %c0_40 = arith.constant 0 : index
    %c0_41 = arith.constant 0 : index
    %85 = vector.load %arg11[%c0_39, %c0_40, %c0_41] : memref<1x2x16xf32, #tpu.memory_space<vmem>>, vector<1x2x16xf32>
    %86 = vector.shape_cast %85 : vector<1x2x16xf32> to vector<2x16xf32>
    %87 = vector.shape_cast %84 : vector<2x16xf32> to vector<1x2x16xf32>
    tpu.vector_store %arg11[%c0_39, %c0_40, %c0_41], %87 {strides = array<i32>} : memref<1x2x16xf32, #tpu.memory_space<vmem>>, vector<1x2x16xf32>,
    return
  }
  func.func @transform_0(%arg0: i32) -> (i32, i32, i32) {
    %c0_i32 = arith.constant 0 : i32
    %c0_i32_0 = arith.constant 0 : i32
    %c0_i32_1 = arith.constant 0 : i32
    return %arg0, %c0_i32, %c0_i32_0 : i32, i32, i32
  }
  func.func @transform_1(%arg0: i32) -> (i32, i32, i32) {
    %c0_i32 = arith.constant 0 : i32
    %c0_i32_0 = arith.constant 0 : i32
    %c0_i32_1 = arith.constant 0 : i32
    return %arg0, %c0_i32, %c0_i32_0 : i32, i32, i32
  }
  func.func @transform_2(%arg0: i32) -> (i32, i32) {
    %c0_i32 = arith.constant 0 : i32
    %c0_i32_0 = arith.constant 0 : i32
    %c0_i32_1 = arith.constant 0 : i32
    return %c0_i32, %c0_i32_0 : i32, i32
  }
  func.func @transform_3(%arg0: i32) -> (i32, i32) {
    %c0_i32 = arith.constant 0 : i32
    %c0_i32_0 = arith.constant 0 : i32
    %c0_i32_1 = arith.constant 0 : i32
    return %c0_i32, %c0_i32_0 : i32, i32
  }
  func.func @transform_4(%arg0: i32) -> (i32, i32) {
    %c0_i32 = arith.constant 0 : i32
    %c0_i32_0 = arith.constant 0 : i32
    %c0_i32_1 = arith.constant 0 : i32
    return %c0_i32, %c0_i32_0 : i32, i32
  }
  func.func @transform_5(%arg0: i32) -> (i32, i32) {
    %c0_i32 = arith.constant 0 : i32
    %c0_i32_0 = arith.constant 0 : i32
    %c0_i32_1 = arith.constant 0 : i32
    return %c0_i32, %c0_i32_0 : i32, i32
  }
  func.func @transform_6(%arg0: i32) -> (i32, i32) {
    %c0_i32 = arith.constant 0 : i32
    %c0_i32_0 = arith.constant 0 : i32
    %c0_i32_1 = arith.constant 0 : i32
    return %c0_i32, %c0_i32_0 : i32, i32
  }
  func.func @transform_7(%arg0: i32) -> (i32, i32) {
    %c0_i32 = arith.constant 0 : i32
    %c0_i32_0 = arith.constant 0 : i32
    %c0_i32_1 = arith.constant 0 : i32
    return %c0_i32, %c0_i32_0 : i32, i32
  }
  func.func @transform_8(%arg0: i32) -> (i32, i32) {
    %c0_i32 = arith.constant 0 : i32
    %c0_i32_0 = arith.constant 0 : i32
    %c0_i32_1 = arith.constant 0 : i32
    return %c0_i32, %c0_i32_0 : i32, i32
  }
  func.func @transform_9(%arg0: i32) -> (i32, i32) {
    %c0_i32 = arith.constant 0 : i32
    %c0_i32_0 = arith.constant 0 : i32
    %c0_i32_1 = arith.constant 0 : i32
    return %c0_i32, %c0_i32_0 : i32, i32
  }
  func.func @transform_10(%arg0: i32) -> (i32, i32, i32) {
    %c0_i32 = arith.constant 0 : i32
    %c0_i32_0 = arith.constant 0 : i32
    %c0_i32_1 = arith.constant 0 : i32
    return %arg0, %c0_i32, %c0_i32_0 : i32, i32, i32
  }
}

module attributes {stable_mosaic.version = 11 : i64} {
  func.func @_conv_bank_kernel(%arg0: i32, %arg1: memref<2x12x8xf32, #tpu.memory_space<vmem>>, %arg2: memref<8x16xf32, #tpu.memory_space<vmem>>, %arg3: memref<1x16xf32, #tpu.memory_space<vmem>>, %arg4: memref<1x16xf32, #tpu.memory_space<vmem>>, %arg5: memref<1x16xf32, #tpu.memory_space<vmem>>, %arg6: memref<16x16xf32, #tpu.memory_space<vmem>>, %arg7: memref<1x16xf32, #tpu.memory_space<vmem>>, %arg8: memref<1x16xf32, #tpu.memory_space<vmem>>, %arg9: memref<1x16xf32, #tpu.memory_space<vmem>>, %arg10: memref<24x16xf32, #tpu.memory_space<vmem>>, %arg11: memref<1x16xf32, #tpu.memory_space<vmem>>, %arg12: memref<1x16xf32, #tpu.memory_space<vmem>>, %arg13: memref<1x16xf32, #tpu.memory_space<vmem>>, %arg14: memref<32x16xf32, #tpu.memory_space<vmem>>, %arg15: memref<1x16xf32, #tpu.memory_space<vmem>>, %arg16: memref<1x16xf32, #tpu.memory_space<vmem>>, %arg17: memref<1x16xf32, #tpu.memory_space<vmem>>, %arg18: memref<16x64xf32, #tpu.memory_space<vmem>>) attributes {dimension_semantics = [#tpu.dimension_semantics<arbitrary>], iteration_bounds = array<i64: 1>, scalar_prefetch = 0 : i64, scratch_operands = 0 : i64, tpu.core_type = #tpu.core_type<tc>, window_params = [{pipeline_mode = #tpu.pipeline_mode<synchronous>, transform_indices = @transform_0, window_bounds = array<i64: 2, 12, 8>}, {pipeline_mode = #tpu.pipeline_mode<synchronous>, transform_indices = @transform_1, window_bounds = array<i64: 8, 16>}, {pipeline_mode = #tpu.pipeline_mode<synchronous>, transform_indices = @transform_2, window_bounds = array<i64: 1, 16>}, {pipeline_mode = #tpu.pipeline_mode<synchronous>, transform_indices = @transform_3, window_bounds = array<i64: 1, 16>}, {pipeline_mode = #tpu.pipeline_mode<synchronous>, transform_indices = @transform_4, window_bounds = array<i64: 1, 16>}, {pipeline_mode = #tpu.pipeline_mode<synchronous>, transform_indices = @transform_5, window_bounds = array<i64: 16, 16>}, {pipeline_mode = #tpu.pipeline_mode<synchronous>, transform_indices = @transform_6, window_bounds = array<i64: 1, 16>}, {pipeline_mode = #tpu.pipeline_mode<synchronous>, transform_indices = @transform_7, window_bounds = array<i64: 1, 16>}, {pipeline_mode = #tpu.pipeline_mode<synchronous>, transform_indices = @transform_8, window_bounds = array<i64: 1, 16>}, {pipeline_mode = #tpu.pipeline_mode<synchronous>, transform_indices = @transform_9, window_bounds = array<i64: 24, 16>}, {pipeline_mode = #tpu.pipeline_mode<synchronous>, transform_indices = @transform_10, window_bounds = array<i64: 1, 16>}, {pipeline_mode = #tpu.pipeline_mode<synchronous>, transform_indices = @transform_11, window_bounds = array<i64: 1, 16>}, {pipeline_mode = #tpu.pipeline_mode<synchronous>, transform_indices = @transform_12, window_bounds = array<i64: 1, 16>}, {pipeline_mode = #tpu.pipeline_mode<synchronous>, transform_indices = @transform_13, window_bounds = array<i64: 32, 16>}, {pipeline_mode = #tpu.pipeline_mode<synchronous>, transform_indices = @transform_14, window_bounds = array<i64: 1, 16>}, {pipeline_mode = #tpu.pipeline_mode<synchronous>, transform_indices = @transform_15, window_bounds = array<i64: 1, 16>}, {pipeline_mode = #tpu.pipeline_mode<synchronous>, transform_indices = @transform_16, window_bounds = array<i64: 1, 16>}, {pipeline_mode = #tpu.pipeline_mode<synchronous>, transform_indices = @transform_17, window_bounds = array<i64: 16, 64>}]} {
    %cst = arith.constant 0.000000e+00 : f32
    %0 = vector.broadcast %cst : f32 to vector<8x16xf32>
    %c0 = arith.constant 0 : index
    %c2 = arith.constant 2 : index
    %c0_0 = arith.constant 0 : index
    %1 = vector.load %arg1[%c0, %c2, %c0_0] : memref<2x12x8xf32, #tpu.memory_space<vmem>>, vector<1x8x8xf32>
    %2 = vector.shape_cast %1 : vector<1x8x8xf32> to vector<8x8xf32>
    %c0_1 = arith.constant 0 : index
    %c0_2 = arith.constant 0 : index
    %3 = vector.load %arg2[%c0_1, %c0_2] : memref<8x16xf32, #tpu.memory_space<vmem>>, vector<8x16xf32>
    %cst_3 = arith.constant dense<0.000000e+00> : vector<8x16xf32>
    %4 = tpu.matmul %2, %3, %cst_3 {dimension_numbers = #tpu.dot_dimension_numbers<[1], [0], [0], [1], [0, 0, 1, 1], [], []>} : vector<8x8xf32>, vector<8x16xf32>, vector<8x16xf32> -> vector<8x16xf32>
    %5 = arith.addf %0, %4 : vector<8x16xf32>
    %c0_4 = arith.constant 0 : index
    %c0_5 = arith.constant 0 : index
    %6 = vector.load %arg3[%c0_4, %c0_5] : memref<1x16xf32, #tpu.memory_space<vmem>>, vector<1x16xf32>
    %7 = vector.broadcast %6 : vector<1x16xf32> to vector<8x16xf32>
    %8 = arith.addf %5, %7 : vector<8x16xf32>
    %cst_6 = arith.constant 0.000000e+00 : f32
    %9 = vector.broadcast %cst_6 : f32 to vector<8x16xf32>
    %c1 = arith.constant 1 : index
    %c2_7 = arith.constant 2 : index
    %c0_8 = arith.constant 0 : index
    %10 = vector.load %arg1[%c1, %c2_7, %c0_8] : memref<2x12x8xf32, #tpu.memory_space<vmem>>, vector<1x8x8xf32>
    %11 = vector.shape_cast %10 : vector<1x8x8xf32> to vector<8x8xf32>
    %c0_9 = arith.constant 0 : index
    %c0_10 = arith.constant 0 : index
    %12 = vector.load %arg2[%c0_9, %c0_10] : memref<8x16xf32, #tpu.memory_space<vmem>>, vector<8x16xf32>
    %cst_11 = arith.constant dense<0.000000e+00> : vector<8x16xf32>
    %13 = tpu.matmul %11, %12, %cst_11 {dimension_numbers = #tpu.dot_dimension_numbers<[1], [0], [0], [1], [0, 0, 1, 1], [], []>} : vector<8x8xf32>, vector<8x16xf32>, vector<8x16xf32> -> vector<8x16xf32>
    %14 = arith.addf %9, %13 : vector<8x16xf32>
    %c0_12 = arith.constant 0 : index
    %c0_13 = arith.constant 0 : index
    %15 = vector.load %arg3[%c0_12, %c0_13] : memref<1x16xf32, #tpu.memory_space<vmem>>, vector<1x16xf32>
    %16 = vector.broadcast %15 : vector<1x16xf32> to vector<8x16xf32>
    %17 = arith.addf %14, %16 : vector<8x16xf32>
    %cst_14 = arith.constant 0.000000e+00 : f32
    %18 = vector.broadcast %cst_14 : f32 to vector<8x16xf32>
    %c0_15 = arith.constant 0 : index
    %c1_16 = arith.constant 1 : index
    %c0_17 = arith.constant 0 : index
    %19 = vector.load %arg1[%c0_15, %c1_16, %c0_17] : memref<2x12x8xf32, #tpu.memory_space<vmem>>, vector<1x8x8xf32>
    %20 = vector.shape_cast %19 : vector<1x8x8xf32> to vector<8x8xf32>
    %c0_18 = arith.constant 0 : index
    %c0_19 = arith.constant 0 : index
    %21 = vector.load %arg6[%c0_18, %c0_19] : memref<16x16xf32, #tpu.memory_space<vmem>>, vector<8x16xf32>
    %cst_20 = arith.constant dense<0.000000e+00> : vector<8x16xf32>
    %22 = tpu.matmul %20, %21, %cst_20 {dimension_numbers = #tpu.dot_dimension_numbers<[1], [0], [0], [1], [0, 0, 1, 1], [], []>} : vector<8x8xf32>, vector<8x16xf32>, vector<8x16xf32> -> vector<8x16xf32>
    %23 = arith.addf %18, %22 : vector<8x16xf32>
    %c0_21 = arith.constant 0 : index
    %c2_22 = arith.constant 2 : index
    %c0_23 = arith.constant 0 : index
    %24 = vector.load %arg1[%c0_21, %c2_22, %c0_23] : memref<2x12x8xf32, #tpu.memory_space<vmem>>, vector<1x8x8xf32>
    %25 = vector.shape_cast %24 : vector<1x8x8xf32> to vector<8x8xf32>
    %c8 = arith.constant 8 : index
    %c0_24 = arith.constant 0 : index
    %26 = vector.load %arg6[%c8, %c0_24] : memref<16x16xf32, #tpu.memory_space<vmem>>, vector<8x16xf32>
    %cst_25 = arith.constant dense<0.000000e+00> : vector<8x16xf32>
    %27 = tpu.matmul %25, %26, %cst_25 {dimension_numbers = #tpu.dot_dimension_numbers<[1], [0], [0], [1], [0, 0, 1, 1], [], []>} : vector<8x8xf32>, vector<8x16xf32>, vector<8x16xf32> -> vector<8x16xf32>
    %28 = arith.addf %23, %27 : vector<8x16xf32>
    %c0_26 = arith.constant 0 : index
    %c0_27 = arith.constant 0 : index
    %29 = vector.load %arg7[%c0_26, %c0_27] : memref<1x16xf32, #tpu.memory_space<vmem>>, vector<1x16xf32>
    %30 = vector.broadcast %29 : vector<1x16xf32> to vector<8x16xf32>
    %31 = arith.addf %28, %30 : vector<8x16xf32>
    %cst_28 = arith.constant 0.000000e+00 : f32
    %32 = vector.broadcast %cst_28 : f32 to vector<8x16xf32>
    %c1_29 = arith.constant 1 : index
    %c1_30 = arith.constant 1 : index
    %c0_31 = arith.constant 0 : index
    %33 = vector.load %arg1[%c1_29, %c1_30, %c0_31] : memref<2x12x8xf32, #tpu.memory_space<vmem>>, vector<1x8x8xf32>
    %34 = vector.shape_cast %33 : vector<1x8x8xf32> to vector<8x8xf32>
    %c0_32 = arith.constant 0 : index
    %c0_33 = arith.constant 0 : index
    %35 = vector.load %arg6[%c0_32, %c0_33] : memref<16x16xf32, #tpu.memory_space<vmem>>, vector<8x16xf32>
    %cst_34 = arith.constant dense<0.000000e+00> : vector<8x16xf32>
    %36 = tpu.matmul %34, %35, %cst_34 {dimension_numbers = #tpu.dot_dimension_numbers<[1], [0], [0], [1], [0, 0, 1, 1], [], []>} : vector<8x8xf32>, vector<8x16xf32>, vector<8x16xf32> -> vector<8x16xf32>
    %37 = arith.addf %32, %36 : vector<8x16xf32>
    %c1_35 = arith.constant 1 : index
    %c2_36 = arith.constant 2 : index
    %c0_37 = arith.constant 0 : index
    %38 = vector.load %arg1[%c1_35, %c2_36, %c0_37] : memref<2x12x8xf32, #tpu.memory_space<vmem>>, vector<1x8x8xf32>
    %39 = vector.shape_cast %38 : vector<1x8x8xf32> to vector<8x8xf32>
    %c8_38 = arith.constant 8 : index
    %c0_39 = arith.constant 0 : index
    %40 = vector.load %arg6[%c8_38, %c0_39] : memref<16x16xf32, #tpu.memory_space<vmem>>, vector<8x16xf32>
    %cst_40 = arith.constant dense<0.000000e+00> : vector<8x16xf32>
    %41 = tpu.matmul %39, %40, %cst_40 {dimension_numbers = #tpu.dot_dimension_numbers<[1], [0], [0], [1], [0, 0, 1, 1], [], []>} : vector<8x8xf32>, vector<8x16xf32>, vector<8x16xf32> -> vector<8x16xf32>
    %42 = arith.addf %37, %41 : vector<8x16xf32>
    %c0_41 = arith.constant 0 : index
    %c0_42 = arith.constant 0 : index
    %43 = vector.load %arg7[%c0_41, %c0_42] : memref<1x16xf32, #tpu.memory_space<vmem>>, vector<1x16xf32>
    %44 = vector.broadcast %43 : vector<1x16xf32> to vector<8x16xf32>
    %45 = arith.addf %42, %44 : vector<8x16xf32>
    %cst_43 = arith.constant 0.000000e+00 : f32
    %46 = vector.broadcast %cst_43 : f32 to vector<8x16xf32>
    %c0_44 = arith.constant 0 : index
    %c1_45 = arith.constant 1 : index
    %c0_46 = arith.constant 0 : index
    %47 = vector.load %arg1[%c0_44, %c1_45, %c0_46] : memref<2x12x8xf32, #tpu.memory_space<vmem>>, vector<1x8x8xf32>
    %48 = vector.shape_cast %47 : vector<1x8x8xf32> to vector<8x8xf32>
    %c0_47 = arith.constant 0 : index
    %c0_48 = arith.constant 0 : index
    %49 = vector.load %arg10[%c0_47, %c0_48] : memref<24x16xf32, #tpu.memory_space<vmem>>, vector<8x16xf32>
    %cst_49 = arith.constant dense<0.000000e+00> : vector<8x16xf32>
    %50 = tpu.matmul %48, %49, %cst_49 {dimension_numbers = #tpu.dot_dimension_numbers<[1], [0], [0], [1], [0, 0, 1, 1], [], []>} : vector<8x8xf32>, vector<8x16xf32>, vector<8x16xf32> -> vector<8x16xf32>
    %51 = arith.addf %46, %50 : vector<8x16xf32>
    %c0_50 = arith.constant 0 : index
    %c2_51 = arith.constant 2 : index
    %c0_52 = arith.constant 0 : index
    %52 = vector.load %arg1[%c0_50, %c2_51, %c0_52] : memref<2x12x8xf32, #tpu.memory_space<vmem>>, vector<1x8x8xf32>
    %53 = vector.shape_cast %52 : vector<1x8x8xf32> to vector<8x8xf32>
    %c8_53 = arith.constant 8 : index
    %c0_54 = arith.constant 0 : index
    %54 = vector.load %arg10[%c8_53, %c0_54] : memref<24x16xf32, #tpu.memory_space<vmem>>, vector<8x16xf32>
    %cst_55 = arith.constant dense<0.000000e+00> : vector<8x16xf32>
    %55 = tpu.matmul %53, %54, %cst_55 {dimension_numbers = #tpu.dot_dimension_numbers<[1], [0], [0], [1], [0, 0, 1, 1], [], []>} : vector<8x8xf32>, vector<8x16xf32>, vector<8x16xf32> -> vector<8x16xf32>
    %56 = arith.addf %51, %55 : vector<8x16xf32>
    %c0_56 = arith.constant 0 : index
    %c3 = arith.constant 3 : index
    %c0_57 = arith.constant 0 : index
    %57 = vector.load %arg1[%c0_56, %c3, %c0_57] : memref<2x12x8xf32, #tpu.memory_space<vmem>>, vector<1x8x8xf32>
    %58 = vector.shape_cast %57 : vector<1x8x8xf32> to vector<8x8xf32>
    %c16 = arith.constant 16 : index
    %c0_58 = arith.constant 0 : index
    %59 = vector.load %arg10[%c16, %c0_58] : memref<24x16xf32, #tpu.memory_space<vmem>>, vector<8x16xf32>
    %cst_59 = arith.constant dense<0.000000e+00> : vector<8x16xf32>
    %60 = tpu.matmul %58, %59, %cst_59 {dimension_numbers = #tpu.dot_dimension_numbers<[1], [0], [0], [1], [0, 0, 1, 1], [], []>} : vector<8x8xf32>, vector<8x16xf32>, vector<8x16xf32> -> vector<8x16xf32>
    %61 = arith.addf %56, %60 : vector<8x16xf32>
    %c0_60 = arith.constant 0 : index
    %c0_61 = arith.constant 0 : index
    %62 = vector.load %arg11[%c0_60, %c0_61] : memref<1x16xf32, #tpu.memory_space<vmem>>, vector<1x16xf32>
    %63 = vector.broadcast %62 : vector<1x16xf32> to vector<8x16xf32>
    %64 = arith.addf %61, %63 : vector<8x16xf32>
    %cst_62 = arith.constant 0.000000e+00 : f32
    %65 = vector.broadcast %cst_62 : f32 to vector<8x16xf32>
    %c1_63 = arith.constant 1 : index
    %c1_64 = arith.constant 1 : index
    %c0_65 = arith.constant 0 : index
    %66 = vector.load %arg1[%c1_63, %c1_64, %c0_65] : memref<2x12x8xf32, #tpu.memory_space<vmem>>, vector<1x8x8xf32>
    %67 = vector.shape_cast %66 : vector<1x8x8xf32> to vector<8x8xf32>
    %c0_66 = arith.constant 0 : index
    %c0_67 = arith.constant 0 : index
    %68 = vector.load %arg10[%c0_66, %c0_67] : memref<24x16xf32, #tpu.memory_space<vmem>>, vector<8x16xf32>
    %cst_68 = arith.constant dense<0.000000e+00> : vector<8x16xf32>
    %69 = tpu.matmul %67, %68, %cst_68 {dimension_numbers = #tpu.dot_dimension_numbers<[1], [0], [0], [1], [0, 0, 1, 1], [], []>} : vector<8x8xf32>, vector<8x16xf32>, vector<8x16xf32> -> vector<8x16xf32>
    %70 = arith.addf %65, %69 : vector<8x16xf32>
    %c1_69 = arith.constant 1 : index
    %c2_70 = arith.constant 2 : index
    %c0_71 = arith.constant 0 : index
    %71 = vector.load %arg1[%c1_69, %c2_70, %c0_71] : memref<2x12x8xf32, #tpu.memory_space<vmem>>, vector<1x8x8xf32>
    %72 = vector.shape_cast %71 : vector<1x8x8xf32> to vector<8x8xf32>
    %c8_72 = arith.constant 8 : index
    %c0_73 = arith.constant 0 : index
    %73 = vector.load %arg10[%c8_72, %c0_73] : memref<24x16xf32, #tpu.memory_space<vmem>>, vector<8x16xf32>
    %cst_74 = arith.constant dense<0.000000e+00> : vector<8x16xf32>
    %74 = tpu.matmul %72, %73, %cst_74 {dimension_numbers = #tpu.dot_dimension_numbers<[1], [0], [0], [1], [0, 0, 1, 1], [], []>} : vector<8x8xf32>, vector<8x16xf32>, vector<8x16xf32> -> vector<8x16xf32>
    %75 = arith.addf %70, %74 : vector<8x16xf32>
    %c1_75 = arith.constant 1 : index
    %c3_76 = arith.constant 3 : index
    %c0_77 = arith.constant 0 : index
    %76 = vector.load %arg1[%c1_75, %c3_76, %c0_77] : memref<2x12x8xf32, #tpu.memory_space<vmem>>, vector<1x8x8xf32>
    %77 = vector.shape_cast %76 : vector<1x8x8xf32> to vector<8x8xf32>
    %c16_78 = arith.constant 16 : index
    %c0_79 = arith.constant 0 : index
    %78 = vector.load %arg10[%c16_78, %c0_79] : memref<24x16xf32, #tpu.memory_space<vmem>>, vector<8x16xf32>
    %cst_80 = arith.constant dense<0.000000e+00> : vector<8x16xf32>
    %79 = tpu.matmul %77, %78, %cst_80 {dimension_numbers = #tpu.dot_dimension_numbers<[1], [0], [0], [1], [0, 0, 1, 1], [], []>} : vector<8x8xf32>, vector<8x16xf32>, vector<8x16xf32> -> vector<8x16xf32>
    %80 = arith.addf %75, %79 : vector<8x16xf32>
    %c0_81 = arith.constant 0 : index
    %c0_82 = arith.constant 0 : index
    %81 = vector.load %arg11[%c0_81, %c0_82] : memref<1x16xf32, #tpu.memory_space<vmem>>, vector<1x16xf32>
    %82 = vector.broadcast %81 : vector<1x16xf32> to vector<8x16xf32>
    %83 = arith.addf %80, %82 : vector<8x16xf32>
    %cst_83 = arith.constant 0.000000e+00 : f32
    %84 = vector.broadcast %cst_83 : f32 to vector<8x16xf32>
    %c0_84 = arith.constant 0 : index
    %c0_85 = arith.constant 0 : index
    %c0_86 = arith.constant 0 : index
    %85 = vector.load %arg1[%c0_84, %c0_85, %c0_86] : memref<2x12x8xf32, #tpu.memory_space<vmem>>, vector<1x8x8xf32>
    %86 = vector.shape_cast %85 : vector<1x8x8xf32> to vector<8x8xf32>
    %c0_87 = arith.constant 0 : index
    %c0_88 = arith.constant 0 : index
    %87 = vector.load %arg14[%c0_87, %c0_88] : memref<32x16xf32, #tpu.memory_space<vmem>>, vector<8x16xf32>
    %cst_89 = arith.constant dense<0.000000e+00> : vector<8x16xf32>
    %88 = tpu.matmul %86, %87, %cst_89 {dimension_numbers = #tpu.dot_dimension_numbers<[1], [0], [0], [1], [0, 0, 1, 1], [], []>} : vector<8x8xf32>, vector<8x16xf32>, vector<8x16xf32> -> vector<8x16xf32>
    %89 = arith.addf %84, %88 : vector<8x16xf32>
    %c0_90 = arith.constant 0 : index
    %c1_91 = arith.constant 1 : index
    %c0_92 = arith.constant 0 : index
    %90 = vector.load %arg1[%c0_90, %c1_91, %c0_92] : memref<2x12x8xf32, #tpu.memory_space<vmem>>, vector<1x8x8xf32>
    %91 = vector.shape_cast %90 : vector<1x8x8xf32> to vector<8x8xf32>
    %c8_93 = arith.constant 8 : index
    %c0_94 = arith.constant 0 : index
    %92 = vector.load %arg14[%c8_93, %c0_94] : memref<32x16xf32, #tpu.memory_space<vmem>>, vector<8x16xf32>
    %cst_95 = arith.constant dense<0.000000e+00> : vector<8x16xf32>
    %93 = tpu.matmul %91, %92, %cst_95 {dimension_numbers = #tpu.dot_dimension_numbers<[1], [0], [0], [1], [0, 0, 1, 1], [], []>} : vector<8x8xf32>, vector<8x16xf32>, vector<8x16xf32> -> vector<8x16xf32>
    %94 = arith.addf %89, %93 : vector<8x16xf32>
    %c0_96 = arith.constant 0 : index
    %c2_97 = arith.constant 2 : index
    %c0_98 = arith.constant 0 : index
    %95 = vector.load %arg1[%c0_96, %c2_97, %c0_98] : memref<2x12x8xf32, #tpu.memory_space<vmem>>, vector<1x8x8xf32>
    %96 = vector.shape_cast %95 : vector<1x8x8xf32> to vector<8x8xf32>
    %c16_99 = arith.constant 16 : index
    %c0_100 = arith.constant 0 : index
    %97 = vector.load %arg14[%c16_99, %c0_100] : memref<32x16xf32, #tpu.memory_space<vmem>>, vector<8x16xf32>
    %cst_101 = arith.constant dense<0.000000e+00> : vector<8x16xf32>
    %98 = tpu.matmul %96, %97, %cst_101 {dimension_numbers = #tpu.dot_dimension_numbers<[1], [0], [0], [1], [0, 0, 1, 1], [], []>} : vector<8x8xf32>, vector<8x16xf32>, vector<8x16xf32> -> vector<8x16xf32>
    %99 = arith.addf %94, %98 : vector<8x16xf32>
    %c0_102 = arith.constant 0 : index
    %c3_103 = arith.constant 3 : index
    %c0_104 = arith.constant 0 : index
    %100 = vector.load %arg1[%c0_102, %c3_103, %c0_104] : memref<2x12x8xf32, #tpu.memory_space<vmem>>, vector<1x8x8xf32>
    %101 = vector.shape_cast %100 : vector<1x8x8xf32> to vector<8x8xf32>
    %c24 = arith.constant 24 : index
    %c0_105 = arith.constant 0 : index
    %102 = vector.load %arg14[%c24, %c0_105] : memref<32x16xf32, #tpu.memory_space<vmem>>, vector<8x16xf32>
    %cst_106 = arith.constant dense<0.000000e+00> : vector<8x16xf32>
    %103 = tpu.matmul %101, %102, %cst_106 {dimension_numbers = #tpu.dot_dimension_numbers<[1], [0], [0], [1], [0, 0, 1, 1], [], []>} : vector<8x8xf32>, vector<8x16xf32>, vector<8x16xf32> -> vector<8x16xf32>
    %104 = arith.addf %99, %103 : vector<8x16xf32>
    %c0_107 = arith.constant 0 : index
    %c0_108 = arith.constant 0 : index
    %105 = vector.load %arg15[%c0_107, %c0_108] : memref<1x16xf32, #tpu.memory_space<vmem>>, vector<1x16xf32>
    %106 = vector.broadcast %105 : vector<1x16xf32> to vector<8x16xf32>
    %107 = arith.addf %104, %106 : vector<8x16xf32>
    %cst_109 = arith.constant 0.000000e+00 : f32
    %108 = vector.broadcast %cst_109 : f32 to vector<8x16xf32>
    %c1_110 = arith.constant 1 : index
    %c0_111 = arith.constant 0 : index
    %c0_112 = arith.constant 0 : index
    %109 = vector.load %arg1[%c1_110, %c0_111, %c0_112] : memref<2x12x8xf32, #tpu.memory_space<vmem>>, vector<1x8x8xf32>
    %110 = vector.shape_cast %109 : vector<1x8x8xf32> to vector<8x8xf32>
    %c0_113 = arith.constant 0 : index
    %c0_114 = arith.constant 0 : index
    %111 = vector.load %arg14[%c0_113, %c0_114] : memref<32x16xf32, #tpu.memory_space<vmem>>, vector<8x16xf32>
    %cst_115 = arith.constant dense<0.000000e+00> : vector<8x16xf32>
    %112 = tpu.matmul %110, %111, %cst_115 {dimension_numbers = #tpu.dot_dimension_numbers<[1], [0], [0], [1], [0, 0, 1, 1], [], []>} : vector<8x8xf32>, vector<8x16xf32>, vector<8x16xf32> -> vector<8x16xf32>
    %113 = arith.addf %108, %112 : vector<8x16xf32>
    %c1_116 = arith.constant 1 : index
    %c1_117 = arith.constant 1 : index
    %c0_118 = arith.constant 0 : index
    %114 = vector.load %arg1[%c1_116, %c1_117, %c0_118] : memref<2x12x8xf32, #tpu.memory_space<vmem>>, vector<1x8x8xf32>
    %115 = vector.shape_cast %114 : vector<1x8x8xf32> to vector<8x8xf32>
    %c8_119 = arith.constant 8 : index
    %c0_120 = arith.constant 0 : index
    %116 = vector.load %arg14[%c8_119, %c0_120] : memref<32x16xf32, #tpu.memory_space<vmem>>, vector<8x16xf32>
    %cst_121 = arith.constant dense<0.000000e+00> : vector<8x16xf32>
    %117 = tpu.matmul %115, %116, %cst_121 {dimension_numbers = #tpu.dot_dimension_numbers<[1], [0], [0], [1], [0, 0, 1, 1], [], []>} : vector<8x8xf32>, vector<8x16xf32>, vector<8x16xf32> -> vector<8x16xf32>
    %118 = arith.addf %113, %117 : vector<8x16xf32>
    %c1_122 = arith.constant 1 : index
    %c2_123 = arith.constant 2 : index
    %c0_124 = arith.constant 0 : index
    %119 = vector.load %arg1[%c1_122, %c2_123, %c0_124] : memref<2x12x8xf32, #tpu.memory_space<vmem>>, vector<1x8x8xf32>
    %120 = vector.shape_cast %119 : vector<1x8x8xf32> to vector<8x8xf32>
    %c16_125 = arith.constant 16 : index
    %c0_126 = arith.constant 0 : index
    %121 = vector.load %arg14[%c16_125, %c0_126] : memref<32x16xf32, #tpu.memory_space<vmem>>, vector<8x16xf32>
    %cst_127 = arith.constant dense<0.000000e+00> : vector<8x16xf32>
    %122 = tpu.matmul %120, %121, %cst_127 {dimension_numbers = #tpu.dot_dimension_numbers<[1], [0], [0], [1], [0, 0, 1, 1], [], []>} : vector<8x8xf32>, vector<8x16xf32>, vector<8x16xf32> -> vector<8x16xf32>
    %123 = arith.addf %118, %122 : vector<8x16xf32>
    %c1_128 = arith.constant 1 : index
    %c3_129 = arith.constant 3 : index
    %c0_130 = arith.constant 0 : index
    %124 = vector.load %arg1[%c1_128, %c3_129, %c0_130] : memref<2x12x8xf32, #tpu.memory_space<vmem>>, vector<1x8x8xf32>
    %125 = vector.shape_cast %124 : vector<1x8x8xf32> to vector<8x8xf32>
    %c24_131 = arith.constant 24 : index
    %c0_132 = arith.constant 0 : index
    %126 = vector.load %arg14[%c24_131, %c0_132] : memref<32x16xf32, #tpu.memory_space<vmem>>, vector<8x16xf32>
    %cst_133 = arith.constant dense<0.000000e+00> : vector<8x16xf32>
    %127 = tpu.matmul %125, %126, %cst_133 {dimension_numbers = #tpu.dot_dimension_numbers<[1], [0], [0], [1], [0, 0, 1, 1], [], []>} : vector<8x8xf32>, vector<8x16xf32>, vector<8x16xf32> -> vector<8x16xf32>
    %128 = arith.addf %123, %127 : vector<8x16xf32>
    %c0_134 = arith.constant 0 : index
    %c0_135 = arith.constant 0 : index
    %129 = vector.load %arg15[%c0_134, %c0_135] : memref<1x16xf32, #tpu.memory_space<vmem>>, vector<1x16xf32>
    %130 = vector.broadcast %129 : vector<1x16xf32> to vector<8x16xf32>
    %131 = arith.addf %128, %130 : vector<8x16xf32>
    %cst_136 = arith.constant dense<0.000000e+00> : vector<16xf32>
    %132 = vector.multi_reduction <add>, %8, %cst_136 [0] : vector<8x16xf32> to vector<16xf32>
    %133 = vector.shape_cast %132 : vector<16xf32> to vector<1x16xf32>
    %cst_137 = arith.constant 0.000000e+00 : f32
    %134 = vector.broadcast %cst_137 : f32 to vector<1x16xf32>
    %135 = arith.addf %134, %133 : vector<1x16xf32>
    %cst_138 = arith.constant dense<0.000000e+00> : vector<16xf32>
    %136 = vector.multi_reduction <add>, %17, %cst_138 [0] : vector<8x16xf32> to vector<16xf32>
    %137 = vector.shape_cast %136 : vector<16xf32> to vector<1x16xf32>
    %138 = arith.addf %135, %137 : vector<1x16xf32>
    %cst_139 = arith.constant 1.600000e+01 : f32
    %139 = vector.broadcast %cst_139 : f32 to vector<1x16xf32>
    %140 = arith.divf %138, %139 : vector<1x16xf32>
    %141 = vector.broadcast %140 : vector<1x16xf32> to vector<8x16xf32>
    %142 = arith.subf %8, %141 : vector<8x16xf32>
    %143 = arith.mulf %142, %142 : vector<8x16xf32>
    %cst_140 = arith.constant dense<0.000000e+00> : vector<16xf32>
    %144 = vector.multi_reduction <add>, %143, %cst_140 [0] : vector<8x16xf32> to vector<16xf32>
    %145 = vector.shape_cast %144 : vector<16xf32> to vector<1x16xf32>
    %cst_141 = arith.constant 0.000000e+00 : f32
    %146 = vector.broadcast %cst_141 : f32 to vector<1x16xf32>
    %147 = arith.addf %146, %145 : vector<1x16xf32>
    %148 = vector.broadcast %140 : vector<1x16xf32> to vector<8x16xf32>
    %149 = arith.subf %17, %148 : vector<8x16xf32>
    %150 = arith.mulf %149, %149 : vector<8x16xf32>
    %cst_142 = arith.constant dense<0.000000e+00> : vector<16xf32>
    %151 = vector.multi_reduction <add>, %150, %cst_142 [0] : vector<8x16xf32> to vector<16xf32>
    %152 = vector.shape_cast %151 : vector<16xf32> to vector<1x16xf32>
    %153 = arith.addf %147, %152 : vector<1x16xf32>
    %cst_143 = arith.constant 1.600000e+01 : f32
    %154 = vector.broadcast %cst_143 : f32 to vector<1x16xf32>
    %155 = arith.divf %153, %154 : vector<1x16xf32>
    %cst_144 = arith.constant 9.99999974E-6 : f32
    %156 = vector.broadcast %cst_144 : f32 to vector<1x16xf32>
    %157 = arith.addf %155, %156 : vector<1x16xf32>
    %158 = math.rsqrt %157 : vector<1x16xf32>
    %c0_145 = arith.constant 0 : index
    %c0_146 = arith.constant 0 : index
    %159 = vector.load %arg4[%c0_145, %c0_146] : memref<1x16xf32, #tpu.memory_space<vmem>>, vector<1x16xf32>
    %160 = arith.mulf %158, %159 : vector<1x16xf32>
    %c0_147 = arith.constant 0 : index
    %c0_148 = arith.constant 0 : index
    %161 = vector.load %arg5[%c0_147, %c0_148] : memref<1x16xf32, #tpu.memory_space<vmem>>, vector<1x16xf32>
    %162 = arith.mulf %140, %160 : vector<1x16xf32>
    %163 = arith.subf %161, %162 : vector<1x16xf32>
    %cst_149 = arith.constant dense<0.000000e+00> : vector<16xf32>
    %164 = vector.multi_reduction <add>, %31, %cst_149 [0] : vector<8x16xf32> to vector<16xf32>
    %165 = vector.shape_cast %164 : vector<16xf32> to vector<1x16xf32>
    %cst_150 = arith.constant 0.000000e+00 : f32
    %166 = vector.broadcast %cst_150 : f32 to vector<1x16xf32>
    %167 = arith.addf %166, %165 : vector<1x16xf32>
    %cst_151 = arith.constant dense<0.000000e+00> : vector<16xf32>
    %168 = vector.multi_reduction <add>, %45, %cst_151 [0] : vector<8x16xf32> to vector<16xf32>
    %169 = vector.shape_cast %168 : vector<16xf32> to vector<1x16xf32>
    %170 = arith.addf %167, %169 : vector<1x16xf32>
    %cst_152 = arith.constant 1.600000e+01 : f32
    %171 = vector.broadcast %cst_152 : f32 to vector<1x16xf32>
    %172 = arith.divf %170, %171 : vector<1x16xf32>
    %173 = vector.broadcast %172 : vector<1x16xf32> to vector<8x16xf32>
    %174 = arith.subf %31, %173 : vector<8x16xf32>
    %175 = arith.mulf %174, %174 : vector<8x16xf32>
    %cst_153 = arith.constant dense<0.000000e+00> : vector<16xf32>
    %176 = vector.multi_reduction <add>, %175, %cst_153 [0] : vector<8x16xf32> to vector<16xf32>
    %177 = vector.shape_cast %176 : vector<16xf32> to vector<1x16xf32>
    %cst_154 = arith.constant 0.000000e+00 : f32
    %178 = vector.broadcast %cst_154 : f32 to vector<1x16xf32>
    %179 = arith.addf %178, %177 : vector<1x16xf32>
    %180 = vector.broadcast %172 : vector<1x16xf32> to vector<8x16xf32>
    %181 = arith.subf %45, %180 : vector<8x16xf32>
    %182 = arith.mulf %181, %181 : vector<8x16xf32>
    %cst_155 = arith.constant dense<0.000000e+00> : vector<16xf32>
    %183 = vector.multi_reduction <add>, %182, %cst_155 [0] : vector<8x16xf32> to vector<16xf32>
    %184 = vector.shape_cast %183 : vector<16xf32> to vector<1x16xf32>
    %185 = arith.addf %179, %184 : vector<1x16xf32>
    %cst_156 = arith.constant 1.600000e+01 : f32
    %186 = vector.broadcast %cst_156 : f32 to vector<1x16xf32>
    %187 = arith.divf %185, %186 : vector<1x16xf32>
    %cst_157 = arith.constant 9.99999974E-6 : f32
    %188 = vector.broadcast %cst_157 : f32 to vector<1x16xf32>
    %189 = arith.addf %187, %188 : vector<1x16xf32>
    %190 = math.rsqrt %189 : vector<1x16xf32>
    %c0_158 = arith.constant 0 : index
    %c0_159 = arith.constant 0 : index
    %191 = vector.load %arg8[%c0_158, %c0_159] : memref<1x16xf32, #tpu.memory_space<vmem>>, vector<1x16xf32>
    %192 = arith.mulf %190, %191 : vector<1x16xf32>
    %c0_160 = arith.constant 0 : index
    %c0_161 = arith.constant 0 : index
    %193 = vector.load %arg9[%c0_160, %c0_161] : memref<1x16xf32, #tpu.memory_space<vmem>>, vector<1x16xf32>
    %194 = arith.mulf %172, %192 : vector<1x16xf32>
    %195 = arith.subf %193, %194 : vector<1x16xf32>
    %cst_162 = arith.constant dense<0.000000e+00> : vector<16xf32>
    %196 = vector.multi_reduction <add>, %64, %cst_162 [0] : vector<8x16xf32> to vector<16xf32>
    %197 = vector.shape_cast %196 : vector<16xf32> to vector<1x16xf32>
    %cst_163 = arith.constant 0.000000e+00 : f32
    %198 = vector.broadcast %cst_163 : f32 to vector<1x16xf32>
    %199 = arith.addf %198, %197 : vector<1x16xf32>
    %cst_164 = arith.constant dense<0.000000e+00> : vector<16xf32>
    %200 = vector.multi_reduction <add>, %83, %cst_164 [0] : vector<8x16xf32> to vector<16xf32>
    %201 = vector.shape_cast %200 : vector<16xf32> to vector<1x16xf32>
    %202 = arith.addf %199, %201 : vector<1x16xf32>
    %cst_165 = arith.constant 1.600000e+01 : f32
    %203 = vector.broadcast %cst_165 : f32 to vector<1x16xf32>
    %204 = arith.divf %202, %203 : vector<1x16xf32>
    %205 = vector.broadcast %204 : vector<1x16xf32> to vector<8x16xf32>
    %206 = arith.subf %64, %205 : vector<8x16xf32>
    %207 = arith.mulf %206, %206 : vector<8x16xf32>
    %cst_166 = arith.constant dense<0.000000e+00> : vector<16xf32>
    %208 = vector.multi_reduction <add>, %207, %cst_166 [0] : vector<8x16xf32> to vector<16xf32>
    %209 = vector.shape_cast %208 : vector<16xf32> to vector<1x16xf32>
    %cst_167 = arith.constant 0.000000e+00 : f32
    %210 = vector.broadcast %cst_167 : f32 to vector<1x16xf32>
    %211 = arith.addf %210, %209 : vector<1x16xf32>
    %212 = vector.broadcast %204 : vector<1x16xf32> to vector<8x16xf32>
    %213 = arith.subf %83, %212 : vector<8x16xf32>
    %214 = arith.mulf %213, %213 : vector<8x16xf32>
    %cst_168 = arith.constant dense<0.000000e+00> : vector<16xf32>
    %215 = vector.multi_reduction <add>, %214, %cst_168 [0] : vector<8x16xf32> to vector<16xf32>
    %216 = vector.shape_cast %215 : vector<16xf32> to vector<1x16xf32>
    %217 = arith.addf %211, %216 : vector<1x16xf32>
    %cst_169 = arith.constant 1.600000e+01 : f32
    %218 = vector.broadcast %cst_169 : f32 to vector<1x16xf32>
    %219 = arith.divf %217, %218 : vector<1x16xf32>
    %cst_170 = arith.constant 9.99999974E-6 : f32
    %220 = vector.broadcast %cst_170 : f32 to vector<1x16xf32>
    %221 = arith.addf %219, %220 : vector<1x16xf32>
    %222 = math.rsqrt %221 : vector<1x16xf32>
    %c0_171 = arith.constant 0 : index
    %c0_172 = arith.constant 0 : index
    %223 = vector.load %arg12[%c0_171, %c0_172] : memref<1x16xf32, #tpu.memory_space<vmem>>, vector<1x16xf32>
    %224 = arith.mulf %222, %223 : vector<1x16xf32>
    %c0_173 = arith.constant 0 : index
    %c0_174 = arith.constant 0 : index
    %225 = vector.load %arg13[%c0_173, %c0_174] : memref<1x16xf32, #tpu.memory_space<vmem>>, vector<1x16xf32>
    %226 = arith.mulf %204, %224 : vector<1x16xf32>
    %227 = arith.subf %225, %226 : vector<1x16xf32>
    %cst_175 = arith.constant dense<0.000000e+00> : vector<16xf32>
    %228 = vector.multi_reduction <add>, %107, %cst_175 [0] : vector<8x16xf32> to vector<16xf32>
    %229 = vector.shape_cast %228 : vector<16xf32> to vector<1x16xf32>
    %cst_176 = arith.constant 0.000000e+00 : f32
    %230 = vector.broadcast %cst_176 : f32 to vector<1x16xf32>
    %231 = arith.addf %230, %229 : vector<1x16xf32>
    %cst_177 = arith.constant dense<0.000000e+00> : vector<16xf32>
    %232 = vector.multi_reduction <add>, %131, %cst_177 [0] : vector<8x16xf32> to vector<16xf32>
    %233 = vector.shape_cast %232 : vector<16xf32> to vector<1x16xf32>
    %234 = arith.addf %231, %233 : vector<1x16xf32>
    %cst_178 = arith.constant 1.600000e+01 : f32
    %235 = vector.broadcast %cst_178 : f32 to vector<1x16xf32>
    %236 = arith.divf %234, %235 : vector<1x16xf32>
    %237 = vector.broadcast %236 : vector<1x16xf32> to vector<8x16xf32>
    %238 = arith.subf %107, %237 : vector<8x16xf32>
    %239 = arith.mulf %238, %238 : vector<8x16xf32>
    %cst_179 = arith.constant dense<0.000000e+00> : vector<16xf32>
    %240 = vector.multi_reduction <add>, %239, %cst_179 [0] : vector<8x16xf32> to vector<16xf32>
    %241 = vector.shape_cast %240 : vector<16xf32> to vector<1x16xf32>
    %cst_180 = arith.constant 0.000000e+00 : f32
    %242 = vector.broadcast %cst_180 : f32 to vector<1x16xf32>
    %243 = arith.addf %242, %241 : vector<1x16xf32>
    %244 = vector.broadcast %236 : vector<1x16xf32> to vector<8x16xf32>
    %245 = arith.subf %131, %244 : vector<8x16xf32>
    %246 = arith.mulf %245, %245 : vector<8x16xf32>
    %cst_181 = arith.constant dense<0.000000e+00> : vector<16xf32>
    %247 = vector.multi_reduction <add>, %246, %cst_181 [0] : vector<8x16xf32> to vector<16xf32>
    %248 = vector.shape_cast %247 : vector<16xf32> to vector<1x16xf32>
    %249 = arith.addf %243, %248 : vector<1x16xf32>
    %cst_182 = arith.constant 1.600000e+01 : f32
    %250 = vector.broadcast %cst_182 : f32 to vector<1x16xf32>
    %251 = arith.divf %249, %250 : vector<1x16xf32>
    %cst_183 = arith.constant 9.99999974E-6 : f32
    %252 = vector.broadcast %cst_183 : f32 to vector<1x16xf32>
    %253 = arith.addf %251, %252 : vector<1x16xf32>
    %254 = math.rsqrt %253 : vector<1x16xf32>
    %c0_184 = arith.constant 0 : index
    %c0_185 = arith.constant 0 : index
    %255 = vector.load %arg16[%c0_184, %c0_185] : memref<1x16xf32, #tpu.memory_space<vmem>>, vector<1x16xf32>
    %256 = arith.mulf %254, %255 : vector<1x16xf32>
    %c0_186 = arith.constant 0 : index
    %c0_187 = arith.constant 0 : index
    %257 = vector.load %arg17[%c0_186, %c0_187] : memref<1x16xf32, #tpu.memory_space<vmem>>, vector<1x16xf32>
    %258 = arith.mulf %236, %256 : vector<1x16xf32>
    %259 = arith.subf %257, %258 : vector<1x16xf32>
    %260 = vector.broadcast %160 : vector<1x16xf32> to vector<8x16xf32>
    %261 = arith.mulf %8, %260 : vector<8x16xf32>
    %262 = vector.broadcast %163 : vector<1x16xf32> to vector<8x16xf32>
    %263 = arith.addf %261, %262 : vector<8x16xf32>
    %cst_188 = arith.constant 0.000000e+00 : f32
    %264 = vector.broadcast %cst_188 : f32 to vector<8x16xf32>
    %265 = arith.maximumf %263, %264 : vector<8x16xf32>
    %266 = vector.extract_strided_slice %265 {offsets = [0, 0], sizes = [1, 16], strides = [1, 1]} : vector<8x16xf32> to vector<1x16xf32>
    %267 = vector.extract_strided_slice %265 {offsets = [1, 0], sizes = [7, 16], strides = [1, 1]} : vector<8x16xf32> to vector<7x16xf32>
    %268 = vector.extract_strided_slice %265 {offsets = [0, 0], sizes = [7, 16], strides = [1, 1]} : vector<8x16xf32> to vector<7x16xf32>
    %269 = arith.maximumf %267, %268 : vector<7x16xf32>
    %270 = tpu.concatenate %266, %269 in 0 : vector<1x16xf32>, vector<7x16xf32> -> vector<8x16xf32>
    %271 = vector.broadcast %192 : vector<1x16xf32> to vector<8x16xf32>
    %272 = arith.mulf %31, %271 : vector<8x16xf32>
    %273 = vector.broadcast %195 : vector<1x16xf32> to vector<8x16xf32>
    %274 = arith.addf %272, %273 : vector<8x16xf32>
    %cst_189 = arith.constant 0.000000e+00 : f32
    %275 = vector.broadcast %cst_189 : f32 to vector<8x16xf32>
    %276 = arith.maximumf %274, %275 : vector<8x16xf32>
    %277 = vector.extract_strided_slice %276 {offsets = [0, 0], sizes = [1, 16], strides = [1, 1]} : vector<8x16xf32> to vector<1x16xf32>
    %278 = vector.extract_strided_slice %276 {offsets = [1, 0], sizes = [7, 16], strides = [1, 1]} : vector<8x16xf32> to vector<7x16xf32>
    %279 = vector.extract_strided_slice %276 {offsets = [0, 0], sizes = [7, 16], strides = [1, 1]} : vector<8x16xf32> to vector<7x16xf32>
    %280 = arith.maximumf %278, %279 : vector<7x16xf32>
    %281 = tpu.concatenate %277, %280 in 0 : vector<1x16xf32>, vector<7x16xf32> -> vector<8x16xf32>
    %282 = vector.broadcast %224 : vector<1x16xf32> to vector<8x16xf32>
    %283 = arith.mulf %64, %282 : vector<8x16xf32>
    %284 = vector.broadcast %227 : vector<1x16xf32> to vector<8x16xf32>
    %285 = arith.addf %283, %284 : vector<8x16xf32>
    %cst_190 = arith.constant 0.000000e+00 : f32
    %286 = vector.broadcast %cst_190 : f32 to vector<8x16xf32>
    %287 = arith.maximumf %285, %286 : vector<8x16xf32>
    %288 = vector.extract_strided_slice %287 {offsets = [0, 0], sizes = [1, 16], strides = [1, 1]} : vector<8x16xf32> to vector<1x16xf32>
    %289 = vector.extract_strided_slice %287 {offsets = [1, 0], sizes = [7, 16], strides = [1, 1]} : vector<8x16xf32> to vector<7x16xf32>
    %290 = vector.extract_strided_slice %287 {offsets = [0, 0], sizes = [7, 16], strides = [1, 1]} : vector<8x16xf32> to vector<7x16xf32>
    %291 = arith.maximumf %289, %290 : vector<7x16xf32>
    %292 = tpu.concatenate %288, %291 in 0 : vector<1x16xf32>, vector<7x16xf32> -> vector<8x16xf32>
    %293 = vector.broadcast %256 : vector<1x16xf32> to vector<8x16xf32>
    %294 = arith.mulf %107, %293 : vector<8x16xf32>
    %295 = vector.broadcast %259 : vector<1x16xf32> to vector<8x16xf32>
    %296 = arith.addf %294, %295 : vector<8x16xf32>
    %cst_191 = arith.constant 0.000000e+00 : f32
    %297 = vector.broadcast %cst_191 : f32 to vector<8x16xf32>
    %298 = arith.maximumf %296, %297 : vector<8x16xf32>
    %299 = vector.extract_strided_slice %298 {offsets = [0, 0], sizes = [1, 16], strides = [1, 1]} : vector<8x16xf32> to vector<1x16xf32>
    %300 = vector.extract_strided_slice %298 {offsets = [1, 0], sizes = [7, 16], strides = [1, 1]} : vector<8x16xf32> to vector<7x16xf32>
    %301 = vector.extract_strided_slice %298 {offsets = [0, 0], sizes = [7, 16], strides = [1, 1]} : vector<8x16xf32> to vector<7x16xf32>
    %302 = arith.maximumf %300, %301 : vector<7x16xf32>
    %303 = tpu.concatenate %299, %302 in 0 : vector<1x16xf32>, vector<7x16xf32> -> vector<8x16xf32>
    %304 = tpu.concatenate %270, %281, %292, %303 in 1 : vector<8x16xf32>, vector<8x16xf32>, vector<8x16xf32>, vector<8x16xf32> -> vector<8x64xf32>
    %c0_192 = arith.constant 0 : index
    %c0_193 = arith.constant 0 : index
    %305 = vector.load %arg18[%c0_192, %c0_193] : memref<16x64xf32, #tpu.memory_space<vmem>>, vector<8x64xf32>
    tpu.vector_store %arg18[%c0_192, %c0_193], %304 {strides = array<i32>} : memref<16x64xf32, #tpu.memory_space<vmem>>, vector<8x64xf32>,
    %306 = vector.broadcast %160 : vector<1x16xf32> to vector<8x16xf32>
    %307 = arith.mulf %17, %306 : vector<8x16xf32>
    %308 = vector.broadcast %163 : vector<1x16xf32> to vector<8x16xf32>
    %309 = arith.addf %307, %308 : vector<8x16xf32>
    %cst_194 = arith.constant 0.000000e+00 : f32
    %310 = vector.broadcast %cst_194 : f32 to vector<8x16xf32>
    %311 = arith.maximumf %309, %310 : vector<8x16xf32>
    %312 = vector.extract_strided_slice %311 {offsets = [0, 0], sizes = [1, 16], strides = [1, 1]} : vector<8x16xf32> to vector<1x16xf32>
    %313 = vector.extract_strided_slice %311 {offsets = [1, 0], sizes = [7, 16], strides = [1, 1]} : vector<8x16xf32> to vector<7x16xf32>
    %314 = vector.extract_strided_slice %311 {offsets = [0, 0], sizes = [7, 16], strides = [1, 1]} : vector<8x16xf32> to vector<7x16xf32>
    %315 = arith.maximumf %313, %314 : vector<7x16xf32>
    %316 = tpu.concatenate %312, %315 in 0 : vector<1x16xf32>, vector<7x16xf32> -> vector<8x16xf32>
    %317 = vector.broadcast %192 : vector<1x16xf32> to vector<8x16xf32>
    %318 = arith.mulf %45, %317 : vector<8x16xf32>
    %319 = vector.broadcast %195 : vector<1x16xf32> to vector<8x16xf32>
    %320 = arith.addf %318, %319 : vector<8x16xf32>
    %cst_195 = arith.constant 0.000000e+00 : f32
    %321 = vector.broadcast %cst_195 : f32 to vector<8x16xf32>
    %322 = arith.maximumf %320, %321 : vector<8x16xf32>
    %323 = vector.extract_strided_slice %322 {offsets = [0, 0], sizes = [1, 16], strides = [1, 1]} : vector<8x16xf32> to vector<1x16xf32>
    %324 = vector.extract_strided_slice %322 {offsets = [1, 0], sizes = [7, 16], strides = [1, 1]} : vector<8x16xf32> to vector<7x16xf32>
    %325 = vector.extract_strided_slice %322 {offsets = [0, 0], sizes = [7, 16], strides = [1, 1]} : vector<8x16xf32> to vector<7x16xf32>
    %326 = arith.maximumf %324, %325 : vector<7x16xf32>
    %327 = tpu.concatenate %323, %326 in 0 : vector<1x16xf32>, vector<7x16xf32> -> vector<8x16xf32>
    %328 = vector.broadcast %224 : vector<1x16xf32> to vector<8x16xf32>
    %329 = arith.mulf %83, %328 : vector<8x16xf32>
    %330 = vector.broadcast %227 : vector<1x16xf32> to vector<8x16xf32>
    %331 = arith.addf %329, %330 : vector<8x16xf32>
    %cst_196 = arith.constant 0.000000e+00 : f32
    %332 = vector.broadcast %cst_196 : f32 to vector<8x16xf32>
    %333 = arith.maximumf %331, %332 : vector<8x16xf32>
    %334 = vector.extract_strided_slice %333 {offsets = [0, 0], sizes = [1, 16], strides = [1, 1]} : vector<8x16xf32> to vector<1x16xf32>
    %335 = vector.extract_strided_slice %333 {offsets = [1, 0], sizes = [7, 16], strides = [1, 1]} : vector<8x16xf32> to vector<7x16xf32>
    %336 = vector.extract_strided_slice %333 {offsets = [0, 0], sizes = [7, 16], strides = [1, 1]} : vector<8x16xf32> to vector<7x16xf32>
    %337 = arith.maximumf %335, %336 : vector<7x16xf32>
    %338 = tpu.concatenate %334, %337 in 0 : vector<1x16xf32>, vector<7x16xf32> -> vector<8x16xf32>
    %339 = vector.broadcast %256 : vector<1x16xf32> to vector<8x16xf32>
    %340 = arith.mulf %131, %339 : vector<8x16xf32>
    %341 = vector.broadcast %259 : vector<1x16xf32> to vector<8x16xf32>
    %342 = arith.addf %340, %341 : vector<8x16xf32>
    %cst_197 = arith.constant 0.000000e+00 : f32
    %343 = vector.broadcast %cst_197 : f32 to vector<8x16xf32>
    %344 = arith.maximumf %342, %343 : vector<8x16xf32>
    %345 = vector.extract_strided_slice %344 {offsets = [0, 0], sizes = [1, 16], strides = [1, 1]} : vector<8x16xf32> to vector<1x16xf32>
    %346 = vector.extract_strided_slice %344 {offsets = [1, 0], sizes = [7, 16], strides = [1, 1]} : vector<8x16xf32> to vector<7x16xf32>
    %347 = vector.extract_strided_slice %344 {offsets = [0, 0], sizes = [7, 16], strides = [1, 1]} : vector<8x16xf32> to vector<7x16xf32>
    %348 = arith.maximumf %346, %347 : vector<7x16xf32>
    %349 = tpu.concatenate %345, %348 in 0 : vector<1x16xf32>, vector<7x16xf32> -> vector<8x16xf32>
    %350 = tpu.concatenate %316, %327, %338, %349 in 1 : vector<8x16xf32>, vector<8x16xf32>, vector<8x16xf32>, vector<8x16xf32> -> vector<8x64xf32>
    %c8_198 = arith.constant 8 : index
    %c0_199 = arith.constant 0 : index
    %351 = vector.load %arg18[%c8_198, %c0_199] : memref<16x64xf32, #tpu.memory_space<vmem>>, vector<8x64xf32>
    tpu.vector_store %arg18[%c8_198, %c0_199], %350 {strides = array<i32>} : memref<16x64xf32, #tpu.memory_space<vmem>>, vector<8x64xf32>,
    return
  }
  func.func @transform_0(%arg0: i32) -> (i32, i32, i32) {
    %c0_i32 = arith.constant 0 : i32
    %c0_i32_0 = arith.constant 0 : i32
    %c0_i32_1 = arith.constant 0 : i32
    %c0_i32_2 = arith.constant 0 : i32
    return %c0_i32, %c0_i32_0, %c0_i32_1 : i32, i32, i32
  }
  func.func @transform_1(%arg0: i32) -> (i32, i32) {
    %c0_i32 = arith.constant 0 : i32
    %c0_i32_0 = arith.constant 0 : i32
    %c0_i32_1 = arith.constant 0 : i32
    return %c0_i32, %c0_i32_0 : i32, i32
  }
  func.func @transform_2(%arg0: i32) -> (i32, i32) {
    %c0_i32 = arith.constant 0 : i32
    %c0_i32_0 = arith.constant 0 : i32
    %c0_i32_1 = arith.constant 0 : i32
    return %c0_i32, %c0_i32_0 : i32, i32
  }
  func.func @transform_3(%arg0: i32) -> (i32, i32) {
    %c0_i32 = arith.constant 0 : i32
    %c0_i32_0 = arith.constant 0 : i32
    %c0_i32_1 = arith.constant 0 : i32
    return %c0_i32, %c0_i32_0 : i32, i32
  }
  func.func @transform_4(%arg0: i32) -> (i32, i32) {
    %c0_i32 = arith.constant 0 : i32
    %c0_i32_0 = arith.constant 0 : i32
    %c0_i32_1 = arith.constant 0 : i32
    return %c0_i32, %c0_i32_0 : i32, i32
  }
  func.func @transform_5(%arg0: i32) -> (i32, i32) {
    %c0_i32 = arith.constant 0 : i32
    %c0_i32_0 = arith.constant 0 : i32
    %c0_i32_1 = arith.constant 0 : i32
    return %c0_i32, %c0_i32_0 : i32, i32
  }
  func.func @transform_6(%arg0: i32) -> (i32, i32) {
    %c0_i32 = arith.constant 0 : i32
    %c0_i32_0 = arith.constant 0 : i32
    %c0_i32_1 = arith.constant 0 : i32
    return %c0_i32, %c0_i32_0 : i32, i32
  }
  func.func @transform_7(%arg0: i32) -> (i32, i32) {
    %c0_i32 = arith.constant 0 : i32
    %c0_i32_0 = arith.constant 0 : i32
    %c0_i32_1 = arith.constant 0 : i32
    return %c0_i32, %c0_i32_0 : i32, i32
  }
  func.func @transform_8(%arg0: i32) -> (i32, i32) {
    %c0_i32 = arith.constant 0 : i32
    %c0_i32_0 = arith.constant 0 : i32
    %c0_i32_1 = arith.constant 0 : i32
    return %c0_i32, %c0_i32_0 : i32, i32
  }
  func.func @transform_9(%arg0: i32) -> (i32, i32) {
    %c0_i32 = arith.constant 0 : i32
    %c0_i32_0 = arith.constant 0 : i32
    %c0_i32_1 = arith.constant 0 : i32
    return %c0_i32, %c0_i32_0 : i32, i32
  }
  func.func @transform_10(%arg0: i32) -> (i32, i32) {
    %c0_i32 = arith.constant 0 : i32
    %c0_i32_0 = arith.constant 0 : i32
    %c0_i32_1 = arith.constant 0 : i32
    return %c0_i32, %c0_i32_0 : i32, i32
  }
  func.func @transform_11(%arg0: i32) -> (i32, i32) {
    %c0_i32 = arith.constant 0 : i32
    %c0_i32_0 = arith.constant 0 : i32
    %c0_i32_1 = arith.constant 0 : i32
    return %c0_i32, %c0_i32_0 : i32, i32
  }
  func.func @transform_12(%arg0: i32) -> (i32, i32) {
    %c0_i32 = arith.constant 0 : i32
    %c0_i32_0 = arith.constant 0 : i32
    %c0_i32_1 = arith.constant 0 : i32
    return %c0_i32, %c0_i32_0 : i32, i32
  }
  func.func @transform_13(%arg0: i32) -> (i32, i32) {
    %c0_i32 = arith.constant 0 : i32
    %c0_i32_0 = arith.constant 0 : i32
    %c0_i32_1 = arith.constant 0 : i32
    return %c0_i32, %c0_i32_0 : i32, i32
  }
  func.func @transform_14(%arg0: i32) -> (i32, i32) {
    %c0_i32 = arith.constant 0 : i32
    %c0_i32_0 = arith.constant 0 : i32
    %c0_i32_1 = arith.constant 0 : i32
    return %c0_i32, %c0_i32_0 : i32, i32
  }
  func.func @transform_15(%arg0: i32) -> (i32, i32) {
    %c0_i32 = arith.constant 0 : i32
    %c0_i32_0 = arith.constant 0 : i32
    %c0_i32_1 = arith.constant 0 : i32
    return %c0_i32, %c0_i32_0 : i32, i32
  }
  func.func @transform_16(%arg0: i32) -> (i32, i32) {
    %c0_i32 = arith.constant 0 : i32
    %c0_i32_0 = arith.constant 0 : i32
    %c0_i32_1 = arith.constant 0 : i32
    return %c0_i32, %c0_i32_0 : i32, i32
  }
  func.func @transform_17(%arg0: i32) -> (i32, i32) {
    %c0_i32 = arith.constant 0 : i32
    %c0_i32_0 = arith.constant 0 : i32
    %c0_i32_1 = arith.constant 0 : i32
    return %c0_i32, %c0_i32_0 : i32, i32
  }
}

module attributes {stable_mosaic.version = 11 : i64} {
  func.func @_conv_proj_kernel(%arg0: i32, %arg1: memref<2x10x16xf32, #tpu.memory_space<vmem>>, %arg2: memref<48x8xf32, #tpu.memory_space<vmem>>, %arg3: memref<1x8xf32, #tpu.memory_space<vmem>>, %arg4: memref<1x8xf32, #tpu.memory_space<vmem>>, %arg5: memref<1x8xf32, #tpu.memory_space<vmem>>, %arg6: memref<16x8xf32, #tpu.memory_space<vmem>>, %arg7: memref<16x8xf32, #tpu.memory_space<vmem>>) attributes {dimension_semantics = [#tpu.dimension_semantics<arbitrary>], iteration_bounds = array<i64: 1>, scalar_prefetch = 0 : i64, scratch_operands = 0 : i64, tpu.core_type = #tpu.core_type<tc>, window_params = [{pipeline_mode = #tpu.pipeline_mode<synchronous>, transform_indices = @transform_0, window_bounds = array<i64: 2, 10, 16>}, {pipeline_mode = #tpu.pipeline_mode<synchronous>, transform_indices = @transform_1, window_bounds = array<i64: 48, 8>}, {pipeline_mode = #tpu.pipeline_mode<synchronous>, transform_indices = @transform_2, window_bounds = array<i64: 1, 8>}, {pipeline_mode = #tpu.pipeline_mode<synchronous>, transform_indices = @transform_3, window_bounds = array<i64: 1, 8>}, {pipeline_mode = #tpu.pipeline_mode<synchronous>, transform_indices = @transform_4, window_bounds = array<i64: 1, 8>}, {pipeline_mode = #tpu.pipeline_mode<synchronous>, transform_indices = @transform_5, window_bounds = array<i64: 16, 8>}, {pipeline_mode = #tpu.pipeline_mode<synchronous>, transform_indices = @transform_6, window_bounds = array<i64: 16, 8>}]} {
    %cst = arith.constant 0.000000e+00 : f32
    %0 = vector.broadcast %cst : f32 to vector<8x8xf32>
    %c0 = arith.constant 0 : index
    %c0_0 = arith.constant 0 : index
    %c0_1 = arith.constant 0 : index
    %1 = vector.load %arg1[%c0, %c0_0, %c0_1] : memref<2x10x16xf32, #tpu.memory_space<vmem>>, vector<1x8x16xf32>
    %2 = vector.shape_cast %1 : vector<1x8x16xf32> to vector<8x16xf32>
    %c0_2 = arith.constant 0 : index
    %c0_3 = arith.constant 0 : index
    %3 = vector.load %arg2[%c0_2, %c0_3] : memref<48x8xf32, #tpu.memory_space<vmem>>, vector<16x8xf32>
    %cst_4 = arith.constant dense<0.000000e+00> : vector<8x8xf32>
    %4 = tpu.matmul %2, %3, %cst_4 {dimension_numbers = #tpu.dot_dimension_numbers<[1], [0], [0], [1], [0, 0, 1, 1], [], []>} : vector<8x16xf32>, vector<16x8xf32>, vector<8x8xf32> -> vector<8x8xf32>
    %5 = arith.addf %0, %4 : vector<8x8xf32>
    %c0_5 = arith.constant 0 : index
    %c1 = arith.constant 1 : index
    %c0_6 = arith.constant 0 : index
    %6 = vector.load %arg1[%c0_5, %c1, %c0_6] : memref<2x10x16xf32, #tpu.memory_space<vmem>>, vector<1x8x16xf32>
    %7 = vector.shape_cast %6 : vector<1x8x16xf32> to vector<8x16xf32>
    %c16 = arith.constant 16 : index
    %c0_7 = arith.constant 0 : index
    %8 = vector.load %arg2[%c16, %c0_7] : memref<48x8xf32, #tpu.memory_space<vmem>>, vector<16x8xf32>
    %cst_8 = arith.constant dense<0.000000e+00> : vector<8x8xf32>
    %9 = tpu.matmul %7, %8, %cst_8 {dimension_numbers = #tpu.dot_dimension_numbers<[1], [0], [0], [1], [0, 0, 1, 1], [], []>} : vector<8x16xf32>, vector<16x8xf32>, vector<8x8xf32> -> vector<8x8xf32>
    %10 = arith.addf %5, %9 : vector<8x8xf32>
    %c0_9 = arith.constant 0 : index
    %c2 = arith.constant 2 : index
    %c0_10 = arith.constant 0 : index
    %11 = vector.load %arg1[%c0_9, %c2, %c0_10] : memref<2x10x16xf32, #tpu.memory_space<vmem>>, vector<1x8x16xf32>
    %12 = vector.shape_cast %11 : vector<1x8x16xf32> to vector<8x16xf32>
    %c32 = arith.constant 32 : index
    %c0_11 = arith.constant 0 : index
    %13 = vector.load %arg2[%c32, %c0_11] : memref<48x8xf32, #tpu.memory_space<vmem>>, vector<16x8xf32>
    %cst_12 = arith.constant dense<0.000000e+00> : vector<8x8xf32>
    %14 = tpu.matmul %12, %13, %cst_12 {dimension_numbers = #tpu.dot_dimension_numbers<[1], [0], [0], [1], [0, 0, 1, 1], [], []>} : vector<8x16xf32>, vector<16x8xf32>, vector<8x8xf32> -> vector<8x8xf32>
    %15 = arith.addf %10, %14 : vector<8x8xf32>
    %c0_13 = arith.constant 0 : index
    %c0_14 = arith.constant 0 : index
    %16 = vector.load %arg3[%c0_13, %c0_14] : memref<1x8xf32, #tpu.memory_space<vmem>>, vector<1x8xf32>
    %17 = vector.broadcast %16 : vector<1x8xf32> to vector<8x8xf32>
    %18 = arith.addf %15, %17 : vector<8x8xf32>
    %cst_15 = arith.constant 0.000000e+00 : f32
    %19 = vector.broadcast %cst_15 : f32 to vector<8x8xf32>
    %c1_16 = arith.constant 1 : index
    %c0_17 = arith.constant 0 : index
    %c0_18 = arith.constant 0 : index
    %20 = vector.load %arg1[%c1_16, %c0_17, %c0_18] : memref<2x10x16xf32, #tpu.memory_space<vmem>>, vector<1x8x16xf32>
    %21 = vector.shape_cast %20 : vector<1x8x16xf32> to vector<8x16xf32>
    %c0_19 = arith.constant 0 : index
    %c0_20 = arith.constant 0 : index
    %22 = vector.load %arg2[%c0_19, %c0_20] : memref<48x8xf32, #tpu.memory_space<vmem>>, vector<16x8xf32>
    %cst_21 = arith.constant dense<0.000000e+00> : vector<8x8xf32>
    %23 = tpu.matmul %21, %22, %cst_21 {dimension_numbers = #tpu.dot_dimension_numbers<[1], [0], [0], [1], [0, 0, 1, 1], [], []>} : vector<8x16xf32>, vector<16x8xf32>, vector<8x8xf32> -> vector<8x8xf32>
    %24 = arith.addf %19, %23 : vector<8x8xf32>
    %c1_22 = arith.constant 1 : index
    %c1_23 = arith.constant 1 : index
    %c0_24 = arith.constant 0 : index
    %25 = vector.load %arg1[%c1_22, %c1_23, %c0_24] : memref<2x10x16xf32, #tpu.memory_space<vmem>>, vector<1x8x16xf32>
    %26 = vector.shape_cast %25 : vector<1x8x16xf32> to vector<8x16xf32>
    %c16_25 = arith.constant 16 : index
    %c0_26 = arith.constant 0 : index
    %27 = vector.load %arg2[%c16_25, %c0_26] : memref<48x8xf32, #tpu.memory_space<vmem>>, vector<16x8xf32>
    %cst_27 = arith.constant dense<0.000000e+00> : vector<8x8xf32>
    %28 = tpu.matmul %26, %27, %cst_27 {dimension_numbers = #tpu.dot_dimension_numbers<[1], [0], [0], [1], [0, 0, 1, 1], [], []>} : vector<8x16xf32>, vector<16x8xf32>, vector<8x8xf32> -> vector<8x8xf32>
    %29 = arith.addf %24, %28 : vector<8x8xf32>
    %c1_28 = arith.constant 1 : index
    %c2_29 = arith.constant 2 : index
    %c0_30 = arith.constant 0 : index
    %30 = vector.load %arg1[%c1_28, %c2_29, %c0_30] : memref<2x10x16xf32, #tpu.memory_space<vmem>>, vector<1x8x16xf32>
    %31 = vector.shape_cast %30 : vector<1x8x16xf32> to vector<8x16xf32>
    %c32_31 = arith.constant 32 : index
    %c0_32 = arith.constant 0 : index
    %32 = vector.load %arg2[%c32_31, %c0_32] : memref<48x8xf32, #tpu.memory_space<vmem>>, vector<16x8xf32>
    %cst_33 = arith.constant dense<0.000000e+00> : vector<8x8xf32>
    %33 = tpu.matmul %31, %32, %cst_33 {dimension_numbers = #tpu.dot_dimension_numbers<[1], [0], [0], [1], [0, 0, 1, 1], [], []>} : vector<8x16xf32>, vector<16x8xf32>, vector<8x8xf32> -> vector<8x8xf32>
    %34 = arith.addf %29, %33 : vector<8x8xf32>
    %c0_34 = arith.constant 0 : index
    %c0_35 = arith.constant 0 : index
    %35 = vector.load %arg3[%c0_34, %c0_35] : memref<1x8xf32, #tpu.memory_space<vmem>>, vector<1x8xf32>
    %36 = vector.broadcast %35 : vector<1x8xf32> to vector<8x8xf32>
    %37 = arith.addf %34, %36 : vector<8x8xf32>
    %cst_36 = arith.constant dense<0.000000e+00> : vector<8xf32>
    %38 = vector.multi_reduction <add>, %18, %cst_36 [0] : vector<8x8xf32> to vector<8xf32>
    %39 = vector.shape_cast %38 : vector<8xf32> to vector<1x8xf32>
    %cst_37 = arith.constant 0.000000e+00 : f32
    %40 = vector.broadcast %cst_37 : f32 to vector<1x8xf32>
    %41 = arith.addf %40, %39 : vector<1x8xf32>
    %cst_38 = arith.constant dense<0.000000e+00> : vector<8xf32>
    %42 = vector.multi_reduction <add>, %37, %cst_38 [0] : vector<8x8xf32> to vector<8xf32>
    %43 = vector.shape_cast %42 : vector<8xf32> to vector<1x8xf32>
    %44 = arith.addf %41, %43 : vector<1x8xf32>
    %cst_39 = arith.constant 1.600000e+01 : f32
    %45 = vector.broadcast %cst_39 : f32 to vector<1x8xf32>
    %46 = arith.divf %44, %45 : vector<1x8xf32>
    %47 = vector.broadcast %46 : vector<1x8xf32> to vector<8x8xf32>
    %48 = arith.subf %18, %47 : vector<8x8xf32>
    %49 = arith.mulf %48, %48 : vector<8x8xf32>
    %cst_40 = arith.constant dense<0.000000e+00> : vector<8xf32>
    %50 = vector.multi_reduction <add>, %49, %cst_40 [0] : vector<8x8xf32> to vector<8xf32>
    %51 = vector.shape_cast %50 : vector<8xf32> to vector<1x8xf32>
    %cst_41 = arith.constant 0.000000e+00 : f32
    %52 = vector.broadcast %cst_41 : f32 to vector<1x8xf32>
    %53 = arith.addf %52, %51 : vector<1x8xf32>
    %54 = vector.broadcast %46 : vector<1x8xf32> to vector<8x8xf32>
    %55 = arith.subf %37, %54 : vector<8x8xf32>
    %56 = arith.mulf %55, %55 : vector<8x8xf32>
    %cst_42 = arith.constant dense<0.000000e+00> : vector<8xf32>
    %57 = vector.multi_reduction <add>, %56, %cst_42 [0] : vector<8x8xf32> to vector<8xf32>
    %58 = vector.shape_cast %57 : vector<8xf32> to vector<1x8xf32>
    %59 = arith.addf %53, %58 : vector<1x8xf32>
    %cst_43 = arith.constant 1.600000e+01 : f32
    %60 = vector.broadcast %cst_43 : f32 to vector<1x8xf32>
    %61 = arith.divf %59, %60 : vector<1x8xf32>
    %cst_44 = arith.constant 9.99999974E-6 : f32
    %62 = vector.broadcast %cst_44 : f32 to vector<1x8xf32>
    %63 = arith.addf %61, %62 : vector<1x8xf32>
    %64 = math.rsqrt %63 : vector<1x8xf32>
    %c0_45 = arith.constant 0 : index
    %c0_46 = arith.constant 0 : index
    %65 = vector.load %arg4[%c0_45, %c0_46] : memref<1x8xf32, #tpu.memory_space<vmem>>, vector<1x8xf32>
    %66 = arith.mulf %64, %65 : vector<1x8xf32>
    %c0_47 = arith.constant 0 : index
    %c0_48 = arith.constant 0 : index
    %67 = vector.load %arg5[%c0_47, %c0_48] : memref<1x8xf32, #tpu.memory_space<vmem>>, vector<1x8xf32>
    %68 = arith.mulf %46, %66 : vector<1x8xf32>
    %69 = arith.subf %67, %68 : vector<1x8xf32>
    %70 = vector.broadcast %66 : vector<1x8xf32> to vector<8x8xf32>
    %71 = arith.mulf %18, %70 : vector<8x8xf32>
    %72 = vector.broadcast %69 : vector<1x8xf32> to vector<8x8xf32>
    %73 = arith.addf %71, %72 : vector<8x8xf32>
    %c0_49 = arith.constant 0 : index
    %c0_50 = arith.constant 0 : index
    %74 = vector.load %arg6[%c0_49, %c0_50] : memref<16x8xf32, #tpu.memory_space<vmem>>, vector<8x8xf32>
    %75 = arith.addf %73, %74 : vector<8x8xf32>
    %c0_51 = arith.constant 0 : index
    %c0_52 = arith.constant 0 : index
    %76 = vector.load %arg7[%c0_51, %c0_52] : memref<16x8xf32, #tpu.memory_space<vmem>>, vector<8x8xf32>
    tpu.vector_store %arg7[%c0_51, %c0_52], %75 {strides = array<i32>} : memref<16x8xf32, #tpu.memory_space<vmem>>, vector<8x8xf32>,
    %77 = vector.broadcast %66 : vector<1x8xf32> to vector<8x8xf32>
    %78 = arith.mulf %37, %77 : vector<8x8xf32>
    %79 = vector.broadcast %69 : vector<1x8xf32> to vector<8x8xf32>
    %80 = arith.addf %78, %79 : vector<8x8xf32>
    %c8 = arith.constant 8 : index
    %c0_53 = arith.constant 0 : index
    %81 = vector.load %arg6[%c8, %c0_53] : memref<16x8xf32, #tpu.memory_space<vmem>>, vector<8x8xf32>
    %82 = arith.addf %80, %81 : vector<8x8xf32>
    %c8_54 = arith.constant 8 : index
    %c0_55 = arith.constant 0 : index
    %83 = vector.load %arg7[%c8_54, %c0_55] : memref<16x8xf32, #tpu.memory_space<vmem>>, vector<8x8xf32>
    tpu.vector_store %arg7[%c8_54, %c0_55], %82 {strides = array<i32>} : memref<16x8xf32, #tpu.memory_space<vmem>>, vector<8x8xf32>,
    return
  }
  func.func @transform_0(%arg0: i32) -> (i32, i32, i32) {
    %c0_i32 = arith.constant 0 : i32
    %c0_i32_0 = arith.constant 0 : i32
    %c0_i32_1 = arith.constant 0 : i32
    %c0_i32_2 = arith.constant 0 : i32
    return %c0_i32, %c0_i32_0, %c0_i32_1 : i32, i32, i32
  }
  func.func @transform_1(%arg0: i32) -> (i32, i32) {
    %c0_i32 = arith.constant 0 : i32
    %c0_i32_0 = arith.constant 0 : i32
    %c0_i32_1 = arith.constant 0 : i32
    return %c0_i32, %c0_i32_0 : i32, i32
  }
  func.func @transform_2(%arg0: i32) -> (i32, i32) {
    %c0_i32 = arith.constant 0 : i32
    %c0_i32_0 = arith.constant 0 : i32
    %c0_i32_1 = arith.constant 0 : i32
    return %c0_i32, %c0_i32_0 : i32, i32
  }
  func.func @transform_3(%arg0: i32) -> (i32, i32) {
    %c0_i32 = arith.constant 0 : i32
    %c0_i32_0 = arith.constant 0 : i32
    %c0_i32_1 = arith.constant 0 : i32
    return %c0_i32, %c0_i32_0 : i32, i32
  }
  func.func @transform_4(%arg0: i32) -> (i32, i32) {
    %c0_i32 = arith.constant 0 : i32
    %c0_i32_0 = arith.constant 0 : i32
    %c0_i32_1 = arith.constant 0 : i32
    return %c0_i32, %c0_i32_0 : i32, i32
  }
  func.func @transform_5(%arg0: i32) -> (i32, i32) {
    %c0_i32 = arith.constant 0 : i32
    %c0_i32_0 = arith.constant 0 : i32
    %c0_i32_1 = arith.constant 0 : i32
    return %c0_i32, %c0_i32_0 : i32, i32
  }
  func.func @transform_6(%arg0: i32) -> (i32, i32) {
    %c0_i32 = arith.constant 0 : i32
    %c0_i32_0 = arith.constant 0 : i32
    %c0_i32_1 = arith.constant 0 : i32
    return %c0_i32, %c0_i32_0 : i32, i32
  }
}

module attributes {stable_mosaic.version = 11 : i64} {
  func.func @_highway_stack_kernel(%arg0: i32, %arg1: memref<16x8xf32, #tpu.memory_space<vmem>>, %arg2: memref<8x16xf32, #tpu.memory_space<vmem>>, %arg3: memref<1x16xf32, #tpu.memory_space<vmem>>, %arg4: memref<4x16x16xf32, #tpu.memory_space<vmem>>, %arg5: memref<4x1x16xf32, #tpu.memory_space<vmem>>, %arg6: memref<4x16x16xf32, #tpu.memory_space<vmem>>, %arg7: memref<4x1x16xf32, #tpu.memory_space<vmem>>, %arg8: memref<16x16xf32, #tpu.memory_space<vmem>>) attributes {dimension_semantics = [#tpu.dimension_semantics<arbitrary>], iteration_bounds = array<i64: 1>, scalar_prefetch = 0 : i64, scratch_operands = 0 : i64, tpu.core_type = #tpu.core_type<tc>, window_params = [{pipeline_mode = #tpu.pipeline_mode<synchronous>, transform_indices = @transform_0, window_bounds = array<i64: 16, 8>}, {pipeline_mode = #tpu.pipeline_mode<synchronous>, transform_indices = @transform_1, window_bounds = array<i64: 8, 16>}, {pipeline_mode = #tpu.pipeline_mode<synchronous>, transform_indices = @transform_2, window_bounds = array<i64: 1, 16>}, {pipeline_mode = #tpu.pipeline_mode<synchronous>, transform_indices = @transform_3, window_bounds = array<i64: 4, 16, 16>}, {pipeline_mode = #tpu.pipeline_mode<synchronous>, transform_indices = @transform_4, window_bounds = array<i64: 4, 1, 16>}, {pipeline_mode = #tpu.pipeline_mode<synchronous>, transform_indices = @transform_5, window_bounds = array<i64: 4, 16, 16>}, {pipeline_mode = #tpu.pipeline_mode<synchronous>, transform_indices = @transform_6, window_bounds = array<i64: 4, 1, 16>}, {pipeline_mode = #tpu.pipeline_mode<synchronous>, transform_indices = @transform_7, window_bounds = array<i64: 16, 16>}]} {
    %c0 = arith.constant 0 : index
    %c0_0 = arith.constant 0 : index
    %0 = vector.load %arg1[%c0, %c0_0] : memref<16x8xf32, #tpu.memory_space<vmem>>, vector<16x8xf32>
    %c0_1 = arith.constant 0 : index
    %c0_2 = arith.constant 0 : index
    %1 = vector.load %arg2[%c0_1, %c0_2] : memref<8x16xf32, #tpu.memory_space<vmem>>, vector<8x16xf32>
    %cst = arith.constant dense<0.000000e+00> : vector<16x16xf32>
    %2 = tpu.matmul %0, %1, %cst {dimension_numbers = #tpu.dot_dimension_numbers<[1], [0], [0], [1], [0, 0, 1, 1], [], []>} : vector<16x8xf32>, vector<8x16xf32>, vector<16x16xf32> -> vector<16x16xf32>
    %c0_3 = arith.constant 0 : index
    %c0_4 = arith.constant 0 : index
    %3 = vector.load %arg3[%c0_3, %c0_4] : memref<1x16xf32, #tpu.memory_space<vmem>>, vector<1x16xf32>
    %4 = vector.broadcast %3 : vector<1x16xf32> to vector<16x16xf32>
    %5 = arith.addf %2, %4 : vector<16x16xf32>
    %c0_5 = arith.constant 0 : index
    %c0_6 = arith.constant 0 : index
    %c0_7 = arith.constant 0 : index
    %6 = vector.load %arg4[%c0_5, %c0_6, %c0_7] : memref<4x16x16xf32, #tpu.memory_space<vmem>>, vector<1x16x16xf32>
    %7 = vector.shape_cast %6 : vector<1x16x16xf32> to vector<16x16xf32>
    %cst_8 = arith.constant dense<0.000000e+00> : vector<16x16xf32>
    %8 = tpu.matmul %5, %7, %cst_8 {dimension_numbers = #tpu.dot_dimension_numbers<[1], [0], [0], [1], [0, 0, 1, 1], [], []>} : vector<16x16xf32>, vector<16x16xf32>, vector<16x16xf32> -> vector<16x16xf32>
    %c0_9 = arith.constant 0 : index
    %c0_10 = arith.constant 0 : index
    %c0_11 = arith.constant 0 : index
    %9 = vector.load %arg5[%c0_9, %c0_10, %c0_11] : memref<4x1x16xf32, #tpu.memory_space<vmem>>, vector<1x1x16xf32>
    %10 = vector.shape_cast %9 : vector<1x1x16xf32> to vector<1x16xf32>
    %11 = vector.broadcast %10 : vector<1x16xf32> to vector<16x16xf32>
    %12 = arith.addf %8, %11 : vector<16x16xf32>
    %cst_12 = arith.constant 0.000000e+00 : f32
    %13 = vector.broadcast %cst_12 : f32 to vector<16x16xf32>
    %14 = arith.maximumf %12, %13 : vector<16x16xf32>
    %c0_13 = arith.constant 0 : index
    %c0_14 = arith.constant 0 : index
    %c0_15 = arith.constant 0 : index
    %15 = vector.load %arg6[%c0_13, %c0_14, %c0_15] : memref<4x16x16xf32, #tpu.memory_space<vmem>>, vector<1x16x16xf32>
    %16 = vector.shape_cast %15 : vector<1x16x16xf32> to vector<16x16xf32>
    %cst_16 = arith.constant dense<0.000000e+00> : vector<16x16xf32>
    %17 = tpu.matmul %5, %16, %cst_16 {dimension_numbers = #tpu.dot_dimension_numbers<[1], [0], [0], [1], [0, 0, 1, 1], [], []>} : vector<16x16xf32>, vector<16x16xf32>, vector<16x16xf32> -> vector<16x16xf32>
    %c0_17 = arith.constant 0 : index
    %c0_18 = arith.constant 0 : index
    %c0_19 = arith.constant 0 : index
    %18 = vector.load %arg7[%c0_17, %c0_18, %c0_19] : memref<4x1x16xf32, #tpu.memory_space<vmem>>, vector<1x1x16xf32>
    %19 = vector.shape_cast %18 : vector<1x1x16xf32> to vector<1x16xf32>
    %20 = vector.broadcast %19 : vector<1x16xf32> to vector<16x16xf32>
    %21 = arith.addf %17, %20 : vector<16x16xf32>
    %22 = arith.negf %21 : vector<16x16xf32>
    %23 = math.exp %22 : vector<16x16xf32>
    %cst_20 = arith.constant 1.000000e+00 : f32
    %24 = vector.broadcast %cst_20 : f32 to vector<16x16xf32>
    %25 = arith.addf %24, %23 : vector<16x16xf32>
    %26 = arith.divf %24, %25 : vector<16x16xf32>
    %27 = arith.mulf %14, %26 : vector<16x16xf32>
    %cst_21 = arith.constant 1.000000e+00 : f32
    %28 = vector.broadcast %cst_21 : f32 to vector<16x16xf32>
    %29 = arith.subf %28, %26 : vector<16x16xf32>
    %30 = arith.mulf %5, %29 : vector<16x16xf32>
    %31 = arith.addf %27, %30 : vector<16x16xf32>
    %c1 = arith.constant 1 : index
    %c0_22 = arith.constant 0 : index
    %c0_23 = arith.constant 0 : index
    %32 = vector.load %arg4[%c1, %c0_22, %c0_23] : memref<4x16x16xf32, #tpu.memory_space<vmem>>, vector<1x16x16xf32>
    %33 = vector.shape_cast %32 : vector<1x16x16xf32> to vector<16x16xf32>
    %cst_24 = arith.constant dense<0.000000e+00> : vector<16x16xf32>
    %34 = tpu.matmul %31, %33, %cst_24 {dimension_numbers = #tpu.dot_dimension_numbers<[1], [0], [0], [1], [0, 0, 1, 1], [], []>} : vector<16x16xf32>, vector<16x16xf32>, vector<16x16xf32> -> vector<16x16xf32>
    %c1_25 = arith.constant 1 : index
    %c0_26 = arith.constant 0 : index
    %c0_27 = arith.constant 0 : index
    %35 = vector.load %arg5[%c1_25, %c0_26, %c0_27] : memref<4x1x16xf32, #tpu.memory_space<vmem>>, vector<1x1x16xf32>
    %36 = vector.shape_cast %35 : vector<1x1x16xf32> to vector<1x16xf32>
    %37 = vector.broadcast %36 : vector<1x16xf32> to vector<16x16xf32>
    %38 = arith.addf %34, %37 : vector<16x16xf32>
    %cst_28 = arith.constant 0.000000e+00 : f32
    %39 = vector.broadcast %cst_28 : f32 to vector<16x16xf32>
    %40 = arith.maximumf %38, %39 : vector<16x16xf32>
    %c1_29 = arith.constant 1 : index
    %c0_30 = arith.constant 0 : index
    %c0_31 = arith.constant 0 : index
    %41 = vector.load %arg6[%c1_29, %c0_30, %c0_31] : memref<4x16x16xf32, #tpu.memory_space<vmem>>, vector<1x16x16xf32>
    %42 = vector.shape_cast %41 : vector<1x16x16xf32> to vector<16x16xf32>
    %cst_32 = arith.constant dense<0.000000e+00> : vector<16x16xf32>
    %43 = tpu.matmul %31, %42, %cst_32 {dimension_numbers = #tpu.dot_dimension_numbers<[1], [0], [0], [1], [0, 0, 1, 1], [], []>} : vector<16x16xf32>, vector<16x16xf32>, vector<16x16xf32> -> vector<16x16xf32>
    %c1_33 = arith.constant 1 : index
    %c0_34 = arith.constant 0 : index
    %c0_35 = arith.constant 0 : index
    %44 = vector.load %arg7[%c1_33, %c0_34, %c0_35] : memref<4x1x16xf32, #tpu.memory_space<vmem>>, vector<1x1x16xf32>
    %45 = vector.shape_cast %44 : vector<1x1x16xf32> to vector<1x16xf32>
    %46 = vector.broadcast %45 : vector<1x16xf32> to vector<16x16xf32>
    %47 = arith.addf %43, %46 : vector<16x16xf32>
    %48 = arith.negf %47 : vector<16x16xf32>
    %49 = math.exp %48 : vector<16x16xf32>
    %cst_36 = arith.constant 1.000000e+00 : f32
    %50 = vector.broadcast %cst_36 : f32 to vector<16x16xf32>
    %51 = arith.addf %50, %49 : vector<16x16xf32>
    %52 = arith.divf %50, %51 : vector<16x16xf32>
    %53 = arith.mulf %40, %52 : vector<16x16xf32>
    %cst_37 = arith.constant 1.000000e+00 : f32
    %54 = vector.broadcast %cst_37 : f32 to vector<16x16xf32>
    %55 = arith.subf %54, %52 : vector<16x16xf32>
    %56 = arith.mulf %31, %55 : vector<16x16xf32>
    %57 = arith.addf %53, %56 : vector<16x16xf32>
    %c2 = arith.constant 2 : index
    %c0_38 = arith.constant 0 : index
    %c0_39 = arith.constant 0 : index
    %58 = vector.load %arg4[%c2, %c0_38, %c0_39] : memref<4x16x16xf32, #tpu.memory_space<vmem>>, vector<1x16x16xf32>
    %59 = vector.shape_cast %58 : vector<1x16x16xf32> to vector<16x16xf32>
    %cst_40 = arith.constant dense<0.000000e+00> : vector<16x16xf32>
    %60 = tpu.matmul %57, %59, %cst_40 {dimension_numbers = #tpu.dot_dimension_numbers<[1], [0], [0], [1], [0, 0, 1, 1], [], []>} : vector<16x16xf32>, vector<16x16xf32>, vector<16x16xf32> -> vector<16x16xf32>
    %c2_41 = arith.constant 2 : index
    %c0_42 = arith.constant 0 : index
    %c0_43 = arith.constant 0 : index
    %61 = vector.load %arg5[%c2_41, %c0_42, %c0_43] : memref<4x1x16xf32, #tpu.memory_space<vmem>>, vector<1x1x16xf32>
    %62 = vector.shape_cast %61 : vector<1x1x16xf32> to vector<1x16xf32>
    %63 = vector.broadcast %62 : vector<1x16xf32> to vector<16x16xf32>
    %64 = arith.addf %60, %63 : vector<16x16xf32>
    %cst_44 = arith.constant 0.000000e+00 : f32
    %65 = vector.broadcast %cst_44 : f32 to vector<16x16xf32>
    %66 = arith.maximumf %64, %65 : vector<16x16xf32>
    %c2_45 = arith.constant 2 : index
    %c0_46 = arith.constant 0 : index
    %c0_47 = arith.constant 0 : index
    %67 = vector.load %arg6[%c2_45, %c0_46, %c0_47] : memref<4x16x16xf32, #tpu.memory_space<vmem>>, vector<1x16x16xf32>
    %68 = vector.shape_cast %67 : vector<1x16x16xf32> to vector<16x16xf32>
    %cst_48 = arith.constant dense<0.000000e+00> : vector<16x16xf32>
    %69 = tpu.matmul %57, %68, %cst_48 {dimension_numbers = #tpu.dot_dimension_numbers<[1], [0], [0], [1], [0, 0, 1, 1], [], []>} : vector<16x16xf32>, vector<16x16xf32>, vector<16x16xf32> -> vector<16x16xf32>
    %c2_49 = arith.constant 2 : index
    %c0_50 = arith.constant 0 : index
    %c0_51 = arith.constant 0 : index
    %70 = vector.load %arg7[%c2_49, %c0_50, %c0_51] : memref<4x1x16xf32, #tpu.memory_space<vmem>>, vector<1x1x16xf32>
    %71 = vector.shape_cast %70 : vector<1x1x16xf32> to vector<1x16xf32>
    %72 = vector.broadcast %71 : vector<1x16xf32> to vector<16x16xf32>
    %73 = arith.addf %69, %72 : vector<16x16xf32>
    %74 = arith.negf %73 : vector<16x16xf32>
    %75 = math.exp %74 : vector<16x16xf32>
    %cst_52 = arith.constant 1.000000e+00 : f32
    %76 = vector.broadcast %cst_52 : f32 to vector<16x16xf32>
    %77 = arith.addf %76, %75 : vector<16x16xf32>
    %78 = arith.divf %76, %77 : vector<16x16xf32>
    %79 = arith.mulf %66, %78 : vector<16x16xf32>
    %cst_53 = arith.constant 1.000000e+00 : f32
    %80 = vector.broadcast %cst_53 : f32 to vector<16x16xf32>
    %81 = arith.subf %80, %78 : vector<16x16xf32>
    %82 = arith.mulf %57, %81 : vector<16x16xf32>
    %83 = arith.addf %79, %82 : vector<16x16xf32>
    %c3 = arith.constant 3 : index
    %c0_54 = arith.constant 0 : index
    %c0_55 = arith.constant 0 : index
    %84 = vector.load %arg4[%c3, %c0_54, %c0_55] : memref<4x16x16xf32, #tpu.memory_space<vmem>>, vector<1x16x16xf32>
    %85 = vector.shape_cast %84 : vector<1x16x16xf32> to vector<16x16xf32>
    %cst_56 = arith.constant dense<0.000000e+00> : vector<16x16xf32>
    %86 = tpu.matmul %83, %85, %cst_56 {dimension_numbers = #tpu.dot_dimension_numbers<[1], [0], [0], [1], [0, 0, 1, 1], [], []>} : vector<16x16xf32>, vector<16x16xf32>, vector<16x16xf32> -> vector<16x16xf32>
    %c3_57 = arith.constant 3 : index
    %c0_58 = arith.constant 0 : index
    %c0_59 = arith.constant 0 : index
    %87 = vector.load %arg5[%c3_57, %c0_58, %c0_59] : memref<4x1x16xf32, #tpu.memory_space<vmem>>, vector<1x1x16xf32>
    %88 = vector.shape_cast %87 : vector<1x1x16xf32> to vector<1x16xf32>
    %89 = vector.broadcast %88 : vector<1x16xf32> to vector<16x16xf32>
    %90 = arith.addf %86, %89 : vector<16x16xf32>
    %cst_60 = arith.constant 0.000000e+00 : f32
    %91 = vector.broadcast %cst_60 : f32 to vector<16x16xf32>
    %92 = arith.maximumf %90, %91 : vector<16x16xf32>
    %c3_61 = arith.constant 3 : index
    %c0_62 = arith.constant 0 : index
    %c0_63 = arith.constant 0 : index
    %93 = vector.load %arg6[%c3_61, %c0_62, %c0_63] : memref<4x16x16xf32, #tpu.memory_space<vmem>>, vector<1x16x16xf32>
    %94 = vector.shape_cast %93 : vector<1x16x16xf32> to vector<16x16xf32>
    %cst_64 = arith.constant dense<0.000000e+00> : vector<16x16xf32>
    %95 = tpu.matmul %83, %94, %cst_64 {dimension_numbers = #tpu.dot_dimension_numbers<[1], [0], [0], [1], [0, 0, 1, 1], [], []>} : vector<16x16xf32>, vector<16x16xf32>, vector<16x16xf32> -> vector<16x16xf32>
    %c3_65 = arith.constant 3 : index
    %c0_66 = arith.constant 0 : index
    %c0_67 = arith.constant 0 : index
    %96 = vector.load %arg7[%c3_65, %c0_66, %c0_67] : memref<4x1x16xf32, #tpu.memory_space<vmem>>, vector<1x1x16xf32>
    %97 = vector.shape_cast %96 : vector<1x1x16xf32> to vector<1x16xf32>
    %98 = vector.broadcast %97 : vector<1x16xf32> to vector<16x16xf32>
    %99 = arith.addf %95, %98 : vector<16x16xf32>
    %100 = arith.negf %99 : vector<16x16xf32>
    %101 = math.exp %100 : vector<16x16xf32>
    %cst_68 = arith.constant 1.000000e+00 : f32
    %102 = vector.broadcast %cst_68 : f32 to vector<16x16xf32>
    %103 = arith.addf %102, %101 : vector<16x16xf32>
    %104 = arith.divf %102, %103 : vector<16x16xf32>
    %105 = arith.mulf %92, %104 : vector<16x16xf32>
    %cst_69 = arith.constant 1.000000e+00 : f32
    %106 = vector.broadcast %cst_69 : f32 to vector<16x16xf32>
    %107 = arith.subf %106, %104 : vector<16x16xf32>
    %108 = arith.mulf %83, %107 : vector<16x16xf32>
    %109 = arith.addf %105, %108 : vector<16x16xf32>
    %c0_70 = arith.constant 0 : index
    %c0_71 = arith.constant 0 : index
    %110 = vector.load %arg8[%c0_70, %c0_71] : memref<16x16xf32, #tpu.memory_space<vmem>>, vector<16x16xf32>
    tpu.vector_store %arg8[%c0_70, %c0_71], %109 {strides = array<i32>} : memref<16x16xf32, #tpu.memory_space<vmem>>, vector<16x16xf32>,
    return
  }
  func.func @transform_0(%arg0: i32) -> (i32, i32) {
    %c0_i32 = arith.constant 0 : i32
    %c0_i32_0 = arith.constant 0 : i32
    %c0_i32_1 = arith.constant 0 : i32
    return %c0_i32, %c0_i32_0 : i32, i32
  }
  func.func @transform_1(%arg0: i32) -> (i32, i32) {
    %c0_i32 = arith.constant 0 : i32
    %c0_i32_0 = arith.constant 0 : i32
    %c0_i32_1 = arith.constant 0 : i32
    return %c0_i32, %c0_i32_0 : i32, i32
  }
  func.func @transform_2(%arg0: i32) -> (i32, i32) {
    %c0_i32 = arith.constant 0 : i32
    %c0_i32_0 = arith.constant 0 : i32
    %c0_i32_1 = arith.constant 0 : i32
    return %c0_i32, %c0_i32_0 : i32, i32
  }
  func.func @transform_3(%arg0: i32) -> (i32, i32, i32) {
    %c0_i32 = arith.constant 0 : i32
    %c0_i32_0 = arith.constant 0 : i32
    %c0_i32_1 = arith.constant 0 : i32
    %c0_i32_2 = arith.constant 0 : i32
    return %c0_i32, %c0_i32_0, %c0_i32_1 : i32, i32, i32
  }
  func.func @transform_4(%arg0: i32) -> (i32, i32, i32) {
    %c0_i32 = arith.constant 0 : i32
    %c0_i32_0 = arith.constant 0 : i32
    %c0_i32_1 = arith.constant 0 : i32
    %c0_i32_2 = arith.constant 0 : i32
    return %c0_i32, %c0_i32_0, %c0_i32_1 : i32, i32, i32
  }
  func.func @transform_5(%arg0: i32) -> (i32, i32, i32) {
    %c0_i32 = arith.constant 0 : i32
    %c0_i32_0 = arith.constant 0 : i32
    %c0_i32_1 = arith.constant 0 : i32
    %c0_i32_2 = arith.constant 0 : i32
    return %c0_i32, %c0_i32_0, %c0_i32_1 : i32, i32, i32
  }
  func.func @transform_6(%arg0: i32) -> (i32, i32, i32) {
    %c0_i32 = arith.constant 0 : i32
    %c0_i32_0 = arith.constant 0 : i32
    %c0_i32_1 = arith.constant 0 : i32
    %c0_i32_2 = arith.constant 0 : i32
    return %c0_i32, %c0_i32_0, %c0_i32_1 : i32, i32, i32
  }
  func.func @transform_7(%arg0: i32) -> (i32, i32) {
    %c0_i32 = arith.constant 0 : i32
    %c0_i32_0 = arith.constant 0 : i32
    %c0_i32_1 = arith.constant 0 : i32
    return %c0_i32, %c0_i32_0 : i32, i32
  }
}

module attributes {stable_mosaic.version = 11 : i64} {
  func.func @_linear_kernel(%arg0: i32, %arg1: memref<16x32xf32, #tpu.memory_space<vmem>>, %arg2: memref<32x16xf32, #tpu.memory_space<vmem>>, %arg3: memref<1x16xf32, #tpu.memory_space<vmem>>, %arg4: memref<16x16xf32, #tpu.memory_space<vmem>>) attributes {dimension_semantics = [#tpu.dimension_semantics<arbitrary>], iteration_bounds = array<i64: 1>, scalar_prefetch = 0 : i64, scratch_operands = 0 : i64, tpu.core_type = #tpu.core_type<tc>, window_params = [{pipeline_mode = #tpu.pipeline_mode<synchronous>, transform_indices = @transform_0, window_bounds = array<i64: 16, 32>}, {pipeline_mode = #tpu.pipeline_mode<synchronous>, transform_indices = @transform_1, window_bounds = array<i64: 32, 16>}, {pipeline_mode = #tpu.pipeline_mode<synchronous>, transform_indices = @transform_2, window_bounds = array<i64: 1, 16>}, {pipeline_mode = #tpu.pipeline_mode<synchronous>, transform_indices = @transform_3, window_bounds = array<i64: 16, 16>}]} {
    %c0 = arith.constant 0 : index
    %c0_0 = arith.constant 0 : index
    %0 = vector.load %arg1[%c0, %c0_0] : memref<16x32xf32, #tpu.memory_space<vmem>>, vector<16x32xf32>
    %c0_1 = arith.constant 0 : index
    %c0_2 = arith.constant 0 : index
    %1 = vector.load %arg2[%c0_1, %c0_2] : memref<32x16xf32, #tpu.memory_space<vmem>>, vector<32x16xf32>
    %cst = arith.constant dense<0.000000e+00> : vector<16x16xf32>
    %2 = tpu.matmul %0, %1, %cst {dimension_numbers = #tpu.dot_dimension_numbers<[1], [0], [0], [1], [0, 0, 1, 1], [], []>} : vector<16x32xf32>, vector<32x16xf32>, vector<16x16xf32> -> vector<16x16xf32>
    %c0_3 = arith.constant 0 : index
    %c0_4 = arith.constant 0 : index
    %3 = vector.load %arg3[%c0_3, %c0_4] : memref<1x16xf32, #tpu.memory_space<vmem>>, vector<1x16xf32>
    %4 = vector.broadcast %3 : vector<1x16xf32> to vector<16x16xf32>
    %5 = arith.addf %2, %4 : vector<16x16xf32>
    %c0_5 = arith.constant 0 : index
    %c0_6 = arith.constant 0 : index
    %6 = vector.load %arg4[%c0_5, %c0_6] : memref<16x16xf32, #tpu.memory_space<vmem>>, vector<16x16xf32>
    tpu.vector_store %arg4[%c0_5, %c0_6], %5 {strides = array<i32>} : memref<16x16xf32, #tpu.memory_space<vmem>>, vector<16x16xf32>,
    return
  }
  func.func @transform_0(%arg0: i32) -> (i32, i32) {
    %c0_i32 = arith.constant 0 : i32
    %c0_i32_0 = arith.constant 0 : i32
    %c0_i32_1 = arith.constant 0 : i32
    return %c0_i32, %c0_i32_0 : i32, i32
  }
  func.func @transform_1(%arg0: i32) -> (i32, i32) {
    %c0_i32 = arith.constant 0 : i32
    %c0_i32_0 = arith.constant 0 : i32
    %c0_i32_1 = arith.constant 0 : i32
    return %c0_i32, %c0_i32_0 : i32, i32
  }
  func.func @transform_2(%arg0: i32) -> (i32, i32) {
    %c0_i32 = arith.constant 0 : i32
    %c0_i32_0 = arith.constant 0 : i32
    %c0_i32_1 = arith.constant 0 : i32
    return %c0_i32, %c0_i32_0 : i32, i32
  }
  func.func @transform_3(%arg0: i32) -> (i32, i32) {
    %c0_i32 = arith.constant 0 : i32
    %c0_i32_0 = arith.constant 0 : i32
    %c0_i32_1 = arith.constant 0 : i32
    return %c0_i32, %c0_i32_0 : i32, i32
  }
}

</mosaic_0001>

<bundles_post_ra>
// kernel: tacotron_forward.27
= control target key start
LH: loop header
LB: loop body
LE: loop exit
PB: predicated region body
PF: predicated region fallthrough
CT: control target
= control target key end

     0   :  { %vm29_vm0 = vcmask 64512   ;;  %v232_v0 = vmov 0.0   ;;  %vm233_vm1 = vmmov 0   ;;  %v234_v4 = vmov 0.0|0.0   ;;  %s292_s1 = inlined_call_operand.vmem [shape: f32[8,32], index: 1, kind: input, shape index: {}]   ;;  %s293_s0 = inlined_call_operand.vmem [shape: f32[8,8], index: 0, kind: input, shape index: {}]   ;;  %s294_s3 = inlined_call_operand.vmem [shape: f32[32,16], index: 3, kind: input, shape index: {}]   ;;  %s295_s2 = inlined_call_operand.vmem [shape: f32[1,32], index: 2, kind: input, shape index: {}]   ;;  %s296_s4 = inlined_call_operand.vmem [shape: f32[1,16], index: 4, kind: input, shape index: {}]   ;;  %s297_s5 = inlined_call_operand.vmem [shape: f32[8,16], index: 5, kind: output, shape index: {}]  }
   0x1   :  { %207 = vmatprep.subr.mxu0 %v232_v0  ;;  %v21_v1 = vld [vmem:[%s292_s1] sm:$0xff]  ;;  %209 = vmatprep.mubr.msk.f32.mxu0 %vm233_vm1, %v232_v0  ;;  %v105_v5 = vld [vmem:[%s294_s3 + $0x8] sm:$0xff]  ;;  %v106_v7 = vld [vmem:[%s294_s3 + $0x10] sm:$0xff]  ;;  %vm115_vm2 = vcmask 261120   ;;  %vm190_vm3 = vcmask 130048  }
   0x2   :  { %v20_v2 = vld [vmem:[%s293_s0] sm:$0xff]  ;;  %208 = vmatpush3.msra.mxu0 %v21_v1  ;;  %223 = vmatprep.subr.bf16.mxu1 %v234_v4  ;;  %v107_v8 = vld [vmem:[%s294_s3 + $0x18] sm:$0xff] }
   0x3   :  { %v104_v3 = vld [vmem:[%s294_s3] sm:$0xff]  ;;  %210 = vmatmul.mubr.msk.f32.vlgmr.msra.gmra.mrb[0].mxu0 %vm29_vm0, %v20_v2  ;;  %220 = vmatprep.mubr.msk.f32.mxu1 %vm233_vm1, %v232_v0  ;;  %v227_v9 = vpack.c.bf16 %v107_v8, %v106_v7 }
   0x4   :  { %v224_v6 = vpack.c.bf16 %v105_v5, %v104_v3  ;;  %v196_v10 = vld [vmem:[%s295_s2] ss:$0 sm:$0xff] }
   0x5   :  { %v198_v15 = vld [vmem:[%s296_s4] ss:$0 sm:$0xff] }
   0x6   :  { %225 = vmatpush3.bf16.msra.mxu1 %v224_v6 }
   0x7   :  { %226 = vmatprep.subr.bf16.mxu1 %v234_v4 }
   0xa   :  { %228 = vmatpush3.bf16.msra.mxu1 %v227_v9 }
  0xd6   :  { %v99_v11 = vpop.f32.mrb[0].mxu0 }
  0xd7   :  { %v100_v12 = vadd.f32 %v196_v10, %v99_v11  ;;  %v211_v13 = vpop.f32.mrb[1].mxu0 }
  0xd9   :  { %v103_v14 = vmax.f32 %v100_v12, 0.0 }
  0xdb   :  { %221 = vmatmul.mubr.msk.f32.vlgmr.msra.gmra.mrb[0].mxu1 %vm115_vm2, %v103_v14 }
 0x1ae   :  { %v185_v16 = vpop.f32.mrb[0].mxu1 }
 0x1af   :  { %v186_v17 = vadd.f32 %v198_v15, %v185_v16  ;;  %v222_v18 = vpop.f32.mrb[1].mxu1 }
 0x1b1   :  { %v189_v19 = vmax.f32 %v186_v17, 0.0 }
 0x1b3   :  { %191 = vst.msk [vmem:[%s297_s5] sm:$0xff] %vm190_vm3, %v189_v19 }

// kernel: tacotron_forward.28
= control target key start
LH: loop header
LB: loop body
LE: loop exit
PB: predicated region body
PF: predicated region fallthrough
CT: control target
= control target key end

     0   :  { %v122_v0 = vmov 0.0|0.0   ;;  %vm123_vm0 = vmmov 0   ;;  %v124_v3 = vmov 0.0   ;;  %vm24_vm1 = vcmask 130048   ;;  %s160_s1 = inlined_call_operand.vmem [shape: f32[16,96], index: 1, kind: input, shape index: {}]   ;;  %s161_s0 = inlined_call_operand.vmem [shape: f32[8,16], index: 0, kind: input, shape index: {}]   ;;  %s162_s2 = inlined_call_operand.vmem [shape: f32[1,96], index: 2, kind: input, shape index: {}]   ;;  %s163_s3 = inlined_call_operand.vmem [shape: f32[8,96], index: 3, kind: output, shape index: {}]  }
   0x1   :  { %116 = vmatprep.subr.bf16.mxu0 %v122_v0  ;;  %v15_v1 = vld [vmem:[%s160_s1] sm:$0xff]  ;;  %v16_v2 = vld [vmem:[%s160_s1 + $0x8] sm:$0xff]  ;;  %113 = vmatprep.mubr.msk.f32.mxu0 %vm123_vm0, %v124_v3  ;;  %vm98_vm2 = vcmask 785408  }
   0x2   :  { %v117_v4 = vpack.c.bf16 %v16_v2, %v15_v1  ;;  %v14_v5 = vld [vmem:[%s161_s0] sm:$0xff] }
   0x3   :  { %v104_v6 = vld [vmem:[%s162_s2] ss:$0 sm:$0xff] }
   0x4   :  { %118 = vmatpush3.bf16.msra.mxu0 %v117_v4 }
   0x7   :  { %114 = vmatmul.mubr.msk.f32.vlgmr.msra.gmra.mrb[0].mxu0 %vm24_vm1, %v14_v5 }
  0xda   :  { %v94_v7 = vpop.f32.mrb[0].mxu0 }
  0xdb   :  { %v95_v8 = vadd.f32 %v104_v6, %v94_v7  ;;  %v115_v9 = vpop.f32.mrb[1].mxu0 }
  0xdd   :  { %99 = vst.msk [vmem:[%s163_s3] sm:$0xff] %vm98_vm2, %v95_v8 }

// kernel: tacotron_forward.20
= control target key start
LH: loop header
LB: loop body
LE: loop exit
PB: predicated region body
PF: predicated region fallthrough
CT: control target
= control target key end

     0   :  { %vm33_vm0 = vcmask 261120   ;;  %vm211_vm1 = vcmask 130048   ;;  %s350_s1 = inlined_call_operand.vmem [shape: f32[32,32], index: 1, kind: input, shape index: {}]   ;;  %s351_s0 = inlined_call_operand.vmem [shape: f32[16,32], index: 0, kind: input, shape index: {}]   ;;  %s352_s3 = inlined_call_operand.vmem [shape: f32[32,16], index: 3, kind: input, shape index: {}]   ;;  %s353_s2 = inlined_call_operand.vmem [shape: f32[1,32], index: 2, kind: input, shape index: {}]   ;;  %s354_s4 = inlined_call_operand.vmem [shape: f32[1,16], index: 4, kind: input, shape index: {}]   ;;  %s355_s5 = inlined_call_operand.vmem [shape: f32[16,16], index: 5, kind: output, shape index: {}]  }
   0x1   :  { %v22_v0 = vld [vmem:[%s350_s1] sm:$0xff]  ;;  %v23_v1 = vld [vmem:[%s350_s1 + $0x8] sm:$0xff]  ;;  %v24_v2 = vld [vmem:[%s350_s1 + $0x10] sm:$0xff] }
   0x2   :  { %v258_v3 = vpack.c.bf16 %v23_v1, %v22_v0  ;;  %v25_v4 = vld [vmem:[%s350_s1 + $0x18] sm:$0xff]  ;;  %v20_v5 = vld [vmem:[%s351_s0] sm:$0xff]  ;;  %v118_v8 = vld [vmem:[%s352_s3 + $0x8] sm:$0xff] }
   0x3   :  { %v262_v6 = vpack.c.bf16 %v25_v4, %v24_v2  ;;  %244 = vmatprep.mubr.msk.f32.mxu0 %vm33_vm0, %v20_v5  ;;  %v117_v7 = vld [vmem:[%s352_s3] sm:$0xff]  ;;  %v21_v10 = vld [vmem:[%s351_s0 + $0x8] sm:$0xff]  ;;  %v119_v11 = vld [vmem:[%s352_s3 + $0x10] sm:$0xff] }
   0x4   :  { %259 = vmatprep.subr.bf16.mxu0 %v258_v3  ;;  %v266_v9 = vpack.c.bf16 %v118_v8, %v117_v7  ;;  %v120_v12 = vld [vmem:[%s352_s3 + $0x18] sm:$0xff]  ;;  %v218_v14 = vld [vmem:[%s353_s2] ss:$0 sm:$0xff] }
   0x5   :  { %261 = vmatpush3.bf16.msra.mxu0 %v258_v3  ;;  %v270_v13 = vpack.c.bf16 %v120_v12, %v119_v11  ;;  %v221_v21 = vld [vmem:[%s354_s4] ss:$0 sm:$0xff] }
   0x6   :  { %263 = vmatprep.subr.bf16.mxu0 %v262_v6  ;;  %267 = vmatprep.subr.bf16.mxu1 %v266_v9 }
   0x7   :  { %269 = vmatpush3.bf16.msra.mxu1 %v266_v9 }
   0x8   :  { %271 = vmatprep.subr.bf16.mxu1 %v270_v13 }
   0x9   :  { %265 = vmatpush3.bf16.msra.mxu0 %v262_v6 }
   0xb   :  { %273 = vmatpush3.bf16.msra.mxu1 %v270_v13 }
   0xc   :  { %245 = vmatmul.mubr.msk.f32.vlgmr.msra.gmra.mrb[0].mxu0 %vm33_vm0, %v21_v10 }
  0xdf   :  { %v246_v15 = vpop.f32.mrb[0].mxu0 }
  0xe0   :  { %v112_v16 = vadd.f32 %v246_v15, %v218_v14  ;;  %v106_v17 = vpop.f32.mrb[1].mxu0 }
  0xe1   :  { %v107_v18 = vadd.f32 %v218_v14, %v106_v17 }
  0xe2   :  { %v116_v20 = vmax.f32 %v112_v16, 0.0 }
  0xe3   :  { %v115_v19 = vmax.f32 %v107_v18, 0.0 }
  0xe5   :  { %255 = vmatprep.mubr.msk.f32.mxu1 %vm33_vm0, %v115_v19 }
  0xe6   :  { %256 = vmatmul.mubr.msk.f32.vlgmr.msra.gmra.mrb[0].mxu1 %vm33_vm0, %v116_v20 }
 0x1b9   :  { %v257_v22 = vpop.f32.mrb[0].mxu1 }
 0x1ba   :  { %v206_v23 = vadd.f32 %v257_v22, %v221_v21  ;;  %v200_v24 = vpop.f32.mrb[1].mxu1 }
 0x1bb   :  { %v201_v25 = vadd.f32 %v221_v21, %v200_v24 }
 0x1bc   :  { %v210_v26 = vmax.f32 %v206_v23, 0.0 }
 0x1bd   :  { %v209_v27 = vmax.f32 %v201_v25, 0.0 }
 0x1be   :  { %213 = vst.msk [vmem:[%s355_s5 + $0x8] sm:$0xff] %vm211_vm1, %v210_v26 }
 0x1bf   :  { %212 = vst.msk [vmem:[%s355_s5] sm:$0xff] %vm211_vm1, %v209_v27 }

// kernel: tacotron_forward.22
= control target key start
LH: loop header
LB: loop body
LE: loop exit
PB: predicated region body
PF: predicated region fallthrough
CT: control target
= control target key end

     0   :  { %v825_v0 = vmov 0.0|0.0   ;;  %vm826_vm0 = vmmov 0   ;;  %v827_v8 = vmov 0.0   ;;  %vm38_vm1 = vcmask 523264   ;;  %s1023_s1 = inlined_call_operand.vmem [shape: f32[192,16], index: 1, kind: input, shape index: {}]   ;;  %s1024_s0 = inlined_call_operand.vmem [shape: f32[2,10,64], index: 0, kind: input, shape index: {}]   ;;  %s1025_s2 = inlined_call_operand.vmem [shape: f32[1,16], index: 2, kind: input, shape index: {}]   ;;  %s1026_s3 = inlined_call_operand.vmem [shape: f32[1,16], index: 3, kind: input, shape index: {}]   ;;  %s1027_s4 = inlined_call_operand.vmem [shape: f32[1,16], index: 4, kind: input, shape index: {}]   ;;  %s1028_s5 = inlined_call_operand.vmem [shape: f32[16,16], index: 5, kind: output, shape index: {}]  }
   0x1   :  { %748 = vmatprep.subr.bf16.mxu0 %v825_v0  ;;  %v30_v1 = vld [vmem:[%s1023_s1 + $0x40] sm:$0xff]  ;;  %v31_v2 = vld [vmem:[%s1023_s1 + $0x48] sm:$0xff]  ;;  %760 = vmatprep.subr.bf16.mxu1 %v825_v0  ;;  %v32_v6 = vld [vmem:[%s1023_s1 + $0x50] sm:$0xff]  ;;  %vm501_vm2 = vcmask 130048  }
   0x2   :  { %v21_v3 = vld [vmem:[%s1023_s1] sm:$0xff]  ;;  %v749_v4 = vpack.c.bf16 %v31_v2, %v30_v1  ;;  %v22_v5 = vld [vmem:[%s1023_s1 + $0x8] sm:$0xff]  ;;  %v33_v7 = vld [vmem:[%s1023_s1 + $0x58] sm:$0xff]  ;;  %650 = vmatprep.mubr.msk.f32.mxu0 %vm826_vm0, %v827_v8  ;;  %669 = vmatprep.mubr.msk.f32.mxu1 %vm826_vm0, %v827_v8 }
   0x3   :  { %v882_v9 = vpack.c.bf16 %v22_v5, %v21_v3  ;;  %v23_v10 = vld [vmem:[%s1023_s1 + $0x10] sm:$0xff]  ;;  %v24_v11 = vld [vmem:[%s1023_s1 + $0x18] sm:$0xff]  ;;  %v752_v12 = vpack.c.bf16 %v33_v7, %v32_v6  ;;  %v34_v14 = vld [vmem:[%s1023_s1 + $0x60] sm:$0xff] }
   0x4   :  { %750 = vmatpush3.bf16.msra.mxu0 %v749_v4  ;;  %v892_v13 = vpack.c.bf16 %v24_v11, %v23_v10  ;;  %v35_v15 = vld [vmem:[%s1023_s1 + $0x68] sm:$0xff]  ;;  %v25_v16 = vld [vmem:[%s1023_s1 + $0x20] sm:$0xff]  ;;  %v36_v20 = vld [vmem:[%s1023_s1 + $0x70] sm:$0xff] }
   0x5   :  { %762 = vmatpush3.bf16.msra.mxu1 %v882_v9  ;;  %751 = vmatprep.subr.bf16.mxu0 %v825_v0  ;;  %v26_v17 = vld [vmem:[%s1023_s1 + $0x28] sm:$0xff]  ;;  %v755_v18 = vpack.c.bf16 %v35_v15, %v34_v14  ;;  %v37_v21 = vld [vmem:[%s1023_s1 + $0x78] sm:$0xff]  ;;  %v27_v22 = vld [vmem:[%s1023_s1 + $0x30] sm:$0xff] }
   0x6   :  { %763 = vmatprep.subr.bf16.mxu1 %v825_v0  ;;  %v909_v19 = vpack.c.bf16 %v26_v17, %v25_v16  ;;  %v28_v23 = vld [vmem:[%s1023_s1 + $0x38] sm:$0xff]  ;;  %v758_v24 = vpack.c.bf16 %v37_v21, %v36_v20  ;;  %v186_v26 = vld [vmem:[%s1023_s1 + $0x80] sm:$0xff]  ;;  %v187_v27 = vld [vmem:[%s1023_s1 + $0x88] sm:$0xff] }
   0x7   :  { %v770_v25 = vpack.c.bf16 %v28_v23, %v27_v22  ;;  %v29_v28 = vld [vmem:[%s1024_s0 + $0x1] sm:$0xff]  ;;  %v773_v29 = vpack.c.bf16 %v187_v27, %v186_v26  ;;  %v188_v31 = vld [vmem:[%s1023_s1 + $0x90] sm:$0xff]  ;;  %v189_v32 = vld [vmem:[%s1023_s1 + $0x98] sm:$0xff] }
   0x8   :  { %753 = vmatpush3.bf16.msra.mxu0 %v752_v12  ;;  %v20_v30 = vld [vmem:[%s1024_s0] sm:$0xff]  ;;  %v776_v33 = vpack.c.bf16 %v189_v32, %v188_v31  ;;  %v191_v35 = vld [vmem:[%s1023_s1 + $0xa8] sm:$0xff]  ;;  %v192_v37 = vld [vmem:[%s1023_s1 + $0xb0] sm:$0xff] }
   0x9   :  { %765 = vmatpush3.bf16.msra.mxu1 %v892_v13  ;;  %754 = vmatprep.subr.bf16.mxu0 %v825_v0  ;;  %v190_v34 = vld [vmem:[%s1023_s1 + $0xa0] sm:$0xff]  ;;  %v193_v38 = vld [vmem:[%s1023_s1 + $0xb8] sm:$0xff]  ;;  %v574_v42 = vld [vmem:[%s1024_s0 + $0x10] sm:$0xff] }
   0xa   :  { %766 = vmatprep.subr.bf16.mxu1 %v825_v0  ;;  %v779_v36 = vpack.c.bf16 %v191_v35, %v190_v34  ;;  %v782_v39 = vpack.c.bf16 %v193_v38, %v192_v37  ;;  %v185_v40 = vld [vmem:[%s1024_s0 + $0x2] sm:$0xff]  ;;  %v575_v41 = vld [vmem:[%s1024_s0 + $0x11] sm:$0xff]  ;;  %v573_v54 = vld [vmem:[%s1025_s2] ss:$0 sm:$0xff] }
   0xb   :  { %v578_v43 = vld [vmem:[%s1024_s0 + $0x12] sm:$0xff]  ;;  %v543_v38 = vld [vmem:[%s1026_s3] sm:$0x1] }
   0xc   :  { %756 = vmatpush3.bf16.msra.mxu0 %v755_v18 }
   0xd   :  { %768 = vmatpush3.bf16.msra.mxu1 %v909_v19  ;;  %757 = vmatprep.subr.bf16.mxu0 %v825_v0 }
   0xe   :  { %769 = vmatprep.subr.bf16.mxu1 %v825_v0 }
  0x10   :  { %759 = vmatpush3.bf16.msra.mxu0 %v758_v24 }
  0x11   :  { %771 = vmatpush3.bf16.msra.mxu1 %v770_v25  ;;  %772 = vmatprep.subr.bf16.mxu0 %v825_v0 }
  0x12   :  { %784 = vmatprep.subr.bf16.mxu1 %v825_v0 }
  0x13   :  { %651 = vmatmul.mubr.msk.f32.vlgmr.msra.gmra.mrb[0].mxu0 %vm38_vm1, %v29_v28 }
  0x14   :  { %670 = vmatmul.mubr.msk.f32.vlgmr.msra.gmra.mrb[0].mxu1 %vm38_vm1, %v20_v30  ;;  %774 = vmatpush3.bf16.msra.mxu0 %v773_v29 }
  0x15   :  { %786 = vmatpush3.bf16.msra.mxu1 %v749_v4  ;;  %775 = vmatprep.subr.bf16.mxu0 %v825_v0 }
  0x16   :  { %787 = vmatprep.subr.bf16.mxu1 %v825_v0  ;;  %688 = vmatprep.mubr.msk.f32.mxu0 %vm826_vm0, %v827_v8 }
  0x17   :  { %707 = vmatprep.mubr.msk.f32.mxu1 %vm826_vm0, %v827_v8 }
  0x18   :  { %777 = vmatpush3.bf16.msra.mxu0 %v776_v33 }
  0x19   :  { %789 = vmatpush3.bf16.msra.mxu1 %v752_v12  ;;  %778 = vmatprep.subr.bf16.mxu0 %v825_v0 }
  0x1a   :  { %790 = vmatprep.subr.bf16.mxu1 %v825_v0 }
  0x1c   :  { %780 = vmatpush3.bf16.msra.mxu0 %v779_v36 }
  0x1d   :  { %792 = vmatpush3.bf16.msra.mxu1 %v755_v18  ;;  %781 = vmatprep.subr.bf16.mxu0 %v825_v0 }
  0x1e   :  { %793 = vmatprep.subr.bf16.mxu1 %v825_v0 }
  0x20   :  { %783 = vmatpush3.bf16.msra.mxu0 %v782_v39 }
  0x21   :  { %795 = vmatpush3.bf16.msra.mxu1 %v758_v24  ;;  %796 = vmatprep.subr.bf16.mxu0 %v825_v0 }
  0x22   :  { %808 = vmatprep.subr.bf16.mxu1 %v825_v0 }
  0x23   :  { %689 = vmatmul.mubr.msk.f32.vlgmr.msra.gmra.mrb[2].mxu0 %vm38_vm1, %v185_v40 }
  0x24   :  { %798 = vmatpush3.bf16.msra.mxu0 %v882_v9  ;;  %708 = vmatmul.mubr.msk.f32.vlgmr.msra.gmra.mrb[2].mxu1 %vm38_vm1, %v575_v41 }
  0x25   :  { %810 = vmatpush3.bf16.msra.mxu1 %v773_v29  ;;  %799 = vmatprep.subr.bf16.mxu0 %v825_v0 }
  0x26   :  { %811 = vmatprep.subr.bf16.mxu1 %v825_v0  ;;  %726 = vmatprep.mubr.msk.f32.mxu0 %vm826_vm0, %v827_v8 }
  0x27   :  { %745 = vmatprep.mubr.msk.f32.mxu1 %vm826_vm0, %v827_v8 }
  0x28   :  { %801 = vmatpush3.bf16.msra.mxu0 %v892_v13 }
  0x29   :  { %813 = vmatpush3.bf16.msra.mxu1 %v776_v33  ;;  %802 = vmatprep.subr.bf16.mxu0 %v825_v0 }
  0x2a   :  { %814 = vmatprep.subr.bf16.mxu1 %v825_v0 }
  0x2c   :  { %804 = vmatpush3.bf16.msra.mxu0 %v909_v19 }
  0x2d   :  { %816 = vmatpush3.bf16.msra.mxu1 %v779_v36  ;;  %805 = vmatprep.subr.bf16.mxu0 %v825_v0  ;;  %v548_v36 = vlaneseq }
  0x2e   :  { %817 = vmatprep.subr.bf16.mxu1 %v825_v0 }
  0x2f   :  { %v549_v37 = vshrl.u32 %v548_v36, 7 }
  0x30   :  { %807 = vmatpush3.bf16.msra.mxu0 %v770_v25 }
  0x31   :  { %819 = vmatpush3.bf16.msra.mxu1 %v782_v39  ;;  %v550_v39 = vsub.s32 0, %v549_v37 }
  0x33   :  { %727 = vmatmul.mubr.msk.f32.vlgmr.msra.gmra.mrb[4].mxu0 %vm38_vm1, %v574_v42  ;;  %v545_v42 = vld [vmem:[%s1027_s4] sm:$0x1] }
  0x34   :  { %746 = vmatmul.mubr.msk.f32.vlgmr.msra.gmra.mrb[4].mxu1 %vm38_vm1, %v578_v43 }
  0xe6   :  { %v108_v44 = vpop.f32.mrb[0].mxu0 }
  0xe7   :  { %v652_v45 = vpop.f32.mrb[1].mxu0  ;;  %v181_v46 = vpop.f32.mrb[0].mxu1 }
  0xe8   :  { %v182_v47 = vadd.f32 %v181_v46, %v108_v44  ;;  %v671_v48 = vpop.f32.mrb[1].mxu1 }
  0xf6   :  { %v263_v49 = vpop.f32.mrb[2].mxu0 }
  0xf7   :  { %v267_v50 = vadd.f32 %v263_v49, %v182_v47  ;;  %v690_v51 = vpop.f32.mrb[3].mxu0  ;;  %v348_v52 = vpop.f32.mrb[2].mxu1 }
  0xf8   :  { %v709_v53 = vpop.f32.mrb[3].mxu1 }
  0xf9   :  { %v275_v55 = vadd.f32 %v573_v54, %v267_v50 }
  0xfb   :  { %v502_v56 = vsel %vm501_vm2, %v275_v55, 0.0 }
  0xfc   :  { %v503_v57 = vrot.slane %v502_v56, 4 }
  0xfe   :  { %v504_v62 = vadd.f32 %v503_v57, %v502_v56 }
 0x100   :  { %v505_v2 = vrot.slane %v504_v62, 2 }
 0x102   :  { %v506_v5 = vadd.f32 %v505_v2, %v504_v62 }
 0x104   :  { %v507_v8 = vrot.slane %v506_v5, 1 }
 0x106   :  { %v421_v58 = vpop.f32.mrb[4].mxu0  ;;  %v508_v11 = vadd.f32 %v507_v8, %v506_v5 }
 0x107   :  { %v422_v59 = vadd.f32 %v421_v58, %v348_v52  ;;  %v728_v60 = vpop.f32.mrb[5].mxu0  ;;  %v495_v61 = vpop.f32.mrb[4].mxu1 }
 0x108   :  { %v747_v63 = vpop.f32.mrb[5].mxu1 }
 0x109   :  { %v499_v0 = vadd.f32 %v495_v61, %v422_v59 }
 0x10b   :  { %v500_v1 = vadd.f32 %v573_v54, %v499_v0 }
 0x10d   :  { %v510_v3 = vsel %vm501_vm2, %v500_v1, 0.0 }
 0x10e   :  { %v511_v4 = vrot.slane %v510_v3, 4 }
 0x110   :  { %v512_v6 = vadd.f32 %v511_v4, %v510_v3 }
 0x112   :  { %v513_v7 = vrot.slane %v512_v6, 2 }
 0x114   :  { %v514_v9 = vadd.f32 %v513_v7, %v512_v6 }
 0x116   :  { %v515_v10 = vrot.slane %v514_v9, 1 }
 0x118   :  { %v516_v12 = vadd.f32 %v515_v10, %v514_v9 }
 0x11a   :  { %v517_v13 = vadd.f32 %v516_v12, %v508_v11 }
 0x11c   :  { %v519_v14 = vmul.f32 0.0625, %v517_v13 }
 0x11e   :  { %v520_v15 = vsub.f32 %v275_v55, %v519_v14  ;;  %v530_v16 = vsub.f32 %v500_v1, %v519_v14 }
 0x120   :  { %v521_v17 = vmul.f32 %v520_v15, %v520_v15  ;;  %v531_v18 = vmul.f32 %v530_v16, %v530_v16 }
 0x122   :  { %v522_v19 = vsel %vm501_vm2, %v521_v17, 0.0  ;;  %v532_v20 = vsel %vm501_vm2, %v531_v18, 0.0 }
 0x123   :  { %v523_v21 = vrot.slane %v522_v19, 4  ;;  %v533_v22 = vrot.slane %v532_v20, 4 }
 0x125   :  { %v524_v23 = vadd.f32 %v523_v21, %v522_v19  ;;  %v534_v24 = vadd.f32 %v533_v22, %v532_v20 }
 0x127   :  { %v525_v25 = vrot.slane %v524_v23, 2  ;;  %v535_v26 = vrot.slane %v534_v24, 2 }
 0x129   :  { %v526_v27 = vadd.f32 %v525_v25, %v524_v23  ;;  %v536_v28 = vadd.f32 %v535_v26, %v534_v24 }
 0x12b   :  { %v527_v29 = vrot.slane %v526_v27, 1  ;;  %v537_v30 = vrot.slane %v536_v28, 1 }
 0x12d   :  { %v528_v31 = vadd.f32 %v527_v29, %v526_v27  ;;  %v538_v32 = vadd.f32 %v537_v30, %v536_v28 }
 0x12f   :  { %v539_v33 = vadd.f32 %v538_v32, %v528_v31 }
 0x131   :  { %v540_v34 = vmul.f32 0.0625, %v539_v33 }
 0x133   :  { %v541_v35 = vadd.f32 1e-05, %v540_v34 }
 0x135   :  { %823 = vrsqrt.f32 %v541_v35 }
 0x13f   :  { %v824_v40 = vpop.eup %823 }
 0x140   :  { %v544_v41 = vmul.f32 %v824_v40, %v543_v38 }
 0x142   :  { %v546_v43 = vmul.f32 %v544_v41, %v519_v14  ;;  %v551_v44 = vrot.slane %v544_v41, %v550_v39 }
 0x144   :  { %v547_v45 = vsub.f32 %v545_v42, %v546_v43  ;;  %v552_v46 = vmul.f32 %v551_v44, %v275_v55  ;;  %v562_v47 = vmul.f32 %v551_v44, %v500_v1 }
 0x146   :  { %v557_v48 = vrot.slane %v547_v45, %v550_v39 }
 0x148   :  { %v559_v49 = vadd.f32 %v557_v48, %v552_v46  ;;  %v563_v50 = vadd.f32 %v562_v47, %v557_v48 }
 0x14a   :  { %v560_v51 = vmax.f32 %v559_v49, 0.0  ;;  %v564_v52 = vmax.f32 %v563_v50, 0.0 }
 0x14c   :  { %561 = vst.msk [vmem:[%s1028_s5] sm:$0xff] %vm501_vm2, %v560_v51  ;;  %565 = vst.msk [vmem:[%s1028_s5 + $0x8] sm:$0xff] %vm501_vm2, %v564_v52 }

// kernel: tacotron_forward.23
= control target key start
LH: loop header
LB: loop body
LE: loop exit
PB: predicated region body
PF: predicated region fallthrough
CT: control target
= control target key end

     0   :  { %v649_v0 = vmov 0.0|0.0   ;;  %vm650_vm0 = vmmov 0   ;;  %v651_v6 = vmov 0.0   ;;  %vm29_vm1 = vcmask 130048   ;;  %s762_s1 = inlined_call_operand.vmem [shape: f32[48,16], index: 1, kind: input, shape index: {}]   ;;  %s763_s0 = inlined_call_operand.vmem [shape: f32[2,10,16], index: 0, kind: input, shape index: {}]   ;;  %s764_s2 = inlined_call_operand.vmem [shape: f32[1,16], index: 2, kind: input, shape index: {}]   ;;  %s765_s3 = inlined_call_operand.vmem [shape: f32[1,16], index: 3, kind: input, shape index: {}]   ;;  %s766_s4 = inlined_call_operand.vmem [shape: f32[1,16], index: 4, kind: input, shape index: {}]   ;;  %s767_s5 = inlined_call_operand.vmem [shape: f32[16,16], index: 5, kind: input, shape index: {}]   ;;  %s768_s6 = inlined_call_operand.vmem [shape: f32[16,16], index: 6, kind: output, shape index: {}]  }
   0x1   :  { %626 = vmatprep.subr.bf16.mxu0 %v649_v0  ;;  %v27_v1 = vld [vmem:[%s762_s1 + $0x10] sm:$0xff]  ;;  %v28_v2 = vld [vmem:[%s762_s1 + $0x18] sm:$0xff]  ;;  %629 = vmatprep.subr.bf16.mxu1 %v649_v0  ;;  %v24_v3 = vld [vmem:[%s762_s1] sm:$0xff] }
   0x2   :  { %v627_v4 = vpack.c.bf16 %v28_v2, %v27_v1  ;;  %v25_v5 = vld [vmem:[%s762_s1 + $0x8] sm:$0xff]  ;;  %588 = vmatprep.mubr.msk.f32.mxu0 %vm650_vm0, %v651_v6  ;;  %595 = vmatprep.mubr.msk.f32.mxu1 %vm650_vm0, %v651_v6  ;;  %v177_v8 = vld [vmem:[%s762_s1 + $0x20] sm:$0xff]  ;;  %v561_v14 = vld [vmem:[%s763_s0 + $0x11] sm:$0xff] }
   0x3   :  { %v630_v7 = vpack.c.bf16 %v25_v5, %v24_v3  ;;  %v178_v9 = vld [vmem:[%s762_s1 + $0x28] sm:$0xff]  ;;  %v23_v12 = vld [vmem:[%s763_s0] sm:$0xff]  ;;  %v560_v15 = vld [vmem:[%s763_s0 + $0x10] sm:$0xff] }
   0x4   :  { %628 = vmatpush3.bf16.msra.mxu0 %v627_v4  ;;  %v26_v10 = vld [vmem:[%s763_s0 + $0x1] sm:$0xff]  ;;  %v633_v11 = vpack.c.bf16 %v178_v9, %v177_v8  ;;  %v564_v16 = vld [vmem:[%s763_s0 + $0x12] sm:$0xff]  ;;  %v559_v23 = vld [vmem:[%s764_s2] ss:$0 sm:$0xff]  ;;  %v532_v9 = vlaneseq }
   0x5   :  { %631 = vmatpush3.bf16.msra.mxu1 %v630_v7  ;;  %632 = vmatprep.subr.bf16.mxu0 %v649_v0  ;;  %v176_v13 = vld [vmem:[%s763_s0 + $0x2] sm:$0xff] }
   0x6   :  { %635 = vmatprep.subr.bf16.mxu1 %v649_v0 }
   0x7   :  { %589 = vmatmul.mubr.msk.f32.vlgmr.msra.gmra.mrb[0].mxu0 %vm29_vm1, %v26_v10  ;;  %v533_v10 = vshrl.u32 %v532_v9, 7 }
   0x8   :  { %596 = vmatmul.mubr.msk.f32.vlgmr.msra.gmra.mrb[0].mxu1 %vm29_vm1, %v23_v12  ;;  %634 = vmatpush3.bf16.msra.mxu0 %v633_v11 }
   0x9   :  { %602 = vmatprep.mubr.msk.f32.mxu0 %vm650_vm0, %v651_v6  ;;  %637 = vmatpush3.bf16.msra.mxu1 %v627_v4  ;;  %v534_v12 = vsub.s32 0, %v533_v10 }
   0xa   :  { %638 = vmatprep.subr.bf16.mxu0 %v649_v0  ;;  %609 = vmatprep.mubr.msk.f32.mxu1 %vm650_vm0, %v651_v6 }
   0xb   :  { %603 = vmatmul.mubr.msk.f32.vlgmr.msra.gmra.mrb[2].mxu0 %vm29_vm1, %v176_v13  ;;  %641 = vmatprep.subr.bf16.mxu1 %v649_v0 }
   0xc   :  { %640 = vmatpush3.bf16.msra.mxu0 %v630_v7  ;;  %610 = vmatmul.mubr.msk.f32.vlgmr.msra.gmra.mrb[2].mxu1 %vm29_vm1, %v561_v14 }
   0xd   :  { %616 = vmatprep.mubr.msk.f32.mxu0 %vm650_vm0, %v651_v6  ;;  %643 = vmatpush3.bf16.msra.mxu1 %v633_v11  ;;  %v527_v11 = vld [vmem:[%s765_s3] sm:$0x1] }
   0xe   :  { %623 = vmatprep.mubr.msk.f32.mxu1 %vm650_vm0, %v651_v6 }
   0xf   :  { %617 = vmatmul.mubr.msk.f32.vlgmr.msra.gmra.mrb[4].mxu0 %vm29_vm1, %v560_v15  ;;  %v529_v15 = vld [vmem:[%s766_s4] sm:$0x1] }
  0x10   :  { %624 = vmatmul.mubr.msk.f32.vlgmr.msra.gmra.mrb[4].mxu1 %vm29_vm1, %v564_v16 }
  0xda   :  { %v99_v17 = vpop.f32.mrb[0].mxu0 }
  0xdb   :  { %v590_v18 = vpop.f32.mrb[1].mxu0  ;;  %v172_v19 = vpop.f32.mrb[0].mxu1 }
  0xdc   :  { %v173_v20 = vadd.f32 %v172_v19, %v99_v17  ;;  %v597_v21 = vpop.f32.mrb[1].mxu1 }
  0xde   :  { %v248_v22 = vpop.f32.mrb[2].mxu0 }
  0xdf   :  { %v252_v24 = vadd.f32 %v248_v22, %v173_v20  ;;  %v604_v25 = vpop.f32.mrb[3].mxu0  ;;  %v333_v26 = vpop.f32.mrb[2].mxu1  ;;  %v544_v22 = vld [vmem:[%s767_s5] sm:$0xff] }
  0xe0   :  { %v611_v27 = vpop.f32.mrb[3].mxu1 }
  0xe1   :  { %v260_v28 = vadd.f32 %v559_v23, %v252_v24 }
  0xe2   :  { %v406_v29 = vpop.f32.mrb[4].mxu0 }
  0xe3   :  { %v486_v30 = vsel %vm29_vm1, %v260_v28, 0.0  ;;  %v407_v31 = vadd.f32 %v406_v29, %v333_v26  ;;  %v618_v32 = vpop.f32.mrb[5].mxu0  ;;  %v480_v33 = vpop.f32.mrb[4].mxu1 }
  0xe4   :  { %v487_v34 = vrot.slane %v486_v30, 4  ;;  %v625_v35 = vpop.f32.mrb[5].mxu1 }
  0xe5   :  { %v484_v36 = vadd.f32 %v480_v33, %v407_v31 }
  0xe6   :  { %v488_v37 = vadd.f32 %v487_v34, %v486_v30 }
  0xe7   :  { %v485_v38 = vadd.f32 %v559_v23, %v484_v36  ;;  %v549_v23 = vld [vmem:[%s767_s5 + $0x8] sm:$0xff] }
  0xe8   :  { %v489_v39 = vrot.slane %v488_v37, 2 }
  0xe9   :  { %v494_v40 = vsel %vm29_vm1, %v485_v38, 0.0 }
  0xea   :  { %v495_v41 = vrot.slane %v494_v40, 4  ;;  %v490_v42 = vadd.f32 %v489_v39, %v488_v37 }
  0xec   :  { %v496_v43 = vadd.f32 %v495_v41, %v494_v40  ;;  %v491_v45 = vrot.slane %v490_v42, 1 }
  0xee   :  { %v497_v44 = vrot.slane %v496_v43, 2  ;;  %v492_v48 = vadd.f32 %v491_v45, %v490_v42 }
  0xf0   :  { %v498_v46 = vadd.f32 %v497_v44, %v496_v43 }
  0xf2   :  { %v499_v47 = vrot.slane %v498_v46, 1 }
  0xf4   :  { %v500_v49 = vadd.f32 %v499_v47, %v498_v46 }
  0xf6   :  { %v501_v50 = vadd.f32 %v500_v49, %v492_v48 }
  0xf8   :  { %v503_v51 = vmul.f32 0.0625, %v501_v50 }
  0xfa   :  { %v504_v52 = vsub.f32 %v260_v28, %v503_v51  ;;  %v514_v53 = vsub.f32 %v485_v38, %v503_v51 }
  0xfc   :  { %v505_v54 = vmul.f32 %v504_v52, %v504_v52  ;;  %v515_v55 = vmul.f32 %v514_v53, %v514_v53 }
  0xfe   :  { %v506_v56 = vsel %vm29_vm1, %v505_v54, 0.0  ;;  %v516_v57 = vsel %vm29_vm1, %v515_v55, 0.0 }
  0xff   :  { %v507_v58 = vrot.slane %v506_v56, 4  ;;  %v517_v59 = vrot.slane %v516_v57, 4 }
 0x101   :  { %v508_v60 = vadd.f32 %v507_v58, %v506_v56  ;;  %v518_v61 = vadd.f32 %v517_v59, %v516_v57 }
 0x103   :  { %v509_v62 = vrot.slane %v508_v60, 2  ;;  %v519_v63 = vrot.slane %v518_v61, 2 }
 0x105   :  { %v510_v0 = vadd.f32 %v509_v62, %v508_v60  ;;  %v520_v1 = vadd.f32 %v519_v63, %v518_v61 }
 0x107   :  { %v511_v2 = vrot.slane %v510_v0, 1  ;;  %v521_v3 = vrot.slane %v520_v1, 1 }
 0x109   :  { %v512_v4 = vadd.f32 %v511_v2, %v510_v0  ;;  %v522_v5 = vadd.f32 %v521_v3, %v520_v1 }
 0x10b   :  { %v523_v6 = vadd.f32 %v522_v5, %v512_v4 }
 0x10d   :  { %v524_v7 = vmul.f32 0.0625, %v523_v6 }
 0x10f   :  { %v525_v8 = vadd.f32 1e-05, %v524_v7 }
 0x111   :  { %647 = vrsqrt.f32 %v525_v8 }
 0x11b   :  { %v648_v13 = vpop.eup %647 }
 0x11c   :  { %v528_v14 = vmul.f32 %v648_v13, %v527_v11 }
 0x11e   :  { %v530_v16 = vmul.f32 %v528_v14, %v503_v51  ;;  %v535_v17 = vrot.slane %v528_v14, %v534_v12 }
 0x120   :  { %v531_v18 = vsub.f32 %v529_v15, %v530_v16  ;;  %v536_v19 = vmul.f32 %v535_v17, %v260_v28  ;;  %v547_v20 = vmul.f32 %v535_v17, %v485_v38 }
 0x122   :  { %v541_v21 = vrot.slane %v531_v18, %v534_v12 }
 0x124   :  { %v543_v24 = vadd.f32 %v541_v21, %v536_v19  ;;  %v548_v25 = vadd.f32 %v547_v20, %v541_v21 }
 0x126   :  { %v545_v26 = vadd.f32 %v544_v22, %v543_v24  ;;  %v550_v27 = vadd.f32 %v549_v23, %v548_v25 }
 0x128   :  { %546 = vst.msk [vmem:[%s768_s6] sm:$0xff] %vm29_vm1, %v545_v26  ;;  %551 = vst.msk [vmem:[%s768_s6 + $0x8] sm:$0xff] %vm29_vm1, %v550_v27 }

// kernel: tacotron_forward.25
= control target key start
LH: loop header
LB: loop body
LE: loop exit
PB: predicated region body
PF: predicated region fallthrough
CT: control target
= control target key end

     0   :  { %vm25_vm0 = vcmask 130048   ;;  %vm107_vm1 = vcmask 785408   ;;  %s173_s1 = inlined_call_operand.vmem [shape: f32[16,96], index: 1, kind: input, shape index: {}]   ;;  %s174_s0 = inlined_call_operand.vmem [shape: f32[16,16], index: 0, kind: input, shape index: {}]   ;;  %s175_s2 = inlined_call_operand.vmem [shape: f32[1,96], index: 2, kind: input, shape index: {}]   ;;  %s176_s3 = inlined_call_operand.vmem [shape: f32[16,96], index: 3, kind: output, shape index: {}]  }
   0x1   :  { %v16_v0 = vld [vmem:[%s173_s1] sm:$0xff]  ;;  %v17_v1 = vld [vmem:[%s173_s1 + $0x8] sm:$0xff] }
   0x2   :  { %v14_v2 = vld [vmem:[%s174_s0] sm:$0xff]  ;;  %v128_v3 = vpack.c.bf16 %v17_v1, %v16_v0  ;;  %v15_v4 = vld [vmem:[%s174_s0 + $0x8] sm:$0xff] }
   0x3   :  { %125 = vmatprep.mubr.msk.f32.mxu0 %vm25_vm0, %v14_v2  ;;  %v114_v5 = vld [vmem:[%s175_s2] ss:$0 sm:$0xff] }
   0x4   :  { %129 = vmatprep.subr.bf16.mxu0 %v128_v3 }
   0x5   :  { %131 = vmatpush3.bf16.msra.mxu0 %v128_v3 }
   0x8   :  { %126 = vmatmul.mubr.msk.f32.vlgmr.msra.gmra.mrb[0].mxu0 %vm25_vm0, %v15_v4 }
  0xdb   :  { %v127_v6 = vpop.f32.mrb[0].mxu0 }
  0xdc   :  { %v104_v7 = vadd.f32 %v127_v6, %v114_v5  ;;  %v98_v8 = vpop.f32.mrb[1].mxu0 }
  0xdd   :  { %v99_v9 = vadd.f32 %v114_v5, %v98_v8 }
  0xde   :  { %109 = vst.msk [vmem:[%s176_s3 + $0x8] sm:$0xff] %vm107_vm1, %v104_v7 }
  0xdf   :  { %108 = vst.msk [vmem:[%s176_s3] sm:$0xff] %vm107_vm1, %v99_v9 }

// kernel: tacotron_forward.24
= control target key start
LH: loop header
LB: loop body
LE: loop exit
PB: predicated region body
PF: predicated region fallthrough
CT: control target
= control target key end

     0   :  { %vm31_vm0 = vcmask 130048   ;;  %s1159_s3 = inlined_call_operand.vmem [shape: f32[4,16,16], index: 3, kind: input, shape index: {}]   ;;  %s1160_s0 = inlined_call_operand.vmem [shape: f32[16,16], index: 0, kind: input, shape index: {}]   ;;  %s1161_s1 = inlined_call_operand.vmem [shape: f32[4,16,16], index: 1, kind: input, shape index: {}]   ;;  %s1162_s4 = inlined_call_operand.vmem [shape: f32[4,1,16], index: 4, kind: input, shape index: {}]   ;;  %s1163_s2 = inlined_call_operand.vmem [shape: f32[4,1,16], index: 2, kind: input, shape index: {}]   ;;  %s1164_s5 = inlined_call_operand.vmem [shape: f32[16,16], index: 5, kind: output, shape index: {}]  }
   0x1   :  { %v115_v0 = vld [vmem:[%s1159_s3] sm:$0xff]  ;;  %v116_v1 = vld [vmem:[%s1159_s3 + $0x8] sm:$0xff]  ;;  %v839_v8 = vld [vmem:[%s1159_s3 + $0x10] sm:$0xff] }
   0x2   :  { %v20_v2 = vld [vmem:[%s1160_s0] sm:$0xff]  ;;  %v967_v3 = vpack.c.bf16 %v116_v1, %v115_v0  ;;  %v23_v5 = vld [vmem:[%s1161_s1 + $0x8] sm:$0xff]  ;;  %v840_v9 = vld [vmem:[%s1159_s3 + $0x18] sm:$0xff] }
   0x3   :  { %918 = vmatprep.mubr.msk.f32.mxu1 %vm31_vm0, %v20_v2  ;;  %v22_v4 = vld [vmem:[%s1161_s1] sm:$0xff]  ;;  %911 = vmatprep.mubr.msk.f32.mxu0 %vm31_vm0, %v20_v2  ;;  %v21_v7 = vld [vmem:[%s1160_s0 + $0x8] sm:$0xff]  ;;  %v833_v10 = vld [vmem:[%s1161_s1 + $0x10] sm:$0xff]  ;;  %v975_v11 = vpack.c.bf16 %v840_v9, %v839_v8 }
   0x4   :  { %v963_v6 = vpack.c.bf16 %v23_v5, %v22_v4  ;;  %968 = vmatprep.subr.bf16.mxu1 %v967_v3  ;;  %v834_v12 = vld [vmem:[%s1161_s1 + $0x18] sm:$0xff]  ;;  %v828_v14 = vld [vmem:[%s1162_s4] ss:$0 sm:$0xff]  ;;  %v854_v43 = vld [vmem:[%s1159_s3 + $0x28] sm:$0xff] }
   0x5   :  { %970 = vmatpush3.bf16.msra.mxu1 %v967_v3  ;;  %v971_v13 = vpack.c.bf16 %v834_v12, %v833_v10  ;;  %v825_v27 = vld [vmem:[%s1163_s2] ss:$0 sm:$0xff]  ;;  %v848_v46 = vld [vmem:[%s1161_s1 + $0x28] sm:$0xff]  ;;  %v842_v48 = vld [vmem:[%s1162_s4 + $0x1] ss:$0 sm:$0xff] }
   0x6   :  { %964 = vmatprep.subr.bf16.mxu0 %v963_v6  ;;  %976 = vmatprep.subr.bf16.mxu1 %v975_v11  ;;  %v853_v42 = vld [vmem:[%s1159_s3 + $0x20] sm:$0xff]  ;;  %v867_v12 = vld [vmem:[%s1159_s3 + $0x30] sm:$0xff] }
   0x7   :  { %966 = vmatpush3.bf16.msra.mxu0 %v963_v6  ;;  %v847_v44 = vld [vmem:[%s1161_s1 + $0x20] sm:$0xff]  ;;  %v983_v45 = vpack.c.bf16 %v854_v43, %v853_v42 }
   0x8   :  { %919 = vmatmul.mubr.msk.f32.vlgmr.msra.gmra.mrb[0].mxu1 %vm31_vm0, %v21_v7  ;;  %972 = vmatprep.subr.bf16.mxu0 %v971_v13  ;;  %v979_v47 = vpack.c.bf16 %v848_v46, %v847_v44  ;;  %v836_v61 = vld [vmem:[%s1163_s2 + $0x1] ss:$0 sm:$0xff]  ;;  %v870_v46 = vld [vmem:[%s1162_s4 + $0x3] ss:$0 sm:$0xff] }
   0x9   :  { %978 = vmatpush3.bf16.msra.mxu1 %v975_v11 }
   0xa   :  { %912 = vmatmul.mubr.msk.f32.vlgmr.msra.gmra.mrb[0].mxu0 %vm31_vm0, %v21_v7  ;;  %984 = vmatprep.subr.bf16.mxu1 %v983_v45 }
   0xb   :  { %974 = vmatpush3.bf16.msra.mxu0 %v971_v13  ;;  %v868_v13 = vld [vmem:[%s1159_s3 + $0x38] sm:$0xff] }
   0xc   :  { %980 = vmatprep.subr.bf16.mxu0 %v979_v47 }
  0xdb   :  { %v920_v15 = vpop.f32.mrb[0].mxu1 }
  0xdc   :  { %v196_v16 = vadd.f32 %v920_v15, %v828_v14  ;;  %v190_v17 = vpop.f32.mrb[1].mxu1  ;;  %v991_v15 = vpack.c.bf16 %v868_v13, %v867_v12 }
  0xdd   :  { %v913_v18 = vpop.f32.mrb[0].mxu0  ;;  %v191_v19 = vadd.f32 %v828_v14, %v190_v17  ;;  %v861_v14 = vld [vmem:[%s1161_s1 + $0x30] sm:$0xff] }
  0xde   :  { %v104_v20 = vpop.f32.mrb[1].mxu0  ;;  %v832_v21 = vmul.f32 -1.442695, %v196_v16  ;;  %v110_v28 = vadd.f32 %v913_v18, %v825_v27  ;;  %v862_v16 = vld [vmem:[%s1161_s1 + $0x38] sm:$0xff]  ;;  %v856_v18 = vld [vmem:[%s1162_s4 + $0x2] ss:$0 sm:$0xff] }
  0xdf   :  { %v831_v22 = vmul.f32 -1.442695, %v191_v19  ;;  %v105_v29 = vadd.f32 %v825_v27, %v104_v20  ;;  %v987_v17 = vpack.c.bf16 %v862_v16, %v861_v14 }
  0xe0   :  { %995 = vpow2.f32 %v832_v21  ;;  %v114_v30 = vmax.f32 %v110_v28, 0.0 }
  0xe1   :  { %997 = vpow2.f32 %v831_v22  ;;  %v113_v31 = vmax.f32 %v105_v29, 0.0 }
  0xea   :  { %v996_v23 = vpop.eup %995 }
  0xeb   :  { %v998_v24 = vpop.eup %997  ;;  %v206_v25 = vadd.f32 1.0, %v996_v23 }
  0xec   :  { %v205_v26 = vadd.f32 1.0, %v998_v24 }
  0xed   :  { %999 = vrcp.f32 %v206_v25 }
  0xee   :  { %1001 = vrcp.f32 %v205_v26 }
  0xf7   :  { %v1000_v32 = vpop.eup %999 }
  0xf8   :  { %v1002_v33 = vpop.eup %1001  ;;  %v212_v34 = vmul.f32 %v1000_v32, %v114_v30  ;;  %v214_v35 = vsub.f32 1.0, %v1000_v32 }
  0xf9   :  { %v211_v36 = vmul.f32 %v1002_v33, %v113_v31  ;;  %v213_v37 = vsub.f32 1.0, %v1002_v33  ;;  %v850_v31 = vld [vmem:[%s1163_s2 + $0x2] ss:$0 sm:$0xff] }
  0xfa   :  { %v216_v38 = vmul.f32 %v214_v35, %v21_v7 }
  0xfb   :  { %v215_v39 = vmul.f32 %v213_v37, %v20_v2 }
  0xfc   :  { %v218_v40 = vadd.f32 %v216_v38, %v212_v34 }
  0xfd   :  { %v217_v41 = vadd.f32 %v215_v39, %v211_v36 }
  0xff   :  { %925 = vmatprep.mubr.msk.f32.mxu0 %vm31_vm0, %v217_v41  ;;  %932 = vmatprep.mubr.msk.f32.mxu1 %vm31_vm0, %v217_v41 }
 0x100   :  { %926 = vmatmul.mubr.msk.f32.vlgmr.msra.gmra.mrb[2].mxu0 %vm31_vm0, %v218_v40  ;;  %933 = vmatmul.mubr.msk.f32.vlgmr.msra.gmra.mrb[2].mxu1 %vm31_vm0, %v218_v40 }
 0x101   :  { %986 = vmatpush3.bf16.msra.mxu1 %v983_v45  ;;  %982 = vmatpush3.bf16.msra.mxu0 %v979_v47 }
 0x102   :  { %992 = vmatprep.subr.bf16.mxu1 %v991_v15  ;;  %988 = vmatprep.subr.bf16.mxu0 %v987_v17 }
 0x1d3   :  { %v927_v49 = vpop.f32.mrb[2].mxu0  ;;  %v934_v50 = vpop.f32.mrb[2].mxu1 }
 0x1d4   :  { %v396_v51 = vadd.f32 %v934_v50, %v842_v48  ;;  %v302_v52 = vpop.f32.mrb[3].mxu0  ;;  %v390_v53 = vpop.f32.mrb[3].mxu1  ;;  %v308_v62 = vadd.f32 %v927_v49, %v836_v61 }
 0x1d5   :  { %v391_v54 = vadd.f32 %v842_v48, %v390_v53  ;;  %v303_v63 = vadd.f32 %v836_v61, %v302_v52 }
 0x1d6   :  { %v846_v55 = vmul.f32 -1.442695, %v396_v51  ;;  %v312_v0 = vmax.f32 %v308_v62, 0.0 }
 0x1d7   :  { %v845_v56 = vmul.f32 -1.442695, %v391_v54  ;;  %v311_v2 = vmax.f32 %v303_v63, 0.0 }
 0x1d8   :  { %1003 = vpow2.f32 %v846_v55 }
 0x1d9   :  { %1005 = vpow2.f32 %v845_v56 }
 0x1e2   :  { %v1004_v57 = vpop.eup %1003 }
 0x1e3   :  { %v1006_v58 = vpop.eup %1005  ;;  %v406_v59 = vadd.f32 1.0, %v1004_v57 }
 0x1e4   :  { %v405_v60 = vadd.f32 1.0, %v1006_v58 }
 0x1e5   :  { %1007 = vrcp.f32 %v406_v59  ;;  %v864_v59 = vld [vmem:[%s1163_s2 + $0x3] ss:$0 sm:$0xff] }
 0x1e6   :  { %1009 = vrcp.f32 %v405_v60 }
 0x1ef   :  { %v1008_v1 = vpop.eup %1007 }
 0x1f0   :  { %v1010_v3 = vpop.eup %1009  ;;  %v414_v4 = vsub.f32 1.0, %v1008_v1  ;;  %v412_v5 = vmul.f32 %v1008_v1, %v312_v0 }
 0x1f1   :  { %v411_v6 = vmul.f32 %v1010_v3, %v311_v2  ;;  %v413_v7 = vsub.f32 1.0, %v1010_v3 }
 0x1f2   :  { %v416_v8 = vmul.f32 %v414_v4, %v218_v40 }
 0x1f3   :  { %v415_v9 = vmul.f32 %v413_v7, %v217_v41 }
 0x1f4   :  { %v418_v10 = vadd.f32 %v416_v8, %v412_v5 }
 0x1f5   :  { %v417_v11 = vadd.f32 %v415_v9, %v411_v6 }
 0x1f7   :  { %939 = vmatprep.mubr.msk.f32.mxu0 %vm31_vm0, %v417_v11  ;;  %946 = vmatprep.mubr.msk.f32.mxu1 %vm31_vm0, %v417_v11 }
 0x1f8   :  { %940 = vmatmul.mubr.msk.f32.vlgmr.msra.gmra.mrb[4].mxu0 %vm31_vm0, %v418_v10  ;;  %947 = vmatmul.mubr.msk.f32.vlgmr.msra.gmra.mrb[4].mxu1 %vm31_vm0, %v418_v10 }
 0x1f9   :  { %994 = vmatpush3.bf16.msra.mxu1 %v991_v15  ;;  %990 = vmatpush3.bf16.msra.mxu0 %v987_v17 }
 0x2cb   :  { %v941_v19 = vpop.f32.mrb[4].mxu0  ;;  %v948_v20 = vpop.f32.mrb[4].mxu1 }
 0x2cc   :  { %v596_v21 = vadd.f32 %v948_v20, %v856_v18  ;;  %v502_v22 = vpop.f32.mrb[5].mxu0  ;;  %v590_v23 = vpop.f32.mrb[5].mxu1  ;;  %v508_v32 = vadd.f32 %v941_v19, %v850_v31 }
 0x2cd   :  { %v591_v24 = vadd.f32 %v856_v18, %v590_v23  ;;  %v503_v33 = vadd.f32 %v850_v31, %v502_v22 }
 0x2ce   :  { %v860_v25 = vmul.f32 -1.442695, %v596_v21  ;;  %v512_v34 = vmax.f32 %v508_v32, 0.0 }
 0x2cf   :  { %v859_v26 = vmul.f32 -1.442695, %v591_v24  ;;  %v511_v36 = vmax.f32 %v503_v33, 0.0 }
 0x2d0   :  { %1011 = vpow2.f32 %v860_v25 }
 0x2d1   :  { %1013 = vpow2.f32 %v859_v26 }
 0x2da   :  { %v1012_v27 = vpop.eup %1011 }
 0x2db   :  { %v1014_v28 = vpop.eup %1013  ;;  %v606_v29 = vadd.f32 1.0, %v1012_v27 }
 0x2dc   :  { %v605_v30 = vadd.f32 1.0, %v1014_v28 }
 0x2dd   :  { %1015 = vrcp.f32 %v606_v29 }
 0x2de   :  { %1017 = vrcp.f32 %v605_v30 }
 0x2e7   :  { %v1016_v35 = vpop.eup %1015 }
 0x2e8   :  { %v1018_v37 = vpop.eup %1017  ;;  %v614_v38 = vsub.f32 1.0, %v1016_v35  ;;  %v612_v39 = vmul.f32 %v1016_v35, %v512_v34 }
 0x2e9   :  { %v611_v40 = vmul.f32 %v1018_v37, %v511_v36  ;;  %v613_v41 = vsub.f32 1.0, %v1018_v37 }
 0x2ea   :  { %v616_v42 = vmul.f32 %v614_v38, %v418_v10 }
 0x2eb   :  { %v615_v43 = vmul.f32 %v613_v41, %v417_v11 }
 0x2ec   :  { %v618_v44 = vadd.f32 %v616_v42, %v612_v39 }
 0x2ed   :  { %v617_v45 = vadd.f32 %v615_v43, %v611_v40 }
 0x2ef   :  { %953 = vmatprep.mubr.msk.f32.mxu0 %vm31_vm0, %v617_v45  ;;  %960 = vmatprep.mubr.msk.f32.mxu1 %vm31_vm0, %v617_v45 }
 0x2f0   :  { %954 = vmatmul.mubr.msk.f32.vlgmr.msra.gmra.mrb[6].mxu0 %vm31_vm0, %v618_v44  ;;  %961 = vmatmul.mubr.msk.f32.vlgmr.msra.gmra.mrb[6].mxu1 %vm31_vm0, %v618_v44 }
 0x3c3   :  { %v955_v47 = vpop.f32.mrb[6].mxu0  ;;  %v962_v48 = vpop.f32.mrb[6].mxu1 }
 0x3c4   :  { %v796_v49 = vadd.f32 %v962_v48, %v870_v46  ;;  %v702_v50 = vpop.f32.mrb[7].mxu0  ;;  %v790_v51 = vpop.f32.mrb[7].mxu1  ;;  %v708_v60 = vadd.f32 %v955_v47, %v864_v59 }
 0x3c5   :  { %v791_v52 = vadd.f32 %v870_v46, %v790_v51  ;;  %v703_v61 = vadd.f32 %v864_v59, %v702_v50 }
 0x3c6   :  { %v874_v53 = vmul.f32 -1.442695, %v796_v49  ;;  %v712_v62 = vmax.f32 %v708_v60, 0.0 }
 0x3c7   :  { %v873_v54 = vmul.f32 -1.442695, %v791_v52  ;;  %v711_v0 = vmax.f32 %v703_v61, 0.0 }
 0x3c8   :  { %1019 = vpow2.f32 %v874_v53 }
 0x3c9   :  { %1021 = vpow2.f32 %v873_v54 }
 0x3d2   :  { %v1020_v55 = vpop.eup %1019 }
 0x3d3   :  { %v1022_v56 = vpop.eup %1021  ;;  %v806_v57 = vadd.f32 1.0, %v1020_v55 }
 0x3d4   :  { %v805_v58 = vadd.f32 1.0, %v1022_v56 }
 0x3d5   :  { %1023 = vrcp.f32 %v806_v57 }
 0x3d6   :  { %1025 = vrcp.f32 %v805_v58 }
 0x3df   :  { %v1024_v63 = vpop.eup %1023 }
 0x3e0   :  { %v1026_v1 = vpop.eup %1025  ;;  %v812_v2 = vmul.f32 %v1024_v63, %v712_v62  ;;  %v814_v3 = vsub.f32 1.0, %v1024_v63 }
 0x3e1   :  { %v811_v4 = vmul.f32 %v1026_v1, %v711_v0  ;;  %v813_v5 = vsub.f32 1.0, %v1026_v1 }
 0x3e2   :  { %v816_v6 = vmul.f32 %v814_v3, %v618_v44 }
 0x3e3   :  { %v815_v7 = vmul.f32 %v813_v5, %v617_v45 }
 0x3e4   :  { %v818_v8 = vadd.f32 %v816_v6, %v812_v2 }
 0x3e5   :  { %v817_v9 = vadd.f32 %v815_v7, %v811_v4 }
 0x3e6   :  { %820 = vst.msk [vmem:[%s1164_s5 + $0x8] sm:$0xff] %vm31_vm0, %v818_v8 }
 0x3e7   :  { %819 = vst.msk [vmem:[%s1164_s5] sm:$0xff] %vm31_vm0, %v817_v9 }

// kernel: tacotron_forward.29
= control target key start
LH: loop header
LB: loop body
LE: loop exit
PB: predicated region body
PF: predicated region fallthrough
CT: control target
= control target key end

     0   :  { %vm27_vm0 = vcmask 261120   ;;  %s194_s1 = inlined_call_operand.vmem [shape: f32[32,32], index: 1, kind: input, shape index: {}]   ;;  %s195_s0 = inlined_call_operand.vmem [shape: f32[16,32], index: 0, kind: input, shape index: {}]   ;;  %s196_s2 = inlined_call_operand.vmem [shape: f32[1,32], index: 2, kind: input, shape index: {}]   ;;  %s197_s3 = inlined_call_operand.vmem [shape: f32[16,32], index: 3, kind: output, shape index: {}]  }
   0x1   :  { %v16_v0 = vld [vmem:[%s194_s1] sm:$0xff]  ;;  %v17_v1 = vld [vmem:[%s194_s1 + $0x8] sm:$0xff]  ;;  %v18_v2 = vld [vmem:[%s194_s1 + $0x10] sm:$0xff] }
   0x2   :  { %v135_v3 = vpack.c.bf16 %v17_v1, %v16_v0  ;;  %v19_v4 = vld [vmem:[%s194_s1 + $0x18] sm:$0xff]  ;;  %v14_v5 = vld [vmem:[%s195_s0] sm:$0xff]  ;;  %v15_v7 = vld [vmem:[%s195_s0 + $0x8] sm:$0xff] }
   0x3   :  { %v139_v6 = vpack.c.bf16 %v19_v4, %v18_v2  ;;  %132 = vmatprep.mubr.msk.f32.mxu0 %vm27_vm0, %v14_v5  ;;  %v115_v8 = vld [vmem:[%s196_s2] ss:$0 sm:$0xff] }
   0x4   :  { %136 = vmatprep.subr.bf16.mxu0 %v135_v3 }
   0x5   :  { %138 = vmatpush3.bf16.msra.mxu0 %v135_v3 }
   0x6   :  { %140 = vmatprep.subr.bf16.mxu0 %v139_v6 }
   0x9   :  { %142 = vmatpush3.bf16.msra.mxu0 %v139_v6 }
   0xc   :  { %133 = vmatmul.mubr.msk.f32.vlgmr.msra.gmra.mrb[0].mxu0 %vm27_vm0, %v15_v7 }
  0xdf   :  { %v134_v9 = vpop.f32.mrb[0].mxu0 }
  0xe0   :  { %v106_v10 = vadd.f32 %v134_v9, %v115_v8  ;;  %v100_v11 = vpop.f32.mrb[1].mxu0 }
  0xe1   :  { %v101_v12 = vadd.f32 %v115_v8, %v100_v11 }
  0xe2   :  { %110 = vst.msk [vmem:[%s197_s3 + $0x8] sm:$0xff] %vm27_vm0, %v106_v10 }
  0xe3   :  { %109 = vst.msk [vmem:[%s197_s3] sm:$0xff] %vm27_vm0, %v101_v12 }

// kernel: tacotron_forward.21
= control target key start
LH: loop header
LB: loop body
LE: loop exit
PB: predicated region body
PF: predicated region fallthrough
CT: control target
= control target key end

     0   :  { %v2177_v0 = vmov 0.0|0.0   ;;  %vm2178_vm0 = vmmov 0   ;;  %v2179_v4 = vmov 0.0   ;;  %vm66_vm1 = vcmask 130048   ;;  %s2180_s29 = smov 16   ;;  %s2603_s1 = inlined_call_operand.vmem [shape: f32[16,16], index: 1, kind: input, shape index: {}]   ;;  %s2604_s5 = inlined_call_operand.vmem [shape: f32[32,16], index: 5, kind: input, shape index: {}]   ;;  %s2605_s0 = inlined_call_operand.vmem [shape: f32[2,12,16], index: 0, kind: input, shape index: {}]   ;;  %s2606_s9 = inlined_call_operand.vmem [shape: f32[48,16], index: 9, kind: input, shape index: {}]   ;;  %s2607_s13 = inlined_call_operand.vmem [shape: f32[64,16], index: 13, kind: input, shape index: {}]   ;;  %s2608_s2 = inlined_call_operand.vmem [shape: f32[1,16], index: 2, kind: input, shape index: {}]   ;;  %s2609_s6 = inlined_call_operand.vmem [shape: f32[1,16], index: 6, kind: input, shape index: {}]   ;;  %s2610_s10 = inlined_call_operand.vmem [shape: f32[1,16], index: 10, kind: input, shape index: {}]   ;;  %s2611_s14 = inlined_call_operand.vmem [shape: f32[1,16], index: 14, kind: input, shape index: {}]   ;;  %s2612_s3 = inlined_call_operand.vmem [shape: f32[1,16], index: 3, kind: input, shape index: {}]   ;;  %s2613_s4 = inlined_call_operand.vmem [shape: f32[1,16], index: 4, kind: input, shape index: {}]   ;;  %s2614_s7 = inlined_call_operand.vmem [shape: f32[1,16], index: 7, kind: input, shape index: {}]   ;;  %s2615_s8 = inlined_call_operand.vmem [shape: f32[1,16], index: 8, kind: input, shape index: {}]   ;;  %s2616_s11 = inlined_call_operand.vmem [shape: f32[1,16], index: 11, kind: input, shape index: {}]   ;;  %s2617_s12 = inlined_call_operand.vmem [shape: f32[1,16], index: 12, kind: input, shape index: {}]   ;;  %s2618_s15 = inlined_call_operand.vmem [shape: f32[1,16], index: 15, kind: input, shape index: {}]   ;;  %s2619_s16 = inlined_call_operand.vmem [shape: f32[1,16], index: 16, kind: input, shape index: {}]   ;;  %s2620_s17 = inlined_call_operand.vmem [shape: f32[16,64], index: 17, kind: output, shape index: {}]  }
   0x1   :  { %2623 = sst [smem:[#allocation2_spill]] %s2603_s1  ;;  %2103 = vmatprep.subr.bf16.mxu0 %v2177_v0  ;;  %2106 = vmatprep.subr.bf16.mxu1 %v2177_v0  ;;  %v2300_v9 = vld [vmem:[%s2605_s0 + $0x2] sm:$0xff]  ;;  %v2305_v10 = vld [vmem:[%s2605_s0 + $0x12] sm:$0xff]  ;;  %v1875_v40 = vld [vmem:[%s2608_s2] ss:$0 sm:$0xff]  ;;  %vm1748_vm2 = vcmask 1040384  }
   0x2   :  { %2624 = sst [smem:[#allocation3_spill]] %s2604_s5  ;;  %s2625_s26 = sld [smem:[#allocation2_spill]]  ;;  %1967 = vmatprep.mubr.msk.f32.mxu0 %vm2178_vm0, %v2179_v4  ;;  %1974 = vmatprep.mubr.msk.f32.mxu1 %vm2178_vm0, %v2179_v4  ;;  %v2316_v13 = vld [vmem:[%s2605_s0 + $0x1] sm:$0xff]  ;;  %v518_v14 = vld [vmem:[%s2606_s9 + $0x10] sm:$0xff]  ;;  %v519_v15 = vld [vmem:[%s2606_s9 + $0x18] sm:$0xff]  ;;  %vm1817_vm3 = vcmask 261120  }
   0x3   :  { %s2626_s30 = sld [smem:[#allocation3_spill]]  ;;  %v516_v16 = vld [vmem:[%s2606_s9] sm:$0xff]  ;;  %v517_v17 = vld [vmem:[%s2606_s9 + $0x8] sm:$0xff]  ;;  %v2343_v18 = vld [vmem:[%s2605_s0 + $0x11] sm:$0xff]  ;;  %v2122_v19 = vpack.c.bf16 %v519_v15, %v518_v14  ;;  %s2181_s1 = smov 32   ;;  %vm1819_vm4 = vcmask 392192  }
   0x4   :  { %v2125_v20 = vpack.c.bf16 %v517_v17, %v516_v16  ;;  %v661_v21 = vld [vmem:[%s2606_s9 + $0x20] sm:$0xff]  ;;  %v662_v22 = vld [vmem:[%s2606_s9 + $0x28] sm:$0xff]  ;;  %v964_v25 = vld [vmem:[%s2607_s13 + $0x10] sm:$0xff]  ;;  %vm1821_vm5 = vcmask 523264  }
   0x5   :  { %v2128_v23 = vpack.c.bf16 %v662_v22, %v661_v21  ;;  %v660_v24 = vld [vmem:[%s2605_s0 + $0x3] sm:$0xff]  ;;  %v965_v26 = vld [vmem:[%s2607_s13 + $0x18] sm:$0xff]  ;;  %v1182_v34 = vld [vmem:[%s2607_s13 + $0x30] sm:$0xff] }
   0x6   :  { %v962_v27 = vld [vmem:[%s2607_s13] sm:$0xff]  ;;  %v963_v28 = vld [vmem:[%s2607_s13 + $0x8] sm:$0xff]  ;;  %v1891_v29 = vld [vmem:[%s2605_s0 + $0x13] sm:$0xff]  ;;  %v2140_v30 = vpack.c.bf16 %v965_v26, %v964_v25 }
   0x7   :  { %v2143_v31 = vpack.c.bf16 %v963_v28, %v962_v27  ;;  %v1109_v32 = vld [vmem:[%s2607_s13 + $0x20] sm:$0xff]  ;;  %v1110_v33 = vld [vmem:[%s2607_s13 + $0x28] sm:$0xff]  ;;  %v1183_v35 = vld [vmem:[%s2607_s13 + $0x38] sm:$0xff] }
   0x8   :  { %v57_v1 = vld [vmem:[%s2625_s26] sm:$0xff]  ;;  %v58_v2 = vld [vmem:[%s2625_s26 + $0x8] sm:$0xff]  ;;  %v2146_v37 = vpack.c.bf16 %v1110_v33, %v1109_v32  ;;  %v2149_v38 = vpack.c.bf16 %v1183_v35, %v1182_v34  ;;  %v1898_v39 = vld [vmem:[%s2605_s0 + $0x10] sm:$0xff] }
   0x9   :  { %v2104_v3 = vpack.c.bf16 %v58_v2, %v57_v1  ;;  %v218_v5 = vld [vmem:[%s2626_s30 + $0x10] sm:$0xff]  ;;  %v219_v6 = vld [vmem:[%s2626_s30 + $0x18] sm:$0xff]  ;;  %v216_v7 = vld [vmem:[%s2626_s30] sm:$0xff] }
   0xa   :  { %v217_v8 = vld [vmem:[%s2626_s30 + $0x8] sm:$0xff]  ;;  %v2110_v11 = vpack.c.bf16 %v219_v6, %v218_v5  ;;  %v961_v36 = vld [vmem:[%s2605_s0] sm:$0xff] }
   0xb   :  { %2105 = vmatpush3.bf16.msra.mxu0 %v2104_v3  ;;  %2108 = vmatpush3.bf16.msra.mxu1 %v2104_v3  ;;  %v2113_v12 = vpack.c.bf16 %v217_v8, %v216_v7  ;;  %v1881_v53 = vld [vmem:[%s2609_s6] ss:$0 sm:$0xff] }
   0xc   :  { %2109 = vmatprep.subr.bf16.mxu0 %v2177_v0  ;;  %2112 = vmatprep.subr.bf16.mxu1 %v2177_v0  ;;  %v1888_v25 = vld [vmem:[%s2610_s10] ss:$0 sm:$0xff] }
   0xe   :  { %1968 = vmatmul.mubr.msk.f32.vlgmr.msra.gmra.mrb[0].mxu0 %vm66_vm1, %v2300_v9  ;;  %1975 = vmatmul.mubr.msk.f32.vlgmr.msra.gmra.mrb[0].mxu1 %vm66_vm1, %v2305_v10 }
   0xf   :  { %2111 = vmatpush3.bf16.msra.mxu0 %v2110_v11  ;;  %2114 = vmatpush3.bf16.msra.mxu1 %v2113_v12 }
  0x10   :  { %1981 = vmatprep.mubr.msk.f32.mxu0 %vm2178_vm0, %v2179_v4  ;;  %1988 = vmatprep.mubr.msk.f32.mxu1 %vm2178_vm0, %v2179_v4 }
  0x11   :  { %2115 = vmatprep.subr.bf16.mxu0 %v2177_v0  ;;  %2118 = vmatprep.subr.bf16.mxu1 %v2177_v0 }
  0x12   :  { %1982 = vmatmul.mubr.msk.f32.vlgmr.msra.gmra.mrb[2].mxu0 %vm66_vm1, %v2300_v9  ;;  %1989 = vmatmul.mubr.msk.f32.vlgmr.msra.gmra.mrb[2].mxu1 %vm66_vm1, %v2316_v13 }
  0x13   :  { %2117 = vmatpush3.bf16.msra.mxu0 %v2110_v11  ;;  %2120 = vmatpush3.bf16.msra.mxu1 %v2113_v12 }
  0x14   :  { %1995 = vmatprep.mubr.msk.f32.mxu0 %vm2178_vm0, %v2179_v4  ;;  %2002 = vmatprep.mubr.msk.f32.mxu1 %vm2178_vm0, %v2179_v4 }
  0x15   :  { %2121 = vmatprep.subr.bf16.mxu0 %v2177_v0  ;;  %2124 = vmatprep.subr.bf16.mxu1 %v2177_v0 }
  0x16   :  { %1996 = vmatmul.mubr.msk.f32.vlgmr.msra.gmra.mrb[4].mxu0 %vm66_vm1, %v2305_v10  ;;  %2003 = vmatmul.mubr.msk.f32.vlgmr.msra.gmra.mrb[4].mxu1 %vm66_vm1, %v2343_v18 }
  0x17   :  { %2123 = vmatpush3.bf16.msra.mxu0 %v2122_v19  ;;  %2126 = vmatpush3.bf16.msra.mxu1 %v2125_v20 }
  0x18   :  { %2009 = vmatprep.mubr.msk.f32.mxu0 %vm2178_vm0, %v2179_v4  ;;  %2016 = vmatprep.mubr.msk.f32.mxu1 %vm2178_vm0, %v2179_v4 }
  0x19   :  { %2127 = vmatprep.subr.bf16.mxu0 %v2177_v0  ;;  %2130 = vmatprep.subr.bf16.mxu1 %v2177_v0 }
  0x1a   :  { %2010 = vmatmul.mubr.msk.f32.vlgmr.msra.gmra.mrb[6].mxu0 %vm66_vm1, %v2300_v9  ;;  %2017 = vmatmul.mubr.msk.f32.vlgmr.msra.gmra.mrb[6].mxu1 %vm66_vm1, %v2316_v13 }
  0x1b   :  { %2129 = vmatpush3.bf16.msra.mxu0 %v2128_v23  ;;  %2132 = vmatpush3.bf16.msra.mxu1 %v2122_v19 }
  0x1c   :  { %2023 = vmatprep.mubr.msk.f32.mxu0 %vm2178_vm0, %v2179_v4  ;;  %2030 = vmatprep.mubr.msk.f32.mxu1 %vm2178_vm0, %v2179_v4 }
  0x1d   :  { %2133 = vmatprep.subr.bf16.mxu0 %v2177_v0  ;;  %2136 = vmatprep.subr.bf16.mxu1 %v2177_v0 }
  0x1e   :  { %2024 = vmatmul.mubr.msk.f32.vlgmr.msra.gmra.mrb[8].mxu0 %vm66_vm1, %v660_v24  ;;  %2031 = vmatmul.mubr.msk.f32.vlgmr.msra.gmra.mrb[8].mxu1 %vm66_vm1, %v2305_v10 }
  0x1f   :  { %2135 = vmatpush3.bf16.msra.mxu0 %v2125_v20  ;;  %2138 = vmatpush3.bf16.msra.mxu1 %v2128_v23 }
  0x20   :  { %2037 = vmatprep.mubr.msk.f32.mxu0 %vm2178_vm0, %v2179_v4  ;;  %2044 = vmatprep.mubr.msk.f32.mxu1 %vm2178_vm0, %v2179_v4 }
  0x21   :  { %2139 = vmatprep.subr.bf16.mxu0 %v2177_v0  ;;  %2142 = vmatprep.subr.bf16.mxu1 %v2177_v0 }
  0x22   :  { %2038 = vmatmul.mubr.msk.f32.vlgmr.msra.gmra.mrb[10].mxu0 %vm66_vm1, %v2343_v18  ;;  %2045 = vmatmul.mubr.msk.f32.vlgmr.msra.gmra.mrb[10].mxu1 %vm66_vm1, %v1891_v29 }
  0x23   :  { %2141 = vmatpush3.bf16.msra.mxu0 %v2140_v30  ;;  %2144 = vmatpush3.bf16.msra.mxu1 %v2143_v31 }
  0x24   :  { %2051 = vmatprep.mubr.msk.f32.mxu0 %vm2178_vm0, %v2179_v4  ;;  %2058 = vmatprep.mubr.msk.f32.mxu1 %vm2178_vm0, %v2179_v4 }
  0x25   :  { %2145 = vmatprep.subr.bf16.mxu0 %v2177_v0  ;;  %2148 = vmatprep.subr.bf16.mxu1 %v2177_v0 }
  0x26   :  { %2052 = vmatmul.mubr.msk.f32.vlgmr.msra.gmra.mrb[12].mxu0 %vm66_vm1, %v2316_v13  ;;  %2059 = vmatmul.mubr.msk.f32.vlgmr.msra.gmra.mrb[12].mxu1 %vm66_vm1, %v961_v36 }
  0x27   :  { %2147 = vmatpush3.bf16.msra.mxu0 %v2146_v37  ;;  %2150 = vmatpush3.bf16.msra.mxu1 %v2149_v38 }
  0x28   :  { %2065 = vmatprep.mubr.msk.f32.mxu0 %vm2178_vm0, %v2179_v4  ;;  %2072 = vmatprep.mubr.msk.f32.mxu1 %vm2178_vm0, %v2179_v4 }
  0x29   :  { %2151 = vmatprep.subr.bf16.mxu0 %v2177_v0  ;;  %2154 = vmatprep.subr.bf16.mxu1 %v2177_v0 }
  0x2a   :  { %2066 = vmatmul.mubr.msk.f32.vlgmr.msra.gmra.mrb[14].mxu0 %vm66_vm1, %v2300_v9  ;;  %2073 = vmatmul.mubr.msk.f32.vlgmr.msra.gmra.mrb[14].mxu1 %vm66_vm1, %v660_v24 }
  0x2b   :  { %2153 = vmatpush3.bf16.msra.mxu0 %v2140_v30  ;;  %2156 = vmatpush3.bf16.msra.mxu1 %v2143_v31 }
  0x2c   :  { %2079 = vmatprep.mubr.msk.f32.mxu0 %vm2178_vm0, %v2179_v4  ;;  %2086 = vmatprep.mubr.msk.f32.mxu1 %vm2178_vm0, %v2179_v4 }
  0x2d   :  { %2157 = vmatprep.subr.bf16.mxu0 %v2177_v0  ;;  %2160 = vmatprep.subr.bf16.mxu1 %v2177_v0 }
  0x2e   :  { %2080 = vmatmul.mubr.msk.f32.vlgmr.msra.gmra.mrb[16].mxu0 %vm66_vm1, %v2343_v18  ;;  %2087 = vmatmul.mubr.msk.f32.vlgmr.msra.gmra.mrb[16].mxu1 %vm66_vm1, %v1898_v39 }
  0x2f   :  { %2159 = vmatpush3.bf16.msra.mxu0 %v2146_v37  ;;  %2093 = vmatprep.mubr.msk.f32.mxu0 %vm2178_vm0, %v2179_v4 }
  0x30   :  { %2162 = vmatpush3.bf16.msra.mxu1 %v2149_v38  ;;  %2100 = vmatprep.mubr.msk.f32.mxu1 %vm2178_vm0, %v2179_v4 }
  0x32   :  { %2094 = vmatmul.mubr.msk.f32.vlgmr.msra.gmra.mrb[18].mxu0 %vm66_vm1, %v2305_v10 }
  0x33   :  { %2101 = vmatmul.mubr.msk.f32.vlgmr.msra.gmra.mrb[18].mxu1 %vm66_vm1, %v1891_v29 }
  0xe1   :  { %v136_v41 = vpop.f32.mrb[0].mxu0  ;;  %v211_v42 = vpop.f32.mrb[0].mxu1 }
  0xe2   :  { %v2462_v43 = vadd.f32 %v1875_v40, %v136_v41  ;;  %v2464_v44 = vadd.f32 %v1875_v40, %v211_v42  ;;  %v1969_v45 = vpop.f32.mrb[1].mxu0  ;;  %v1976_v46 = vpop.f32.mrb[1].mxu1 }
  0xe4   :  { %v1550_v47 = vsel %vm66_vm1, %v2462_v43, 0.0  ;;  %v1558_v48 = vsel %vm66_vm1, %v2464_v44, 0.0 }
  0xe5   :  { %v1551_v49 = vrot.slane %v1550_v47, 4  ;;  %v1559_v50 = vrot.slane %v1558_v48, 4  ;;  %v286_v51 = vpop.f32.mrb[2].mxu0  ;;  %v359_v52 = vpop.f32.mrb[2].mxu1 }
  0xe6   :  { %v360_v54 = vadd.f32 %v359_v52, %v286_v51  ;;  %v1983_v55 = vpop.f32.mrb[3].mxu0  ;;  %v1990_v56 = vpop.f32.mrb[3].mxu1 }
  0xe7   :  { %v1552_v57 = vadd.f32 %v1551_v49, %v1550_v47  ;;  %v1560_v58 = vadd.f32 %v1559_v50, %v1558_v48 }
  0xe8   :  { %v2473_v59 = vadd.f32 %v1881_v53, %v360_v54 }
  0xe9   :  { %v1553_v60 = vrot.slane %v1552_v57, 2  ;;  %v1561_v61 = vrot.slane %v1560_v58, 2  ;;  %v438_v62 = vpop.f32.mrb[4].mxu0  ;;  %v511_v63 = vpop.f32.mrb[4].mxu1 }
  0xea   :  { %v1596_v0 = vsel %vm66_vm1, %v2473_v59, 0.0  ;;  %v512_v1 = vadd.f32 %v511_v63, %v438_v62  ;;  %v1997_v2 = vpop.f32.mrb[5].mxu0  ;;  %v2004_v3 = vpop.f32.mrb[5].mxu1 }
  0xeb   :  { %v1554_v4 = vadd.f32 %v1553_v60, %v1552_v57  ;;  %v1562_v5 = vadd.f32 %v1561_v61, %v1560_v58  ;;  %v1597_v6 = vrot.slane %v1596_v0, 4 }
  0xec   :  { %v2477_v7 = vadd.f32 %v1881_v53, %v512_v1 }
  0xed   :  { %v1555_v8 = vrot.slane %v1554_v4, 1  ;;  %v1563_v9 = vrot.slane %v1562_v5, 1  ;;  %v1598_v10 = vadd.f32 %v1597_v6, %v1596_v0  ;;  %v586_v11 = vpop.f32.mrb[6].mxu0  ;;  %v656_v12 = vpop.f32.mrb[6].mxu1 }
  0xee   :  { %v1604_v13 = vsel %vm66_vm1, %v2477_v7, 0.0  ;;  %v2011_v14 = vpop.f32.mrb[7].mxu0  ;;  %v657_v15 = vadd.f32 %v656_v12, %v586_v11  ;;  %v2018_v16 = vpop.f32.mrb[7].mxu1 }
  0xef   :  { %v1556_v17 = vadd.f32 %v1555_v8, %v1554_v4  ;;  %v1564_v18 = vadd.f32 %v1563_v9, %v1562_v5  ;;  %v1599_v19 = vrot.slane %v1598_v10, 2  ;;  %v1605_v20 = vrot.slane %v1604_v13, 4 }
  0xf1   :  { %v1565_v21 = vadd.f32 %v1564_v18, %v1556_v17  ;;  %v1600_v22 = vadd.f32 %v1599_v19, %v1598_v10  ;;  %v1606_v23 = vadd.f32 %v1605_v20, %v1604_v13  ;;  %v732_v24 = vpop.f32.mrb[8].mxu0  ;;  %v811_v26 = vpop.f32.mrb[8].mxu1  ;;  %v1897_v19 = vld [vmem:[%s2611_s14] ss:$0 sm:$0xff] }
  0xf2   :  { %v736_v27 = vadd.f32 %v732_v24, %v657_v15  ;;  %v2025_v28 = vpop.f32.mrb[9].mxu0  ;;  %v2032_v29 = vpop.f32.mrb[9].mxu1 }
  0xf3   :  { %v2484_v30 = vmul.f32 0.0625, %v1565_v21  ;;  %v1607_v31 = vrot.slane %v1606_v23, 2  ;;  %v1601_v32 = vrot.slane %v1600_v22, 1 }
  0xf4   :  { %v2486_v33 = vadd.f32 %v1888_v25, %v736_v27 }
  0xf5   :  { %v1568_v34 = vsub.f32 %v2462_v43, %v2484_v30  ;;  %v1578_v35 = vsub.f32 %v2464_v44, %v2484_v30  ;;  %v1608_v36 = vadd.f32 %v1607_v31, %v1606_v23  ;;  %v881_v37 = vpop.f32.mrb[10].mxu0  ;;  %v955_v38 = vpop.f32.mrb[10].mxu1  ;;  %v1602_v49 = vadd.f32 %v1601_v32, %v1600_v22 }
  0xf6   :  { %v1641_v39 = vsel %vm66_vm1, %v2486_v33, 0.0  ;;  %v882_v40 = vadd.f32 %v881_v37, %v811_v26  ;;  %v2039_v41 = vpop.f32.mrb[11].mxu0  ;;  %v2046_v42 = vpop.f32.mrb[11].mxu1 }
  0xf7   :  { %v1569_v45 = vmul.f32 %v1568_v34, %v1568_v34  ;;  %v1579_v46 = vmul.f32 %v1578_v35, %v1578_v35  ;;  %v1609_v47 = vrot.slane %v1608_v36, 1  ;;  %v1642_v48 = vrot.slane %v1641_v39, 4 }
  0xf8   :  { %v959_v50 = vadd.f32 %v955_v38, %v882_v40 }
  0xf9   :  { %v1570_v51 = vsel %vm66_vm1, %v1569_v45, 0.0  ;;  %v1580_v52 = vsel %vm66_vm1, %v1579_v46, 0.0  ;;  %v1610_v53 = vadd.f32 %v1609_v47, %v1608_v36  ;;  %v1643_v54 = vadd.f32 %v1642_v48, %v1641_v39  ;;  %v1032_v55 = vpop.f32.mrb[12].mxu0  ;;  %v1105_v56 = vpop.f32.mrb[12].mxu1 }
  0xfa   :  { %v1571_v57 = vrot.slane %v1570_v51, 4  ;;  %v1581_v58 = vrot.slane %v1580_v52, 4  ;;  %v2496_v60 = vadd.f32 %v1888_v25, %v959_v50  ;;  %v2053_v61 = vpop.f32.mrb[13].mxu0  ;;  %v1106_v62 = vadd.f32 %v1105_v56, %v1032_v55  ;;  %v2060_v63 = vpop.f32.mrb[13].mxu1 }
  0xfb   :  { %v1611_v0 = vadd.f32 %v1610_v53, %v1602_v49  ;;  %v1644_v1 = vrot.slane %v1643_v54, 2 }
  0xfc   :  { %v1572_v2 = vadd.f32 %v1571_v57, %v1570_v51  ;;  %v1582_v3 = vadd.f32 %v1581_v58, %v1580_v52  ;;  %v1649_v4 = vsel %vm66_vm1, %v2496_v60, 0.0 }
  0xfd   :  { %v2500_v5 = vmul.f32 0.0625, %v1611_v0  ;;  %v1650_v6 = vrot.slane %v1649_v4, 4  ;;  %v1177_v8 = vpop.f32.mrb[14].mxu0  ;;  %v1250_v9 = vpop.f32.mrb[14].mxu1  ;;  %v1645_v17 = vadd.f32 %v1644_v1, %v1643_v54 }
  0xfe   :  { %v1573_v10 = vrot.slane %v1572_v2, 2  ;;  %v1583_v11 = vrot.slane %v1582_v3, 2  ;;  %v1181_v12 = vadd.f32 %v1177_v8, %v1106_v62  ;;  %v2067_v13 = vpop.f32.mrb[15].mxu0  ;;  %v2074_v14 = vpop.f32.mrb[15].mxu1 }
  0xff   :  { %v1613_v15 = vsub.f32 %v2473_v59, %v2500_v5  ;;  %v1623_v16 = vsub.f32 %v2477_v7, %v2500_v5  ;;  %v1651_v18 = vadd.f32 %v1650_v6, %v1649_v4  ;;  %v1646_v38 = vrot.slane %v1645_v17, 1 }
 0x100   :  { %v1574_v20 = vadd.f32 %v1573_v10, %v1572_v2  ;;  %v1584_v21 = vadd.f32 %v1583_v11, %v1582_v3  ;;  %v1254_v22 = vadd.f32 %v1250_v9, %v1181_v12  ;;  %v1731_v13 = vlaneseq }
 0x101   :  { %v1614_v23 = vmul.f32 %v1613_v15, %v1613_v15  ;;  %v1624_v24 = vmul.f32 %v1623_v16, %v1623_v16  ;;  %v1652_v25 = vrot.slane %v1651_v18, 2  ;;  %v1330_v26 = vpop.f32.mrb[16].mxu0  ;;  %v1403_v27 = vpop.f32.mrb[16].mxu1  ;;  %v1647_v55 = vadd.f32 %v1646_v38, %v1645_v17 }
 0x102   :  { %v1575_v28 = vrot.slane %v1574_v20, 1  ;;  %v1585_v29 = vrot.slane %v1584_v21, 1  ;;  %v2509_v31 = vadd.f32 %v1897_v19, %v1254_v22  ;;  %v2081_v32 = vpop.f32.mrb[17].mxu0  ;;  %v1404_v34 = vadd.f32 %v1403_v27, %v1330_v26  ;;  %v2088_v35 = vpop.f32.mrb[17].mxu1 }
 0x103   :  { %v1615_v36 = vsel %vm66_vm1, %v1614_v23, 0.0  ;;  %v1625_v37 = vsel %vm66_vm1, %v1624_v24, 0.0  ;;  %v1653_v39 = vadd.f32 %v1652_v25, %v1651_v18  ;;  %v1732_v25 = vshrl.u32 %v1731_v13, 7 }
 0x104   :  { %v1576_v40 = vadd.f32 %v1575_v28, %v1574_v20  ;;  %v1586_v41 = vadd.f32 %v1585_v29, %v1584_v21  ;;  %v1616_v42 = vrot.slane %v1615_v36, 4  ;;  %v1626_v45 = vrot.slane %v1625_v37, 4 }
 0x105   :  { %v1654_v46 = vrot.slane %v1653_v39, 1  ;;  %v1686_v47 = vsel %vm66_vm1, %v2509_v31, 0.0  ;;  %v1473_v48 = vpop.f32.mrb[18].mxu0 }
 0x106   :  { %v1587_v49 = vadd.f32 %v1586_v41, %v1576_v40  ;;  %v1617_v50 = vadd.f32 %v1616_v42, %v1615_v36  ;;  %v1627_v51 = vadd.f32 %v1626_v45, %v1625_v37  ;;  %v1687_v52 = vrot.slane %v1686_v47, 4  ;;  %v2095_v53 = vpop.f32.mrb[19].mxu0  ;;  %v1544_v54 = vpop.f32.mrb[18].mxu1  ;;  %v1591_v36 = vld [vmem:[%s2612_s3] sm:$0x1] }
 0x107   :  { %v1655_v56 = vadd.f32 %v1654_v46, %v1653_v39  ;;  %v1477_v57 = vadd.f32 %v1473_v48, %v1404_v34  ;;  %v2102_v58 = vpop.f32.mrb[19].mxu1  ;;  %v2530_v41 = vsub.s32 0, %v1732_v25 }
 0x108   :  { %v1588_v61 = vmul.f32 0.0625, %v1587_v49  ;;  %v1618_v62 = vrot.slane %v1617_v50, 2  ;;  %v1628_v63 = vrot.slane %v1627_v51, 2  ;;  %v1688_v0 = vadd.f32 %v1687_v52, %v1686_v47  ;;  %v1593_v49 = vld [vmem:[%s2613_s4] sm:$0x1] }
 0x109   :  { %v1656_v1 = vadd.f32 %v1655_v56, %v1647_v55  ;;  %v1548_v2 = vadd.f32 %v1544_v54, %v1477_v57 }
 0x10a   :  { %v1589_v3 = vadd.f32 1e-05, %v1588_v61  ;;  %v1619_v4 = vadd.f32 %v1618_v62, %v1617_v50  ;;  %v1629_v6 = vadd.f32 %v1628_v63, %v1627_v51  ;;  %v1689_v9 = vrot.slane %v1688_v0, 2 }
 0x10b   :  { %v2515_v8 = vmul.f32 0.0625, %v1656_v1  ;;  %v2517_v10 = vadd.f32 %v1897_v19, %v1548_v2 }
 0x10c   :  { %2169 = vrsqrt.f32 %v1589_v3  ;;  %v1620_v11 = vrot.slane %v1619_v4, 1  ;;  %v1630_v12 = vrot.slane %v1629_v6, 1  ;;  %v1690_v19 = vadd.f32 %v1689_v9, %v1688_v0 }
 0x10d   :  { %v1658_v14 = vsub.f32 %v2486_v33, %v2515_v8  ;;  %v1668_v15 = vsub.f32 %v2496_v60, %v2515_v8  ;;  %v1694_v16 = vsel %vm66_vm1, %v2517_v10, 0.0 }
 0x10e   :  { %v1621_v17 = vadd.f32 %v1620_v11, %v1619_v4  ;;  %v1631_v18 = vadd.f32 %v1630_v12, %v1629_v6  ;;  %v1695_v20 = vrot.slane %v1694_v16, 4  ;;  %v1691_v35 = vrot.slane %v1690_v19, 1 }
 0x10f   :  { %v1659_v21 = vmul.f32 %v1658_v14, %v1658_v14  ;;  %v1669_v22 = vmul.f32 %v1668_v15, %v1668_v15 }
 0x110   :  { %v1632_v23 = vadd.f32 %v1631_v18, %v1621_v17  ;;  %v1696_v24 = vadd.f32 %v1695_v20, %v1694_v16  ;;  %v1692_v52 = vadd.f32 %v1691_v35, %v1690_v19 }
 0x111   :  { %v1660_v26 = vsel %vm66_vm1, %v1659_v21, 0.0  ;;  %v1670_v27 = vsel %vm66_vm1, %v1669_v22, 0.0  ;;  %v1638_v22 = vld [vmem:[%s2615_s8] sm:$0x1] }
 0x112   :  { %v1633_v28 = vmul.f32 0.0625, %v1632_v23  ;;  %v1661_v29 = vrot.slane %v1660_v26, 4  ;;  %v1671_v32 = vrot.slane %v1670_v27, 4  ;;  %v1697_v34 = vrot.slane %v1696_v24, 2 }
 0x114   :  { %v1634_v37 = vadd.f32 1e-05, %v1633_v28  ;;  %v1662_v38 = vadd.f32 %v1661_v29, %v1660_v26  ;;  %v1672_v39 = vadd.f32 %v1671_v32, %v1670_v27  ;;  %v1698_v40 = vadd.f32 %v1697_v34, %v1696_v24 }
 0x116   :  { %v2170_v42 = vpop.eup %2169  ;;  %2171 = vrsqrt.f32 %v1634_v37  ;;  %v1663_v45 = vrot.slane %v1662_v38, 2  ;;  %v1673_v46 = vrot.slane %v1672_v39, 2  ;;  %v1699_v47 = vrot.slane %v1698_v40, 1 }
 0x117   :  { %v1592_v48 = vmul.f32 %v2170_v42, %v1591_v36 }
 0x118   :  { %v1664_v50 = vadd.f32 %v1663_v45, %v1662_v38  ;;  %v1674_v51 = vadd.f32 %v1673_v46, %v1672_v39  ;;  %v1700_v53 = vadd.f32 %v1699_v47, %v1698_v40 }
 0x119   :  { %v1594_v54 = vmul.f32 %v1592_v48, %v2484_v30  ;;  %v1734_v55 = vrot.slane %v1592_v48, %v2530_v41  ;;  %v1636_v30 = vld [vmem:[%s2614_s7] sm:$0x1] }
 0x11a   :  { %v1665_v56 = vrot.slane %v1664_v50, 1  ;;  %v1675_v57 = vrot.slane %v1674_v51, 1  ;;  %v1701_v58 = vadd.f32 %v1700_v53, %v1692_v52 }
 0x11b   :  { %v1595_v61 = vsub.f32 %v1593_v49, %v1594_v54  ;;  %v1735_v62 = vmul.f32 %v1734_v55, %v2462_v43  ;;  %v1823_v63 = vmul.f32 %v1734_v55, %v2464_v44 }
 0x11c   :  { %v1666_v0 = vadd.f32 %v1665_v56, %v1664_v50  ;;  %v1676_v1 = vadd.f32 %v1675_v57, %v1674_v51  ;;  %v2539_v2 = vmul.f32 0.0625, %v1701_v58  ;;  %v1681_v51 = vld [vmem:[%s2616_s11] sm:$0x1] }
 0x11d   :  { %v1740_v3 = vrot.slane %v1595_v61, %v2530_v41 }
 0x11e   :  { %v1677_v4 = vadd.f32 %v1676_v1, %v1666_v0  ;;  %v1703_v6 = vsub.f32 %v2509_v31, %v2539_v2  ;;  %v1713_v9 = vsub.f32 %v2517_v10, %v2539_v2 }
 0x11f   :  { %v1824_v43 = vadd.f32 %v1823_v63, %v1740_v3  ;;  %v1742_v11 = vadd.f32 %v1740_v3, %v1735_v62  ;;  %v1683_v3 = vld [vmem:[%s2617_s12] sm:$0x1] }
 0x120   :  { %v2172_v44 = vpop.eup %2171  ;;  %v1678_v12 = vmul.f32 0.0625, %v1677_v4  ;;  %v1704_v13 = vmul.f32 %v1703_v6, %v1703_v6  ;;  %v1714_v14 = vmul.f32 %v1713_v9, %v1713_v9 }
 0x121   :  { %v1825_v15 = vmax.f32 %v1824_v43, 0.0  ;;  %v1637_v16 = vmul.f32 %v2172_v44, %v1636_v30  ;;  %v1743_v17 = vmax.f32 %v1742_v11, 0.0 }
 0x122   :  { %v1679_v18 = vadd.f32 1e-05, %v1678_v12  ;;  %v1705_v20 = vsel %vm66_vm1, %v1704_v13, 0.0  ;;  %v1715_v21 = vsel %vm66_vm1, %v1714_v14, 0.0 }
 0x123   :  { %v1753_v19 = vrot.slane %v1637_v16, %v2530_v41  ;;  %v1706_v23 = vrot.slane %v1705_v20, 4  ;;  %v1716_v24 = vrot.slane %v1715_v21, 4  ;;  %v1639_v25 = vmul.f32 %v1637_v16, %v2500_v5 }
 0x124   :  { %2173 = vrsqrt.f32 %v1679_v18  ;;  %v1745_v26 = vrot.slane %v1743_v17, 7  ;;  %v1827_v27 = vrot.slane %v1825_v15, 7 }
 0x125   :  { %v1831_v28 = vmul.f32 %v1753_v19, %v2477_v7  ;;  %v1707_v29 = vadd.f32 %v1706_v23, %v1705_v20  ;;  %v1717_v32 = vadd.f32 %v1716_v24, %v1715_v21  ;;  %v1640_v34 = vsub.f32 %v1638_v22, %v1639_v25  ;;  %v1728_v22 = vld [vmem:[%s2619_s16] sm:$0x1] }
 0x126   :  { %v1754_v35 = vmul.f32 %v1753_v19, %v2473_v59  ;;  %v1747_v36 = vmax.f32 %v1743_v17, %v1745_v26  ;;  %v1829_v37 = vmax.f32 %v1825_v15, %v1827_v27 }
 0x127   :  { %v1708_v38 = vrot.slane %v1707_v29, 2  ;;  %v1718_v39 = vrot.slane %v1717_v32, 2  ;;  %v1759_v40 = vrot.slane %v1640_v34, %v2530_v41 }
 0x128   :  { %v2560_v42 = vsel %vm1748_vm2, %v1743_v17, %v1747_v36  ;;  %v2563_v5 = vsel %vm1748_vm2, %v1825_v15, %v1829_v37 }
 0x129   :  { %v1709_v45 = vadd.f32 %v1708_v38, %v1707_v29  ;;  %v1719_v46 = vadd.f32 %v1718_v39, %v1717_v32  ;;  %v1761_v7 = vadd.f32 %v1759_v40, %v1754_v35  ;;  %v1832_v47 = vadd.f32 %v1831_v28, %v1759_v40 }
 0x12b   :  { %v1710_v48 = vrot.slane %v1709_v45, 1  ;;  %v1720_v49 = vrot.slane %v1719_v46, 1  ;;  %v1762_v50 = vmax.f32 %v1761_v7, 0.0  ;;  %v1833_v59 = vmax.f32 %v1832_v47, 0.0 }
 0x12d   :  { %v1711_v52 = vadd.f32 %v1710_v48, %v1709_v45  ;;  %v1721_v53 = vadd.f32 %v1720_v49, %v1719_v46  ;;  %v1764_v54 = vrot.slane %v1762_v50, 7  ;;  %v1835_v55 = vrot.slane %v1833_v59, 7 }
 0x12e   :  { %v2174_v56 = vpop.eup %2173 }
 0x12f   :  { %v1682_v57 = vmul.f32 %v2174_v56, %v1681_v51  ;;  %v1722_v58 = vadd.f32 %v1721_v53, %v1711_v52  ;;  %v1766_v61 = vmax.f32 %v1762_v50, %v1764_v54  ;;  %v1837_v1 = vmax.f32 %v1833_v59, %v1835_v55 }
 0x131   :  { %v1771_v62 = vrot.slane %v1682_v57, %v2530_v41  ;;  %v1723_v63 = vmul.f32 0.0625, %v1722_v58  ;;  %v1767_v0 = vsel %vm1748_vm2, %v1762_v50, %v1766_v61  ;;  %v1684_v30 = vmul.f32 %v1682_v57, %v2515_v8 }
 0x132   :  { %1805 = vrot.lane.b32.xlu0 %v1767_v0, %s2180_s29  ;;  %v1838_v11 = vsel %vm1748_vm2, %v1833_v59, %v1837_v1 }
 0x133   :  { %v1839_v4 = vmul.f32 %v1771_v62, %v2496_v60  ;;  %v1724_v6 = vadd.f32 1e-05, %v1723_v63  ;;  %v1772_v9 = vmul.f32 %v1771_v62, %v2486_v33  ;;  %v1685_v43 = vsub.f32 %v1683_v3, %v1684_v30  ;;  %v1726_v60 = vld [vmem:[%s2618_s15] sm:$0x1]  ;;  %s2182_s15 = smov 48  }
 0x135   :  { %2175 = vrsqrt.f32 %v1724_v6  ;;  %v1777_v44 = vrot.slane %v1685_v43, %v2530_v41 }
 0x136   :  { %1856 = vrot.lane.b32.xlu0 %v1838_v11, %s2180_s29 }
 0x137   :  { %v1779_v12 = vadd.f32 %v1777_v44, %v1772_v9  ;;  %v1840_v13 = vadd.f32 %v1839_v4, %v1777_v44 }
 0x139   :  { %v1780_v14 = vmax.f32 %v1779_v12, 0.0  ;;  %v1841_v15 = vmax.f32 %v1840_v13, 0.0 }
 0x13b   :  { %v1782_v16 = vrot.slane %v1780_v14, 7  ;;  %v1843_v17 = vrot.slane %v1841_v15, 7 }
 0x13d   :  { %v1784_v8 = vmax.f32 %v1780_v14, %v1782_v16  ;;  %v1845_v21 = vmax.f32 %v1841_v15, %v1843_v17 }
 0x13f   :  { %v2176_v18 = vpop.eup %2175  ;;  %v1785_v20 = vsel %vm1748_vm2, %v1780_v14, %v1784_v8  ;;  %v1846_v25 = vsel %vm1748_vm2, %v1841_v15, %v1845_v21 }
 0x140   :  { %v1727_v33 = vmul.f32 %v2176_v18, %v1726_v60  ;;  %1809 = vrot.lane.b32.xlu1 %v1785_v20, %s2181_s1 }
 0x142   :  { %v1789_v19 = vrot.slane %v1727_v33, %v2530_v41  ;;  %v1729_v23 = vmul.f32 %v1727_v33, %v2539_v2 }
 0x144   :  { %v1847_v24 = vmul.f32 %v1789_v19, %v2517_v10  ;;  %v1730_v26 = vsub.f32 %v1728_v22, %v1729_v23  ;;  %v1790_v27 = vmul.f32 %v1789_v19, %v2509_v31  ;;  %1860 = vrot.lane.b32.xlu1 %v1846_v25, %s2181_s1 }
 0x146   :  { %v1795_v28 = vrot.slane %v1730_v26, %v2530_v41 }
 0x148   :  { %v1848_v29 = vadd.f32 %v1847_v24, %v1795_v28  ;;  %v1797_v32 = vadd.f32 %v1795_v28, %v1790_v27 }
 0x14a   :  { %v1849_v34 = vmax.f32 %v1848_v29, 0.0  ;;  %v1798_v35 = vmax.f32 %v1797_v32, 0.0 }
 0x14c   :  { %v1851_v36 = vrot.slane %v1849_v34, 7  ;;  %v1800_v37 = vrot.slane %v1798_v35, 7 }
 0x14e   :  { %v1853_v38 = vmax.f32 %v1849_v34, %v1851_v36  ;;  %v1802_v39 = vmax.f32 %v1798_v35, %v1800_v37 }
 0x150   :  { %v1854_v2 = vsel %vm1748_vm2, %v1849_v34, %v1853_v38  ;;  %v1803_v10 = vsel %vm1748_vm2, %v1798_v35, %v1802_v39 }
 0x151   :  { %1864 = vrot.lane.b32.xlu1 %v1854_v2, %s2182_s15  ;;  %1813 = vrot.lane.b32.xlu0 %v1803_v10, %s2182_s15 }
 0x1a4   :  { %v1806_v40 = vpop.permute.xlu0 %1805 }
 0x1a5   :  { %v1816_v41 = vsel %vm66_vm1, %v2560_v42, %v1806_v40 }
 0x1a8   :  { %v1857_v45 = vpop.permute.xlu0 %1856 }
 0x1a9   :  { %v1867_v7 = vsel %vm66_vm1, %v2563_v5, %v1857_v45 }
 0x1b2   :  { %v1810_v31 = vpop.permute.xlu1 %1809 }
 0x1b3   :  { %v1818_v47 = vsel %vm1817_vm3, %v1816_v41, %v1810_v31 }
 0x1b6   :  { %v1861_v46 = vpop.permute.xlu1 %1860 }
 0x1b7   :  { %v1868_v48 = vsel %vm1817_vm3, %v1867_v7, %v1861_v46 }
 0x1c3   :  { %v1865_v49 = vpop.permute.xlu1 %1864  ;;  %v1814_v50 = vpop.permute.xlu0 %1813 }
 0x1c4   :  { %v1869_v59 = vsel %vm1819_vm4, %v1868_v48, %v1865_v49  ;;  %v1820_v51 = vsel %vm1819_vm4, %v1818_v47, %v1814_v50 }
 0x1c5   :  { %1870 = vst.msk [vmem:[%s2620_s17 + $0x8] sm:$0xff] %vm1821_vm5, %v1869_v59  ;;  %1822 = vst.msk [vmem:[%s2620_s17] sm:$0xff] %vm1821_vm5, %v1820_v51 }

// kernel: tacotron_forward.26
= control target key start
LH: loop header
LB: loop body
LE: loop exit
PB: predicated region body
PF: predicated region fallthrough
CT: control target
= control target key end

     0   :  { %s795_s24 = smov 0   ;;  %s850_s0 = inlined_call_operand.vmem [shape: f32[8,2,96], index: 0, kind: input, shape index: {}, may-alias: {0,1}]   ;;  %s851_s1 = inlined_call_operand.vmem [shape: f32[8,2,96], index: 1, kind: input, shape index: {}, may-alias: {0,1}]   ;;  %s852_s2 = inlined_call_operand.vmem [shape: f32[16,48], index: 2, kind: input, shape index: {}]   ;;  %s853_s3 = inlined_call_operand.vmem [shape: f32[1,48], index: 3, kind: input, shape index: {}]   ;;  %s854_s4 = inlined_call_operand.vmem [shape: f32[16,48], index: 4, kind: input, shape index: {}]   ;;  %s855_s5 = inlined_call_operand.vmem [shape: f32[1,48], index: 5, kind: input, shape index: {}]   ;;  %s856_s6 = inlined_call_operand.vmem [shape: f32[8,2,16], index: 6, kind: output, shape index: {0}]   ;;  %s857_s7 = inlined_call_operand.vmem [shape: f32[8,2,16], index: 7, kind: output, shape index: {1}]  }
   0x1 LB: > { %s663_s25 = sadd.s32 4294967295, %s743_s24   ;;  %p667_p0 = scmp.ge.s32.totalorder %s743_s24, 1  ;;  %s743_s24 = sphi %s795_s24, %s18_s24  }
   0x2   : > { %p254_p1 = scmp.lt.s32.totalorder %s743_s24, 9 }
   0x4   : > { %p255_p2 = pnand %p667_p0, %p254_p1 }
   0x5   : > { %p294_p3 = scmp.lt.s32.totalorder (!%p255_p2), %s663_s25, 7  ;;  %s298_s26 = ssub.s32 (!%p255_p2), 7, %s663_s25 }
   0x6   : > { %258 = sbr.rel (%p255_p2) target bundleno = 749 (0x2ed), region = 44  ;;  %p299_p4 = scmp.lt.s32.totalorder (!%p255_p2), %s298_s26, 7 }
   0x7   : > { %p672_p5 = scmp.ne.s32.totalorder (!%p255_p2), %s663_s25, 0 }
   0xd   : > { %s295_s27 = scalar_select %p294_p3, %s663_s25, 7 }
   0xe   : > { %s859_s26 = smov (!%p299_p4, %s298_s26), 7  ;;  %317 = sbr.rel (%p672_p5) target bundleno = 21 (0x15), region = 48 }
   0xf   : > { %s668_s28 = sshll.u32 %s295_s27, 1  ;;  %s669_s9 = sshll.u32 %s859_s26, 1  ;;  %vm318_vm0 = vcmask (!%p672_p5), 123904   ;;  %v745_v0 = vmov (!%p672_p5), 0.0  }
  0x10   : > { %s806_s8 = scalar_lea.vmem %s850_s0, %s668_s28  ;;  %s811_s12 = scalar_lea.vmem %s851_s1, %s669_s9  ;;  %319 = vst.msk [vmem:[#allocation2] sm:$0x3] (!%p672_p5), %vm318_vm0, %v745_v0  ;;  %320 = vst.msk [vmem:[#allocation3] sm:$0x3] (!%p672_p5), %vm318_vm0, %v745_v0 }
  0x11   : > { %s816_s15 = scalar_lea.vmem %s856_s6, %s668_s28  ;;  %s821_s18 = scalar_lea.vmem %s857_s7, %s669_s9 }
  0x15 PF: > { %v437_v1 = vld [vmem:[%s854_s4] sm:$0xff]  ;;  %v438_v2 = vld [vmem:[%s854_s4 + $0x8] sm:$0xff]  ;;  %v746_v3 = vmov 0.0|0.0   ;;  %vm747_vm1 = vmmov 0   ;;  %v748_v5 = vmov 0.0   ;;  %vm333_vm2 = vcmask 130048  }
  0x16   : > { %704 = vmatprep.subr.bf16.mxu1 %v746_v3  ;;  %v705_v4 = vpack.c.bf16 %v438_v2, %v437_v1  ;;  %698 = vmatprep.mubr.msk.f32.mxu1 %vm747_vm1, %v748_v5  ;;  %v324_v6 = vld [vmem:[%s852_s2] sm:$0xff]  ;;  %v325_v7 = vld [vmem:[%s852_s2 + $0x8] sm:$0xff]  ;;  %s749_s10 = smov 16   ;;  %s750_s11 = smov 48   ;;  %vm555_vm3 = vcmask 123904  }
  0x17   : > { %701 = vmatprep.subr.bf16.mxu0 %v746_v3  ;;  %v702_v8 = vpack.c.bf16 %v325_v7, %v324_v6  ;;  %691 = vmatprep.mubr.msk.f32.mxu0 %vm747_vm1, %v748_v5  ;;  %v436_v9 = vld [vmem:[#allocation3] sm:$0x3]  ;;  %v323_v10 = vld [vmem:[#allocation2] sm:$0x3]  ;;  %s751_s13 = smov 96   ;;  %s752_s14 = smov 32  }
  0x18   : > { %706 = vmatpush3.bf16.msra.mxu1 %v705_v4  ;;  %v676_v11 = vld [vmem:[%s855_s5] ss:$0 sm:$0xff] }
  0x19   : > { %703 = vmatpush3.bf16.msra.mxu0 %v702_v8  ;;  %v673_v13 = vld [vmem:[%s853_s3] ss:$0 sm:$0xff] }
  0x1a   : > { %v321_v19 = vld [vmem:[%s806_s8] sm:$0x3]  ;;  %s753_s8 = smov 64  }
  0x1b   : > { %699 = vmatmul.mubr.msk.f32.vlgmr.msra.gmra.mrb[0].mxu1 %vm333_vm2, %v436_v9  ;;  %v322_v24 = vld [vmem:[%s811_s12] sm:$0x3]  ;;  %s754_s12 = smov 112  }
  0x1c   : > { %692 = vmatmul.mubr.msk.f32.vlgmr.msra.gmra.mrb[0].mxu0 %vm333_vm2, %v323_v10 }
  0xee   : > { %v515_v12 = vpop.f32.mrb[0].mxu1 }
  0xef   : > { %v516_v14 = vadd.f32 %v676_v11, %v515_v12  ;;  %v700_v15 = vpop.f32.mrb[1].mxu1  ;;  %v403_v16 = vpop.f32.mrb[0].mxu0 }
  0xf0   : > { %v693_v17 = vpop.f32.mrb[1].mxu0  ;;  %v404_v18 = vadd.f32 %v673_v13, %v403_v16 }
  0xf1   : > { %530 = vrot.lane.b32.xlu1 %v516_v14, %s749_s10  ;;  %520 = vrot.lane.b32.xlu0 %v516_v14, %s750_s11 }
  0xf2   : > { %v407_v20 = vadd.f32 %v404_v18, %v321_v19 }
  0xf4   : > { %v675_v21 = vmul.f32 -1.442695, %v407_v20 }
  0xf5   : > { %415 = vrot.lane.b32.xlu0 %v404_v18, %s751_s13 }
  0xf6   : > { %725 = vpow2.f32 %v675_v21 }
 0x100   : > { %v726_v22 = vpop.eup %725 }
 0x101   : > { %v411_v23 = vadd.f32 1.0, %v726_v22 }
 0x103   : > { %727 = vrcp.f32 %v411_v23 }
 0x10d   : > { %v728_v28 = vpop.eup %727 }
 0x10e   : > { %v425_v43 = vsub.f32 1.0, %v728_v28 }
 0x163   : > { %v521_v25 = vpop.permute.xlu0 %520  ;;  %v531_v34 = vpop.permute.xlu1 %530 }
 0x164   : > { %v523_v26 = vadd.f32 %v521_v25, %v322_v24 }
 0x166   : > { %v678_v27 = vmul.f32 -1.442695, %v523_v26 }
 0x167   : > { %v416_v29 = vpop.permute.xlu0 %415 }
 0x168   : > { %729 = vpow2.f32 %v678_v27  ;;  %v418_v30 = vmul.f32 %v728_v28, %v416_v29 }
 0x16a   : > { %420 = vrot.lane.b32.xlu1 %v418_v30, %s752_s14 }
 0x172   : > { %v730_v31 = vpop.eup %729 }
 0x173   : > { %v527_v32 = vadd.f32 1.0, %v730_v31 }
 0x175   : > { %731 = vrcp.f32 %v527_v32 }
 0x17f   : > { %v732_v33 = vpop.eup %731 }
 0x180   : > { %v533_v35 = vmul.f32 %v732_v33, %v531_v34  ;;  %v540_v49 = vsub.f32 1.0, %v732_v33 }
 0x182   : > { %535 = vrot.lane.b32.xlu0 %v533_v35, %s752_s14 }
 0x186   : > { %431 = vrot.lane.b32.xlu0 %v323_v10, %s749_s10 }
 0x18a   : > { %546 = vrot.lane.b32.xlu0 %v436_v9, %s753_s8 }
 0x1dc   : > { %v421_v36 = vpop.permute.xlu1 %420 }
 0x1dd   : > { %v423_v37 = vadd.f32 %v421_v36, %v321_v19 }
 0x1df   : > { %733 = vtanh.f32 %v423_v37 }
 0x1e9   : > { %v734_v38 = vpop.eup %733 }
 0x1ea   : > { %427 = vrot.lane.b32.xlu1 %v734_v38, %s754_s12 }
 0x1f4   : > { %v536_v39 = vpop.permute.xlu0 %535 }
 0x1f5   : > { %v538_v40 = vadd.f32 %v536_v39, %v322_v24 }
 0x1f7   : > { %735 = vtanh.f32 %v538_v40 }
 0x1f8   : > { %v432_v42 = vpop.permute.xlu0 %431 }
 0x1f9   : > { %v434_v45 = vmul.f32 %v728_v28, %v432_v42 }
 0x1fc   : > { %v547_v48 = vpop.permute.xlu0 %546 }
 0x1fd   : > { %v549_v51 = vmul.f32 %v732_v33, %v547_v48 }
 0x201   : > { %v736_v41 = vpop.eup %735 }
 0x202   : > { %542 = vrot.lane.b32.xlu1 %v736_v41, %s754_s12 }
 0x25c   : > { %v428_v44 = vpop.permute.xlu1 %427 }
 0x25d   : > { %v430_v46 = vmul.f32 %v428_v44, %v425_v43 }
 0x25f   : > { %v435_v47 = vadd.f32 %v434_v45, %v430_v46 }
 0x261   : > { %552 = vrot.lane.b32.xlu1 %v435_v47, %s754_s12 }
 0x274   : > { %v543_v50 = vpop.permute.xlu1 %542 }
 0x275   : > { %v545_v52 = vmul.f32 %v543_v50, %v540_v49 }
 0x277   : > { %v550_v53 = vadd.f32 %v549_v51, %v545_v52 }
 0x279   : > { %558 = vrot.lane.b32.xlu0 %v550_v53, %s753_s8 }
 0x2d3   : > { %v553_v54 = vpop.permute.xlu1 %552 }
 0x2d4   : > { %556 = vst.msk [vmem:[#allocation2] sm:$0x3] %vm555_vm3, %v553_v54  ;;  %562 = vst.msk [vmem:[%s816_s15] sm:$0x3] %vm555_vm3, %v553_v54 }
 0x2eb   : > { %v559_v55 = vpop.permute.xlu0 %558 }
 0x2ec   : > { %561 = vst.msk [vmem:[#allocation3] sm:$0x3] %vm555_vm3, %v559_v55  ;;  %563 = vst.msk [vmem:[%s821_s18] sm:$0x3] %vm555_vm3, %v559_v55 }
 0x2ed PF: > { %s18_s24 = sadd.s32 1, %s743_s24  }
 0x2ee   : > { %p15_p6 = scmp.ge.s32.totalorder %s18_s24, 10  }
 0x2f0   :  { %17 = sbr.rel (!%p15_p6) target bundleno = 1 (0x1), region = 93 }

// kernel: tacotron_forward.31
= control target key start
LH: loop header
LB: loop body
LE: loop exit
PB: predicated region body
PF: predicated region fallthrough
CT: control target
= control target key end

     0   :  { %v142_v3 = vmov 0.0   ;;  %vm43_vm0 = vcmask 523264   ;;  %v33_v26 = vlaneseq  ;;  %s225_s1 = inlined_call_operand.vmem [shape: f32[64,192], index: 1, kind: input, shape index: {}]   ;;  %s226_s0 = inlined_call_operand.vmem [shape: f32[8,64], index: 0, kind: input, shape index: {}]   ;;  %s227_s2 = inlined_call_operand.vmem [shape: f32[1,192], index: 2, kind: input, shape index: {}]   ;;  %s228_s3 = inlined_call_operand.vmem [shape: f32[8,192], index: 3, kind: output, shape index: {}]  }
   0x1   :  { %v16_v0 = vld [vmem:[%s225_s1 + $0x8] sm:$0xff]  ;;  %v18_v1 = vld [vmem:[%s225_s1 + $0x18] sm:$0xff]  ;;  %v15_v2 = vld [vmem:[%s225_s1] sm:$0xff]  ;;  %111 = vmatprep.mubr.f32.mxu0 %v142_v3 }
   0x2   :  { %v125_v4 = vpack.c.bf16 %v18_v1, %v16_v0  ;;  %v17_v5 = vld [vmem:[%s225_s1 + $0x10] sm:$0xff]  ;;  %v20_v6 = vld [vmem:[%s225_s1 + $0x28] sm:$0xff]  ;;  %v22_v7 = vld [vmem:[%s225_s1 + $0x38] sm:$0xff]  ;;  %v34_v27 = vshrl.u32 %v33_v26, 7 }
   0x3   :  { %v127_v8 = vpack.c.bf16 %v17_v5, %v15_v2  ;;  %v129_v9 = vpack.c.bf16 %v22_v7, %v20_v6  ;;  %v19_v10 = vld [vmem:[%s225_s1 + $0x20] sm:$0xff]  ;;  %v21_v11 = vld [vmem:[%s225_s1 + $0x30] sm:$0xff]  ;;  %v24_v12 = vld [vmem:[%s225_s1 + $0x48] sm:$0xff] }
   0x4   :  { %126 = vmatprep.subr.bf16.mxu0 %v125_v4  ;;  %v26_v13 = vld [vmem:[%s225_s1 + $0x58] sm:$0xff]  ;;  %v131_v14 = vpack.c.bf16 %v21_v11, %v19_v10  ;;  %v23_v16 = vld [vmem:[%s225_s1 + $0x40] sm:$0xff]  ;;  %v25_v17 = vld [vmem:[%s225_s1 + $0x50] sm:$0xff]  ;;  %v35_v28 = vsub.s32 0, %v34_v27  ;;  %v39_v30 = vsub.s32 1, %v34_v27 }
   0x5   :  { %128 = vmatpush1.bf16.msra.mxu0 %v127_v8  ;;  %v133_v15 = vpack.c.bf16 %v26_v13, %v24_v12  ;;  %v28_v18 = vld [vmem:[%s225_s1 + $0x68] sm:$0xff]  ;;  %v30_v19 = vld [vmem:[%s225_s1 + $0x78] sm:$0xff]  ;;  %v135_v20 = vpack.c.bf16 %v25_v17, %v23_v16  ;;  %v27_v22 = vld [vmem:[%s225_s1 + $0x60] sm:$0xff] }
   0x6   :  { %130 = vmatprep.subr.bf16.mxu0 %v129_v9  ;;  %v137_v21 = vpack.c.bf16 %v30_v19, %v28_v18  ;;  %v29_v23 = vld [vmem:[%s225_s1 + $0x70] sm:$0xff]  ;;  %v14_v25 = vld [vmem:[%s226_s0] sm:$0xff] }
   0x7   :  { %v139_v24 = vpack.c.bf16 %v29_v23, %v27_v22  ;;  %v31_v29 = vld [vmem:[%s227_s2] sm:$0x3] }
   0x8   :  { %v36_v31 = vrot.slane %v31_v29, %v35_v28  ;;  %v40_v32 = vrot.slane %v31_v29, %v39_v30 }
   0x9   :  { %132 = vmatpush1.bf16.msra.mxu0 %v131_v14 }
   0xa   :  { %134 = vmatprep.subr.bf16.mxu0 %v133_v15 }
   0xd   :  { %136 = vmatpush1.bf16.msra.mxu0 %v135_v20 }
   0xe   :  { %138 = vmatprep.subr.bf16.mxu0 %v137_v21 }
  0x11   :  { %140 = vmatpush1.bf16.msra.mxu0 %v139_v24 }
  0x14   :  { %124 = vmatmul.mubr.msk.f32.vlgmr.msra.gmra.mrb[0].mxu0 %vm43_vm0, %v14_v25 }
  0xe7   :  { %v113_v33 = vpop.f32.mrb[0].mxu0 }
  0xe8   :  { %v114_v34 = vadd.f32 %v113_v33, %v36_v31  ;;  %v115_v35 = vpop.f32.mrb[1].mxu0 }
  0xe9   :  { %v116_v36 = vadd.f32 %v115_v35, %v40_v32 }
  0xea   :  { %118 = vst [vmem:[%s228_s3] sm:$0xff] %v114_v34 }
  0xeb   :  { %119 = vst.msk [vmem:[%s228_s3 + $0x8] sm:$0xff] %vm43_vm0, %v116_v36 }

// kernel: tacotron_forward.30
= control target key start
LH: loop header
LB: loop body
LE: loop exit
PB: predicated region body
PF: predicated region fallthrough
CT: control target
= control target key end

     0   :  { %s911_s30 = smov 0   ;;  %s1015_s0 = inlined_call_operand.vmem [shape: f32[4,2,96], index: 0, kind: input, shape index: {}]   ;;  %s1016_s1 = inlined_call_operand.vmem [shape: f32[32,96], index: 1, kind: input, shape index: {}]   ;;  %s1017_s2 = inlined_call_operand.vmem [shape: f32[1,96], index: 2, kind: input, shape index: {}]   ;;  %s1018_s3 = inlined_call_operand.vmem [shape: f32[32,32], index: 3, kind: input, shape index: {}]   ;;  %s1019_s4 = inlined_call_operand.vmem [shape: f32[2,8,32], index: 4, kind: input, shape index: {}]   ;;  %s1020_s5 = inlined_call_operand.vmem [shape: f32[1,32], index: 5, kind: input, shape index: {}]   ;;  %s1021_s6 = inlined_call_operand.vmem [shape: f32[2,8,32], index: 6, kind: input, shape index: {}]   ;;  %s1022_s7 = inlined_call_operand.vmem [shape: f32[2,8], index: 7, kind: input, shape index: {}]   ;;  %s1023_s8 = inlined_call_operand.vmem [shape: f32[4,2,64], index: 8, kind: output, shape index: {0}]   ;;  %s1024_s9 = inlined_call_operand.vmem [shape: f32[4,2,8], index: 9, kind: output, shape index: {1}]  }
   0x1 LB: > { %s755_s10 = sadd.s32 4294967295, %s851_s30   ;;  %p759_p0 = scmp.ge.s32.totalorder %s851_s30, 1  ;;  %s851_s30 = sphi %s911_s30, %s20_s30  }
   0x2   : > { %p289_p1 = scmp.lt.s32.totalorder %s851_s30, 5 }
   0x4   : > { %p290_p2 = pnand %p759_p0, %p289_p1 }
   0x5   : > { %p327_p3 = scmp.lt.s32.totalorder (!%p290_p2), %s755_s10, 3  ;;  %p763_p4 = scmp.ne.s32.totalorder (!%p290_p2), %s755_s10, 0 }
   0x6   : > { %293 = sbr.rel (%p290_p2) target bundleno = 1678 (0x68e), region = 52 }
   0xd   : > { %s328_s11 = scalar_select %p327_p3, %s755_s10, 3 }
   0xe   : > { %342 = sbr.rel (%p763_p4) target bundleno = 21 (0x15), region = 56  ;;  %vm343_vm0 = vcmask (!%p763_p4), 254976   ;;  %v853_v0 = vmov (!%p763_p4), 0.0  }
   0xf   : > { %s919_s12 = sshll.u32 %s328_s11, 1  ;;  %344 = vst.msk [vmem:[#allocation2] sm:$0x3] (!%p763_p4), %vm343_vm0, %v853_v0 }
  0x10   : > { %s330_s15 = scalar_lea.vmem %s1015_s0, %s919_s12  ;;  %s334_s18 = scalar_lea.vmem %s1023_s8, %s919_s12 }
  0x11   : > { %s338_s21 = scalar_lea.vmem %s1024_s9, %s919_s12 }
  0x15 PF: > { %v347_v1 = vld [vmem:[%s1016_s1] sm:$0xff]  ;;  %v348_v2 = vld [vmem:[%s1016_s1 + $0x8] sm:$0xff]  ;;  %v349_v3 = vld [vmem:[%s1016_s1 + $0x10] sm:$0xff]  ;;  %v854_v4 = vmov 0.0|0.0   ;;  %vm855_vm1 = vmmov 0   ;;  %v856_v7 = vmov 0.0   ;;  %v547_v40 = vlaneseq }
  0x16   : > { %803 = vmatprep.subr.bf16.mxu0 %v854_v4  ;;  %v804_v5 = vpack.c.bf16 %v348_v2, %v347_v1  ;;  %v350_v6 = vld [vmem:[%s1016_s1 + $0x18] sm:$0xff]  ;;  %789 = vmatprep.mubr.msk.f32.mxu0 %vm855_vm1, %v856_v7  ;;  %v346_v9 = vld [vmem:[#allocation2] sm:$0x3]  ;;  %vm358_vm2 = vcmask 261120   ;;  %s857_s13 = smov 64   ;;  %v468_v25 = vld [vmem:[%s1018_s3 + $0x8] sm:$0xff] }
  0x17   : > { %809 = vmatprep.subr.bf16.mxu1 %v854_v4  ;;  %800 = vmatprep.mubr.msk.f32.mxu1 %vm855_vm1, %v856_v7  ;;  %v807_v8 = vpack.c.bf16 %v350_v6, %v349_v3  ;;  %v764_v10 = vld [vmem:[%s1017_s2] ss:$0 sm:$0xff]  ;;  %v469_v26 = vld [vmem:[%s1018_s3 + $0x10] sm:$0xff]  ;;  %v470_v28 = vld [vmem:[%s1018_s3 + $0x18] sm:$0xff]  ;;  %s858_s26 = smov 96   ;;  %s859_s27 = smov 32  }
  0x18   : > { %805 = vmatpush3.bf16.msra.mxu0 %v804_v5  ;;  %v345_v14 = vld [vmem:[%s330_s15] sm:$0x3]  ;;  %v813_v29 = vpack.c.bf16 %v470_v28, %v469_v26  ;;  %vm465_vm3 = vcmask 254976   ;;  %v860_v38 = vmov 1966171168   ;;  %v548_v42 = vshrl.u32 %v547_v40, 7 }
  0x19   : > { %806 = vmatprep.subr.bf16.mxu0 %v854_v4  ;;  %v467_v24 = vld [vmem:[%s1018_s3] sm:$0xff]  ;;  %v545_v39 = vunpack.c.l.s4 %v860_v38  ;;  %v567_v53 = vld [vmem:[%s1019_s4 + $0x8] sm:$0xff]  ;;  %v602_v0 = vand.u32 127, %v547_v40  ;;  %vm611_vm4 = vcmask 1041409   ;;  %vm615_vm6 = vcmask 58368  }
  0x1a   : > { %v810_v27 = vpack.c.bf16 %v468_v25, %v467_v24  ;;  %v570_v46 = vsub.s32 0, %v548_v42  ;;  %v566_v50 = vld [vmem:[%s1019_s4] sm:$0xff]  ;;  %vm668_vm7 = vcmask 517120  }
  0x1b   : > { %v546_v41 = vunpack.c.0.s8 %v545_v39  ;;  %v768_v57 = vld [vmem:[%s1020_s5] ss:$0 sm:$0xff]  ;;  %v605_v1 = vsub.s32 %v602_v0, %v548_v42 }
  0x1c   : > { %808 = vmatpush3.bf16.msra.mxu0 %v807_v8  ;;  %811 = vmatpush3.bf16.msra.mxu1 %v810_v27  ;;  %v597_v3 = vld [vmem:[%s1022_s7] sm:$0x3] }
  0x1d   : > { %812 = vmatprep.subr.bf16.mxu1 %v854_v4  ;;  %v549_v43 = vsub.s32 %v546_v41, %v548_v42  ;;  %vm598_vm5 = vcmp.gt.f32.partialorder %v597_v3, 0.5  ;;  %v643_v24 = vld [vmem:[%s1021_s6] sm:$0xff] }
  0x1f   : > { %790 = vmatmul.mubr.msk.f32.vlgmr.msra.gmra.mrb[0].mxu0 %vm358_vm2, %v346_v9 }
  0x20   : > { %814 = vmatpush3.bf16.msra.mxu1 %v813_v29 }
  0xf2   : > { %v428_v11 = vpop.f32.mrb[0].mxu0 }
  0xf3   : > { %v429_v12 = vadd.f32 %v764_v10, %v428_v11  ;;  %v791_v13 = vpop.f32.mrb[1].mxu0 }
  0xf5   : > { %440 = vrot.lane.b32.xlu0 %v429_v12, %s857_s13  ;;  %v432_v15 = vadd.f32 %v429_v12, %v345_v14 }
  0xf7   : > { %v766_v16 = vmul.f32 -1.442695, %v432_v15 }
  0xf9   : > { %831 = vpow2.f32 %v766_v16 }
 0x103   : > { %v832_v17 = vpop.eup %831 }
 0x104   : > { %v436_v18 = vadd.f32 1.0, %v832_v17 }
 0x106   : > { %833 = vrcp.f32 %v436_v18  ;;  %v638_v18 = vsub.s32 1, %v548_v42 }
 0x110   : > { %v834_v19 = vpop.eup %833 }
 0x111   : > { %v450_v32 = vsub.f32 1.0, %v834_v19 }
 0x167   : > { %v441_v20 = vpop.permute.xlu0 %440 }
 0x168   : > { %v443_v21 = vmul.f32 %v834_v19, %v441_v20 }
 0x16a   : > { %445 = vrot.lane.b32.xlu0 %v443_v21, %s857_s13 }
 0x1dc   : > { %v446_v22 = vpop.permute.xlu0 %445 }
 0x1dd   : > { %v448_v23 = vadd.f32 %v446_v22, %v345_v14 }
 0x1df   : > { %835 = vtanh.f32 %v448_v23  ;;  %v644_v23 = vld [vmem:[%s1021_s6 + $0x8] sm:$0xff] }
 0x1e9   : > { %v836_v30 = vpop.eup %835 }
 0x1ea   : > { %452 = vrot.lane.b32.xlu1 %v836_v30, %s858_s26 }
 0x1ee   : > { %456 = vrot.lane.b32.xlu1 %v346_v9, %s859_s27 }
 0x25c   : > { %v453_v31 = vpop.permute.xlu1 %452 }
 0x25d   : > { %v455_v34 = vmul.f32 %v453_v31, %v450_v32 }
 0x260   : > { %v457_v33 = vpop.permute.xlu1 %456 }
 0x261   : > { %v459_v35 = vmul.f32 %v834_v19, %v457_v33 }
 0x263   : > { %v460_v36 = vadd.f32 %v459_v35, %v455_v34 }
 0x265   : > { %462 = vrot.lane.b32.xlu0 %v460_v36, %s858_s26 }
 0x2d7   : > { %v967_v37 = vpop.permute.xlu0 %462 }
 0x2d8   : > { %466 = vst.msk [vmem:[#allocation2] sm:$0x3] %vm465_vm3, %v967_v37  ;;  %801 = vmatmul.mubr.msk.f32.vlgmr.msra.gmra.mrb[0].mxu1 %vm358_vm2, %v967_v37 }
 0x3ab   : > { %v539_v44 = vpop.f32.mrb[0].mxu1 }
 0x3ac   : > { %v550_v45 = vrot.slane %v539_v44, %v549_v43  ;;  %v802_v47 = vpop.f32.mrb[1].mxu1 }
 0x3ae   : > { %v551_v48 = vcombine.high %v550_v45, %v550_v45  ;;  %v558_v49 = vrot.slane %v550_v45, %v549_v43 }
 0x3b0   : > { %v565_v51 = vrot.slane %v551_v48, %v549_v43  ;;  %v571_v52 = vrot.slane %v558_v49, %v570_v46 }
 0x3b2   : > { %v575_v54 = vrot.slane %v565_v51, %v570_v46  ;;  %v578_v55 = vadd.f32 %v571_v52, %v566_v50 }
 0x3b4   : > { %v579_v56 = vadd.f32 %v575_v54, %v567_v53  ;;  %837 = vtanh.f32 %v578_v55 }
 0x3b6   : > { %839 = vtanh.f32 %v579_v56 }
 0x3be   : > { %v838_v58 = vpop.eup %837 }
 0x3bf   : > { %v589_v59 = vmul.f32 %v838_v58, %v768_v57 }
 0x3c0   : > { %v840_v60 = vpop.eup %839 }
 0x3c1   : > { %v591_v61 = vsel %vm358_vm2, %v589_v59, 0.0  ;;  %v590_v62 = vmul.f32 %v840_v60, %v768_v57 }
 0x3c2   : > { %592 = vadd.xlane.f32.xlu1 %v591_v61 }
 0x3c3   : > { %v594_v63 = vsel %vm358_vm2, %v590_v62, 0.0 }
 0x3c4   : > { %595 = vadd.xlane.f32.xlu0 %v594_v63 }
 0x44f   : > { %v593_v2 = vpop.xlane.xlu1 %592 }
 0x450   : > { %v606_v5 = vrot.slane %v593_v2, %v605_v1 }
 0x451   : > { %v596_v4 = vpop.xlane.xlu0 %595 }
 0x452   : > { %v610_v6 = vrot.slane %v596_v4, %v605_v1 }
 0x454   : > { %v612_v7 = vsel %vm611_vm4, %v610_v6, %v606_v5 }
 0x455   : > { %v614_v8 = vsel %vm598_vm5, %v612_v7, -1e+30 }
 0x456   : > { %v616_v9 = vsel %vm615_vm6, %v614_v8, -inf }
 0x457   : > { %617 = vmax.xlane.f32.xlu0 %v616_v9 }
 0x4e4   : > { %v618_v10 = vpop.xlane.xlu0 %617 }
 0x4e5   : > { %v619_v11 = vsub.f32 %v614_v8, %v618_v10 }
 0x4e7   : > { %v620_v12 = vmul.f32 1.442695, %v619_v11 }
 0x4e9   : > { %841 = vpow2.f32 %v620_v12 }
 0x4f3   : > { %v842_v13 = vpop.eup %841 }
 0x4f4   : > { %v622_v14 = vmul.f32 %v842_v13, %v597_v3 }
 0x4f6   : > { %v623_v15 = vsel %vm615_vm6, %v622_v14, 0.0 }
 0x4f7   : > { %624 = vadd.xlane.f32.xlu1 %v623_v15 }
 0x584   : > { %v625_v16 = vpop.xlane.xlu1 %624 }
 0x585   : > { %v626_v17 = vmax.f32 %v625_v16, 1e-20 }
 0x587   : > { %843 = vrcp.f32 %v626_v17 }
 0x591   : > { %v844_v19 = vpop.eup %843 }
 0x592   : > { %v628_v20 = vmul.f32 %v844_v19, %v622_v14 }
 0x594   : > { %v639_v21 = vrot.slane %v628_v20, %v638_v18  ;;  %670 = vst.msk [vmem:[%s338_s21] sm:$0x3] %vm615_vm6, %v628_v20  ;;  %v632_v22 = vrot.slane %v628_v20, %v570_v46 }
 0x596   : > { %641 = vbcast.lane.b32.xlu1 %v639_v21, 256  ;;  %634 = vbcast.lane.b32.xlu0 %v632_v22, 256 }
 0x608   : > { %v642_v25 = vpop.permute.xlu1 %641  ;;  %v635_v26 = vpop.permute.xlu0 %634 }
 0x609   : > { %v646_v27 = vmul.f32 %v644_v23, %v642_v25  ;;  %v645_v28 = vmul.f32 %v643_v24, %v635_v26 }
 0x60b   : > { %v654_v29 = vsel %vm358_vm2, %v646_v27, 0.0  ;;  %v647_v30 = vsel %vm358_vm2, %v645_v28, 0.0 }
 0x60c   : > { %v655_v31 = vrot.slane %v654_v29, 4  ;;  %v648_v32 = vrot.slane %v647_v30, 4 }
 0x60e   : > { %v656_v33 = vadd.f32 %v655_v31, %v654_v29  ;;  %v649_v34 = vadd.f32 %v648_v32, %v647_v30 }
 0x610   : > { %v657_v35 = vrot.slane %v656_v33, 2  ;;  %v650_v36 = vrot.slane %v649_v34, 2 }
 0x612   : > { %v658_v38 = vadd.f32 %v657_v35, %v656_v33  ;;  %v651_v39 = vadd.f32 %v650_v36, %v649_v34 }
 0x614   : > { %v659_v40 = vrot.slane %v658_v38, 1  ;;  %v652_v41 = vrot.slane %v651_v39, 1 }
 0x616   : > { %v653_v42 = vadd.f32 %v652_v41, %v651_v39  ;;  %v660_v43 = vadd.f32 %v659_v40, %v658_v38 }
 0x618   : > { %v663_v44 = vsel %vm611_vm4, %v660_v43, %v653_v42 }
 0x619   : > { %664 = vrot.lane.b32.xlu1 %v663_v44, %s859_s27 }
 0x68b   : > { %v665_v45 = vpop.permute.xlu1 %664 }
 0x68c   : > { %v667_v46 = vsel %vm358_vm2, %v967_v37, %v665_v45 }
 0x68d   : > { %669 = vst.msk [vmem:[%s334_s18] sm:$0x3] %vm668_vm7, %v667_v46 }
 0x68e PF: > { %s20_s30 = sadd.s32 1, %s851_s30  }
 0x68f   : > { %p17_p5 = scmp.ge.s32.totalorder %s20_s30, 6  }
 0x691   :  { %19 = sbr.rel (!%p17_p5) target bundleno = 1 (0x1), region = 98 }

// kernel: tacotron_forward.32
= control target key start
LH: loop header
LB: loop body
LE: loop exit
PB: predicated region body
PF: predicated region fallthrough
CT: control target
= control target key end

     0   :  { %s1123_s13 = smov 0   ;;  %s1371_s0 = inlined_call_operand.vmem [shape: f32[4,2,64], index: 0, kind: input, shape index: {}]   ;;  %s1372_s1 = inlined_call_operand.vmem [shape: f32[4,2,192], index: 1, kind: input, shape index: {}]   ;;  %s1373_s2 = inlined_call_operand.vmem [shape: f32[64,192], index: 2, kind: input, shape index: {}]   ;;  %s1374_s3 = inlined_call_operand.vmem [shape: f32[1,192], index: 3, kind: input, shape index: {}]   ;;  %s1375_s4 = inlined_call_operand.vmem [shape: f32[64,192], index: 4, kind: input, shape index: {}]   ;;  %s1376_s5 = inlined_call_operand.vmem [shape: f32[1,192], index: 5, kind: input, shape index: {}]   ;;  %s1377_s6 = inlined_call_operand.vmem [shape: f32[64,192], index: 6, kind: input, shape index: {}]   ;;  %s1378_s7 = inlined_call_operand.vmem [shape: f32[1,192], index: 7, kind: input, shape index: {}]   ;;  %s1379_s8 = inlined_call_operand.vmem [shape: f32[64,16], index: 8, kind: input, shape index: {}]   ;;  %s1380_s9 = inlined_call_operand.vmem [shape: f32[1,16], index: 9, kind: input, shape index: {}]   ;;  %s1381_s10 = inlined_call_operand.vmem [shape: f32[4,2,16], index: 10, kind: output, shape index: {}]  }
   0x1 LB: > { %s920_s14 = sadd.s32 4294967295, %s1060_s13   ;;  %p924_p0 = scmp.ge.s32.totalorder %s1060_s13, 1  ;;  %s1060_s13 = sphi %s1123_s13, %s20_s13  }
   0x2   : > { %p321_p1 = scmp.lt.s32.totalorder %s1060_s13, 5 }
   0x4   : > { %p322_p2 = pnand %p924_p0, %p321_p1 }
   0x5   : > { %p362_p3 = scmp.lt.s32.totalorder (!%p322_p2), %s920_s14, 3  ;;  %p929_p4 = scmp.ne.s32.totalorder (!%p322_p2), %s920_s14, 0 }
   0x6   : > { %325 = sbr.rel (%p322_p2) target bundleno = 1247 (0x4df), region = 60 }
   0xd   : > { %s363_s15 = scalar_select %p362_p3, %s920_s14, 3 }
   0xe   : > { %378 = sbr.rel (%p929_p4) target bundleno = 21 (0x15), region = 64  ;;  %vm379_vm0 = vcmask (!%p929_p4), 517120   ;;  %v1062_v0 = vmov (!%p929_p4), 0.0  }
   0xf   : > { %s925_s16 = sshll.u32 %s363_s15, 1  ;;  %s939_s17 = sshll.u32 %s363_s15, 2  ;;  %380 = vst.msk [vmem:[#allocation2] sm:$0x3] (!%p929_p4), %vm379_vm0, %v1062_v0  ;;  %381 = vst.msk [vmem:[#allocation3] sm:$0x3] (!%p929_p4), %vm379_vm0, %v1062_v0 }
  0x10   : > { %s1134_s20 = scalar_lea.vmem %s1371_s0, %s925_s16  ;;  %s1139_s23 = scalar_lea.vmem %s1372_s1, %s939_s17 }
  0x11   : > { %s1144_s26 = scalar_lea.vmem %s1381_s10, %s925_s16 }
  0x15 PF: > { %v386_v1 = vld [vmem:[%s1373_s2 + $0x8] sm:$0xff]  ;;  %v388_v2 = vld [vmem:[%s1373_s2 + $0x18] sm:$0xff]  ;;  %v385_v3 = vld [vmem:[%s1373_s2] sm:$0xff]  ;;  %v1063_v8 = vmov 0.0   ;;  %vm413_vm1 = vcmask 523264   ;;  %v403_v27 = vlaneseq  ;;  %s1065_s29 = smov 64  }
  0x16   : > { %v968_v4 = vpack.c.bf16 %v388_v2, %v386_v1  ;;  %v387_v5 = vld [vmem:[%s1373_s2 + $0x10] sm:$0xff]  ;;  %v390_v6 = vld [vmem:[%s1373_s2 + $0x28] sm:$0xff]  ;;  %v392_v7 = vld [vmem:[%s1373_s2 + $0x38] sm:$0xff]  ;;  %481 = vmatprep.mubr.f32.mxu0 %v1063_v8  ;;  %628 = vmatprep.mubr.f32.mxu1 %v1063_v8  ;;  %v1064_v47 = vmov 1983009808   ;;  %vm530_vm2 = vcmask 517120  }
  0x17   : > { %v970_v9 = vpack.c.bf16 %v387_v5, %v385_v3  ;;  %v972_v10 = vpack.c.bf16 %v392_v7, %v390_v6  ;;  %v389_v11 = vld [vmem:[%s1373_s2 + $0x20] sm:$0xff]  ;;  %v391_v12 = vld [vmem:[%s1373_s2 + $0x30] sm:$0xff]  ;;  %v394_v13 = vld [vmem:[%s1373_s2 + $0x48] sm:$0xff]  ;;  %v404_v28 = vshrl.u32 %v403_v27, 7  ;;  %v508_v48 = vunpack.c.l.s4 %v1064_v47 }
  0x18   : > { %969 = vmatprep.subr.bf16.mxu0 %v968_v4  ;;  %v396_v14 = vld [vmem:[%s1373_s2 + $0x58] sm:$0xff]  ;;  %v974_v15 = vpack.c.bf16 %v391_v12, %v389_v11  ;;  %v393_v17 = vld [vmem:[%s1373_s2 + $0x40] sm:$0xff]  ;;  %v395_v18 = vld [vmem:[%s1373_s2 + $0x50] sm:$0xff]  ;;  %vm1067_vm3 = vmmov 0   ;;  %vm853_vm4 = vcmask 123904  }
  0x19   : > { %971 = vmatpush1.bf16.msra.mxu0 %v970_v9  ;;  %v976_v16 = vpack.c.bf16 %v396_v14, %v394_v13  ;;  %v398_v19 = vld [vmem:[%s1373_s2 + $0x68] sm:$0xff]  ;;  %v400_v20 = vld [vmem:[%s1373_s2 + $0x78] sm:$0xff]  ;;  %v978_v21 = vpack.c.bf16 %v395_v18, %v393_v17  ;;  %v397_v23 = vld [vmem:[%s1373_s2 + $0x60] sm:$0xff]  ;;  %v1201_v29 = vsub.s32 0, %v404_v28  ;;  %v1208_v40 = vsub.s32 1, %v404_v28 }
  0x1a   : > { %973 = vmatprep.subr.bf16.mxu0 %v972_v10  ;;  %v980_v22 = vpack.c.bf16 %v400_v20, %v398_v19  ;;  %v399_v24 = vld [vmem:[%s1373_s2 + $0x70] sm:$0xff]  ;;  %v1196_v26 = vld [vmem:[#allocation2] sm:$0x3]  ;;  %v509_v49 = vunpack.c.0.s8 %v508_v48  ;;  %v637_v51 = vld [vmem:[%s1377_s6 + $0x8] sm:$0xff] }
  0x1b   : > { %v982_v25 = vpack.c.bf16 %v399_v24, %v397_v23  ;;  %v401_v30 = vld [vmem:[%s1374_s3] sm:$0x3]  ;;  %v639_v52 = vld [vmem:[%s1377_s6 + $0x18] sm:$0xff]  ;;  %v534_v53 = vld [vmem:[%s1375_s4 + $0x8] sm:$0xff] }
  0x1c   : > { %v406_v31 = vrot.slane %v401_v30, %v1201_v29  ;;  %v383_v32 = vld [vmem:[%s1139_s23] sm:$0xf]  ;;  %v410_v41 = vrot.slane %v401_v30, %v1208_v40  ;;  %v1214_v50 = vsub.s32 %v509_v49, %v404_v28  ;;  %v1000_v54 = vpack.c.bf16 %v639_v52, %v637_v51  ;;  %v536_v55 = vld [vmem:[%s1375_s4 + $0x18] sm:$0xff]  ;;  %v638_v57 = vld [vmem:[%s1377_s6 + $0x10] sm:$0xff] }
  0x1d   : > { %975 = vmatpush1.bf16.msra.mxu0 %v974_v15  ;;  %v497_v42 = vrot.slane %v383_v32, 2  ;;  %v636_v56 = vld [vmem:[%s1377_s6] sm:$0xff]  ;;  %v984_v59 = vpack.c.bf16 %v536_v55, %v534_v53  ;;  %v535_v62 = vld [vmem:[%s1375_s4 + $0x10] sm:$0xff]  ;;  %v641_v63 = vld [vmem:[%s1377_s6 + $0x28] sm:$0xff] }
  0x1e   : > { %977 = vmatprep.subr.bf16.mxu0 %v976_v16  ;;  %v1002_v60 = vpack.c.bf16 %v638_v57, %v636_v56  ;;  %v533_v61 = vld [vmem:[%s1375_s4] sm:$0xff]  ;;  %v513_v0 = vrot.slane %v1196_v26, %v1214_v50  ;;  %v643_v2 = vld [vmem:[%s1377_s6 + $0x38] sm:$0xff]  ;;  %v538_v3 = vld [vmem:[%s1375_s4 + $0x28] sm:$0xff] }
  0x1f   : > { %v986_v1 = vpack.c.bf16 %v535_v62, %v533_v61  ;;  %v540_v4 = vld [vmem:[%s1375_s4 + $0x38] sm:$0xff]  ;;  %985 = vmatprep.subr.bf16.mxu1 %v984_v59  ;;  %v1004_v5 = vpack.c.bf16 %v643_v2, %v641_v63  ;;  %v640_v7 = vld [vmem:[%s1377_s6 + $0x20] sm:$0xff]  ;;  %v642_v9 = vld [vmem:[%s1377_s6 + $0x30] sm:$0xff] }
  0x20   : > { %v988_v6 = vpack.c.bf16 %v540_v4, %v538_v3  ;;  %v537_v10 = vld [vmem:[%s1375_s4 + $0x20] sm:$0xff]  ;;  %v1006_v11 = vpack.c.bf16 %v642_v9, %v640_v7  ;;  %v539_v12 = vld [vmem:[%s1375_s4 + $0x30] sm:$0xff]  ;;  %v645_v13 = vld [vmem:[%s1377_s6 + $0x48] sm:$0xff] }
  0x21   : > { %979 = vmatpush1.bf16.msra.mxu0 %v978_v21  ;;  %987 = vmatpush1.bf16.msra.mxu1 %v986_v1  ;;  %v647_v14 = vld [vmem:[%s1377_s6 + $0x58] sm:$0xff]  ;;  %v990_v15 = vpack.c.bf16 %v539_v12, %v537_v10  ;;  %v542_v17 = vld [vmem:[%s1375_s4 + $0x48] sm:$0xff]  ;;  %v644_v19 = vld [vmem:[%s1377_s6 + $0x40] sm:$0xff] }
  0x22   : > { %981 = vmatprep.subr.bf16.mxu0 %v980_v22  ;;  %989 = vmatprep.subr.bf16.mxu1 %v988_v6  ;;  %v1008_v16 = vpack.c.bf16 %v647_v14, %v645_v13  ;;  %v544_v18 = vld [vmem:[%s1375_s4 + $0x58] sm:$0xff]  ;;  %v646_v21 = vld [vmem:[%s1377_s6 + $0x50] sm:$0xff]  ;;  %v541_v22 = vld [vmem:[%s1375_s4 + $0x40] sm:$0xff] }
  0x23   : > { %v992_v20 = vpack.c.bf16 %v544_v18, %v542_v17  ;;  %v543_v23 = vld [vmem:[%s1375_s4 + $0x50] sm:$0xff]  ;;  %v1010_v24 = vpack.c.bf16 %v646_v21, %v644_v19  ;;  %v546_v27 = vld [vmem:[%s1375_s4 + $0x68] sm:$0xff]  ;;  %v382_v49 = vld [vmem:[%s1134_s20] sm:$0x3] }
  0x24   : > { %v994_v28 = vpack.c.bf16 %v543_v23, %v541_v22  ;;  %v652_v55 = vld [vmem:[%s1378_s7] sm:$0x3]  ;;  %v766_v9 = vld [vmem:[%s1379_s8 + $0x8] sm:$0xff]  ;;  %v767_v10 = vld [vmem:[%s1379_s8 + $0x10] sm:$0xff] }
  0x25   : > { %983 = vmatpush1.bf16.msra.mxu0 %v982_v25  ;;  %v649_v25 = vld [vmem:[%s1377_s6 + $0x68] sm:$0xff]  ;;  %991 = vmatpush1.bf16.msra.mxu1 %v990_v15  ;;  %v661_v1 = vrot.slane %v652_v55, %v1208_v40  ;;  %v768_v12 = vld [vmem:[%s1379_s8 + $0x18] sm:$0xff]  ;;  %v769_v14 = vld [vmem:[%s1379_s8 + $0x20] sm:$0xff] }
  0x26   : > { %1001 = vmatprep.subr.bf16.mxu0 %v1000_v54  ;;  %993 = vmatprep.subr.bf16.mxu1 %v992_v20  ;;  %v1020_v13 = vpack.c.bf16 %v768_v12, %v767_v10  ;;  %v770_v15 = vld [vmem:[%s1379_s8 + $0x28] sm:$0xff]  ;;  %v771_v18 = vld [vmem:[%s1379_s8 + $0x30] sm:$0xff]  ;;  %v772_v19 = vld [vmem:[%s1379_s8 + $0x38] sm:$0xff] }
  0x27   : > { %v1026_v20 = vpack.c.bf16 %v772_v19, %v771_v18 }
  0x28   : > { %930 = vmatmul.mubr.msk.f32.vlgmr.msra.gmra.mrb[0].mxu0 %vm413_vm1, %v1196_v26  ;;  %v651_v26 = vld [vmem:[%s1377_s6 + $0x78] sm:$0xff] }
  0x29   : > { %731 = vmatprep.mubr.f32.mxu0 %v1063_v8  ;;  %1003 = vmatpush1.bf16.msra.mxu0 %v1002_v60  ;;  %v1012_v30 = vpack.c.bf16 %v651_v26, %v649_v25 }
  0x2a   : > { %1005 = vmatprep.subr.bf16.mxu0 %v1004_v5  ;;  %995 = vmatpush1.bf16.msra.mxu1 %v994_v28 }
  0x2d   : > { %1007 = vmatpush1.bf16.msra.mxu0 %v1006_v11  ;;  %v1066_v11 = vmov 0.0|0.0  }
  0x2e   : > { %1009 = vmatprep.subr.bf16.mxu0 %v1008_v16  ;;  %v1023_v16 = vpack.c.bf16 %v770_v15, %v769_v14 }
  0x31   : > { %1011 = vmatpush1.bf16.msra.mxu0 %v1010_v24 }
  0x32   : > { %1013 = vmatprep.subr.bf16.mxu0 %v1012_v30  ;;  %v935_v30 = vld [vmem:[%s1380_s9] ss:$0 sm:$0xff] }
  0xfb   : > { %v483_v33 = vpop.f32.mrb[0].mxu0 }
  0xfc   : > { %v484_v34 = vadd.f32 %v483_v33, %v406_v31  ;;  %v485_v35 = vpop.f32.mrb[1].mxu0  ;;  %v548_v31 = vld [vmem:[%s1375_s4 + $0x78] sm:$0xff]  ;;  %v650_v33 = vld [vmem:[%s1377_s6 + $0x70] sm:$0xff] }
  0xfd   : > { %v486_v43 = vadd.f32 %v485_v35, %v410_v41  ;;  %v545_v35 = vld [vmem:[%s1375_s4 + $0x60] sm:$0xff] }
  0xfe   : > { %v488_v36 = vadd.f32 %v484_v34, %v383_v32  ;;  %v648_v32 = vld [vmem:[%s1377_s6 + $0x60] sm:$0xff]  ;;  %v996_v34 = vpack.c.bf16 %v548_v31, %v546_v27 }
 0x100   : > { %v931_v37 = vmul.f32 -1.442695, %v488_v36  ;;  %v547_v36 = vld [vmem:[%s1375_s4 + $0x70] sm:$0xff]  ;;  %997 = vmatprep.subr.bf16.mxu1 %v996_v34 }
 0x102   : > { %1042 = vpow2.f32 %v931_v37  ;;  %v1014_v37 = vpack.c.bf16 %v650_v33, %v648_v32 }
 0x104   : > { %1015 = vmatpush1.bf16.msra.mxu0 %v1014_v37 }
 0x10c   : > { %v1043_v38 = vpop.eup %1042 }
 0x10d   : > { %v492_v39 = vadd.f32 1.0, %v1043_v38  ;;  %v998_v38 = vpack.c.bf16 %v547_v36, %v545_v35 }
 0x10f   : > { %1044 = vrcp.f32 %v492_v39  ;;  %999 = vmatpush1.bf16.msra.mxu1 %v998_v38  ;;  %v635_v39 = vld [vmem:[#allocation3] sm:$0x3] }
 0x110   : > { %933 = vmatmul.mubr.msk.f32.vlgmr.msra.gmra.mrb[2].mxu0 %vm413_vm1, %v635_v39  ;;  %1016 = vmatprep.subr.bf16.mxu1 %v1066_v11 }
 0x119   : > { %v1211_v44 = vpop.eup %1044 }
 0x11a   : > { %v495_v45 = vmul.f32 %v1211_v44, %v486_v43 }
 0x11c   : > { %v499_v46 = vadd.f32 %v497_v42, %v495_v45  ;;  %v501_v42 = vsub.f32 1.0, %v1211_v44 }
 0x11e   : > { %1046 = vtanh.f32 %v499_v46 }
 0x128   : > { %v1047_v58 = vpop.eup %1046 }
 0x129   : > { %503 = vrot.lane.b32.xlu0 %v1047_v58, %s1065_s29 }
 0x12d   : > { %514 = vrot.lane.b32.xlu0 %v513_v0, %s1065_s29 }
 0x131   : > { %754 = vrot.lane.b32.xlu0 %v635_v39, %s1065_s29 }
 0x19b   : > { %v504_v41 = vpop.permute.xlu0 %503 }
 0x19c   : > { %v506_v45 = vmul.f32 %v504_v41, %v501_v42 }
 0x19f   : > { %v515_v43 = vpop.permute.xlu0 %514 }
 0x1a0   : > { %v517_v46 = vmul.f32 %v1211_v44, %v515_v43  ;;  %v549_v44 = vld [vmem:[%s1376_s5] sm:$0x3] }
 0x1a1   : > { %v554_v56 = vrot.slane %v549_v44, %v1201_v29  ;;  %v558_v2 = vrot.slane %v549_v44, %v1208_v40 }
 0x1a2   : > { %v518_v47 = vadd.f32 %v517_v46, %v506_v45 }
 0x1a3   : > { %v755_v21 = vpop.permute.xlu0 %754 }
 0x1a4   : > { %v526_v48 = vrot.slane %v518_v47, %v1214_v50  ;;  %v657_v50 = vrot.slane %v652_v55, %v1201_v29  ;;  %v765_v29 = vld [vmem:[%s1379_s8] sm:$0xff] }
 0x1a5   : > { %v1017_v40 = vpack.c.bf16 %v766_v9, %v765_v29 }
 0x1a6   : > { %527 = vrot.lane.b32.xlu1 %v526_v48, %s1065_s29 }
 0x1e3   : > { %v733_v53 = vpop.f32.mrb[2].mxu0 }
 0x1e4   : > { %v735_v54 = vpop.f32.mrb[3].mxu0  ;;  %v734_v57 = vadd.f32 %v733_v53, %v657_v50 }
 0x1e5   : > { %v736_v3 = vadd.f32 %v735_v54, %v661_v1 }
 0x218   : > { %v528_v51 = vpop.permute.xlu1 %527 }
 0x219   : > { %531 = vst.msk [vmem:[#allocation2] sm:$0x3] %vm530_vm2, %v528_v51  ;;  %v532_v52 = vadd.f32 %v528_v51, %v382_v49 }
 0x21b   : > { %932 = vmatmul.mubr.msk.f32.vlgmr.msra.gmra.mrb[0].mxu1 %vm413_vm1, %v532_v52 }
 0x21c   : > { %1018 = vmatpush3.bf16.msra.mxu1 %v1017_v40  ;;  %965 = vmatprep.mubr.msk.f32.mxu1 %vm1067_vm3, %v1063_v8 }
 0x21d   : > { %1019 = vmatprep.subr.bf16.mxu1 %v1066_v11 }
 0x220   : > { %1021 = vmatpush3.bf16.msra.mxu1 %v1020_v13 }
 0x221   : > { %1022 = vmatprep.subr.bf16.mxu1 %v1066_v11 }
 0x224   : > { %1024 = vmatpush3.bf16.msra.mxu1 %v1023_v16 }
 0x225   : > { %1025 = vmatprep.subr.bf16.mxu1 %v1066_v11 }
 0x228   : > { %1027 = vmatpush3.bf16.msra.mxu1 %v1026_v20 }
 0x2ee   : > { %v630_v58 = vpop.f32.mrb[0].mxu1 }
 0x2ef   : > { %v631_v59 = vadd.f32 %v630_v58, %v554_v56  ;;  %v632_v60 = vpop.f32.mrb[1].mxu1 }
 0x2f0   : > { %v633_v6 = vadd.f32 %v632_v60, %v558_v2 }
 0x2f1   : > { %v738_v61 = vadd.f32 %v734_v57, %v631_v59 }
 0x2f3   : > { %v934_v62 = vmul.f32 -1.442695, %v738_v61 }
 0x2f5   : > { %1048 = vpow2.f32 %v934_v62 }
 0x2ff   : > { %v1049_v63 = vpop.eup %1048 }
 0x300   : > { %v742_v0 = vadd.f32 1.0, %v1049_v63 }
 0x302   : > { %1050 = vrcp.f32 %v742_v0 }
 0x30c   : > { %v1051_v4 = vpop.eup %1050 }
 0x30d   : > { %v745_v5 = vmul.f32 %v1051_v4, %v736_v3  ;;  %v748_v22 = vsub.f32 1.0, %v1051_v4  ;;  %v757_v24 = vmul.f32 %v1051_v4, %v755_v21 }
 0x30f   : > { %v746_v7 = vadd.f32 %v745_v5, %v633_v6 }
 0x311   : > { %1052 = vtanh.f32 %v746_v7 }
 0x31b   : > { %v1053_v17 = vpop.eup %1052 }
 0x31c   : > { %750 = vrot.lane.b32.xlu1 %v1053_v17, %s1065_s29 }
 0x38e   : > { %v751_v23 = vpop.permute.xlu1 %750 }
 0x38f   : > { %v753_v25 = vmul.f32 %v751_v23, %v748_v22 }
 0x391   : > { %v758_v26 = vadd.f32 %v757_v24, %v753_v25 }
 0x393   : > { %760 = vrot.lane.b32.xlu1 %v758_v26, %s1065_s29 }
 0x405   : > { %v761_v27 = vpop.permute.xlu1 %760 }
 0x406   : > { %763 = vst.msk [vmem:[#allocation3] sm:$0x3] %vm530_vm2, %v761_v27  ;;  %v764_v28 = vadd.f32 %v761_v27, %v532_v52 }
 0x408   : > { %966 = vmatmul.mubr.msk.f32.vlgmr.msra.gmra.mrb[2].mxu1 %vm413_vm1, %v764_v28 }
 0x4db   : > { %v849_v8 = vpop.f32.mrb[2].mxu1 }
 0x4dc   : > { %v850_v31 = vadd.f32 %v935_v30, %v849_v8  ;;  %v967_v32 = vpop.f32.mrb[3].mxu1 }
 0x4de   : > { %854 = vst.msk [vmem:[%s1144_s26] sm:$0x3] %vm853_vm4, %v850_v31 }
 0x4df PF: > { %s20_s13 = sadd.s32 1, %s1060_s13  }
 0x4e0   : > { %p17_p5 = scmp.ge.s32.totalorder %s20_s13, 6  }
 0x4e2   :  { %19 = sbr.rel (!%p17_p5) target bundleno = 1 (0x1), region = 97 }

// kernel: tacotron_forward.35
= control target key start
LH: loop header
LB: loop body
LE: loop exit
PB: predicated region body
PF: predicated region fallthrough
CT: control target
= control target key end

     0   :  { %v650_v0 = vmov 0.0|0.0   ;;  %vm651_vm0 = vmmov 0   ;;  %v652_v6 = vmov 0.0   ;;  %vm29_vm1 = vcmask 130048   ;;  %s763_s1 = inlined_call_operand.vmem [shape: f32[48,8], index: 1, kind: input, shape index: {}]   ;;  %s764_s0 = inlined_call_operand.vmem [shape: f32[2,10,16], index: 0, kind: input, shape index: {}]   ;;  %s765_s2 = inlined_call_operand.vmem [shape: f32[1,8], index: 2, kind: input, shape index: {}]   ;;  %s766_s3 = inlined_call_operand.vmem [shape: f32[1,8], index: 3, kind: input, shape index: {}]   ;;  %s767_s4 = inlined_call_operand.vmem [shape: f32[1,8], index: 4, kind: input, shape index: {}]   ;;  %s768_s5 = inlined_call_operand.vmem [shape: f32[16,8], index: 5, kind: input, shape index: {}]   ;;  %s769_s6 = inlined_call_operand.vmem [shape: f32[16,8], index: 6, kind: output, shape index: {}]  }
   0x1   :  { %627 = vmatprep.subr.bf16.mxu0 %v650_v0  ;;  %v27_v1 = vld [vmem:[%s763_s1 + $0x10] sm:$0xff]  ;;  %v28_v2 = vld [vmem:[%s763_s1 + $0x18] sm:$0xff]  ;;  %630 = vmatprep.subr.bf16.mxu1 %v650_v0  ;;  %v24_v3 = vld [vmem:[%s763_s1] sm:$0xff]  ;;  %vm486_vm2 = vcmask 64512  }
   0x2   :  { %v628_v4 = vpack.c.bf16 %v28_v2, %v27_v1  ;;  %v25_v5 = vld [vmem:[%s763_s1 + $0x8] sm:$0xff]  ;;  %589 = vmatprep.mubr.msk.f32.mxu0 %vm651_vm0, %v652_v6  ;;  %596 = vmatprep.mubr.msk.f32.mxu1 %vm651_vm0, %v652_v6  ;;  %v177_v8 = vld [vmem:[%s763_s1 + $0x20] sm:$0xff]  ;;  %v562_v14 = vld [vmem:[%s764_s0 + $0x11] sm:$0xff] }
   0x3   :  { %v631_v7 = vpack.c.bf16 %v25_v5, %v24_v3  ;;  %v178_v9 = vld [vmem:[%s763_s1 + $0x28] sm:$0xff]  ;;  %v23_v12 = vld [vmem:[%s764_s0] sm:$0xff]  ;;  %v561_v15 = vld [vmem:[%s764_s0 + $0x10] sm:$0xff] }
   0x4   :  { %629 = vmatpush3.bf16.msra.mxu0 %v628_v4  ;;  %v26_v10 = vld [vmem:[%s764_s0 + $0x1] sm:$0xff]  ;;  %v634_v11 = vpack.c.bf16 %v178_v9, %v177_v8  ;;  %v565_v16 = vld [vmem:[%s764_s0 + $0x12] sm:$0xff]  ;;  %v560_v23 = vld [vmem:[%s765_s2] ss:$0 sm:$0xff]  ;;  %v533_v9 = vlaneseq }
   0x5   :  { %632 = vmatpush3.bf16.msra.mxu1 %v631_v7  ;;  %633 = vmatprep.subr.bf16.mxu0 %v650_v0  ;;  %v176_v13 = vld [vmem:[%s764_s0 + $0x2] sm:$0xff] }
   0x6   :  { %636 = vmatprep.subr.bf16.mxu1 %v650_v0 }
   0x7   :  { %590 = vmatmul.mubr.msk.f32.vlgmr.msra.gmra.mrb[0].mxu0 %vm29_vm1, %v26_v10  ;;  %v534_v10 = vshrl.u32 %v533_v9, 7 }
   0x8   :  { %597 = vmatmul.mubr.msk.f32.vlgmr.msra.gmra.mrb[0].mxu1 %vm29_vm1, %v23_v12  ;;  %635 = vmatpush3.bf16.msra.mxu0 %v634_v11 }
   0x9   :  { %603 = vmatprep.mubr.msk.f32.mxu0 %vm651_vm0, %v652_v6  ;;  %638 = vmatpush3.bf16.msra.mxu1 %v628_v4  ;;  %v535_v12 = vsub.s32 0, %v534_v10 }
   0xa   :  { %639 = vmatprep.subr.bf16.mxu0 %v650_v0  ;;  %610 = vmatprep.mubr.msk.f32.mxu1 %vm651_vm0, %v652_v6 }
   0xb   :  { %604 = vmatmul.mubr.msk.f32.vlgmr.msra.gmra.mrb[2].mxu0 %vm29_vm1, %v176_v13  ;;  %642 = vmatprep.subr.bf16.mxu1 %v650_v0 }
   0xc   :  { %641 = vmatpush3.bf16.msra.mxu0 %v631_v7  ;;  %611 = vmatmul.mubr.msk.f32.vlgmr.msra.gmra.mrb[2].mxu1 %vm29_vm1, %v562_v14 }
   0xd   :  { %617 = vmatprep.mubr.msk.f32.mxu0 %vm651_vm0, %v652_v6  ;;  %644 = vmatpush3.bf16.msra.mxu1 %v634_v11  ;;  %v528_v11 = vld [vmem:[%s766_s3] sm:$0x1] }
   0xe   :  { %624 = vmatprep.mubr.msk.f32.mxu1 %vm651_vm0, %v652_v6 }
   0xf   :  { %618 = vmatmul.mubr.msk.f32.vlgmr.msra.gmra.mrb[4].mxu0 %vm29_vm1, %v561_v15  ;;  %v530_v15 = vld [vmem:[%s767_s4] sm:$0x1] }
  0x10   :  { %625 = vmatmul.mubr.msk.f32.vlgmr.msra.gmra.mrb[4].mxu1 %vm29_vm1, %v565_v16 }
  0xda   :  { %v99_v17 = vpop.f32.mrb[0].mxu0 }
  0xdb   :  { %v591_v18 = vpop.f32.mrb[1].mxu0  ;;  %v172_v19 = vpop.f32.mrb[0].mxu1 }
  0xdc   :  { %v173_v20 = vadd.f32 %v172_v19, %v99_v17  ;;  %v598_v21 = vpop.f32.mrb[1].mxu1 }
  0xde   :  { %v248_v22 = vpop.f32.mrb[2].mxu0 }
  0xdf   :  { %v252_v24 = vadd.f32 %v248_v22, %v173_v20  ;;  %v605_v25 = vpop.f32.mrb[3].mxu0  ;;  %v333_v26 = vpop.f32.mrb[2].mxu1  ;;  %v545_v22 = vld [vmem:[%s768_s5] sm:$0xff] }
  0xe0   :  { %v612_v27 = vpop.f32.mrb[3].mxu1 }
  0xe1   :  { %v260_v28 = vadd.f32 %v560_v23, %v252_v24 }
  0xe2   :  { %v406_v29 = vpop.f32.mrb[4].mxu0 }
  0xe3   :  { %v487_v30 = vsel %vm486_vm2, %v260_v28, 0.0  ;;  %v407_v31 = vadd.f32 %v406_v29, %v333_v26  ;;  %v619_v32 = vpop.f32.mrb[5].mxu0  ;;  %v480_v33 = vpop.f32.mrb[4].mxu1 }
  0xe4   :  { %v488_v34 = vrot.slane %v487_v30, 4  ;;  %v626_v35 = vpop.f32.mrb[5].mxu1 }
  0xe5   :  { %v484_v36 = vadd.f32 %v480_v33, %v407_v31 }
  0xe6   :  { %v489_v37 = vadd.f32 %v488_v34, %v487_v30 }
  0xe7   :  { %v485_v38 = vadd.f32 %v560_v23, %v484_v36  ;;  %v550_v23 = vld [vmem:[%s768_s5 + $0x8] sm:$0xff] }
  0xe8   :  { %v490_v39 = vrot.slane %v489_v37, 2 }
  0xe9   :  { %v495_v40 = vsel %vm486_vm2, %v485_v38, 0.0 }
  0xea   :  { %v496_v41 = vrot.slane %v495_v40, 4  ;;  %v491_v42 = vadd.f32 %v490_v39, %v489_v37 }
  0xec   :  { %v497_v43 = vadd.f32 %v496_v41, %v495_v40  ;;  %v492_v45 = vrot.slane %v491_v42, 1 }
  0xee   :  { %v498_v44 = vrot.slane %v497_v43, 2  ;;  %v493_v48 = vadd.f32 %v492_v45, %v491_v42 }
  0xf0   :  { %v499_v46 = vadd.f32 %v498_v44, %v497_v43 }
  0xf2   :  { %v500_v47 = vrot.slane %v499_v46, 1 }
  0xf4   :  { %v501_v49 = vadd.f32 %v500_v47, %v499_v46 }
  0xf6   :  { %v502_v50 = vadd.f32 %v501_v49, %v493_v48 }
  0xf8   :  { %v504_v51 = vmul.f32 0.0625, %v502_v50 }
  0xfa   :  { %v505_v52 = vsub.f32 %v260_v28, %v504_v51  ;;  %v515_v53 = vsub.f32 %v485_v38, %v504_v51 }
  0xfc   :  { %v506_v54 = vmul.f32 %v505_v52, %v505_v52  ;;  %v516_v55 = vmul.f32 %v515_v53, %v515_v53 }
  0xfe   :  { %v507_v56 = vsel %vm486_vm2, %v506_v54, 0.0  ;;  %v517_v57 = vsel %vm486_vm2, %v516_v55, 0.0 }
  0xff   :  { %v508_v58 = vrot.slane %v507_v56, 4  ;;  %v518_v59 = vrot.slane %v517_v57, 4 }
 0x101   :  { %v509_v60 = vadd.f32 %v508_v58, %v507_v56  ;;  %v519_v61 = vadd.f32 %v518_v59, %v517_v57 }
 0x103   :  { %v510_v62 = vrot.slane %v509_v60, 2  ;;  %v520_v63 = vrot.slane %v519_v61, 2 }
 0x105   :  { %v511_v0 = vadd.f32 %v510_v62, %v509_v60  ;;  %v521_v1 = vadd.f32 %v520_v63, %v519_v61 }
 0x107   :  { %v512_v2 = vrot.slane %v511_v0, 1  ;;  %v522_v3 = vrot.slane %v521_v1, 1 }
 0x109   :  { %v513_v4 = vadd.f32 %v512_v2, %v511_v0  ;;  %v523_v5 = vadd.f32 %v522_v3, %v521_v1 }
 0x10b   :  { %v524_v6 = vadd.f32 %v523_v5, %v513_v4 }
 0x10d   :  { %v525_v7 = vmul.f32 0.0625, %v524_v6 }
 0x10f   :  { %v526_v8 = vadd.f32 1e-05, %v525_v7 }
 0x111   :  { %648 = vrsqrt.f32 %v526_v8 }
 0x11b   :  { %v649_v13 = vpop.eup %648 }
 0x11c   :  { %v529_v14 = vmul.f32 %v649_v13, %v528_v11 }
 0x11e   :  { %v531_v16 = vmul.f32 %v529_v14, %v504_v51  ;;  %v536_v17 = vrot.slane %v529_v14, %v535_v12 }
 0x120   :  { %v532_v18 = vsub.f32 %v530_v15, %v531_v16  ;;  %v537_v19 = vmul.f32 %v536_v17, %v260_v28  ;;  %v548_v20 = vmul.f32 %v536_v17, %v485_v38 }
 0x122   :  { %v542_v21 = vrot.slane %v532_v18, %v535_v12 }
 0x124   :  { %v544_v24 = vadd.f32 %v542_v21, %v537_v19  ;;  %v549_v25 = vadd.f32 %v548_v20, %v542_v21 }
 0x126   :  { %v546_v26 = vadd.f32 %v545_v22, %v544_v24  ;;  %v551_v27 = vadd.f32 %v550_v23, %v549_v25 }
 0x128   :  { %547 = vst.msk [vmem:[%s769_s6] sm:$0xff] %vm486_vm2, %v546_v26  ;;  %552 = vst.msk [vmem:[%s769_s6 + $0x8] sm:$0xff] %vm486_vm2, %v551_v27 }

// kernel: tacotron_forward.36
= control target key start
LH: loop header
LB: loop body
LE: loop exit
PB: predicated region body
PF: predicated region fallthrough
CT: control target
= control target key end

     0   :  { %vm36_vm0 = vcmask 64512   ;;  %vm127_vm1 = vcmask 130048   ;;  %s1282_s1 = inlined_call_operand.vmem [shape: f32[8,16], index: 1, kind: input, shape index: {}]   ;;  %s1283_s0 = inlined_call_operand.vmem [shape: f32[16,8], index: 0, kind: input, shape index: {}]   ;;  %s1284_s5 = inlined_call_operand.vmem [shape: f32[4,16,16], index: 5, kind: input, shape index: {}]   ;;  %s1285_s3 = inlined_call_operand.vmem [shape: f32[4,16,16], index: 3, kind: input, shape index: {}]   ;;  %s1286_s2 = inlined_call_operand.vmem [shape: f32[1,16], index: 2, kind: input, shape index: {}]   ;;  %s1287_s6 = inlined_call_operand.vmem [shape: f32[4,1,16], index: 6, kind: input, shape index: {}]   ;;  %s1288_s4 = inlined_call_operand.vmem [shape: f32[4,1,16], index: 4, kind: input, shape index: {}]   ;;  %s1289_s7 = inlined_call_operand.vmem [shape: f32[16,16], index: 7, kind: output, shape index: {}]  }
   0x1   :  { %v28_v0 = vld [vmem:[%s1282_s1] sm:$0xff]  ;;  %v27_v2 = vld [vmem:[%s1283_s0 + $0x8] sm:$0xff]  ;;  %v938_v14 = vld [vmem:[%s1284_s5 + $0x10] sm:$0xff] }
   0x2   :  { %v26_v1 = vld [vmem:[%s1283_s0] sm:$0xff]  ;;  %1009 = vmatprep.subr.mxu0 %v28_v0  ;;  %v212_v4 = vld [vmem:[%s1284_s5 + $0x8] sm:$0xff]  ;;  %v939_v15 = vld [vmem:[%s1284_s5 + $0x18] sm:$0xff] }
   0x3   :  { %1011 = vmatprep.mubr.msk.f32.mxu0 %vm36_vm0, %v26_v1  ;;  %1010 = vmatpush3.msra.mxu0 %v28_v0  ;;  %v211_v3 = vld [vmem:[%s1284_s5] sm:$0xff]  ;;  %v119_v7 = vld [vmem:[%s1285_s3 + $0x8] sm:$0xff]  ;;  %v932_v16 = vld [vmem:[%s1285_s3 + $0x10] sm:$0xff]  ;;  %v1082_v17 = vpack.c.bf16 %v939_v15, %v938_v14 }
   0x4   :  { %1012 = vmatmul.mubr.msk.f32.vlgmr.msra.gmra.mrb[0].mxu0 %vm36_vm0, %v27_v2  ;;  %v118_v5 = vld [vmem:[%s1285_s3] sm:$0xff]  ;;  %v1074_v6 = vpack.c.bf16 %v212_v4, %v211_v3  ;;  %v933_v18 = vld [vmem:[%s1285_s3 + $0x18] sm:$0xff]  ;;  %v953_v49 = vld [vmem:[%s1284_s5 + $0x28] sm:$0xff] }
   0x5   :  { %v1070_v8 = vpack.c.bf16 %v119_v7, %v118_v5  ;;  %v921_v9 = vld [vmem:[%s1286_s2] ss:$0 sm:$0xff]  ;;  %v1078_v19 = vpack.c.bf16 %v933_v18, %v932_v16  ;;  %v947_v52 = vld [vmem:[%s1285_s3 + $0x28] sm:$0xff]  ;;  %v941_v54 = vld [vmem:[%s1287_s6 + $0x1] ss:$0 sm:$0xff] }
   0x6   :  { %1075 = vmatprep.subr.bf16.mxu0 %v1074_v6  ;;  %v927_v20 = vld [vmem:[%s1287_s6] ss:$0 sm:$0xff]  ;;  %v935_v3 = vld [vmem:[%s1288_s4 + $0x1] ss:$0 sm:$0xff]  ;;  %v966_v18 = vld [vmem:[%s1284_s5 + $0x30] sm:$0xff] }
   0x7   :  { %1071 = vmatprep.subr.bf16.mxu1 %v1070_v8  ;;  %1077 = vmatpush3.bf16.msra.mxu0 %v1074_v6  ;;  %v924_v33 = vld [vmem:[%s1288_s4] ss:$0 sm:$0xff] }
   0x8   :  { %1073 = vmatpush3.bf16.msra.mxu1 %v1070_v8  ;;  %1083 = vmatprep.subr.bf16.mxu0 %v1082_v17  ;;  %v952_v48 = vld [vmem:[%s1284_s5 + $0x20] sm:$0xff] }
   0x9   :  { %1079 = vmatprep.subr.bf16.mxu1 %v1078_v19  ;;  %v946_v50 = vld [vmem:[%s1285_s3 + $0x20] sm:$0xff]  ;;  %v1090_v51 = vpack.c.bf16 %v953_v49, %v952_v48 }
   0xa   :  { %v1086_v53 = vpack.c.bf16 %v947_v52, %v946_v50  ;;  %v969_v52 = vld [vmem:[%s1287_s6 + $0x3] ss:$0 sm:$0xff] }
  0xd7   :  { %v1013_v10 = vpop.f32.mrb[0].mxu0 }
  0xd8   :  { %v109_v11 = vpop.f32.mrb[1].mxu0  ;;  %v115_v13 = vadd.f32 %v1013_v10, %v921_v9 }
  0xd9   :  { %v110_v12 = vadd.f32 %v921_v9, %v109_v11 }
  0xdb   :  { %1018 = vmatprep.mubr.msk.f32.mxu1 %vm127_vm1, %v110_v12  ;;  %1025 = vmatprep.mubr.msk.f32.mxu0 %vm127_vm1, %v110_v12 }
  0xdc   :  { %1019 = vmatmul.mubr.msk.f32.vlgmr.msra.gmra.mrb[0].mxu1 %vm127_vm1, %v115_v13  ;;  %1026 = vmatmul.mubr.msk.f32.vlgmr.msra.gmra.mrb[2].mxu0 %vm127_vm1, %v115_v13 }
  0xdd   :  { %1085 = vmatpush3.bf16.msra.mxu0 %v1082_v17  ;;  %1081 = vmatpush3.bf16.msra.mxu1 %v1078_v19  ;;  %v967_v19 = vld [vmem:[%s1284_s5 + $0x38] sm:$0xff] }
  0xde   :  { %1091 = vmatprep.subr.bf16.mxu0 %v1090_v51  ;;  %1087 = vmatprep.subr.bf16.mxu1 %v1086_v53 }
 0x1af   :  { %v1020_v21 = vpop.f32.mrb[0].mxu1  ;;  %v1027_v22 = vpop.f32.mrb[2].mxu0 }
 0x1b0   :  { %v292_v23 = vadd.f32 %v1027_v22, %v927_v20  ;;  %v200_v24 = vpop.f32.mrb[1].mxu1  ;;  %v286_v25 = vpop.f32.mrb[3].mxu0  ;;  %v206_v34 = vadd.f32 %v1020_v21, %v924_v33  ;;  %v1098_v21 = vpack.c.bf16 %v967_v19, %v966_v18  ;;  %v961_v22 = vld [vmem:[%s1285_s3 + $0x38] sm:$0xff] }
 0x1b1   :  { %v287_v26 = vadd.f32 %v927_v20, %v286_v25  ;;  %v201_v35 = vadd.f32 %v924_v33, %v200_v24  ;;  %v960_v20 = vld [vmem:[%s1285_s3 + $0x30] sm:$0xff]  ;;  %v955_v24 = vld [vmem:[%s1287_s6 + $0x2] ss:$0 sm:$0xff] }
 0x1b2   :  { %v931_v27 = vmul.f32 -1.442695, %v292_v23  ;;  %v210_v36 = vmax.f32 %v206_v34, 0.0  ;;  %v1094_v23 = vpack.c.bf16 %v961_v22, %v960_v20 }
 0x1b3   :  { %v930_v28 = vmul.f32 -1.442695, %v287_v26  ;;  %v209_v38 = vmax.f32 %v201_v35, 0.0 }
 0x1b4   :  { %1102 = vpow2.f32 %v931_v27 }
 0x1b5   :  { %1104 = vpow2.f32 %v930_v28 }
 0x1be   :  { %v1103_v29 = vpop.eup %1102 }
 0x1bf   :  { %v1105_v30 = vpop.eup %1104  ;;  %v302_v31 = vadd.f32 1.0, %v1103_v29 }
 0x1c0   :  { %v301_v32 = vadd.f32 1.0, %v1105_v30 }
 0x1c1   :  { %1106 = vrcp.f32 %v302_v31 }
 0x1c2   :  { %1108 = vrcp.f32 %v301_v32 }
 0x1cb   :  { %v1107_v37 = vpop.eup %1106 }
 0x1cc   :  { %v1109_v39 = vpop.eup %1108  ;;  %v310_v40 = vsub.f32 1.0, %v1107_v37  ;;  %v308_v41 = vmul.f32 %v1107_v37, %v210_v36  ;;  %v949_v37 = vld [vmem:[%s1288_s4 + $0x2] ss:$0 sm:$0xff] }
 0x1cd   :  { %v307_v42 = vmul.f32 %v1109_v39, %v209_v38  ;;  %v309_v43 = vsub.f32 1.0, %v1109_v39 }
 0x1ce   :  { %v312_v44 = vmul.f32 %v310_v40, %v115_v13 }
 0x1cf   :  { %v311_v45 = vmul.f32 %v309_v43, %v110_v12 }
 0x1d0   :  { %v314_v46 = vadd.f32 %v312_v44, %v308_v41 }
 0x1d1   :  { %v313_v47 = vadd.f32 %v311_v45, %v307_v42 }
 0x1d3   :  { %1032 = vmatprep.mubr.msk.f32.mxu1 %vm127_vm1, %v313_v47  ;;  %1039 = vmatprep.mubr.msk.f32.mxu0 %vm127_vm1, %v313_v47 }
 0x1d4   :  { %1033 = vmatmul.mubr.msk.f32.vlgmr.msra.gmra.mrb[2].mxu1 %vm127_vm1, %v314_v46  ;;  %1040 = vmatmul.mubr.msk.f32.vlgmr.msra.gmra.mrb[4].mxu0 %vm127_vm1, %v314_v46 }
 0x1d5   :  { %1093 = vmatpush3.bf16.msra.mxu0 %v1090_v51  ;;  %1089 = vmatpush3.bf16.msra.mxu1 %v1086_v53 }
 0x1d6   :  { %1099 = vmatprep.subr.bf16.mxu0 %v1098_v21  ;;  %1095 = vmatprep.subr.bf16.mxu1 %v1094_v23 }
 0x2a7   :  { %v1034_v55 = vpop.f32.mrb[2].mxu1  ;;  %v1041_v56 = vpop.f32.mrb[4].mxu0 }
 0x2a8   :  { %v492_v57 = vadd.f32 %v1041_v56, %v941_v54  ;;  %v398_v58 = vpop.f32.mrb[3].mxu1  ;;  %v486_v59 = vpop.f32.mrb[5].mxu0  ;;  %v404_v4 = vadd.f32 %v1034_v55, %v935_v3 }
 0x2a9   :  { %v487_v60 = vadd.f32 %v941_v54, %v486_v59  ;;  %v399_v5 = vadd.f32 %v935_v3, %v398_v58 }
 0x2aa   :  { %v945_v61 = vmul.f32 -1.442695, %v492_v57  ;;  %v408_v6 = vmax.f32 %v404_v4, 0.0 }
 0x2ab   :  { %v944_v62 = vmul.f32 -1.442695, %v487_v60  ;;  %v407_v8 = vmax.f32 %v399_v5, 0.0 }
 0x2ac   :  { %1110 = vpow2.f32 %v945_v61 }
 0x2ad   :  { %1112 = vpow2.f32 %v944_v62 }
 0x2b6   :  { %v1111_v63 = vpop.eup %1110 }
 0x2b7   :  { %v1113_v0 = vpop.eup %1112  ;;  %v502_v1 = vadd.f32 1.0, %v1111_v63 }
 0x2b8   :  { %v501_v2 = vadd.f32 1.0, %v1113_v0 }
 0x2b9   :  { %1114 = vrcp.f32 %v502_v1  ;;  %v963_v1 = vld [vmem:[%s1288_s4 + $0x3] ss:$0 sm:$0xff] }
 0x2ba   :  { %1116 = vrcp.f32 %v501_v2 }
 0x2c3   :  { %v1115_v7 = vpop.eup %1114 }
 0x2c4   :  { %v1117_v9 = vpop.eup %1116  ;;  %v510_v10 = vsub.f32 1.0, %v1115_v7  ;;  %v508_v11 = vmul.f32 %v1115_v7, %v408_v6 }
 0x2c5   :  { %v507_v12 = vmul.f32 %v1117_v9, %v407_v8  ;;  %v509_v13 = vsub.f32 1.0, %v1117_v9 }
 0x2c6   :  { %v512_v14 = vmul.f32 %v510_v10, %v314_v46 }
 0x2c7   :  { %v511_v15 = vmul.f32 %v509_v13, %v313_v47 }
 0x2c8   :  { %v514_v16 = vadd.f32 %v512_v14, %v508_v11 }
 0x2c9   :  { %v513_v17 = vadd.f32 %v511_v15, %v507_v12 }
 0x2cb   :  { %1046 = vmatprep.mubr.msk.f32.mxu1 %vm127_vm1, %v513_v17  ;;  %1053 = vmatprep.mubr.msk.f32.mxu0 %vm127_vm1, %v513_v17 }
 0x2cc   :  { %1047 = vmatmul.mubr.msk.f32.vlgmr.msra.gmra.mrb[4].mxu1 %vm127_vm1, %v514_v16  ;;  %1054 = vmatmul.mubr.msk.f32.vlgmr.msra.gmra.mrb[6].mxu0 %vm127_vm1, %v514_v16 }
 0x2cd   :  { %1101 = vmatpush3.bf16.msra.mxu0 %v1098_v21  ;;  %1097 = vmatpush3.bf16.msra.mxu1 %v1094_v23 }
 0x39f   :  { %v1048_v25 = vpop.f32.mrb[4].mxu1  ;;  %v1055_v26 = vpop.f32.mrb[6].mxu0 }
 0x3a0   :  { %v692_v27 = vadd.f32 %v1055_v26, %v955_v24  ;;  %v598_v28 = vpop.f32.mrb[5].mxu1  ;;  %v686_v29 = vpop.f32.mrb[7].mxu0  ;;  %v604_v38 = vadd.f32 %v1048_v25, %v949_v37 }
 0x3a1   :  { %v687_v30 = vadd.f32 %v955_v24, %v686_v29  ;;  %v599_v39 = vadd.f32 %v949_v37, %v598_v28 }
 0x3a2   :  { %v959_v31 = vmul.f32 -1.442695, %v692_v27  ;;  %v608_v40 = vmax.f32 %v604_v38, 0.0 }
 0x3a3   :  { %v958_v32 = vmul.f32 -1.442695, %v687_v30  ;;  %v607_v42 = vmax.f32 %v599_v39, 0.0 }
 0x3a4   :  { %1118 = vpow2.f32 %v959_v31 }
 0x3a5   :  { %1120 = vpow2.f32 %v958_v32 }
 0x3ae   :  { %v1119_v33 = vpop.eup %1118 }
 0x3af   :  { %v1121_v34 = vpop.eup %1120  ;;  %v702_v35 = vadd.f32 1.0, %v1119_v33 }
 0x3b0   :  { %v701_v36 = vadd.f32 1.0, %v1121_v34 }
 0x3b1   :  { %1122 = vrcp.f32 %v702_v35 }
 0x3b2   :  { %1124 = vrcp.f32 %v701_v36 }
 0x3bb   :  { %v1123_v41 = vpop.eup %1122 }
 0x3bc   :  { %v1125_v43 = vpop.eup %1124  ;;  %v710_v44 = vsub.f32 1.0, %v1123_v41  ;;  %v708_v45 = vmul.f32 %v1123_v41, %v608_v40 }
 0x3bd   :  { %v707_v46 = vmul.f32 %v1125_v43, %v607_v42  ;;  %v709_v47 = vsub.f32 1.0, %v1125_v43 }
 0x3be   :  { %v712_v48 = vmul.f32 %v710_v44, %v514_v16 }
 0x3bf   :  { %v711_v49 = vmul.f32 %v709_v47, %v513_v17 }
 0x3c0   :  { %v714_v50 = vadd.f32 %v712_v48, %v708_v45 }
 0x3c1   :  { %v713_v51 = vadd.f32 %v711_v49, %v707_v46 }
 0x3c3   :  { %1060 = vmatprep.mubr.msk.f32.mxu1 %vm127_vm1, %v713_v51  ;;  %1067 = vmatprep.mubr.msk.f32.mxu0 %vm127_vm1, %v713_v51 }
 0x3c4   :  { %1061 = vmatmul.mubr.msk.f32.vlgmr.msra.gmra.mrb[6].mxu1 %vm127_vm1, %v714_v50  ;;  %1068 = vmatmul.mubr.msk.f32.vlgmr.msra.gmra.mrb[8].mxu0 %vm127_vm1, %v714_v50 }
 0x497   :  { %v1062_v53 = vpop.f32.mrb[6].mxu1  ;;  %v1069_v54 = vpop.f32.mrb[8].mxu0 }
 0x498   :  { %v892_v55 = vadd.f32 %v1069_v54, %v969_v52  ;;  %v798_v56 = vpop.f32.mrb[7].mxu1  ;;  %v886_v57 = vpop.f32.mrb[9].mxu0  ;;  %v804_v2 = vadd.f32 %v1062_v53, %v963_v1 }
 0x499   :  { %v887_v58 = vadd.f32 %v969_v52, %v886_v57  ;;  %v799_v3 = vadd.f32 %v963_v1, %v798_v56 }
 0x49a   :  { %v973_v59 = vmul.f32 -1.442695, %v892_v55  ;;  %v808_v4 = vmax.f32 %v804_v2, 0.0 }
 0x49b   :  { %v972_v60 = vmul.f32 -1.442695, %v887_v58  ;;  %v807_v6 = vmax.f32 %v799_v3, 0.0 }
 0x49c   :  { %1126 = vpow2.f32 %v973_v59 }
 0x49d   :  { %1128 = vpow2.f32 %v972_v60 }
 0x4a6   :  { %v1127_v61 = vpop.eup %1126 }
 0x4a7   :  { %v1129_v62 = vpop.eup %1128  ;;  %v902_v63 = vadd.f32 1.0, %v1127_v61 }
 0x4a8   :  { %v901_v0 = vadd.f32 1.0, %v1129_v62 }
 0x4a9   :  { %1130 = vrcp.f32 %v902_v63 }
 0x4aa   :  { %1132 = vrcp.f32 %v901_v0 }
 0x4b3   :  { %v1131_v5 = vpop.eup %1130 }
 0x4b4   :  { %v1133_v7 = vpop.eup %1132  ;;  %v908_v8 = vmul.f32 %v1131_v5, %v808_v4  ;;  %v910_v9 = vsub.f32 1.0, %v1131_v5 }
 0x4b5   :  { %v907_v10 = vmul.f32 %v1133_v7, %v807_v6  ;;  %v909_v11 = vsub.f32 1.0, %v1133_v7 }
 0x4b6   :  { %v912_v12 = vmul.f32 %v910_v9, %v714_v50 }
 0x4b7   :  { %v911_v13 = vmul.f32 %v909_v11, %v713_v51 }
 0x4b8   :  { %v914_v14 = vadd.f32 %v912_v12, %v908_v8 }
 0x4b9   :  { %v913_v15 = vadd.f32 %v911_v13, %v907_v10 }
 0x4ba   :  { %916 = vst.msk [vmem:[%s1289_s7 + $0x8] sm:$0xff] %vm127_vm1, %v914_v14 }
 0x4bb   :  { %915 = vst.msk [vmem:[%s1289_s7] sm:$0xff] %vm127_vm1, %v913_v15 }

// kernel: tacotron_forward.33
= control target key start
LH: loop header
LB: loop body
LE: loop exit
PB: predicated region body
PF: predicated region fallthrough
CT: control target
= control target key end

     0   :  { %v2047_v0 = vmov 0.0   ;;  %vm65_vm0 = vcmask 64512   ;;  %vm2048_vm1 = vmmov 0   ;;  %vm1540_vm2 = vcmask 130048   ;;  %s2049_s24 = smov 16   ;;  %s2050_s25 = smov 32   ;;  %s2437_s1 = inlined_call_operand.vmem [shape: f32[8,16], index: 1, kind: input, shape index: {}]   ;;  %s2438_s0 = inlined_call_operand.vmem [shape: f32[2,12,8], index: 0, kind: input, shape index: {}]   ;;  %s2439_s5 = inlined_call_operand.vmem [shape: f32[16,16], index: 5, kind: input, shape index: {}]   ;;  %s2440_s9 = inlined_call_operand.vmem [shape: f32[24,16], index: 9, kind: input, shape index: {}]   ;;  %s2441_s13 = inlined_call_operand.vmem [shape: f32[32,16], index: 13, kind: input, shape index: {}]   ;;  %s2442_s2 = inlined_call_operand.vmem [shape: f32[1,16], index: 2, kind: input, shape index: {}]   ;;  %s2443_s6 = inlined_call_operand.vmem [shape: f32[1,16], index: 6, kind: input, shape index: {}]   ;;  %s2444_s10 = inlined_call_operand.vmem [shape: f32[1,16], index: 10, kind: input, shape index: {}]   ;;  %s2445_s14 = inlined_call_operand.vmem [shape: f32[1,16], index: 14, kind: input, shape index: {}]   ;;  %s2446_s3 = inlined_call_operand.vmem [shape: f32[1,16], index: 3, kind: input, shape index: {}]   ;;  %s2447_s4 = inlined_call_operand.vmem [shape: f32[1,16], index: 4, kind: input, shape index: {}]   ;;  %s2448_s7 = inlined_call_operand.vmem [shape: f32[1,16], index: 7, kind: input, shape index: {}]   ;;  %s2449_s8 = inlined_call_operand.vmem [shape: f32[1,16], index: 8, kind: input, shape index: {}]   ;;  %s2450_s11 = inlined_call_operand.vmem [shape: f32[1,16], index: 11, kind: input, shape index: {}]   ;;  %s2451_s12 = inlined_call_operand.vmem [shape: f32[1,16], index: 12, kind: input, shape index: {}]   ;;  %s2452_s15 = inlined_call_operand.vmem [shape: f32[1,16], index: 15, kind: input, shape index: {}]   ;;  %s2453_s16 = inlined_call_operand.vmem [shape: f32[1,16], index: 16, kind: input, shape index: {}]   ;;  %s2454_s17 = inlined_call_operand.vmem [shape: f32[16,64], index: 17, kind: output, shape index: {}]  }
   0x1   :  { %2456 = sst [smem:[#allocation2_spill]] %s2437_s1  ;;  %1934 = vmatprep.subr.mxu0 %v2047_v0  ;;  %1939 = vmatprep.subr.mxu1 %v2047_v0  ;;  %v216_v4 = vld [vmem:[%s2439_s5 + $0x8] sm:$0xff]  ;;  %v215_v5 = vld [vmem:[%s2439_s5] sm:$0xff]  ;;  %v656_v10 = vld [vmem:[%s2440_s9 + $0x10] sm:$0xff]  ;;  %vm1739_vm3 = vcmask 1040384   ;;  %vm1808_vm4 = vcmask 261120  }
   0x2   :  { %2457 = sst [smem:[#allocation3_spill]] %s2438_s0  ;;  %s2458_s26 = sld [smem:[#allocation2_spill]]  ;;  %1936 = vmatprep.mubr.msk.f32.mxu0 %vm2048_vm1, %v2047_v0  ;;  %1941 = vmatprep.mubr.msk.f32.mxu1 %vm2048_vm1, %v2047_v0  ;;  %v514_v8 = vld [vmem:[%s2440_s9 + $0x8] sm:$0xff]  ;;  %v513_v9 = vld [vmem:[%s2440_s9] sm:$0xff]  ;;  %v1101_v16 = vld [vmem:[%s2441_s13 + $0x10] sm:$0xff]  ;;  %vm1810_vm5 = vcmask 392192  }
   0x3   :  { %s2459_s29 = sld [smem:[#allocation3_spill]]  ;;  %v957_v13 = vld [vmem:[%s2441_s13 + $0x8] sm:$0xff]  ;;  %v956_v14 = vld [vmem:[%s2441_s13] sm:$0xff]  ;;  %v1173_v17 = vld [vmem:[%s2441_s13 + $0x18] sm:$0xff]  ;;  %vm1812_vm6 = vcmask 523264  }
   0x4   :  { %v1866_v19 = vld [vmem:[%s2442_s2] ss:$0 sm:$0xff] }
   0x5   :  { %v1872_v32 = vld [vmem:[%s2443_s6] ss:$0 sm:$0xff] }
   0x8   :  { %v57_v1 = vld [vmem:[%s2458_s26] sm:$0xff] }
   0x9   :  { %v2150_v2 = vld [vmem:[%s2459_s29 + $0x2] sm:$0xff]  ;;  %v2155_v3 = vld [vmem:[%s2459_s29 + $0x12] sm:$0xff]  ;;  %1935 = vmatpush3.msra.mxu0 %v57_v1  ;;  %1940 = vmatpush3.msra.mxu1 %v57_v1 }
   0xa   :  { %1937 = vmatmul.mubr.msk.f32.vlgmr.msra.gmra.mrb[0].mxu0 %vm65_vm0, %v2150_v2  ;;  %1942 = vmatmul.mubr.msk.f32.vlgmr.msra.gmra.mrb[0].mxu1 %vm65_vm0, %v2155_v3  ;;  %v214_v6 = vld [vmem:[%s2459_s29 + $0x1] sm:$0xff]  ;;  %v2188_v7 = vld [vmem:[%s2459_s29 + $0x11] sm:$0xff] }
   0xb   :  { %1944 = vmatprep.subr.mxu0 %v2047_v0  ;;  %1949 = vmatprep.subr.mxu1 %v2047_v0  ;;  %v655_v11 = vld [vmem:[%s2459_s29 + $0x3] sm:$0xff]  ;;  %v1882_v12 = vld [vmem:[%s2459_s29 + $0x13] sm:$0xff] }
   0xc   :  { %1945 = vmatpush3.msra.mxu0 %v216_v4  ;;  %1946 = vmatprep.mubr.msk.f32.mxu0 %vm2048_vm1, %v2047_v0  ;;  %v955_v15 = vld [vmem:[%s2459_s29] sm:$0xff]  ;;  %v1889_v18 = vld [vmem:[%s2459_s29 + $0x10] sm:$0xff] }
   0xd   :  { %1950 = vmatpush3.msra.mxu1 %v215_v5  ;;  %1951 = vmatprep.mubr.msk.f32.mxu1 %vm2048_vm1, %v2047_v0 }
   0xe   :  { %1947 = vmatmul.mubr.msk.f32.vlgmr.msra.gmra.mrb[2].mxu0 %vm65_vm0, %v2150_v2  ;;  %1952 = vmatmul.mubr.msk.f32.vlgmr.msra.gmra.mrb[2].mxu1 %vm65_vm0, %v214_v6 }
   0xf   :  { %1954 = vmatprep.subr.mxu0 %v2047_v0  ;;  %1959 = vmatprep.subr.mxu1 %v2047_v0 }
  0x10   :  { %1955 = vmatpush3.msra.mxu0 %v216_v4  ;;  %1956 = vmatprep.mubr.msk.f32.mxu0 %vm2048_vm1, %v2047_v0  ;;  %v1879_v4 = vld [vmem:[%s2444_s10] ss:$0 sm:$0xff] }
  0x11   :  { %1960 = vmatpush3.msra.mxu1 %v215_v5  ;;  %1961 = vmatprep.mubr.msk.f32.mxu1 %vm2048_vm1, %v2047_v0 }
  0x12   :  { %1957 = vmatmul.mubr.msk.f32.vlgmr.msra.gmra.mrb[4].mxu0 %vm65_vm0, %v2155_v3  ;;  %1962 = vmatmul.mubr.msk.f32.vlgmr.msra.gmra.mrb[4].mxu1 %vm65_vm0, %v2188_v7 }
  0x13   :  { %1964 = vmatprep.subr.mxu0 %v2047_v0  ;;  %1969 = vmatprep.subr.mxu1 %v2047_v0 }
  0x14   :  { %1965 = vmatpush3.msra.mxu0 %v514_v8  ;;  %1966 = vmatprep.mubr.msk.f32.mxu0 %vm2048_vm1, %v2047_v0 }
  0x15   :  { %1970 = vmatpush3.msra.mxu1 %v513_v9  ;;  %1971 = vmatprep.mubr.msk.f32.mxu1 %vm2048_vm1, %v2047_v0 }
  0x16   :  { %1967 = vmatmul.mubr.msk.f32.vlgmr.msra.gmra.mrb[6].mxu0 %vm65_vm0, %v2150_v2  ;;  %1974 = vmatprep.subr.mxu0 %v2047_v0 }
  0x17   :  { %1972 = vmatmul.mubr.msk.f32.vlgmr.msra.gmra.mrb[6].mxu1 %vm65_vm0, %v214_v6  ;;  %1975 = vmatpush3.msra.mxu0 %v656_v10 }
  0x18   :  { %1979 = vmatprep.subr.mxu1 %v2047_v0  ;;  %1976 = vmatprep.mubr.msk.f32.mxu0 %vm2048_vm1, %v2047_v0 }
  0x19   :  { %1980 = vmatpush3.msra.mxu1 %v514_v8  ;;  %1981 = vmatprep.mubr.msk.f32.mxu1 %vm2048_vm1, %v2047_v0 }
  0x1a   :  { %1977 = vmatmul.mubr.msk.f32.vlgmr.msra.gmra.mrb[8].mxu0 %vm65_vm0, %v655_v11  ;;  %1984 = vmatprep.subr.mxu0 %v2047_v0 }
  0x1b   :  { %1982 = vmatmul.mubr.msk.f32.vlgmr.msra.gmra.mrb[8].mxu1 %vm65_vm0, %v2155_v3  ;;  %1985 = vmatpush3.msra.mxu0 %v513_v9 }
  0x1c   :  { %1989 = vmatprep.subr.mxu1 %v2047_v0  ;;  %1986 = vmatprep.mubr.msk.f32.mxu0 %vm2048_vm1, %v2047_v0 }
  0x1d   :  { %1990 = vmatpush3.msra.mxu1 %v656_v10  ;;  %1991 = vmatprep.mubr.msk.f32.mxu1 %vm2048_vm1, %v2047_v0 }
  0x1e   :  { %1987 = vmatmul.mubr.msk.f32.vlgmr.msra.gmra.mrb[10].mxu0 %vm65_vm0, %v2188_v7  ;;  %1994 = vmatprep.subr.mxu0 %v2047_v0 }
  0x1f   :  { %1992 = vmatmul.mubr.msk.f32.vlgmr.msra.gmra.mrb[10].mxu1 %vm65_vm0, %v1882_v12  ;;  %1995 = vmatpush3.msra.mxu0 %v957_v13 }
  0x20   :  { %1999 = vmatprep.subr.mxu1 %v2047_v0  ;;  %1996 = vmatprep.mubr.msk.f32.mxu0 %vm2048_vm1, %v2047_v0 }
  0x21   :  { %2000 = vmatpush3.msra.mxu1 %v956_v14  ;;  %2001 = vmatprep.mubr.msk.f32.mxu1 %vm2048_vm1, %v2047_v0 }
  0x22   :  { %1997 = vmatmul.mubr.msk.f32.vlgmr.msra.gmra.mrb[12].mxu0 %vm65_vm0, %v214_v6  ;;  %2004 = vmatprep.subr.mxu0 %v2047_v0 }
  0x23   :  { %2002 = vmatmul.mubr.msk.f32.vlgmr.msra.gmra.mrb[12].mxu1 %vm65_vm0, %v955_v15  ;;  %2005 = vmatpush3.msra.mxu0 %v1101_v16 }
  0x24   :  { %2009 = vmatprep.subr.mxu1 %v2047_v0  ;;  %2006 = vmatprep.mubr.msk.f32.mxu0 %vm2048_vm1, %v2047_v0 }
  0x25   :  { %2010 = vmatpush3.msra.mxu1 %v1173_v17  ;;  %2011 = vmatprep.mubr.msk.f32.mxu1 %vm2048_vm1, %v2047_v0 }
  0x26   :  { %2007 = vmatmul.mubr.msk.f32.vlgmr.msra.gmra.mrb[14].mxu0 %vm65_vm0, %v2150_v2  ;;  %2014 = vmatprep.subr.mxu0 %v2047_v0 }
  0x27   :  { %2012 = vmatmul.mubr.msk.f32.vlgmr.msra.gmra.mrb[14].mxu1 %vm65_vm0, %v655_v11  ;;  %2015 = vmatpush3.msra.mxu0 %v957_v13 }
  0x28   :  { %2019 = vmatprep.subr.mxu1 %v2047_v0  ;;  %2016 = vmatprep.mubr.msk.f32.mxu0 %vm2048_vm1, %v2047_v0 }
  0x29   :  { %2020 = vmatpush3.msra.mxu1 %v956_v14  ;;  %2021 = vmatprep.mubr.msk.f32.mxu1 %vm2048_vm1, %v2047_v0 }
  0x2a   :  { %2017 = vmatmul.mubr.msk.f32.vlgmr.msra.gmra.mrb[16].mxu0 %vm65_vm0, %v2188_v7  ;;  %2024 = vmatprep.subr.mxu0 %v2047_v0 }
  0x2b   :  { %2022 = vmatmul.mubr.msk.f32.vlgmr.msra.gmra.mrb[16].mxu1 %vm65_vm0, %v1889_v18  ;;  %2025 = vmatpush3.msra.mxu0 %v1101_v16 }
  0x2c   :  { %2029 = vmatprep.subr.mxu1 %v2047_v0  ;;  %2026 = vmatprep.mubr.msk.f32.mxu0 %vm2048_vm1, %v2047_v0 }
  0x2d   :  { %2030 = vmatpush3.msra.mxu1 %v1173_v17  ;;  %2031 = vmatprep.mubr.msk.f32.mxu1 %vm2048_vm1, %v2047_v0 }
  0x2e   :  { %2027 = vmatmul.mubr.msk.f32.vlgmr.msra.gmra.mrb[18].mxu0 %vm65_vm0, %v2155_v3 }
  0x2f   :  { %2032 = vmatmul.mubr.msk.f32.vlgmr.msra.gmra.mrb[18].mxu1 %vm65_vm0, %v1882_v12 }
  0xdd   :  { %v135_v20 = vpop.f32.mrb[0].mxu0  ;;  %v210_v21 = vpop.f32.mrb[0].mxu1 }
  0xde   :  { %v2296_v22 = vadd.f32 %v1866_v19, %v135_v20  ;;  %v2298_v23 = vadd.f32 %v1866_v19, %v210_v21  ;;  %v1938_v24 = vpop.f32.mrb[1].mxu0  ;;  %v1943_v25 = vpop.f32.mrb[1].mxu1 }
  0xe0   :  { %v1541_v26 = vsel %vm1540_vm2, %v2296_v22, 0.0  ;;  %v1549_v27 = vsel %vm1540_vm2, %v2298_v23, 0.0 }
  0xe1   :  { %v1542_v28 = vrot.slane %v1541_v26, 4  ;;  %v1550_v29 = vrot.slane %v1549_v27, 4  ;;  %v283_v30 = vpop.f32.mrb[2].mxu0  ;;  %v356_v31 = vpop.f32.mrb[2].mxu1 }
  0xe2   :  { %v357_v33 = vadd.f32 %v356_v31, %v283_v30  ;;  %v1948_v34 = vpop.f32.mrb[3].mxu0  ;;  %v1953_v35 = vpop.f32.mrb[3].mxu1 }
  0xe3   :  { %v1543_v36 = vadd.f32 %v1542_v28, %v1541_v26  ;;  %v1551_v37 = vadd.f32 %v1550_v29, %v1549_v27 }
  0xe4   :  { %v2307_v38 = vadd.f32 %v1872_v32, %v357_v33 }
  0xe5   :  { %v1544_v39 = vrot.slane %v1543_v36, 2  ;;  %v1552_v40 = vrot.slane %v1551_v37, 2  ;;  %v435_v41 = vpop.f32.mrb[4].mxu0  ;;  %v508_v42 = vpop.f32.mrb[4].mxu1 }
  0xe6   :  { %v1587_v43 = vsel %vm1540_vm2, %v2307_v38, 0.0  ;;  %v509_v44 = vadd.f32 %v508_v42, %v435_v41  ;;  %v1958_v45 = vpop.f32.mrb[5].mxu0  ;;  %v1963_v46 = vpop.f32.mrb[5].mxu1 }
  0xe7   :  { %v1545_v47 = vadd.f32 %v1544_v39, %v1543_v36  ;;  %v1553_v48 = vadd.f32 %v1552_v40, %v1551_v37  ;;  %v1588_v49 = vrot.slane %v1587_v43, 4 }
  0xe8   :  { %v2311_v50 = vadd.f32 %v1872_v32, %v509_v44 }
  0xe9   :  { %v1546_v51 = vrot.slane %v1545_v47, 1  ;;  %v1554_v52 = vrot.slane %v1553_v48, 1  ;;  %v1589_v53 = vadd.f32 %v1588_v49, %v1587_v43  ;;  %v581_v54 = vpop.f32.mrb[6].mxu0 }
  0xea   :  { %v1595_v55 = vsel %vm1540_vm2, %v2311_v50, 0.0  ;;  %v1968_v56 = vpop.f32.mrb[7].mxu0  ;;  %v651_v57 = vpop.f32.mrb[6].mxu1 }
  0xeb   :  { %v1547_v58 = vadd.f32 %v1546_v51, %v1545_v47  ;;  %v1555_v59 = vadd.f32 %v1554_v52, %v1553_v48  ;;  %v1590_v60 = vrot.slane %v1589_v53, 2  ;;  %v1596_v61 = vrot.slane %v1595_v55, 4  ;;  %v1973_v62 = vpop.f32.mrb[7].mxu1 }
  0xec   :  { %v652_v63 = vadd.f32 %v651_v57, %v581_v54 }
  0xed   :  { %v1556_v0 = vadd.f32 %v1555_v59, %v1547_v58  ;;  %v1591_v1 = vadd.f32 %v1590_v60, %v1589_v53  ;;  %v1597_v2 = vadd.f32 %v1596_v61, %v1595_v55  ;;  %v726_v3 = vpop.f32.mrb[8].mxu0  ;;  %v1888_v61 = vld [vmem:[%s2445_s14] ss:$0 sm:$0xff] }
  0xee   :  { %v730_v5 = vadd.f32 %v726_v3, %v652_v63  ;;  %v1978_v6 = vpop.f32.mrb[9].mxu0  ;;  %v805_v7 = vpop.f32.mrb[8].mxu1 }
  0xef   :  { %v2318_v8 = vmul.f32 0.0625, %v1556_v0  ;;  %v1598_v9 = vrot.slane %v1597_v2, 2  ;;  %v1983_v10 = vpop.f32.mrb[9].mxu1  ;;  %v1592_v11 = vrot.slane %v1591_v1, 1 }
  0xf0   :  { %v2320_v12 = vadd.f32 %v1879_v4, %v730_v5 }
  0xf1   :  { %v1559_v13 = vsub.f32 %v2296_v22, %v2318_v8  ;;  %v1569_v14 = vsub.f32 %v2298_v23, %v2318_v8  ;;  %v1599_v15 = vadd.f32 %v1598_v9, %v1597_v2  ;;  %v875_v16 = vpop.f32.mrb[10].mxu0  ;;  %v1593_v28 = vadd.f32 %v1592_v11, %v1591_v1 }
  0xf2   :  { %v1632_v17 = vsel %vm1540_vm2, %v2320_v12, 0.0  ;;  %v876_v18 = vadd.f32 %v875_v16, %v805_v7  ;;  %v1988_v19 = vpop.f32.mrb[11].mxu0  ;;  %v949_v20 = vpop.f32.mrb[10].mxu1 }
  0xf3   :  { %v1560_v21 = vmul.f32 %v1559_v13, %v1559_v13  ;;  %v1570_v24 = vmul.f32 %v1569_v14, %v1569_v14  ;;  %v1600_v25 = vrot.slane %v1599_v15, 1  ;;  %v1633_v26 = vrot.slane %v1632_v17, 4  ;;  %v1993_v27 = vpop.f32.mrb[11].mxu1 }
  0xf4   :  { %v953_v29 = vadd.f32 %v949_v20, %v876_v18 }
  0xf5   :  { %v1561_v30 = vsel %vm1540_vm2, %v1560_v21, 0.0  ;;  %v1571_v31 = vsel %vm1540_vm2, %v1570_v24, 0.0  ;;  %v1601_v32 = vadd.f32 %v1600_v25, %v1599_v15  ;;  %v1634_v33 = vadd.f32 %v1633_v26, %v1632_v17  ;;  %v1024_v34 = vpop.f32.mrb[12].mxu0 }
  0xf6   :  { %v1562_v35 = vrot.slane %v1561_v30, 4  ;;  %v1572_v36 = vrot.slane %v1571_v31, 4  ;;  %v2330_v37 = vadd.f32 %v1879_v4, %v953_v29  ;;  %v1998_v39 = vpop.f32.mrb[13].mxu0  ;;  %v1097_v40 = vpop.f32.mrb[12].mxu1 }
  0xf7   :  { %v1602_v41 = vadd.f32 %v1601_v32, %v1593_v28  ;;  %v1635_v42 = vrot.slane %v1634_v33, 2  ;;  %v1098_v43 = vadd.f32 %v1097_v40, %v1024_v34  ;;  %v2003_v44 = vpop.f32.mrb[13].mxu1 }
  0xf8   :  { %v1563_v45 = vadd.f32 %v1562_v35, %v1561_v30  ;;  %v1573_v46 = vadd.f32 %v1572_v36, %v1571_v31  ;;  %v1640_v47 = vsel %vm1540_vm2, %v2330_v37, 0.0 }
  0xf9   :  { %v2334_v48 = vmul.f32 0.0625, %v1602_v41  ;;  %v1641_v49 = vrot.slane %v1640_v47, 4  ;;  %v1168_v51 = vpop.f32.mrb[14].mxu0  ;;  %v1636_v54 = vadd.f32 %v1635_v42, %v1634_v33 }
  0xfa   :  { %v1564_v52 = vrot.slane %v1563_v45, 2  ;;  %v1574_v53 = vrot.slane %v1573_v46, 2  ;;  %v1172_v55 = vadd.f32 %v1168_v51, %v1098_v43  ;;  %v2008_v56 = vpop.f32.mrb[15].mxu0  ;;  %v1240_v57 = vpop.f32.mrb[14].mxu1 }
  0xfb   :  { %v1604_v58 = vsub.f32 %v2307_v38, %v2334_v48  ;;  %v1614_v59 = vsub.f32 %v2311_v50, %v2334_v48  ;;  %v1642_v60 = vadd.f32 %v1641_v49, %v1640_v47  ;;  %v2013_v62 = vpop.f32.mrb[15].mxu1  ;;  %v1637_v9 = vrot.slane %v1636_v54, 1 }
  0xfc   :  { %v1565_v63 = vadd.f32 %v1564_v52, %v1563_v45  ;;  %v1575_v0 = vadd.f32 %v1574_v53, %v1573_v46  ;;  %v1244_v1 = vadd.f32 %v1240_v57, %v1172_v55  ;;  %v1722_v56 = vlaneseq }
  0xfd   :  { %v1605_v2 = vmul.f32 %v1604_v58, %v1604_v58  ;;  %v1615_v3 = vmul.f32 %v1614_v59, %v1614_v59  ;;  %v1643_v4 = vrot.slane %v1642_v60, 2  ;;  %v1320_v5 = vpop.f32.mrb[16].mxu0  ;;  %v1638_v34 = vadd.f32 %v1637_v9, %v1636_v54 }
  0xfe   :  { %v1566_v6 = vrot.slane %v1565_v63, 1  ;;  %v1576_v7 = vrot.slane %v1575_v0, 1  ;;  %v2343_v10 = vadd.f32 %v1888_v61, %v1244_v1  ;;  %v2018_v11 = vpop.f32.mrb[17].mxu0  ;;  %v1393_v13 = vpop.f32.mrb[16].mxu1 }
  0xff   :  { %v1606_v14 = vsel %vm1540_vm2, %v1605_v2, 0.0  ;;  %v1616_v15 = vsel %vm1540_vm2, %v1615_v3, 0.0  ;;  %v1644_v16 = vadd.f32 %v1643_v4, %v1642_v60  ;;  %v1394_v17 = vadd.f32 %v1393_v13, %v1320_v5  ;;  %v2023_v18 = vpop.f32.mrb[17].mxu1 }
 0x100   :  { %v1567_v19 = vadd.f32 %v1566_v6, %v1565_v63  ;;  %v1577_v20 = vadd.f32 %v1576_v7, %v1575_v0  ;;  %v1607_v21 = vrot.slane %v1606_v14, 4  ;;  %v1617_v24 = vrot.slane %v1616_v15, 4 }
 0x101   :  { %v1645_v25 = vrot.slane %v1644_v16, 1  ;;  %v1677_v26 = vsel %vm1540_vm2, %v2343_v10, 0.0  ;;  %v1463_v27 = vpop.f32.mrb[18].mxu0  ;;  %v1723_v4 = vshrl.u32 %v1722_v56, 7 }
 0x102   :  { %v1578_v28 = vadd.f32 %v1577_v20, %v1567_v19  ;;  %v1608_v29 = vadd.f32 %v1607_v21, %v1606_v14  ;;  %v1618_v30 = vadd.f32 %v1617_v24, %v1616_v15  ;;  %v1678_v31 = vrot.slane %v1677_v26, 4  ;;  %v2028_v32 = vpop.f32.mrb[19].mxu0  ;;  %v1534_v33 = vpop.f32.mrb[18].mxu1  ;;  %v1582_v15 = vld [vmem:[%s2446_s3] sm:$0x1] }
 0x103   :  { %v1646_v35 = vadd.f32 %v1645_v25, %v1644_v16  ;;  %v1467_v36 = vadd.f32 %v1463_v27, %v1394_v17  ;;  %v2033_v39 = vpop.f32.mrb[19].mxu1  ;;  %v2364_v20 = vsub.s32 0, %v1723_v4 }
 0x104   :  { %v1579_v40 = vmul.f32 0.0625, %v1578_v28  ;;  %v1609_v41 = vrot.slane %v1608_v29, 2  ;;  %v1619_v42 = vrot.slane %v1618_v30, 2  ;;  %v1679_v43 = vadd.f32 %v1678_v31, %v1677_v26  ;;  %v1584_v28 = vld [vmem:[%s2447_s4] sm:$0x1] }
 0x105   :  { %v1647_v44 = vadd.f32 %v1646_v35, %v1638_v34  ;;  %v1538_v45 = vadd.f32 %v1534_v33, %v1467_v36 }
 0x106   :  { %v1580_v46 = vadd.f32 1e-05, %v1579_v40  ;;  %v1610_v47 = vadd.f32 %v1609_v41, %v1608_v29  ;;  %v1620_v49 = vadd.f32 %v1619_v42, %v1618_v30  ;;  %v1680_v52 = vrot.slane %v1679_v43, 2 }
 0x107   :  { %v2349_v51 = vmul.f32 0.0625, %v1647_v44  ;;  %v2351_v53 = vadd.f32 %v1888_v61, %v1538_v45 }
 0x108   :  { %2039 = vrsqrt.f32 %v1580_v46  ;;  %v1611_v55 = vrot.slane %v1610_v47, 1  ;;  %v1621_v54 = vrot.slane %v1620_v49, 1  ;;  %v1681_v61 = vadd.f32 %v1680_v52, %v1679_v43 }
 0x109   :  { %v1649_v57 = vsub.f32 %v2320_v12, %v2349_v51  ;;  %v1659_v58 = vsub.f32 %v2330_v37, %v2349_v51  ;;  %v1685_v59 = vsel %vm1540_vm2, %v2351_v53, 0.0 }
 0x10a   :  { %v1612_v60 = vadd.f32 %v1611_v55, %v1610_v47  ;;  %v1622_v62 = vadd.f32 %v1621_v54, %v1620_v49  ;;  %v1686_v63 = vrot.slane %v1685_v59, 4  ;;  %v1682_v14 = vrot.slane %v1681_v61, 1 }
 0x10b   :  { %v1650_v0 = vmul.f32 %v1649_v57, %v1649_v57  ;;  %v1660_v1 = vmul.f32 %v1659_v58, %v1659_v58 }
 0x10c   :  { %v1623_v2 = vadd.f32 %v1622_v62, %v1612_v60  ;;  %v1687_v3 = vadd.f32 %v1686_v63, %v1685_v59  ;;  %v1683_v31 = vadd.f32 %v1682_v14, %v1681_v61 }
 0x10d   :  { %v1651_v5 = vsel %vm1540_vm2, %v1650_v0, 0.0  ;;  %v1661_v6 = vsel %vm1540_vm2, %v1660_v1, 0.0  ;;  %v1629_v1 = vld [vmem:[%s2449_s8] sm:$0x1] }
 0x10e   :  { %v1624_v7 = vmul.f32 0.0625, %v1623_v2  ;;  %v1652_v9 = vrot.slane %v1651_v5, 4  ;;  %v1662_v11 = vrot.slane %v1661_v6, 4  ;;  %v1688_v13 = vrot.slane %v1687_v3, 2 }
 0x110   :  { %v1625_v16 = vadd.f32 1e-05, %v1624_v7  ;;  %v1653_v17 = vadd.f32 %v1652_v9, %v1651_v5  ;;  %v1663_v18 = vadd.f32 %v1662_v11, %v1661_v6  ;;  %v1689_v19 = vadd.f32 %v1688_v13, %v1687_v3 }
 0x112   :  { %v2040_v21 = vpop.eup %2039  ;;  %2041 = vrsqrt.f32 %v1625_v16  ;;  %v1654_v24 = vrot.slane %v1653_v17, 2  ;;  %v1664_v25 = vrot.slane %v1663_v18, 2  ;;  %v1690_v26 = vrot.slane %v1689_v19, 1 }
 0x113   :  { %v1583_v27 = vmul.f32 %v2040_v21, %v1582_v15 }
 0x114   :  { %v1655_v29 = vadd.f32 %v1654_v24, %v1653_v17  ;;  %v1665_v30 = vadd.f32 %v1664_v25, %v1663_v18  ;;  %v1691_v32 = vadd.f32 %v1690_v26, %v1689_v19 }
 0x115   :  { %v1585_v33 = vmul.f32 %v1583_v27, %v2318_v8  ;;  %v1725_v34 = vrot.slane %v1583_v27, %v2364_v20  ;;  %v1627_v8 = vld [vmem:[%s2448_s7] sm:$0x1] }
 0x116   :  { %v1656_v35 = vrot.slane %v1655_v29, 1  ;;  %v1666_v36 = vrot.slane %v1665_v30, 1  ;;  %v1692_v39 = vadd.f32 %v1691_v32, %v1683_v31 }
 0x117   :  { %v1586_v40 = vsub.f32 %v1584_v28, %v1585_v33  ;;  %v1726_v41 = vmul.f32 %v1725_v34, %v2296_v22  ;;  %v1814_v42 = vmul.f32 %v1725_v34, %v2298_v23 }
 0x118   :  { %v1657_v43 = vadd.f32 %v1656_v35, %v1655_v29  ;;  %v1667_v44 = vadd.f32 %v1666_v36, %v1665_v30  ;;  %v2373_v45 = vmul.f32 0.0625, %v1692_v39  ;;  %v1672_v30 = vld [vmem:[%s2450_s11] sm:$0x1] }
 0x119   :  { %v1731_v46 = vrot.slane %v1586_v40, %v2364_v20 }
 0x11a   :  { %v1668_v47 = vadd.f32 %v1667_v44, %v1657_v43  ;;  %v1694_v49 = vsub.f32 %v2343_v10, %v2373_v45  ;;  %v1704_v52 = vsub.f32 %v2351_v53, %v2373_v45 }
 0x11b   :  { %v1815_v22 = vadd.f32 %v1814_v42, %v1731_v46  ;;  %v1733_v55 = vadd.f32 %v1731_v46, %v1726_v41  ;;  %v1674_v46 = vld [vmem:[%s2451_s12] sm:$0x1] }
 0x11c   :  { %v2042_v23 = vpop.eup %2041  ;;  %v1669_v54 = vmul.f32 0.0625, %v1668_v47  ;;  %v1695_v56 = vmul.f32 %v1694_v49, %v1694_v49  ;;  %v1705_v57 = vmul.f32 %v1704_v52, %v1704_v52 }
 0x11d   :  { %v1816_v58 = vmax.f32 %v1815_v22, 0.0  ;;  %v1628_v59 = vmul.f32 %v2042_v23, %v1627_v8  ;;  %v1734_v60 = vmax.f32 %v1733_v55, 0.0 }
 0x11e   :  { %v1670_v62 = vadd.f32 1e-05, %v1669_v54  ;;  %v1696_v63 = vsel %vm1540_vm2, %v1695_v56, 0.0  ;;  %v1706_v0 = vsel %vm1540_vm2, %v1705_v57, 0.0 }
 0x11f   :  { %v1744_v61 = vrot.slane %v1628_v59, %v2364_v20  ;;  %v1697_v2 = vrot.slane %v1696_v63, 4  ;;  %v1707_v3 = vrot.slane %v1706_v0, 4  ;;  %v1630_v4 = vmul.f32 %v1628_v59, %v2334_v48 }
 0x120   :  { %2043 = vrsqrt.f32 %v1670_v62  ;;  %v1736_v5 = vrot.slane %v1734_v60, 7  ;;  %v1818_v6 = vrot.slane %v1816_v58, 7 }
 0x121   :  { %v1822_v7 = vmul.f32 %v1744_v61, %v2311_v50  ;;  %v1698_v9 = vadd.f32 %v1697_v2, %v1696_v63  ;;  %v1708_v11 = vadd.f32 %v1707_v3, %v1706_v0  ;;  %v1631_v13 = vsub.f32 %v1629_v1, %v1630_v4  ;;  %v1719_v1 = vld [vmem:[%s2453_s16] sm:$0x1] }
 0x122   :  { %v1745_v14 = vmul.f32 %v1744_v61, %v2307_v38  ;;  %v1738_v15 = vmax.f32 %v1734_v60, %v1736_v5  ;;  %v1820_v16 = vmax.f32 %v1816_v58, %v1818_v6 }
 0x123   :  { %v1699_v17 = vrot.slane %v1698_v9, 2  ;;  %v1709_v18 = vrot.slane %v1708_v11, 2  ;;  %v1750_v19 = vrot.slane %v1631_v13, %v2364_v20 }
 0x124   :  { %v2394_v21 = vsel %vm1739_vm3, %v1734_v60, %v1738_v15  ;;  %v2397_v48 = vsel %vm1739_vm3, %v1816_v58, %v1820_v16 }
 0x125   :  { %v1700_v24 = vadd.f32 %v1699_v17, %v1698_v9  ;;  %v1710_v25 = vadd.f32 %v1709_v18, %v1708_v11  ;;  %v1752_v50 = vadd.f32 %v1750_v19, %v1745_v14  ;;  %v1823_v26 = vadd.f32 %v1822_v7, %v1750_v19 }
 0x127   :  { %v1701_v27 = vrot.slane %v1700_v24, 1  ;;  %v1711_v28 = vrot.slane %v1710_v25, 1  ;;  %v1753_v29 = vmax.f32 %v1752_v50, 0.0  ;;  %v1824_v38 = vmax.f32 %v1823_v26, 0.0 }
 0x129   :  { %v1702_v31 = vadd.f32 %v1701_v27, %v1700_v24  ;;  %v1712_v32 = vadd.f32 %v1711_v28, %v1710_v25  ;;  %v1755_v33 = vrot.slane %v1753_v29, 7  ;;  %v1826_v34 = vrot.slane %v1824_v38, 7 }
 0x12a   :  { %v2044_v35 = vpop.eup %2043 }
 0x12b   :  { %v1673_v36 = vmul.f32 %v2044_v35, %v1672_v30  ;;  %v1713_v39 = vadd.f32 %v1712_v32, %v1702_v31  ;;  %v1757_v40 = vmax.f32 %v1753_v29, %v1755_v33  ;;  %v1828_v44 = vmax.f32 %v1824_v38, %v1826_v34 }
 0x12d   :  { %v1762_v41 = vrot.slane %v1673_v36, %v2364_v20  ;;  %v1714_v42 = vmul.f32 0.0625, %v1713_v39  ;;  %v1758_v43 = vsel %vm1739_vm3, %v1753_v29, %v1757_v40  ;;  %v1675_v8 = vmul.f32 %v1673_v36, %v2349_v51 }
 0x12e   :  { %1796 = vrot.lane.b32.xlu0 %v1758_v43, %s2049_s24  ;;  %v1829_v55 = vsel %vm1739_vm3, %v1824_v38, %v1828_v44 }
 0x12f   :  { %v1830_v47 = vmul.f32 %v1762_v41, %v2330_v37  ;;  %v1715_v49 = vadd.f32 1e-05, %v1714_v42  ;;  %v1763_v52 = vmul.f32 %v1762_v41, %v2320_v12  ;;  %v1676_v22 = vsub.f32 %v1674_v46, %v1675_v8  ;;  %v1717_v37 = vld [vmem:[%s2452_s15] sm:$0x1]  ;;  %s2051_s15 = smov 48  }
 0x131   :  { %2045 = vrsqrt.f32 %v1715_v49  ;;  %v1768_v23 = vrot.slane %v1676_v22, %v2364_v20 }
 0x132   :  { %1847 = vrot.lane.b32.xlu0 %v1829_v55, %s2049_s24 }
 0x133   :  { %v1770_v54 = vadd.f32 %v1768_v23, %v1763_v52  ;;  %v1831_v56 = vadd.f32 %v1830_v47, %v1768_v23 }
 0x135   :  { %v1771_v57 = vmax.f32 %v1770_v54, 0.0  ;;  %v1832_v58 = vmax.f32 %v1831_v56, 0.0 }
 0x137   :  { %v1773_v59 = vrot.slane %v1771_v57, 7  ;;  %v1834_v60 = vrot.slane %v1832_v58, 7 }
 0x139   :  { %v1775_v51 = vmax.f32 %v1771_v57, %v1773_v59  ;;  %v1836_v0 = vmax.f32 %v1832_v58, %v1834_v60 }
 0x13b   :  { %v2046_v62 = vpop.eup %2045  ;;  %v1776_v63 = vsel %vm1739_vm3, %v1771_v57, %v1775_v51  ;;  %v1837_v4 = vsel %vm1739_vm3, %v1832_v58, %v1836_v0 }
 0x13c   :  { %v1718_v12 = vmul.f32 %v2046_v62, %v1717_v37  ;;  %1800 = vrot.lane.b32.xlu1 %v1776_v63, %s2050_s25 }
 0x13e   :  { %v1780_v61 = vrot.slane %v1718_v12, %v2364_v20  ;;  %v1720_v2 = vmul.f32 %v1718_v12, %v2373_v45 }
 0x140   :  { %v1838_v3 = vmul.f32 %v1780_v61, %v2351_v53  ;;  %v1721_v5 = vsub.f32 %v1719_v1, %v1720_v2  ;;  %v1781_v6 = vmul.f32 %v1780_v61, %v2343_v10  ;;  %1851 = vrot.lane.b32.xlu1 %v1837_v4, %s2050_s25 }
 0x142   :  { %v1786_v7 = vrot.slane %v1721_v5, %v2364_v20 }
 0x144   :  { %v1839_v9 = vadd.f32 %v1838_v3, %v1786_v7  ;;  %v1788_v11 = vadd.f32 %v1786_v7, %v1781_v6 }
 0x146   :  { %v1840_v13 = vmax.f32 %v1839_v9, 0.0  ;;  %v1789_v14 = vmax.f32 %v1788_v11, 0.0 }
 0x148   :  { %v1842_v15 = vrot.slane %v1840_v13, 7  ;;  %v1791_v16 = vrot.slane %v1789_v14, 7 }
 0x14a   :  { %v1844_v17 = vmax.f32 %v1840_v13, %v1842_v15  ;;  %v1793_v18 = vmax.f32 %v1789_v14, %v1791_v16 }
 0x14c   :  { %v1845_v45 = vsel %vm1739_vm3, %v1840_v13, %v1844_v17  ;;  %v1794_v53 = vsel %vm1739_vm3, %v1789_v14, %v1793_v18 }
 0x14d   :  { %1855 = vrot.lane.b32.xlu1 %v1845_v45, %s2051_s15  ;;  %1804 = vrot.lane.b32.xlu0 %v1794_v53, %s2051_s15 }
 0x1a0   :  { %v1797_v19 = vpop.permute.xlu0 %1796 }
 0x1a1   :  { %v1807_v20 = vsel %vm1540_vm2, %v2394_v21, %v1797_v19 }
 0x1a4   :  { %v1848_v24 = vpop.permute.xlu0 %1847 }
 0x1a5   :  { %v1858_v50 = vsel %vm1540_vm2, %v2397_v48, %v1848_v24 }
 0x1ae   :  { %v1801_v10 = vpop.permute.xlu1 %1800 }
 0x1af   :  { %v1809_v26 = vsel %vm1808_vm4, %v1807_v20, %v1801_v10 }
 0x1b2   :  { %v1852_v25 = vpop.permute.xlu1 %1851 }
 0x1b3   :  { %v1859_v27 = vsel %vm1808_vm4, %v1858_v50, %v1852_v25 }
 0x1bf   :  { %v1856_v28 = vpop.permute.xlu1 %1855  ;;  %v1805_v29 = vpop.permute.xlu0 %1804 }
 0x1c0   :  { %v1860_v38 = vsel %vm1810_vm5, %v1859_v27, %v1856_v28  ;;  %v1811_v30 = vsel %vm1810_vm5, %v1809_v26, %v1805_v29 }
 0x1c1   :  { %1861 = vst.msk [vmem:[%s2454_s17 + $0x8] sm:$0xff] %vm1812_vm6, %v1860_v38  ;;  %1813 = vst.msk [vmem:[%s2454_s17] sm:$0xff] %vm1812_vm6, %v1811_v30 }

// kernel: tacotron_forward.39
= control target key start
LH: loop header
LB: loop body
LE: loop exit
PB: predicated region body
PF: predicated region fallthrough
CT: control target
= control target key end

     0   :  { %vm27_vm0 = vcmask 261120   ;;  %vm109_vm1 = vcmask 130048   ;;  %s191_s1 = inlined_call_operand.vmem [shape: f32[32,16], index: 1, kind: input, shape index: {}]   ;;  %s192_s0 = inlined_call_operand.vmem [shape: f32[16,32], index: 0, kind: input, shape index: {}]   ;;  %s193_s2 = inlined_call_operand.vmem [shape: f32[1,16], index: 2, kind: input, shape index: {}]   ;;  %s194_s3 = inlined_call_operand.vmem [shape: f32[16,16], index: 3, kind: output, shape index: {}]  }
   0x1   :  { %v16_v0 = vld [vmem:[%s191_s1] sm:$0xff]  ;;  %v17_v1 = vld [vmem:[%s191_s1 + $0x8] sm:$0xff]  ;;  %v18_v2 = vld [vmem:[%s191_s1 + $0x10] sm:$0xff] }
   0x2   :  { %v136_v3 = vpack.c.bf16 %v17_v1, %v16_v0  ;;  %v19_v4 = vld [vmem:[%s191_s1 + $0x18] sm:$0xff]  ;;  %v14_v5 = vld [vmem:[%s192_s0] sm:$0xff]  ;;  %v15_v7 = vld [vmem:[%s192_s0 + $0x8] sm:$0xff] }
   0x3   :  { %v140_v6 = vpack.c.bf16 %v19_v4, %v18_v2  ;;  %133 = vmatprep.mubr.msk.f32.mxu0 %vm27_vm0, %v14_v5  ;;  %v116_v8 = vld [vmem:[%s193_s2] ss:$0 sm:$0xff] }
   0x4   :  { %137 = vmatprep.subr.bf16.mxu0 %v136_v3 }
   0x5   :  { %139 = vmatpush3.bf16.msra.mxu0 %v136_v3 }
   0x6   :  { %141 = vmatprep.subr.bf16.mxu0 %v140_v6 }
   0x9   :  { %143 = vmatpush3.bf16.msra.mxu0 %v140_v6 }
   0xc   :  { %134 = vmatmul.mubr.msk.f32.vlgmr.msra.gmra.mrb[0].mxu0 %vm27_vm0, %v15_v7 }
  0xdf   :  { %v135_v9 = vpop.f32.mrb[0].mxu0 }
  0xe0   :  { %v106_v10 = vadd.f32 %v135_v9, %v116_v8  ;;  %v100_v11 = vpop.f32.mrb[1].mxu0 }
  0xe1   :  { %v101_v12 = vadd.f32 %v116_v8, %v100_v11 }
  0xe2   :  { %111 = vst.msk [vmem:[%s194_s3 + $0x8] sm:$0xff] %vm109_vm1, %v106_v10 }
  0xe3   :  { %110 = vst.msk [vmem:[%s194_s3] sm:$0xff] %vm109_vm1, %v101_v12 }

</bundles_post_ra>
